<compile_context>
chip_gen: v5e
topology: v5e:2x2
jax: 0.10.0
libtpu: 0.0.40
codegen_flags: <defaults>
</compile_context>

<pallas_src>
import jax
import jax.numpy as jnp
from jax.experimental import pallas as pl
from jax.experimental.pallas import tpu as pltpu

KSIZE = 7      # conv kernel taps
CPAD = 128     # lane-padded channel count for every conv layer


# --------------------------------------------------------------------------
# Pallas kernels
# --------------------------------------------------------------------------

def conv_branch_kernel(x_ref, w1_ref, b1_ref, w2_ref, b2_ref, w3_ref, b3_ref, o_ref):
    """Whole conv branch (3 x [Conv1d(7,valid) + ReLU + MaxPool1d(3,3)]) for one row.

    x_ref : (1, 1, L, 128)     input row, channels zero-padded to 128 lanes
    w*_ref: (1, 7*128, 128)    im2col-folded, zero-padded weights
    b*_ref: (1, 1, 128)
    o_ref : (1, 1, Lp3, 128)   final pooled activations (lane-dense)
    """
    h = x_ref[0, 0]                                                     # (L, 128)
    for w_ref, b_ref in ((w1_ref, b1_ref), (w2_ref, b2_ref), (w3_ref, b3_ref)):
        seq = h.shape[0]
        lout = seq - (KSIZE - 1)
        lp = lout // 3
        # im2col: concat the 7 shifted slices along lanes -> ONE MXU matmul
        # (contraction 7*128 = 896) instead of 7 tiny matmuls.
        cols = jnp.concatenate([h[k:k + lout, :] for k in range(KSIZE)], axis=-1)
        acc = jnp.dot(cols, w_ref[0], preferred_element_type=jnp.float32)  # (lout, 128)
        acc = jnp.maximum(acc + b_ref[0], 0.0)                             # bias + ReLU
        # MaxPool1d(3, 3), vectorized: sliding window max of 3 contiguous slices,
        # then stride-3 row selection as a one-hot matmul (exact row pick).
        t = jnp.maximum(jnp.maximum(acc[0:lout - 2, :], acc[1:lout - 1, :]),
                        acc[2:lout, :])                                    # (lout-2, 128)
        r_idx = jax.lax.broadcasted_iota(jnp.int32, (lp, lout - 2), 0)
        c_idx = jax.lax.broadcasted_iota(jnp.int32, (lp, lout - 2), 1)
        sel = (c_idx == 3 * r_idx).astype(jnp.float32)                     # (lp, lout-2)
        h = jnp.dot(sel, t, preferred_element_type=jnp.float32)            # (lp, 128)
    o_ref[0, 0] = h                                                        # one dense store


def fc_kernel(x_ref, w1_ref, b1_ref, w2_ref, b2_ref, w3_ref, b3_ref, o_ref):
    """Flatten(ed) features -> Linear -> Dropout -> Linear -> Dropout -> Linear(1024,1)."""
    # TODO(synk): nn.Dropout reproduced as eval-mode identity (no-op at inference).
    h = jnp.dot(x_ref[...], w1_ref[...], preferred_element_type=jnp.float32) + b1_ref[...]
    h = jnp.dot(h, w2_ref[...], preferred_element_type=jnp.float32) + b2_ref[...]
    # Final Linear(1024, 1) as elementwise mul + lane reduction: keeps the
    # 1-lane-output layer off the MXU entirely.
    o_ref[...] = jnp.sum(h * w3_ref[...], axis=-1, keepdims=True) + b3_ref[...]


# --------------------------------------------------------------------------
# Forward wrapper (2 pallas_calls total)
# --------------------------------------------------------------------------

def tcnn_forward(cell_ncl, drug_ncl, params):
    """cell_ncl: (B, 1, L); drug_ncl: (B, 28, L) in PyTorch NCW -> (2B, 1)."""
    B, _, L = cell_ncl.shape

    # One-time layout prep on tiny tensors (plain XLA): NCW -> NLC, pad lanes to 128.
    def to_nlc_padded(x_ncl):
        x = jnp.transpose(x_ncl, (0, 2, 1))
        return jnp.pad(x, ((0, 0), (0, 0), (0, CPAD - x.shape[-1])))

    x_all = jnp.stack([to_nlc_padded(cell_ncl), to_nlc_padded(drug_ncl)], axis=0)  # (2,B,L,128)

    # Conv weights: fold taps into the contraction dim, pad Cin/Cout to 128 lanes.
    def pad_conv(w, b):
        k, cin, cout = w.shape
        wp = jnp.zeros((k, CPAD, CPAD), jnp.float32).at[:, :cin, :cout].set(w)
        bp = jnp.zeros((1, CPAD), jnp.float32).at[:, :cout].set(b)
        return wp.reshape(k * CPAD, CPAD), bp

    conv_w, conv_b = [], []
    for layer in range(3):
        wc, bc = pad_conv(*params["cell_conv"][layer])
        wd, bd = pad_conv(*params["drug_conv"][layer])
        conv_w.append(jnp.stack([wc, wd], axis=0))   # (2, 7*128, 128)  branch-indexed
        conv_b.append(jnp.stack([bc, bd], axis=0))   # (2, 1, 128)

    lp3 = L
    for _ in range(3):
        lp3 = (lp3 - (KSIZE - 1)) // 3

    # -------- single pallas_call for BOTH branches and ALL conv layers --------
    conv_out = pl.pallas_call(
        conv_branch_kernel,
        out_shape=jax.ShapeDtypeStruct((2, B, lp3, CPAD), jnp.float32),
        grid=(2, B),
        in_specs=[
            pl.BlockSpec((1, 1, L, CPAD), lambda g, b: (g, b, 0, 0)),
            pl.BlockSpec((1, KSIZE * CPAD, CPAD), lambda g, b: (g, 0, 0)),
            pl.BlockSpec((1, 1, CPAD), lambda g, b: (g, 0, 0)),
            pl.BlockSpec((1, KSIZE * CPAD, CPAD), lambda g, b: (g, 0, 0)),
            pl.BlockSpec((1, 1, CPAD), lambda g, b: (g, 0, 0)),
            pl.BlockSpec((1, KSIZE * CPAD, CPAD), lambda g, b: (g, 0, 0)),
            pl.BlockSpec((1, 1, CPAD), lambda g, b: (g, 0, 0)),
        ],
        out_specs=pl.BlockSpec((1, 1, lp3, CPAD), lambda g, b: (g, b, 0, 0)),
        compiler_params=pltpu.CompilerParams(
            dimension_semantics=("parallel", "parallel"),   # branch axis -> v7x 2-TC split
            vmem_limit_bytes=32 * 1024 * 1024),
    )(x_all, conv_w[0], conv_b[0], conv_w[1], conv_b[1], conv_w[2], conv_b[2])

    # -------- FC stage: no activation transpose; permute w1's rows once instead --------
    w1, b1, w2, b2, w3, b3 = params["fc"]
    cout_last = params["cell_conv"][-1][0].shape[-1]                    # 60 real channels
    w1k = w1.reshape(cout_last, lp3, w1.shape[1]).transpose(1, 0, 2)    # (lp3, 60, 1024)
    w1k = jnp.pad(w1k, ((0, 0), (0, CPAD - cout_last), (0, 0)))
    w1k = w1k.reshape(lp3 * CPAD, w1.shape[1])                          # rows match (l, c_pad) flatten

    feat = conv_out.reshape(2 * B, lp3 * CPAD)   # rows = [cell batch..., drug batch...] == torch.cat dim 0
    n = 2 * B
    n_pad = ((n + 7) // 8) * 8                   # pad rows to a sublane multiple for the MXU
    feat = jnp.pad(feat, ((0, n_pad - n), (0, 0)))

    # No grid -> whole arrays live single-buffered in VMEM (w2 ~4 MiB, no accidental 2x buffering).
    out = pl.pallas_call(
        fc_kernel,
        out_shape=jax.ShapeDtypeStruct((n_pad, 1), jnp.float32),
        compiler_params=pltpu.CompilerParams(vmem_limit_bytes=32 * 1024 * 1024),
    )(feat, w1k, b1, w2, b2, jnp.transpose(w3), b3)
    return out[:n]


# --------------------------------------------------------------------------
# Deterministic parameter init (synthetic; logical layouts)
# --------------------------------------------------------------------------

def init_params(key, length):
    def conv_p(k, cin, cout, ksz=7, scale=0.1):
        kw, kb = jax.random.split(k)
        w = scale * jax.random.normal(kw, (ksz, cin, cout), jnp.float32)   # (K, Cin, Cout)
        b = scale * jax.random.normal(kb, (1, cout), jnp.float32)
        return w, b

    def lin_p(k, fin, fout, scale):
        kw, kb = jax.random.split(k)
        w = scale * jax.random.normal(kw, (fin, fout), jnp.float32)        # (in, out)
        b = scale * jax.random.normal(kb, (1, fout), jnp.float32)
        return w, b

    keys = jax.random.split(key, 9)
    drug_conv = [conv_p(keys[0], 28, 40), conv_p(keys[1], 40, 80), conv_p(keys[2], 80, 60)]
    cell_conv = [conv_p(keys[3], 1, 40, scale=0.3), conv_p(keys[4], 40, 80), conv_p(keys[5], 80, 60)]

    lp = length
    for _ in range(3):
        lp = (lp - 6) // 3
    feat = 60 * lp                                   # LazyLinear in_features

    w1, b1 = lin_p(keys[6], feat, 1024, 0.05)
    w2, b2 = lin_p(keys[7], 1024, 1024, 0.03)
    w3, b3 = lin_p(keys[8], 1024, 1, 0.05)
    return {"drug_conv": drug_conv, "cell_conv": cell_conv,
            "fc": (w1, b1, w2, b2, w3, b3)}


# --------------------------------------------------------------------------
# Pure-JAX reference (different code path) for correctness checking
# --------------------------------------------------------------------------

def reference_forward(cell, drug, params):
    hi = jax.lax.Precision.HIGHEST

    def branch(x, convs):
        h = x
        for w, b in convs:
            wt = jnp.transpose(w, (2, 1, 0))         # -> (Cout, Cin, K), PyTorch layout
            y = jax.lax.conv_general_dilated(
                h, wt, window_strides=(1,), padding="VALID",
                dimension_numbers=("NCH", "OIH", "NCH"), precision=hi)
            y = jnp.maximum(y + b.reshape(1, -1, 1), 0.0)
            lp = y.shape[-1] // 3
            y = y[:, :, :lp * 3].reshape(y.shape[0], y.shape[1], lp, 3).max(axis=-1)
            h = y
        return h

    xc2 = branch(cell, params["cell_conv"])
    xd2 = branch(drug, params["drug_conv"])
    x_all = jnp.concatenate([xc2, xd2], axis=0)
    x_flat = x_all.reshape(x_all.shape[0], -1)       # channel-major Flatten (PyTorch order)
    w1, b1, w2, b2, w3, b3 = params["fc"]
    h = jnp.dot(x_flat, w1, precision=hi) + b1
    h = jnp.dot(h, w2, precision=hi) + b2
    return jnp.dot(h, w3, precision=hi) + b3


# --------------------------------------------------------------------------

if __name__ == "__main__":
    B, LENGTH = 2, 150                               # 150 -> 48 -> 14 -> 2 after 3x(conv7+pool3)
    key = jax.random.PRNGKey(0)
    kc, kd, kp = jax.random.split(key, 3)

    cell = jax.random.normal(kc, (B, 1, LENGTH), jnp.float32)    # PyTorch NCW
    drug = jax.random.normal(kd, (B, 28, LENGTH), jnp.float32)   # PyTorch NCW
    params = init_params(kp, LENGTH)

    out = jax.jit(tcnn_forward)(cell, drug, params)
    out = jax.block_until_ready(out)
    assert out.shape == (2 * B, 1), out.shape

    ref = reference_forward(cell, drug, params)
    assert jnp.allclose(out, ref, atol=2e-2, rtol=2e-2), (out, ref)

    print("KERNEL_OK")
</pallas_src>

<mosaic_0001>
module attributes {stable_mosaic.version = 11 : i64} {
  func.func @conv_branch_kernel(%arg0: i32, %arg1: i32, %arg2: memref<1x1x150x128xf32, #tpu.memory_space<vmem>>, %arg3: memref<1x896x128xf32, #tpu.memory_space<vmem>>, %arg4: memref<1x1x128xf32, #tpu.memory_space<vmem>>, %arg5: memref<1x896x128xf32, #tpu.memory_space<vmem>>, %arg6: memref<1x1x128xf32, #tpu.memory_space<vmem>>, %arg7: memref<1x896x128xf32, #tpu.memory_space<vmem>>, %arg8: memref<1x1x128xf32, #tpu.memory_space<vmem>>, %arg9: memref<1x1x2x128xf32, #tpu.memory_space<vmem>>) attributes {dimension_semantics = [#tpu.dimension_semantics<parallel>, #tpu.dimension_semantics<parallel>], iteration_bounds = array<i64: 2, 2>, scalar_prefetch = 0 : i64, scratch_operands = 0 : i64, tpu.core_type = #tpu.core_type<tc>, window_params = [{transform_indices = @transform_0, window_bounds = array<i64: 1, 1, 150, 128>}, {transform_indices = @transform_1, window_bounds = array<i64: 1, 896, 128>}, {transform_indices = @transform_2, window_bounds = array<i64: 1, 1, 128>}, {transform_indices = @transform_3, window_bounds = array<i64: 1, 896, 128>}, {transform_indices = @transform_4, window_bounds = array<i64: 1, 1, 128>}, {transform_indices = @transform_5, window_bounds = array<i64: 1, 896, 128>}, {transform_indices = @transform_6, window_bounds = array<i64: 1, 1, 128>}, {transform_indices = @transform_7, window_bounds = array<i64: 1, 1, 2, 128>}]} {
    %c0 = arith.constant 0 : index
    %c0_0 = arith.constant 0 : index
    %c0_1 = arith.constant 0 : index
    %c0_2 = arith.constant 0 : index
    %0 = vector.load %arg2[%c0, %c0_0, %c0_1, %c0_2] : memref<1x1x150x128xf32, #tpu.memory_space<vmem>>, vector<1x1x150x128xf32>
    %1 = vector.shape_cast %0 : vector<1x1x150x128xf32> to vector<150x128xf32>
    %2 = vector.extract_strided_slice %1 {offsets = [0, 0], sizes = [144, 128], strides = [1, 1]} : vector<150x128xf32> to vector<144x128xf32>
    %3 = vector.extract_strided_slice %1 {offsets = [1, 0], sizes = [144, 128], strides = [1, 1]} : vector<150x128xf32> to vector<144x128xf32>
    %4 = vector.extract_strided_slice %1 {offsets = [2, 0], sizes = [144, 128], strides = [1, 1]} : vector<150x128xf32> to vector<144x128xf32>
    %5 = vector.extract_strided_slice %1 {offsets = [3, 0], sizes = [144, 128], strides = [1, 1]} : vector<150x128xf32> to vector<144x128xf32>
    %6 = vector.extract_strided_slice %1 {offsets = [4, 0], sizes = [144, 128], strides = [1, 1]} : vector<150x128xf32> to vector<144x128xf32>
    %7 = vector.extract_strided_slice %1 {offsets = [5, 0], sizes = [144, 128], strides = [1, 1]} : vector<150x128xf32> to vector<144x128xf32>
    %8 = vector.extract_strided_slice %1 {offsets = [6, 0], sizes = [144, 128], strides = [1, 1]} : vector<150x128xf32> to vector<144x128xf32>
    %9 = tpu.concatenate %2, %3, %4, %5, %6, %7, %8 in 1 : vector<144x128xf32>, vector<144x128xf32>, vector<144x128xf32>, vector<144x128xf32>, vector<144x128xf32>, vector<144x128xf32>, vector<144x128xf32> -> vector<144x896xf32>
    %c0_3 = arith.constant 0 : index
    %c0_4 = arith.constant 0 : index
    %c0_5 = arith.constant 0 : index
    %10 = vector.load %arg3[%c0_3, %c0_4, %c0_5] : memref<1x896x128xf32, #tpu.memory_space<vmem>>, vector<1x896x128xf32>
    %11 = vector.shape_cast %10 : vector<1x896x128xf32> to vector<896x128xf32>
    %cst = arith.constant dense<0.000000e+00> : vector<144x128xf32>
    %12 = tpu.matmul %9, %11, %cst {dimension_numbers = #tpu.dot_dimension_numbers<[1], [0], [0], [1], [0, 0, 1, 1], [], []>} : vector<144x896xf32>, vector<896x128xf32>, vector<144x128xf32> -> vector<144x128xf32>
    %c0_6 = arith.constant 0 : index
    %c0_7 = arith.constant 0 : index
    %c0_8 = arith.constant 0 : index
    %13 = vector.load %arg4[%c0_6, %c0_7, %c0_8] : memref<1x1x128xf32, #tpu.memory_space<vmem>>, vector<1x1x128xf32>
    %14 = vector.shape_cast %13 : vector<1x1x128xf32> to vector<1x128xf32>
    %15 = vector.broadcast %14 : vector<1x128xf32> to vector<144x128xf32>
    %16 = arith.addf %12, %15 : vector<144x128xf32>
    %cst_9 = arith.constant 0.000000e+00 : f32
    %17 = vector.broadcast %cst_9 : f32 to vector<144x128xf32>
    %18 = arith.maximumf %16, %17 : vector<144x128xf32>
    %19 = vector.extract_strided_slice %18 {offsets = [0, 0], sizes = [142, 128], strides = [1, 1]} : vector<144x128xf32> to vector<142x128xf32>
    %20 = vector.extract_strided_slice %18 {offsets = [1, 0], sizes = [142, 128], strides = [1, 1]} : vector<144x128xf32> to vector<142x128xf32>
    %21 = arith.maximumf %19, %20 : vector<142x128xf32>
    %22 = vector.extract_strided_slice %18 {offsets = [2, 0], sizes = [142, 128], strides = [1, 1]} : vector<144x128xf32> to vector<142x128xf32>
    %23 = arith.maximumf %21, %22 : vector<142x128xf32>
    %24 = tpu.iota {dimensions = array<i32: 0>} : vector<48x142xi32>
    %25 = tpu.iota {dimensions = array<i32: 1>} : vector<48x142xi32>
    %c3_i32 = arith.constant 3 : i32
    %26 = vector.broadcast %c3_i32 : i32 to vector<48x142xi32>
    %27 = arith.muli %26, %24 : vector<48x142xi32>
    %28 = arith.cmpi eq, %25, %27 : vector<48x142xi32>
    %29 = arith.extui %28 : vector<48x142xi1> to vector<48x142xi32>
    %30 = arith.sitofp %29 : vector<48x142xi32> to vector<48x142xf32>
    %cst_10 = arith.constant dense<0.000000e+00> : vector<48x128xf32>
    %31 = tpu.matmul %30, %23, %cst_10 {dimension_numbers = #tpu.dot_dimension_numbers<[1], [0], [0], [1], [0, 0, 1, 1], [], []>} : vector<48x142xf32>, vector<142x128xf32>, vector<48x128xf32> -> vector<48x128xf32>
    %32 = vector.extract_strided_slice %31 {offsets = [0, 0], sizes = [42, 128], strides = [1, 1]} : vector<48x128xf32> to vector<42x128xf32>
    %33 = vector.extract_strided_slice %31 {offsets = [1, 0], sizes = [42, 128], strides = [1, 1]} : vector<48x128xf32> to vector<42x128xf32>
    %34 = vector.extract_strided_slice %31 {offsets = [2, 0], sizes = [42, 128], strides = [1, 1]} : vector<48x128xf32> to vector<42x128xf32>
    %35 = vector.extract_strided_slice %31 {offsets = [3, 0], sizes = [42, 128], strides = [1, 1]} : vector<48x128xf32> to vector<42x128xf32>
    %36 = vector.extract_strided_slice %31 {offsets = [4, 0], sizes = [42, 128], strides = [1, 1]} : vector<48x128xf32> to vector<42x128xf32>
    %37 = vector.extract_strided_slice %31 {offsets = [5, 0], sizes = [42, 128], strides = [1, 1]} : vector<48x128xf32> to vector<42x128xf32>
    %38 = vector.extract_strided_slice %31 {offsets = [6, 0], sizes = [42, 128], strides = [1, 1]} : vector<48x128xf32> to vector<42x128xf32>
    %39 = tpu.concatenate %32, %33, %34, %35, %36, %37, %38 in 1 : vector<42x128xf32>, vector<42x128xf32>, vector<42x128xf32>, vector<42x128xf32>, vector<42x128xf32>, vector<42x128xf32>, vector<42x128xf32> -> vector<42x896xf32>
    %c0_11 = arith.constant 0 : index
    %c0_12 = arith.constant 0 : index
    %c0_13 = arith.constant 0 : index
    %40 = vector.load %arg5[%c0_11, %c0_12, %c0_13] : memref<1x896x128xf32, #tpu.memory_space<vmem>>, vector<1x896x128xf32>
    %41 = vector.shape_cast %40 : vector<1x896x128xf32> to vector<896x128xf32>
    %cst_14 = arith.constant dense<0.000000e+00> : vector<42x128xf32>
    %42 = tpu.matmul %39, %41, %cst_14 {dimension_numbers = #tpu.dot_dimension_numbers<[1], [0], [0], [1], [0, 0, 1, 1], [], []>} : vector<42x896xf32>, vector<896x128xf32>, vector<42x128xf32> -> vector<42x128xf32>
    %c0_15 = arith.constant 0 : index
    %c0_16 = arith.constant 0 : index
    %c0_17 = arith.constant 0 : index
    %43 = vector.load %arg6[%c0_15, %c0_16, %c0_17] : memref<1x1x128xf32, #tpu.memory_space<vmem>>, vector<1x1x128xf32>
    %44 = vector.shape_cast %43 : vector<1x1x128xf32> to vector<1x128xf32>
    %45 = vector.broadcast %44 : vector<1x128xf32> to vector<42x128xf32>
    %46 = arith.addf %42, %45 : vector<42x128xf32>
    %cst_18 = arith.constant 0.000000e+00 : f32
    %47 = vector.broadcast %cst_18 : f32 to vector<42x128xf32>
    %48 = arith.maximumf %46, %47 : vector<42x128xf32>
    %49 = vector.extract_strided_slice %48 {offsets = [0, 0], sizes = [40, 128], strides = [1, 1]} : vector<42x128xf32> to vector<40x128xf32>
    %50 = vector.extract_strided_slice %48 {offsets = [1, 0], sizes = [40, 128], strides = [1, 1]} : vector<42x128xf32> to vector<40x128xf32>
    %51 = arith.maximumf %49, %50 : vector<40x128xf32>
    %52 = vector.extract_strided_slice %48 {offsets = [2, 0], sizes = [40, 128], strides = [1, 1]} : vector<42x128xf32> to vector<40x128xf32>
    %53 = arith.maximumf %51, %52 : vector<40x128xf32>
    %54 = tpu.iota {dimensions = array<i32: 0>} : vector<14x40xi32>
    %55 = tpu.iota {dimensions = array<i32: 1>} : vector<14x40xi32>
    %c3_i32_19 = arith.constant 3 : i32
    %56 = vector.broadcast %c3_i32_19 : i32 to vector<14x40xi32>
    %57 = arith.muli %56, %54 : vector<14x40xi32>
    %58 = arith.cmpi eq, %55, %57 : vector<14x40xi32>
    %59 = arith.extui %58 : vector<14x40xi1> to vector<14x40xi32>
    %60 = arith.sitofp %59 : vector<14x40xi32> to vector<14x40xf32>
    %cst_20 = arith.constant dense<0.000000e+00> : vector<14x128xf32>
    %61 = tpu.matmul %60, %53, %cst_20 {dimension_numbers = #tpu.dot_dimension_numbers<[1], [0], [0], [1], [0, 0, 1, 1], [], []>} : vector<14x40xf32>, vector<40x128xf32>, vector<14x128xf32> -> vector<14x128xf32>
    %62 = vector.extract_strided_slice %61 {offsets = [0, 0], sizes = [8, 128], strides = [1, 1]} : vector<14x128xf32> to vector<8x128xf32>
    %63 = vector.extract_strided_slice %61 {offsets = [1, 0], sizes = [8, 128], strides = [1, 1]} : vector<14x128xf32> to vector<8x128xf32>
    %64 = vector.extract_strided_slice %61 {offsets = [2, 0], sizes = [8, 128], strides = [1, 1]} : vector<14x128xf32> to vector<8x128xf32>
    %65 = vector.extract_strided_slice %61 {offsets = [3, 0], sizes = [8, 128], strides = [1, 1]} : vector<14x128xf32> to vector<8x128xf32>
    %66 = vector.extract_strided_slice %61 {offsets = [4, 0], sizes = [8, 128], strides = [1, 1]} : vector<14x128xf32> to vector<8x128xf32>
    %67 = vector.extract_strided_slice %61 {offsets = [5, 0], sizes = [8, 128], strides = [1, 1]} : vector<14x128xf32> to vector<8x128xf32>
    %68 = vector.extract_strided_slice %61 {offsets = [6, 0], sizes = [8, 128], strides = [1, 1]} : vector<14x128xf32> to vector<8x128xf32>
    %69 = tpu.concatenate %62, %63, %64, %65, %66, %67, %68 in 1 : vector<8x128xf32>, vector<8x128xf32>, vector<8x128xf32>, vector<8x128xf32>, vector<8x128xf32>, vector<8x128xf32>, vector<8x128xf32> -> vector<8x896xf32>
    %c0_21 = arith.constant 0 : index
    %c0_22 = arith.constant 0 : index
    %c0_23 = arith.constant 0 : index
    %70 = vector.load %arg7[%c0_21, %c0_22, %c0_23] : memref<1x896x128xf32, #tpu.memory_space<vmem>>, vector<1x896x128xf32>
    %71 = vector.shape_cast %70 : vector<1x896x128xf32> to vector<896x128xf32>
    %cst_24 = arith.constant dense<0.000000e+00> : vector<8x128xf32>
    %72 = tpu.matmul %69, %71, %cst_24 {dimension_numbers = #tpu.dot_dimension_numbers<[1], [0], [0], [1], [0, 0, 1, 1], [], []>} : vector<8x896xf32>, vector<896x128xf32>, vector<8x128xf32> -> vector<8x128xf32>
    %c0_25 = arith.constant 0 : index
    %c0_26 = arith.constant 0 : index
    %c0_27 = arith.constant 0 : index
    %73 = vector.load %arg8[%c0_25, %c0_26, %c0_27] : memref<1x1x128xf32, #tpu.memory_space<vmem>>, vector<1x1x128xf32>
    %74 = vector.shape_cast %73 : vector<1x1x128xf32> to vector<1x128xf32>
    %75 = vector.broadcast %74 : vector<1x128xf32> to vector<8x128xf32>
    %76 = arith.addf %72, %75 : vector<8x128xf32>
    %cst_28 = arith.constant 0.000000e+00 : f32
    %77 = vector.broadcast %cst_28 : f32 to vector<8x128xf32>
    %78 = arith.maximumf %76, %77 : vector<8x128xf32>
    %79 = vector.extract_strided_slice %78 {offsets = [0, 0], sizes = [6, 128], strides = [1, 1]} : vector<8x128xf32> to vector<6x128xf32>
    %80 = vector.extract_strided_slice %78 {offsets = [1, 0], sizes = [6, 128], strides = [1, 1]} : vector<8x128xf32> to vector<6x128xf32>
    %81 = arith.maximumf %79, %80 : vector<6x128xf32>
    %82 = vector.extract_strided_slice %78 {offsets = [2, 0], sizes = [6, 128], strides = [1, 1]} : vector<8x128xf32> to vector<6x128xf32>
    %83 = arith.maximumf %81, %82 : vector<6x128xf32>
    %84 = tpu.iota {dimensions = array<i32: 0>} : vector<2x6xi32>
    %85 = tpu.iota {dimensions = array<i32: 1>} : vector<2x6xi32>
    %c3_i32_29 = arith.constant 3 : i32
    %86 = vector.broadcast %c3_i32_29 : i32 to vector<2x6xi32>
    %87 = arith.muli %86, %84 : vector<2x6xi32>
    %88 = arith.cmpi eq, %85, %87 : vector<2x6xi32>
    %89 = arith.extui %88 : vector<2x6xi1> to vector<2x6xi32>
    %90 = arith.sitofp %89 : vector<2x6xi32> to vector<2x6xf32>
    %cst_30 = arith.constant dense<0.000000e+00> : vector<2x128xf32>
    %91 = tpu.matmul %90, %83, %cst_30 {dimension_numbers = #tpu.dot_dimension_numbers<[1], [0], [0], [1], [0, 0, 1, 1], [], []>} : vector<2x6xf32>, vector<6x128xf32>, vector<2x128xf32> -> vector<2x128xf32>
    %c0_31 = arith.constant 0 : index
    %c0_32 = arith.constant 0 : index
    %c0_33 = arith.constant 0 : index
    %c0_34 = arith.constant 0 : index
    %92 = vector.load %arg9[%c0_31, %c0_32, %c0_33, %c0_34] : memref<1x1x2x128xf32, #tpu.memory_space<vmem>>, vector<1x1x2x128xf32>
    %93 = vector.shape_cast %92 : vector<1x1x2x128xf32> to vector<2x128xf32>
    %94 = vector.shape_cast %91 : vector<2x128xf32> to vector<1x1x2x128xf32>
    tpu.vector_store %arg9[%c0_31, %c0_32, %c0_33, %c0_34], %94 {strides = array<i32>} : memref<1x1x2x128xf32, #tpu.memory_space<vmem>>, vector<1x1x2x128xf32>,
    return
  }
  func.func @transform_0(%arg0: i32, %arg1: i32) -> (i32, i32, i32, i32) {
    %c0_i32 = arith.constant 0 : i32
    %c0_i32_0 = arith.constant 0 : i32
    %c0_i32_1 = arith.constant 0 : i32
    return %arg0, %arg1, %c0_i32, %c0_i32_0 : i32, i32, i32, i32
  }
  func.func @transform_1(%arg0: i32, %arg1: i32) -> (i32, i32, i32) {
    %c0_i32 = arith.constant 0 : i32
    %c0_i32_0 = arith.constant 0 : i32
    %c0_i32_1 = arith.constant 0 : i32
    return %arg0, %c0_i32, %c0_i32_0 : i32, i32, i32
  }
  func.func @transform_2(%arg0: i32, %arg1: i32) -> (i32, i32, i32) {
    %c0_i32 = arith.constant 0 : i32
    %c0_i32_0 = arith.constant 0 : i32
    %c0_i32_1 = arith.constant 0 : i32
    return %arg0, %c0_i32, %c0_i32_0 : i32, i32, i32
  }
  func.func @transform_3(%arg0: i32, %arg1: i32) -> (i32, i32, i32) {
    %c0_i32 = arith.constant 0 : i32
    %c0_i32_0 = arith.constant 0 : i32
    %c0_i32_1 = arith.constant 0 : i32
    return %arg0, %c0_i32, %c0_i32_0 : i32, i32, i32
  }
  func.func @transform_4(%arg0: i32, %arg1: i32) -> (i32, i32, i32) {
    %c0_i32 = arith.constant 0 : i32
    %c0_i32_0 = arith.constant 0 : i32
    %c0_i32_1 = arith.constant 0 : i32
    return %arg0, %c0_i32, %c0_i32_0 : i32, i32, i32
  }
  func.func @transform_5(%arg0: i32, %arg1: i32) -> (i32, i32, i32) {
    %c0_i32 = arith.constant 0 : i32
    %c0_i32_0 = arith.constant 0 : i32
    %c0_i32_1 = arith.constant 0 : i32
    return %arg0, %c0_i32, %c0_i32_0 : i32, i32, i32
  }
  func.func @transform_6(%arg0: i32, %arg1: i32) -> (i32, i32, i32) {
    %c0_i32 = arith.constant 0 : i32
    %c0_i32_0 = arith.constant 0 : i32
    %c0_i32_1 = arith.constant 0 : i32
    return %arg0, %c0_i32, %c0_i32_0 : i32, i32, i32
  }
  func.func @transform_7(%arg0: i32, %arg1: i32) -> (i32, i32, i32, i32) {
    %c0_i32 = arith.constant 0 : i32
    %c0_i32_0 = arith.constant 0 : i32
    %c0_i32_1 = arith.constant 0 : i32
    return %arg0, %arg1, %c0_i32, %c0_i32_0 : i32, i32, i32, i32
  }
}

module attributes {stable_mosaic.version = 11 : i64} {
  func.func @fc_kernel(%arg0: memref<8x256xf32, #tpu.memory_space<vmem>>, %arg1: memref<256x1024xf32, #tpu.memory_space<vmem>>, %arg2: memref<1x1024xf32, #tpu.memory_space<vmem>>, %arg3: memref<1024x1024xf32, #tpu.memory_space<vmem>>, %arg4: memref<1x1024xf32, #tpu.memory_space<vmem>>, %arg5: memref<1x1024xf32, #tpu.memory_space<vmem>>, %arg6: memref<1x1xf32, #tpu.memory_space<vmem>>, %arg7: memref<8x1xf32, #tpu.memory_space<vmem>>) attributes {dimension_semantics = [], scalar_prefetch = 0 : i64, scratch_operands = 0 : i64, tpu.core_type = #tpu.core_type<tc>} {
    %c0 = arith.constant 0 : index
    %c0_0 = arith.constant 0 : index
    %0 = vector.load %arg0[%c0, %c0_0] : memref<8x256xf32, #tpu.memory_space<vmem>>, vector<8x256xf32>
    %c0_1 = arith.constant 0 : index
    %c0_2 = arith.constant 0 : index
    %1 = vector.load %arg1[%c0_1, %c0_2] : memref<256x1024xf32, #tpu.memory_space<vmem>>, vector<256x1024xf32>
    %cst = arith.constant dense<0.000000e+00> : vector<8x1024xf32>
    %2 = tpu.matmul %0, %1, %cst {dimension_numbers = #tpu.dot_dimension_numbers<[1], [0], [0], [1], [0, 0, 1, 1], [], []>} : vector<8x256xf32>, vector<256x1024xf32>, vector<8x1024xf32> -> vector<8x1024xf32>
    %c0_3 = arith.constant 0 : index
    %c0_4 = arith.constant 0 : index
    %3 = vector.load %arg2[%c0_3, %c0_4] : memref<1x1024xf32, #tpu.memory_space<vmem>>, vector<1x1024xf32>
    %4 = vector.broadcast %3 : vector<1x1024xf32> to vector<8x1024xf32>
    %5 = arith.addf %2, %4 : vector<8x1024xf32>
    %c0_5 = arith.constant 0 : index
    %c0_6 = arith.constant 0 : index
    %6 = vector.load %arg3[%c0_5, %c0_6] : memref<1024x1024xf32, #tpu.memory_space<vmem>>, vector<1024x1024xf32>
    %cst_7 = arith.constant dense<0.000000e+00> : vector<8x1024xf32>
    %7 = tpu.matmul %5, %6, %cst_7 {dimension_numbers = #tpu.dot_dimension_numbers<[1], [0], [0], [1], [0, 0, 1, 1], [], []>} : vector<8x1024xf32>, vector<1024x1024xf32>, vector<8x1024xf32> -> vector<8x1024xf32>
    %c0_8 = arith.constant 0 : index
    %c0_9 = arith.constant 0 : index
    %8 = vector.load %arg4[%c0_8, %c0_9] : memref<1x1024xf32, #tpu.memory_space<vmem>>, vector<1x1024xf32>
    %9 = vector.broadcast %8 : vector<1x1024xf32> to vector<8x1024xf32>
    %10 = arith.addf %7, %9 : vector<8x1024xf32>
    %c0_10 = arith.constant 0 : index
    %c0_11 = arith.constant 0 : index
    %11 = vector.load %arg5[%c0_10, %c0_11] : memref<1x1024xf32, #tpu.memory_space<vmem>>, vector<1x1024xf32>
    %12 = vector.broadcast %11 : vector<1x1024xf32> to vector<8x1024xf32>
    %13 = arith.mulf %10, %12 : vector<8x1024xf32>
    %cst_12 = arith.constant dense<0.000000e+00> : vector<8xf32>
    %14 = vector.multi_reduction <add>, %13, %cst_12 [1] : vector<8x1024xf32> to vector<8xf32>
    %15 = vector.shape_cast %14 : vector<8xf32> to vector<8x1xf32>
    %c0_13 = arith.constant 0 : index
    %c0_14 = arith.constant 0 : index
    %16 = vector.load %arg6[%c0_13, %c0_14] : memref<1x1xf32, #tpu.memory_space<vmem>>, vector<1x1xf32>
    %17 = vector.broadcast %16 : vector<1x1xf32> to vector<8x1xf32>
    %18 = arith.addf %15, %17 : vector<8x1xf32>
    %c0_15 = arith.constant 0 : index
    %c0_16 = arith.constant 0 : index
    %19 = vector.load %arg7[%c0_15, %c0_16] : memref<8x1xf32, #tpu.memory_space<vmem>>, vector<8x1xf32>
    tpu.vector_store %arg7[%c0_15, %c0_16], %18 {strides = array<i32>} : memref<8x1xf32, #tpu.memory_space<vmem>>, vector<8x1xf32>,
    return
  }
}

</mosaic_0001>

<bundles_post_ra>
// kernel: tcnn_forward.2
= control target key start
LH: loop header
LB: loop body
LE: loop exit
PB: predicated region body
PF: predicated region fallthrough
CT: control target
= control target key end

     0   :  { %s2918_s24 = smov 0   ;;  %s2920_s25 = smov 0   ;;  %s4134_s0 = inlined_call_operand.vmem [shape: f32[2,2,150,128], index: 0, kind: input, shape index: {}]   ;;  %s4135_s1 = inlined_call_operand.vmem [shape: f32[2,896,128], index: 1, kind: input, shape index: {}]   ;;  %s4136_s2 = inlined_call_operand.vmem [shape: f32[2,1,128], index: 2, kind: input, shape index: {}]   ;;  %s4137_s3 = inlined_call_operand.vmem [shape: f32[2,896,128], index: 3, kind: input, shape index: {}]   ;;  %s4138_s4 = inlined_call_operand.vmem [shape: f32[2,1,128], index: 4, kind: input, shape index: {}]   ;;  %s4139_s5 = inlined_call_operand.vmem [shape: f32[2,896,128], index: 5, kind: input, shape index: {}]   ;;  %s4140_s6 = inlined_call_operand.vmem [shape: f32[2,1,128], index: 6, kind: input, shape index: {}]   ;;  %s4141_s7 = inlined_call_operand.vmem [shape: f32[2,2,2,128], index: 7, kind: output, shape index: {}]  }
   0x1   :  { %s2922_s26 = smov 0   ;;  %s2924_s27 = smov 0  }
   0x2   :  { %s2926_s28 = smov 0  }
   0x3 LB: > { %s26_s29 = sadd.s32 1, %s2866_s26  ;;  %s29_s30 = sadd.s32 1, %s2870_s27  ;;  %s2874_s28 = sphi %s2926_s28, %s17_s28   ;;  %s2870_s27 = sphi %s2924_s27, %s4173_s27   ;;  %s2866_s26 = sphi %s2922_s26, %s4172_s26   ;;  %s2862_s25 = sphi %s2920_s25, %s4171_s25   ;;  %s2858_s24 = sphi %s2918_s24, %s4170_s24  }
   0x4   : > { %p27_p0 = scmp.ge.s32.totalorder %s26_s29, 2  ;;  %p2750_p1 = scmp.ge.s32.totalorder %s2874_s28, 1 }
   0x5   : > { %p311_p2 = scmp.lt.s32.totalorder %s2874_s28, 5 }
   0x6   : > { %s4175_s29 = smov (%p27_p0, %s26_s29), 0  ;;  %s4177_s30 = smov (!%p27_p0, %s29_s30), %s2870_s27 }
   0x7   : > { %p312_p3 = pnand %p2750_p1, %p311_p2  ;;  %p31_p4 = scmp.ge.s32.totalorder %s4177_s30, 2 }
   0x9   : > { %s4179_s30 = smov (%p31_p4, %s4177_s30), 0  ;;  %315 = sbr.rel (%p312_p3) target bundleno = 1362 (0x552), region = 48 }
   0xe   : > { %p374_p5 = scmp.lt.s32.totalorder %s2862_s25, 1  ;;  %p376_p6 = scmp.lt.s32.totalorder %s2858_s24, 1  ;;  %vm509_vm0 = vcmask 1045504   ;;  %vm453_vm1 = vcmask 1046528   ;;  %vm565_vm2 = vcmask 1044480   ;;  %vm621_vm3 = vcmask 1043456  }
   0xf   : > { %vm733_vm4 = vcmask 1041408   ;;  %vm677_vm5 = vcmask 1042432   ;;  %vm1632_vm13 = vcmask 113664  }
  0x10   : > { %s4181_s25 = smov (!%p374_p5, %s2862_s25), 1  ;;  %s4183_s24 = smov (!%p376_p6, %s2858_s24), 1 }
  0x11   : > { %s2953_s8 = smul.u32 896, %s4181_s25  ;;  %s390_s21 = scalar_lea.vmem %s4136_s2, %s4181_s25 }
  0x12   : > { %s2788_s12 = smul.u32 19, %s4183_s24  ;;  %s2755_s9 = sshll.u32 %s4181_s25, 1 }
  0x13   : > { %s2959_s11 = scalar_lea.vmem %s4135_s1, %s2953_s8  ;;  %s2789_s13 = smul.u32 38, %s4181_s25 }
  0x14   : > { %v804_v0 = vld [vmem:[%s2959_s11 + $0x78] sm:$0xff]  ;;  %v803_v2 = vld [vmem:[%s2959_s11 + $0x70] sm:$0xff]  ;;  %v802_v6 = vld [vmem:[%s2959_s11 + $0x68] sm:$0xff]  ;;  %s3961_s19 = scalar_lea.vmem %s4139_s5, %s2953_s8  ;;  %s412_s10 = sadd.s32 %s2755_s9, %s4183_s24 }
  0x15   : > { %v836_v1 = vld [vmem:[%s2959_s11 + $0x178] sm:$0xff]  ;;  %905 = vmatpush.msra.mxu0 %v804_v0  ;;  %v835_v4 = vld [vmem:[%s2959_s11 + $0x170] sm:$0xff]  ;;  %v834_v8 = vld [vmem:[%s2959_s11 + $0x168] sm:$0xff]  ;;  %s380_s14 = sadd.s32 %s2789_s13, %s2788_s12 }
  0x16   : > { %1047 = vmatpush.msra.mxu2 %v836_v1  ;;  %v820_v3 = vld [vmem:[%s2959_s11 + $0xf8] sm:$0xff]  ;;  %v819_v7 = vld [vmem:[%s2959_s11 + $0xf0] sm:$0xff]  ;;  %v818_v10 = vld [vmem:[%s2959_s11 + $0xe8] sm:$0xff]  ;;  %s2751_s15 = sshll.u32 %s380_s14, 3  ;;  %s398_s14 = scalar_lea.vmem %s4138_s4, %s4181_s25 }
  0x17   : > { %v852_v5 = vld [vmem:[%s2959_s11 + $0x1f8] sm:$0xff]  ;;  %976 = vmatpush.msra.mxu1 %v820_v3  ;;  %906 = vmatpush.msra.mxu0 %v803_v2  ;;  %v851_v9 = vld [vmem:[%s2959_s11 + $0x1f0] sm:$0xff]  ;;  %v801_v11 = vld [vmem:[%s2959_s11 + $0x60] sm:$0xff]  ;;  %s3016_s18 = scalar_lea.vmem %s4134_s0, %s2751_s15 }
  0x18   : > { %1118 = vmatpush.msra.mxu3 %v852_v5  ;;  %1048 = vmatpush.msra.mxu2 %v835_v4  ;;  %v833_v12 = vld [vmem:[%s2959_s11 + $0x160] sm:$0xff]  ;;  %v850_v13 = vld [vmem:[%s2959_s11 + $0x1e8] sm:$0xff]  ;;  %v800_v16 = vld [vmem:[%s2959_s11 + $0x58] sm:$0xff] }
  0x19   : > { %977 = vmatpush.msra.mxu1 %v819_v7  ;;  %907 = vmatpush.msra.mxu0 %v802_v6  ;;  %v817_v14 = vld [vmem:[%s2959_s11 + $0xe0] sm:$0xff]  ;;  %v832_v17 = vld [vmem:[%s2959_s11 + $0x158] sm:$0xff]  ;;  %v799_v20 = vld [vmem:[%s2959_s11 + $0x50] sm:$0xff] }
  0x1a   : > { %1119 = vmatpush.msra.mxu3 %v851_v9  ;;  %1049 = vmatpush.msra.mxu2 %v834_v8  ;;  %v849_v15 = vld [vmem:[%s2959_s11 + $0x1e0] sm:$0xff]  ;;  %v816_v18 = vld [vmem:[%s2959_s11 + $0xd8] sm:$0xff]  ;;  %v831_v21 = vld [vmem:[%s2959_s11 + $0x150] sm:$0xff] }
  0x1b   : > { %978 = vmatpush.msra.mxu1 %v818_v10  ;;  %908 = vmatpush.msra.mxu0 %v801_v11  ;;  %v848_v19 = vld [vmem:[%s2959_s11 + $0x1d8] sm:$0xff]  ;;  %v815_v22 = vld [vmem:[%s2959_s11 + $0xd0] sm:$0xff]  ;;  %v798_v24 = vld [vmem:[%s2959_s11 + $0x48] sm:$0xff] }
  0x1c   : > { %1120 = vmatpush.msra.mxu3 %v850_v13  ;;  %1050 = vmatpush.msra.mxu2 %v833_v12  ;;  %v847_v23 = vld [vmem:[%s2959_s11 + $0x1d0] sm:$0xff]  ;;  %v830_v25 = vld [vmem:[%s2959_s11 + $0x148] sm:$0xff]  ;;  %v797_v28 = vld [vmem:[%s2959_s11 + $0x40] sm:$0xff] }
  0x1d   : > { %979 = vmatpush.msra.mxu1 %v817_v14  ;;  %909 = vmatpush.msra.mxu0 %v800_v16  ;;  %v814_v26 = vld [vmem:[%s2959_s11 + $0xc8] sm:$0xff]  ;;  %v829_v29 = vld [vmem:[%s2959_s11 + $0x140] sm:$0xff]  ;;  %v796_v32 = vld [vmem:[%s2959_s11 + $0x38] sm:$0xff] }
  0x1e   : > { %1121 = vmatpush.msra.mxu3 %v849_v15  ;;  %1051 = vmatpush.msra.mxu2 %v832_v17  ;;  %v846_v27 = vld [vmem:[%s2959_s11 + $0x1c8] sm:$0xff]  ;;  %v813_v30 = vld [vmem:[%s2959_s11 + $0xc0] sm:$0xff]  ;;  %v828_v33 = vld [vmem:[%s2959_s11 + $0x138] sm:$0xff] }
  0x1f   : > { %980 = vmatpush.msra.mxu1 %v816_v18  ;;  %910 = vmatpush.msra.mxu0 %v799_v20  ;;  %v845_v31 = vld [vmem:[%s2959_s11 + $0x1c0] sm:$0xff]  ;;  %v812_v34 = vld [vmem:[%s2959_s11 + $0xb8] sm:$0xff]  ;;  %v795_v36 = vld [vmem:[%s2959_s11 + $0x30] sm:$0xff] }
  0x20   : > { %1122 = vmatpush.msra.mxu3 %v848_v19  ;;  %1052 = vmatpush.msra.mxu2 %v831_v21  ;;  %v844_v35 = vld [vmem:[%s2959_s11 + $0x1b8] sm:$0xff]  ;;  %v827_v37 = vld [vmem:[%s2959_s11 + $0x130] sm:$0xff]  ;;  %v794_v40 = vld [vmem:[%s2959_s11 + $0x28] sm:$0xff] }
  0x21   : > { %981 = vmatpush.msra.mxu1 %v815_v22  ;;  %911 = vmatpush.msra.mxu0 %v798_v24  ;;  %v811_v38 = vld [vmem:[%s2959_s11 + $0xb0] sm:$0xff]  ;;  %v826_v41 = vld [vmem:[%s2959_s11 + $0x128] sm:$0xff]  ;;  %v793_v44 = vld [vmem:[%s2959_s11 + $0x20] sm:$0xff] }
  0x22   : > { %1123 = vmatpush.msra.mxu3 %v847_v23  ;;  %1053 = vmatpush.msra.mxu2 %v830_v25  ;;  %v843_v39 = vld [vmem:[%s2959_s11 + $0x1b0] sm:$0xff]  ;;  %v810_v42 = vld [vmem:[%s2959_s11 + $0xa8] sm:$0xff]  ;;  %v825_v45 = vld [vmem:[%s2959_s11 + $0x120] sm:$0xff] }
  0x23   : > { %982 = vmatpush.msra.mxu1 %v814_v26  ;;  %912 = vmatpush.msra.mxu0 %v797_v28  ;;  %v842_v43 = vld [vmem:[%s2959_s11 + $0x1a8] sm:$0xff]  ;;  %v792_v46 = vld [vmem:[%s2959_s11 + $0x18] sm:$0xff]  ;;  %v809_v47 = vld [vmem:[%s2959_s11 + $0xa0] sm:$0xff] }
  0x24   : > { %1124 = vmatpush.msra.mxu3 %v846_v27  ;;  %1054 = vmatpush.msra.mxu2 %v829_v29  ;;  %v841_v48 = vld [vmem:[%s2959_s11 + $0x1a0] sm:$0xff]  ;;  %v824_v49 = vld [vmem:[%s2959_s11 + $0x118] sm:$0xff]  ;;  %v3028_v51 = vld [vmem:[%s3016_s18 + $0x8] sm:$0xff] }
  0x25   : > { %983 = vmatpush.msra.mxu1 %v813_v30  ;;  %913 = vmatpush.msra.mxu0 %v796_v32  ;;  %v3025_v50 = vld [vmem:[%s3016_s18] sm:$0xff]  ;;  %v808_v52 = vld [vmem:[%s2959_s11 + $0x98] sm:$0xff]  ;;  %v791_v54 = vld [vmem:[%s2959_s11 + $0x10] sm:$0xff]  ;;  %v511_v60 = vrot.slane %v3028_v51, 2  ;;  %v455_v1 = vrot.slane %v3028_v51, 1  ;;  %v567_v3 = vrot.slane %v3028_v51, 3 }
  0x26   : > { %1125 = vmatpush.msra.mxu3 %v845_v31  ;;  %1055 = vmatpush.msra.mxu2 %v828_v33  ;;  %v840_v53 = vld [vmem:[%s2959_s11 + $0x198] sm:$0xff]  ;;  %v823_v55 = vld [vmem:[%s2959_s11 + $0x110] sm:$0xff]  ;;  %v790_v56 = vld [vmem:[%s2959_s11 + $0x8] sm:$0xff]  ;;  %v510_v59 = vrot.slane %v3025_v50, 2  ;;  %v454_v0 = vrot.slane %v3025_v50, 1  ;;  %v566_v2 = vrot.slane %v3025_v50, 3 }
  0x27   : > { %984 = vmatpush.msra.mxu1 %v812_v34  ;;  %914 = vmatpush.msra.mxu0 %v795_v36  ;;  %v807_v57 = vld [vmem:[%s2959_s11 + $0x90] sm:$0xff]  ;;  %v822_v61 = vld [vmem:[%s2959_s11 + $0x108] sm:$0xff]  ;;  %v789_v4 = vld [vmem:[%s2959_s11] sm:$0xff] }
  0x28   : > { %1126 = vmatpush.msra.mxu3 %v844_v35  ;;  %1056 = vmatpush.msra.mxu2 %v827_v37  ;;  %v839_v58 = vld [vmem:[%s2959_s11 + $0x190] sm:$0xff]  ;;  %v806_v62 = vld [vmem:[%s2959_s11 + $0x88] sm:$0xff]  ;;  %v821_v5 = vld [vmem:[%s2959_s11 + $0x100] sm:$0xff]  ;;  %v512_v6 = vsel %vm509_vm0, %v510_v59, %v511_v60  ;;  %v456_v10 = vsel %vm453_vm1, %v454_v0, %v455_v1  ;;  %v568_v11 = vsel %vm565_vm2, %v566_v2, %v567_v3 }
  0x29   : > { %985 = vmatpush.msra.mxu1 %v811_v38  ;;  %915 = vmatpush.msra.mxu0 %v794_v40  ;;  %v838_v63 = vld [vmem:[%s2959_s11 + $0x188] sm:$0xff]  ;;  %v805_v7 = vld [vmem:[%s2959_s11 + $0x80] sm:$0xff]  ;;  %v3056_v9 = vld [vmem:[%s3016_s18 + $0x10] sm:$0xff] }
  0x2a   : > { %1127 = vmatpush.msra.mxu3 %v843_v39  ;;  %1057 = vmatpush.msra.mxu2 %v826_v41  ;;  %v837_v8 = vld [vmem:[%s2959_s11 + $0x180] sm:$0xff]  ;;  %v513_v12 = vrot.slane %v3056_v9, 2  ;;  %v457_v13 = vrot.slane %v3056_v9, 1  ;;  %v569_v14 = vrot.slane %v3056_v9, 3  ;;  %v3066_v16 = vld [vmem:[%s3016_s18 + $0x18] sm:$0xff]  ;;  %v3086_v30 = vld [vmem:[%s3016_s18 + $0x28] sm:$0xff] }
  0x2b   : > { %986 = vmatpush.msra.mxu1 %v810_v42  ;;  %916 = vmatpush.msra.mxu0 %v793_v44  ;;  %v515_v19 = vrot.slane %v3066_v16, 2  ;;  %v459_v20 = vrot.slane %v3066_v16, 1  ;;  %v571_v21 = vrot.slane %v3066_v16, 3  ;;  %v3076_v23 = vld [vmem:[%s3016_s18 + $0x20] sm:$0xff]  ;;  %v519_v33 = vrot.slane %v3086_v30, 2  ;;  %v3096_v37 = vld [vmem:[%s3016_s18 + $0x30] sm:$0xff] }
  0x2c   : > { %1128 = vmatpush.msra.mxu3 %v842_v43  ;;  %1058 = vmatpush.msra.mxu2 %v825_v45  ;;  %v514_v15 = vsel %vm509_vm0, %v511_v60, %v513_v12  ;;  %v458_v17 = vsel %vm453_vm1, %v455_v1, %v457_v13  ;;  %v570_v18 = vsel %vm565_vm2, %v567_v3, %v569_v14  ;;  %v517_v26 = vrot.slane %v3076_v23, 2  ;;  %v3106_v44 = vld [vmem:[%s3016_s18 + $0x38] sm:$0xff]  ;;  %v3126_v60 = vld [vmem:[%s3016_s18 + $0x48] sm:$0xff]  ;;  %v3136_v3 = vld [vmem:[%s3016_s18 + $0x50] sm:$0xff] }
  0x2d   : > { %987 = vmatpush.msra.mxu1 %v809_v47  ;;  %917 = vmatpush.msra.mxu0 %v792_v46  ;;  %v516_v22 = vsel %vm509_vm0, %v513_v12, %v515_v19  ;;  %v460_v24 = vsel %vm453_vm1, %v457_v13, %v459_v20  ;;  %v572_v25 = vsel %vm565_vm2, %v569_v14, %v571_v21  ;;  %v461_v27 = vrot.slane %v3076_v23, 1 }
  0x2e   : > { %1129 = vmatpush.msra.mxu3 %v841_v48  ;;  %1059 = vmatpush.msra.mxu2 %v824_v49  ;;  %v573_v28 = vrot.slane %v3076_v23, 3  ;;  %v518_v29 = vsel %vm509_vm0, %v515_v19, %v517_v26  ;;  %v463_v34 = vrot.slane %v3086_v30, 1  ;;  %v575_v35 = vrot.slane %v3086_v30, 3  ;;  %v3156_v19 = vld [vmem:[%s3016_s18 + $0x60] sm:$0xff] }
  0x2f   : > { %988 = vmatpush.msra.mxu1 %v808_v52  ;;  %918 = vmatpush.msra.mxu0 %v791_v54  ;;  %v462_v31 = vsel %vm453_vm1, %v459_v20, %v461_v27  ;;  %v520_v36 = vsel %vm509_vm0, %v517_v26, %v519_v33  ;;  %v521_v40 = vrot.slane %v3096_v37, 2  ;;  %v465_v41 = vrot.slane %v3096_v37, 1  ;;  %v867_v26 = vld [vmem:[%s2959_s11 + $0x270] sm:$0xff] }
  0x30   : > { %1130 = vmatpush.msra.mxu3 %v840_v53  ;;  %1060 = vmatpush.msra.mxu2 %v823_v55  ;;  %v574_v32 = vsel %vm565_vm2, %v571_v21, %v573_v28  ;;  %v464_v38 = vsel %vm453_vm1, %v461_v27, %v463_v34  ;;  %v576_v39 = vsel %vm565_vm2, %v573_v28, %v575_v35  ;;  %v577_v42 = vrot.slane %v3096_v37, 3  ;;  %v3116_v53 = vld [vmem:[%s3016_s18 + $0x40] sm:$0xff]  ;;  %v884_v27 = vld [vmem:[%s2959_s11 + $0x2f8] sm:$0xff]  ;;  %v899_v28 = vld [vmem:[%s2959_s11 + $0x370] sm:$0xff] }
  0x31   : > { %989 = vmatpush.msra.mxu1 %v807_v57  ;;  %919 = vmatpush.msra.mxu0 %v790_v56  ;;  %v522_v43 = vsel %vm509_vm0, %v519_v33, %v521_v40  ;;  %v466_v45 = vsel %vm453_vm1, %v463_v34, %v465_v41  ;;  %v523_v47 = vrot.slane %v3106_v44, 2  ;;  %v467_v48 = vrot.slane %v3106_v44, 1  ;;  %v883_v33 = vld [vmem:[%s2959_s11 + $0x2f0] sm:$0xff]  ;;  %v898_v34 = vld [vmem:[%s2959_s11 + $0x368] sm:$0xff] }
  0x32   : > { %1131 = vmatpush.msra.mxu3 %v839_v58  ;;  %1061 = vmatpush.msra.mxu2 %v822_v61  ;;  %v578_v46 = vsel %vm565_vm2, %v575_v35, %v577_v42  ;;  %v579_v49 = vrot.slane %v3106_v44, 3  ;;  %v525_v56 = vrot.slane %v3116_v53, 2  ;;  %v469_v57 = vrot.slane %v3116_v53, 1  ;;  %v865_v35 = vld [vmem:[%s2959_s11 + $0x260] sm:$0xff] }
  0x33   : > { %990 = vmatpush.msra.mxu1 %v806_v62  ;;  %920 = vmatpush.msra.mxu0 %v789_v4  ;;  %v524_v52 = vsel %vm509_vm0, %v521_v40, %v523_v47  ;;  %v468_v54 = vsel %vm453_vm1, %v465_v41, %v467_v48  ;;  %v581_v58 = vrot.slane %v3116_v53, 3  ;;  %v471_v0 = vrot.slane %v3126_v60, 1  ;;  %v897_v40 = vld [vmem:[%s2959_s11 + $0x360] sm:$0xff] }
  0x34   : > { %1132 = vmatpush.msra.mxu3 %v838_v63  ;;  %1062 = vmatpush.msra.mxu2 %v821_v5  ;;  %v580_v55 = vsel %vm565_vm2, %v577_v42, %v579_v49  ;;  %v526_v59 = vsel %vm509_vm0, %v523_v47, %v525_v56  ;;  %v470_v61 = vsel %vm453_vm1, %v467_v48, %v469_v57  ;;  %v527_v63 = vrot.slane %v3126_v60, 2  ;;  %v863_v48 = vld [vmem:[%s2959_s11 + $0x250] sm:$0xff] }
  0x35   : > { %921 = vmatmul.f32.vlgmr.msra.gmra.mxu0 %v3025_v50  ;;  %1063 = vmatmul.f32.vlgmr.msra.gmra.mxu2 %v512_v6  ;;  %v582_v62 = vsel %vm565_vm2, %v579_v49, %v581_v58  ;;  %v583_v1 = vrot.slane %v3126_v60, 3  ;;  %v472_v4 = vsel %vm453_vm1, %v469_v57, %v471_v0  ;;  %v529_v6 = vrot.slane %v3136_v3, 2  ;;  %v880_v49 = vld [vmem:[%s2959_s11 + $0x2d8] sm:$0xff]  ;;  %v879_v57 = vld [vmem:[%s2959_s11 + $0x2d0] sm:$0xff] }
  0x36   : > { %991 = vmatpush.msra.mxu1 %v805_v7  ;;  %1133 = vmatpush.msra.mxu3 %v837_v8  ;;  %v528_v2 = vsel %vm509_vm0, %v525_v56, %v527_v63  ;;  %v473_v7 = vrot.slane %v3136_v3, 1  ;;  %v585_v8 = vrot.slane %v3136_v3, 3  ;;  %v862_v56 = vld [vmem:[%s2959_s11 + $0x248] sm:$0xff] }
  0x37   : > { %992 = vmatmul.f32.vlgmr.msra.gmra.mxu1 %v456_v10  ;;  %1134 = vmatmul.f32.vlgmr.msra.gmra.mxu3 %v568_v11  ;;  %v584_v5 = vsel %vm565_vm2, %v581_v58, %v583_v1  ;;  %v530_v10 = vsel %vm509_vm0, %v527_v63, %v529_v6  ;;  %v3146_v11 = vld [vmem:[%s3016_s18 + $0x58] sm:$0xff]  ;;  %v894_v58 = vld [vmem:[%s2959_s11 + $0x348] sm:$0xff] }
  0x38   : > { %v474_v12 = vsel %vm453_vm1, %v471_v0, %v473_v7  ;;  %v586_v13 = vsel %vm565_vm2, %v583_v1, %v585_v8  ;;  %v531_v14 = vrot.slane %v3146_v11, 2  ;;  %1260 = vmatpush.msrb.mxu1 %v884_v27  ;;  %v878_v63 = vld [vmem:[%s2959_s11 + $0x2c8] sm:$0xff] }
  0x3a   : > { %1261 = vmatpush.msrb.mxu1 %v883_v33 }
  0x3d   : > { %924 = vmatmul.f32.gmra.mxu0 %v3028_v51  ;;  %1066 = vmatmul.f32.gmra.mxu2 %v514_v15  ;;  %v475_v15 = vrot.slane %v3146_v11, 1 }
  0x3f   : > { %995 = vmatmul.f32.gmra.mxu1 %v458_v17  ;;  %1137 = vmatmul.f32.gmra.mxu3 %v570_v18  ;;  %v587_v17 = vrot.slane %v3146_v11, 3  ;;  %v532_v18 = vsel %vm509_vm0, %v529_v6, %v531_v14  ;;  %v476_v20 = vsel %vm453_vm1, %v473_v7, %v475_v15  ;;  %v877_v6 = vld [vmem:[%s2959_s11 + $0x2c0] sm:$0xff]  ;;  %v892_v7 = vld [vmem:[%s2959_s11 + $0x338] sm:$0xff] }
  0x41   : > { %v588_v21 = vsel %vm565_vm2, %v585_v8, %v587_v17  ;;  %v859_v8 = vld [vmem:[%s2959_s11 + $0x230] sm:$0xff] }
  0x45   : > { %927 = vmatmul.f32.gmra.mxu0 %v3056_v9  ;;  %1069 = vmatmul.f32.gmra.mxu2 %v516_v22  ;;  %v868_v22 = vld [vmem:[%s2959_s11 + $0x278] sm:$0xff] }
  0x46   : > { %1189 = vmatpush.msrb.mxu0 %v868_v22 }
  0x47   : > { %998 = vmatmul.f32.gmra.mxu1 %v460_v24  ;;  %1140 = vmatmul.f32.gmra.mxu3 %v572_v25  ;;  %v900_v24 = vld [vmem:[%s2959_s11 + $0x378] sm:$0xff]  ;;  %v533_v25 = vrot.slane %v3156_v19, 2 }
  0x48   : > { %1331 = vmatpush.msrb.mxu2 %v900_v24  ;;  %1190 = vmatpush.msrb.mxu0 %v867_v26  ;;  %v874_v26 = vld [vmem:[%s2959_s11 + $0x2a8] sm:$0xff] }
  0x4a   : > { %1332 = vmatpush.msrb.mxu2 %v899_v28  ;;  %v889_v28 = vld [vmem:[%s2959_s11 + $0x320] sm:$0xff] }
  0x4c   : > { %1333 = vmatpush.msrb.mxu2 %v898_v34  ;;  %v888_v34 = vld [vmem:[%s2959_s11 + $0x318] sm:$0xff] }
  0x4d   : > { %930 = vmatmul.f32.gmra.mxu0 %v3066_v16  ;;  %1072 = vmatmul.f32.gmra.mxu2 %v518_v29  ;;  %v477_v29 = vrot.slane %v3156_v19, 1 }
  0x4e   : > { %1334 = vmatpush.msrb.mxu2 %v897_v40  ;;  %v3236_v40 = vld [vmem:[%s3016_s18 + $0x80] sm:$0xff] }
  0x4f   : > { %1001 = vmatmul.f32.gmra.mxu1 %v462_v31  ;;  %1143 = vmatmul.f32.gmra.mxu3 %v574_v32  ;;  %v589_v31 = vrot.slane %v3156_v19, 3  ;;  %v866_v32 = vld [vmem:[%s2959_s11 + $0x268] sm:$0xff]  ;;  %v478_v41 = vsel %vm453_vm1, %v475_v15, %v477_v29 }
  0x50   : > { %1191 = vmatpush.msrb.mxu0 %v866_v32  ;;  %v858_v15 = vld [vmem:[%s2959_s11 + $0x228] sm:$0xff] }
  0x51   : > { %v590_v42 = vsel %vm565_vm2, %v587_v17, %v589_v31 }
  0x52   : > { %1192 = vmatpush.msrb.mxu0 %v865_v35  ;;  %v855_v35 = vld [vmem:[%s2959_s11 + $0x210] sm:$0xff] }
  0x55   : > { %933 = vmatmul.f32.gmra.mxu0 %v3076_v23  ;;  %1075 = vmatmul.f32.gmra.mxu2 %v520_v36  ;;  %v882_v36 = vld [vmem:[%s2959_s11 + $0x2e8] sm:$0xff] }
  0x56   : > { %1262 = vmatpush.msrb.mxu1 %v882_v36  ;;  %v872_v36 = vld [vmem:[%s2959_s11 + $0x298] sm:$0xff] }
  0x57   : > { %1004 = vmatmul.f32.gmra.mxu1 %v464_v38  ;;  %1146 = vmatmul.f32.gmra.mxu3 %v576_v39  ;;  %v534_v38 = vsel %vm509_vm0, %v531_v14, %v533_v25  ;;  %v3176_v39 = vld [vmem:[%s3016_s18 + $0x68] sm:$0xff]  ;;  %v891_v14 = vld [vmem:[%s2959_s11 + $0x330] sm:$0xff] }
  0x58   : > { %v535_v47 = vrot.slane %v3176_v39, 2 }
  0x5d   : > { %936 = vmatmul.f32.gmra.mxu0 %v3086_v30  ;;  %1078 = vmatmul.f32.gmra.mxu2 %v522_v43  ;;  %v864_v43 = vld [vmem:[%s2959_s11 + $0x258] sm:$0xff] }
  0x5e   : > { %1193 = vmatpush.msrb.mxu0 %v864_v43 }
  0x5f   : > { %1007 = vmatmul.f32.gmra.mxu1 %v466_v45  ;;  %1149 = vmatmul.f32.gmra.mxu3 %v578_v46  ;;  %v881_v45 = vld [vmem:[%s2959_s11 + $0x2e0] sm:$0xff]  ;;  %v896_v46 = vld [vmem:[%s2959_s11 + $0x358] sm:$0xff] }
  0x60   : > { %1263 = vmatpush.msrb.mxu1 %v881_v45  ;;  %1335 = vmatpush.msrb.mxu2 %v896_v46  ;;  %v871_v46 = vld [vmem:[%s2959_s11 + $0x290] sm:$0xff] }
  0x61   : > { %1194 = vmatpush.msrb.mxu0 %v863_v48  ;;  %v541_v48 = vrot.slane %v3236_v40, 2 }
  0x62   : > { %1264 = vmatpush.msrb.mxu1 %v880_v49  ;;  %v853_v49 = vld [vmem:[%s2959_s11 + $0x200] sm:$0xff] }
  0x63   : > { %1195 = vmatpush.msrb.mxu0 %v862_v56  ;;  %v597_v56 = vrot.slane %v3236_v40, 3 }
  0x64   : > { %1265 = vmatpush.msrb.mxu1 %v879_v57  ;;  %v869_v57 = vld [vmem:[%s2959_s11 + $0x280] sm:$0xff] }
  0x65   : > { %939 = vmatmul.f32.gmra.mxu0 %v3096_v37  ;;  %1081 = vmatmul.f32.gmra.mxu2 %v524_v52  ;;  %v895_v52 = vld [vmem:[%s2959_s11 + $0x350] sm:$0xff] }
  0x66   : > { %1336 = vmatpush.msrb.mxu2 %v895_v52  ;;  %1266 = vmatpush.msrb.mxu1 %v878_v63  ;;  %v870_v52 = vld [vmem:[%s2959_s11 + $0x288] sm:$0xff] }
  0x67   : > { %1010 = vmatmul.f32.gmra.mxu1 %v468_v54  ;;  %1152 = vmatmul.f32.gmra.mxu3 %v580_v55  ;;  %v479_v54 = vrot.slane %v3176_v39, 1  ;;  %v591_v55 = vrot.slane %v3176_v39, 3 }
  0x68   : > { %1337 = vmatpush.msrb.mxu2 %v894_v58  ;;  %1267 = vmatpush.msrb.mxu1 %v877_v6  ;;  %v3266_v6 = vld [vmem:[%s3016_s18 + $0x90] sm:$0x3f] }
  0x69   : > { %v480_v0 = vsel %vm453_vm1, %v477_v29, %v479_v54  ;;  %v592_v1 = vsel %vm565_vm2, %v589_v31, %v591_v55  ;;  %v856_v29 = vld [vmem:[%s2959_s11 + $0x218] sm:$0xff]  ;;  %v873_v31 = vld [vmem:[%s2959_s11 + $0x2a0] sm:$0xff] }
  0x6d   : > { %942 = vmatmul.f32.gmra.mxu0 %v3106_v44  ;;  %1084 = vmatmul.f32.gmra.mxu2 %v526_v59  ;;  %v536_v59 = vsel %vm509_vm0, %v533_v25, %v535_v47  ;;  %v857_v25 = vld [vmem:[%s2959_s11 + $0x220] sm:$0xff] }
  0x6f   : > { %1013 = vmatmul.f32.gmra.mxu1 %v470_v61  ;;  %1155 = vmatmul.f32.gmra.mxu3 %v582_v62  ;;  %v3196_v61 = vld [vmem:[%s3016_s18 + $0x70] sm:$0xff]  ;;  %v861_v62 = vld [vmem:[%s2959_s11 + $0x240] sm:$0xff] }
  0x70   : > { %1196 = vmatpush.msrb.mxu0 %v861_v62 }
  0x75   : > { %945 = vmatmul.f32.gmra.mxu0 %v3116_v53  ;;  %1087 = vmatmul.f32.gmra.mxu2 %v528_v2  ;;  %v893_v2 = vld [vmem:[%s2959_s11 + $0x340] sm:$0xff] }
  0x76   : > { %1338 = vmatpush.msrb.mxu2 %v893_v2 }
  0x77   : > { %1016 = vmatmul.f32.gmra.mxu1 %v472_v4  ;;  %1158 = vmatmul.f32.gmra.mxu3 %v584_v5  ;;  %v860_v4 = vld [vmem:[%s2959_s11 + $0x238] sm:$0xff]  ;;  %v537_v5 = vrot.slane %v3196_v61, 2 }
  0x78   : > { %1197 = vmatpush.msrb.mxu0 %v860_v4  ;;  %1339 = vmatpush.msrb.mxu2 %v892_v7 }
  0x79   : > { %v538_v17 = vsel %vm509_vm0, %v535_v47, %v537_v5  ;;  %v886_v47 = vld [vmem:[%s2959_s11 + $0x308] sm:$0xff] }
  0x7a   : > { %1198 = vmatpush.msrb.mxu0 %v859_v8  ;;  %1340 = vmatpush.msrb.mxu2 %v891_v14  ;;  %v489_v14 = vrot.slane %v3266_v6, 1 }
  0x7c   : > { %1199 = vmatpush.msrb.mxu0 %v858_v15  ;;  %v601_v15 = vrot.slane %v3266_v6, 3 }
  0x7d   : > { %948 = vmatmul.f32.gmra.mxu0 %v3126_v60  ;;  %1090 = vmatmul.f32.gmra.mxu2 %v530_v10  ;;  %v481_v10 = vrot.slane %v3196_v61, 1 }
  0x7e   : > { %1200 = vmatpush.msrb.mxu0 %v857_v25  ;;  %v622_v25 = vrot.slane %v3025_v50, 4 }
  0x7f   : > { %1019 = vmatmul.f32.gmra.mxu1 %v474_v12  ;;  %1161 = vmatmul.f32.gmra.mxu3 %v586_v13  ;;  %v593_v12 = vrot.slane %v3196_v61, 3  ;;  %v876_v13 = vld [vmem:[%s2959_s11 + $0x2b8] sm:$0xff]  ;;  %v482_v22 = vsel %vm453_vm1, %v479_v54, %v481_v10  ;;  %v885_v54 = vld [vmem:[%s2959_s11 + $0x300] sm:$0xff] }
  0x80   : > { %1268 = vmatpush.msrb.mxu1 %v876_v13  ;;  %1201 = vmatpush.msrb.mxu0 %v856_v29 }
  0x81   : > { %v594_v24 = vsel %vm565_vm2, %v591_v55, %v593_v12  ;;  %v485_v55 = vrot.slane %v3236_v40, 1 }
  0x82   : > { %1202 = vmatpush.msrb.mxu0 %v855_v35 }
  0x85   : > { %951 = vmatmul.f32.gmra.mxu0 %v3136_v3  ;;  %1093 = vmatmul.f32.gmra.mxu2 %v532_v18  ;;  %v3216_v18 = vld [vmem:[%s3016_s18 + $0x78] sm:$0xff] }
  0x86   : > { %v539_v27 = vrot.slane %v3216_v18, 2  ;;  %v483_v32 = vrot.slane %v3216_v18, 1  ;;  %v595_v33 = vrot.slane %v3216_v18, 3 }
  0x87   : > { %1022 = vmatmul.f32.gmra.mxu1 %v476_v20  ;;  %1164 = vmatmul.f32.gmra.mxu3 %v588_v21  ;;  %v875_v20 = vld [vmem:[%s2959_s11 + $0x2b0] sm:$0xff]  ;;  %v890_v21 = vld [vmem:[%s2959_s11 + $0x328] sm:$0xff] }
  0x88   : > { %1269 = vmatpush.msrb.mxu1 %v875_v20  ;;  %1341 = vmatpush.msrb.mxu2 %v890_v21  ;;  %v484_v43 = vsel %vm453_vm1, %v481_v10, %v483_v32  ;;  %v596_v45 = vsel %vm565_vm2, %v593_v12, %v595_v33  ;;  %v542_v58 = vsel %vm509_vm0, %v539_v27, %v541_v48  ;;  %v545_v12 = vrot.slane %v3266_v6, 2 }
  0x89   : > { %v486_v62 = vsel %vm453_vm1, %v483_v32, %v485_v55  ;;  %v598_v63 = vsel %vm565_vm2, %v595_v33, %v597_v56  ;;  %v679_v32 = vrot.slane %v3028_v51, 5 }
  0x8a   : > { %1270 = vmatpush.msrb.mxu1 %v874_v26  ;;  %1342 = vmatpush.msrb.mxu2 %v889_v28  ;;  %v623_v26 = vrot.slane %v3028_v51, 4  ;;  %v735_v28 = vrot.slane %v3028_v51, 6  ;;  %v681_v51 = vrot.slane %v3056_v9, 5 }
  0x8c   : > { %1271 = vmatpush.msrb.mxu1 %v873_v31  ;;  %1343 = vmatpush.msrb.mxu2 %v888_v34  ;;  %v678_v31 = vrot.slane %v3025_v50, 5  ;;  %v624_v34 = vsel %vm621_vm3, %v622_v25, %v623_v26 }
  0x8d   : > { %954 = vmatmul.f32.gmra.mxu0 %v3146_v11  ;;  %1096 = vmatmul.f32.gmra.mxu2 %v534_v38  ;;  %v540_v38 = vsel %vm509_vm0, %v537_v5, %v539_v27  ;;  %v734_v27 = vrot.slane %v3025_v50, 6 }
  0x8e   : > { %1272 = vmatpush.msrb.mxu1 %v872_v36 }
  0x8f   : > { %1025 = vmatmul.f32.gmra.mxu1 %v478_v41  ;;  %1167 = vmatmul.f32.gmra.mxu3 %v590_v42  ;;  %v887_v41 = vld [vmem:[%s2959_s11 + $0x310] sm:$0xff]  ;;  %v854_v42 = vld [vmem:[%s2959_s11 + $0x208] sm:$0xff]  ;;  %v736_v35 = vsel %vm733_vm4, %v734_v27, %v735_v28  ;;  %s3707_s11 = scalar_lea.vmem %s4137_s3, %s2953_s8 }
  0x90   : > { %1344 = vmatpush.msrb.mxu2 %v887_v41  ;;  %1203 = vmatpush.msrb.mxu0 %v854_v42  ;;  %v625_v41 = vrot.slane %v3056_v9, 4  ;;  %v737_v42 = vrot.slane %v3056_v9, 6  ;;  %v683_v9 = vrot.slane %v3066_v16, 5 }
  0x91   : > { %1273 = vmatpush.msrb.mxu1 %v871_v46 }
  0x92   : > { %1345 = vmatpush.msrb.mxu2 %v886_v47  ;;  %1204 = vmatpush.msrb.mxu0 %v853_v49  ;;  %v738_v46 = vsel %vm733_vm4, %v735_v28, %v737_v42  ;;  %v627_v49 = vrot.slane %v3066_v16, 4  ;;  %v633_v28 = vrot.slane %v3096_v37, 4 }
  0x93   : > { %1274 = vmatpush.msrb.mxu1 %v870_v52  ;;  %v739_v52 = vrot.slane %v3066_v16, 6  ;;  %v685_v16 = vrot.slane %v3076_v23, 5 }
  0x94   : > { %1346 = vmatpush.msrb.mxu2 %v885_v54 }
  0x95   : > { %957 = vmatmul.f32.gmra.mxu0 %v3156_v19  ;;  %1099 = vmatmul.f32.gmra.mxu2 %v536_v59  ;;  %v3254_v59 = vld [vmem:[%s3016_s18 + $0x88] sm:$0xff] }
  0x96   : > { %1275 = vmatpush.msrb.mxu1 %v869_v57  ;;  %v599_v2 = vrot.slane %v3254_v59, 3  ;;  %v740_v57 = vsel %vm733_vm4, %v737_v42, %v739_v52 }
  0x97   : > { %1028 = vmatmul.f32.gmra.mxu1 %v480_v0  ;;  %1170 = vmatmul.f32.gmra.mxu3 %v592_v1  ;;  %v543_v0 = vrot.slane %v3254_v59, 2  ;;  %v487_v1 = vrot.slane %v3254_v59, 1 }
  0x98   : > { %v600_v10 = vsel %vm565_vm2, %v597_v56, %v599_v2  ;;  %v628_v56 = vsel %vm621_vm3, %v625_v41, %v627_v49 }
  0x99   : > { %v544_v5 = vsel %vm509_vm0, %v541_v48, %v543_v0  ;;  %v488_v8 = vsel %vm453_vm1, %v485_v55, %v487_v1  ;;  %v546_v20 = vsel %vm509_vm0, %v543_v0, %v545_v12  ;;  %v682_v48 = vsel %vm677_vm5, %v679_v32, %v681_v51 }
  0x9a   : > { %v741_v0 = vrot.slane %v3076_v23, 6  ;;  %v686_v12 = vsel %vm677_vm5, %v683_v9, %v685_v16 }
  0x9d   : > { %960 = vmatmul.f32.gmra.mxu0 %v3176_v39  ;;  %1102 = vmatmul.f32.gmra.mxu2 %v538_v17 }
  0x9f   : > { %1031 = vmatmul.f32.gmra.mxu1 %v482_v22  ;;  %1173 = vmatmul.f32.gmra.mxu3 %v594_v24  ;;  %v490_v22 = vsel %vm453_vm1, %v487_v1, %v489_v14  ;;  %v602_v24 = vsel %vm565_vm2, %v599_v2, %v601_v15  ;;  %v631_v14 = vrot.slane %v3086_v30, 4  ;;  %v743_v15 = vrot.slane %v3086_v30, 6 }
  0xa1   : > { %v744_v25 = vsel %vm733_vm4, %v741_v0, %v743_v15 }
  0xa5   : > { %963 = vmatmul.f32.gmra.mxu0 %v3196_v61  ;;  %1105 = vmatmul.f32.gmra.mxu2 %v540_v38  ;;  %v680_v38 = vsel %vm677_vm5, %v678_v31, %v679_v32  ;;  %v745_v31 = vrot.slane %v3096_v37, 6 }
  0xa7   : > { %1034 = vmatmul.f32.gmra.mxu1 %v484_v43  ;;  %1176 = vmatmul.f32.gmra.mxu3 %v596_v45  ;;  %v626_v45 = vsel %vm621_vm3, %v623_v26, %v625_v41 }
  0xad   : > { %966 = vmatmul.f32.gmra.mxu0 %v3216_v18  ;;  %1108 = vmatmul.f32.gmra.mxu2 %v542_v58 }
  0xaf   : > { %1037 = vmatmul.f32.gmra.mxu1 %v486_v62  ;;  %1179 = vmatmul.f32.gmra.mxu3 %v598_v63  ;;  %v684_v62 = vsel %vm677_vm5, %v681_v51, %v683_v9  ;;  %v629_v63 = vrot.slane %v3076_v23, 4  ;;  %v687_v23 = vrot.slane %v3086_v30, 5  ;;  %v689_v30 = vrot.slane %v3096_v37, 5 }
  0xb0   : > { %v635_v51 = vrot.slane %v3106_v44, 4  ;;  %v691_v37 = vrot.slane %v3106_v44, 5 }
  0xb1   : > { %v688_v27 = vsel %vm677_vm5, %v685_v16, %v687_v23  ;;  %v690_v42 = vsel %vm677_vm5, %v687_v23, %v689_v30 }
  0xb2   : > { %v3262_v4 = vpop.f32.mrf.mxu0 }
  0xb4   : > { %v3268_v7 = vpop.f32.mrf.mxu1 }
  0xb5   : > { %969 = vmatmul.f32.gmra.mxu0 %v3236_v40  ;;  %1111 = vmatmul.f32.gmra.mxu2 %v544_v5  ;;  %v630_v5 = vsel %vm621_vm3, %v627_v49, %v629_v63  ;;  %v636_v49 = vsel %vm621_vm3, %v633_v28, %v635_v51 }
  0xb7   : > { %1040 = vmatmul.f32.gmra.mxu1 %v488_v8  ;;  %1182 = vmatmul.f32.gmra.mxu3 %v600_v10  ;;  %v742_v8 = vsel %vm733_vm4, %v739_v52, %v741_v0 }
  0xb8   : > { %v3274_v13 = vpop.f32.mrf.mxu2 }
  0xba   : > { %v3278_v17 = vpop.f32.mrf.mxu0 }
  0xbc   : > { %v3281_v21 = vpop.f32.mrf.mxu1 }
  0xbd   : > { %972 = vmatmul.f32.gmra.mxu0 %v3254_v59  ;;  %1114 = vmatmul.f32.gmra.mxu2 %v546_v20 }
  0xbf   : > { %1043 = vmatmul.f32.gmra.mxu1 %v490_v22  ;;  %1185 = vmatmul.f32.gmra.mxu3 %v602_v24  ;;  %v632_v24 = vsel %vm621_vm3, %v629_v63, %v631_v14 }
  0xc0   : > { %v3290_v29 = vpop.f32.mrf.mxu2 }
  0xc2   : > { %v3294_v33 = vpop.f32.mrf.mxu0 }
  0xc4   : > { %v3298_v36 = vpop.f32.mrf.mxu1 }
  0xc5   : > { %1205 = vmatmul.f32.vlgmr.msrb.gmra.mxu0 %v624_v34  ;;  %1347 = vmatmul.f32.vlgmr.msrb.gmra.mxu2 %v736_v35  ;;  %v634_v35 = vsel %vm621_vm3, %v631_v14, %v633_v28  ;;  %v639_v14 = vrot.slane %v3126_v60, 4 }
  0xc7   : > { %1276 = vmatmul.f32.vlgmr.msrb.gmra.mxu1 %v680_v38  ;;  %v746_v38 = vsel %vm733_vm4, %v743_v15, %v745_v31  ;;  %v751_v15 = vrot.slane %v3126_v60, 6 }
  0xc8   : > { %v3303_v50 = vpop.f32.mrf.mxu2 }
  0xca   : > { %v3306_v43 = vpop.f32.mrf.mxu0 }
  0xcc   : > { %v3310_v47 = vpop.f32.mrf.mxu1 }
  0xcd   : > { %1208 = vmatmul.f32.gmra.mxu0 %v626_v45  ;;  %1350 = vmatmul.f32.gmra.mxu2 %v738_v46  ;;  %v747_v45 = vrot.slane %v3106_v44, 6  ;;  %v693_v44 = vrot.slane %v3116_v53, 5 }
  0xcf   : > { %1279 = vmatmul.f32.gmra.mxu1 %v682_v48  ;;  %v748_v52 = vsel %vm733_vm4, %v745_v31, %v747_v45 }
  0xd0   : > { %v3315_v54 = vpop.f32.mrf.mxu2 }
  0xd2   : > { %v3318_v55 = vpop.f32.mrf.mxu0 }
  0xd4   : > { %v3322_v58 = vpop.f32.mrf.mxu1 }
  0xd5   : > { %1211 = vmatmul.f32.gmra.mxu0 %v628_v56  ;;  %1353 = vmatmul.f32.gmra.mxu2 %v740_v57  ;;  %v692_v56 = vsel %vm677_vm5, %v689_v30, %v691_v37  ;;  %v637_v57 = vrot.slane %v3116_v53, 4  ;;  %v641_v30 = vrot.slane %v3136_v3, 4 }
  0xd7   : > { %1282 = vmatmul.f32.gmra.mxu1 %v684_v62  ;;  %v749_v62 = vrot.slane %v3116_v53, 6  ;;  %v638_v16 = vsel %vm621_vm3, %v635_v51, %v637_v57  ;;  %v695_v53 = vrot.slane %v3126_v60, 5  ;;  %v697_v60 = vrot.slane %v3136_v3, 5 }
  0xd8   : > { %v3327_v1 = vpop.f32.mrf.mxu2  ;;  %v642_v51 = vsel %vm621_vm3, %v639_v14, %v641_v30 }
  0xd9   : > { %v696_v31 = vsel %vm677_vm5, %v693_v44, %v695_v53 }
  0xda   : > { %v3330_v2 = vpop.f32.mrf.mxu0 }
  0xdc   : > { %v3334_v10 = vpop.f32.mrf.mxu1 }
  0xdd   : > { %1214 = vmatmul.f32.gmra.mxu0 %v630_v5  ;;  %1356 = vmatmul.f32.gmra.mxu2 %v742_v8  ;;  %v750_v5 = vsel %vm733_vm4, %v747_v45, %v749_v62 }
  0xdf   : > { %1285 = vmatmul.f32.gmra.mxu1 %v686_v12  ;;  %v694_v12 = vsel %vm677_vm5, %v691_v37, %v693_v44 }
  0xe0   : > { %v3339_v20 = vpop.f32.mrf.mxu2 }
  0xe2   : > { %v3342_v22 = vpop.f32.mrf.mxu0 }
  0xe4   : > { %v3346_v26 = vpop.f32.mrf.mxu1 }
  0xe5   : > { %1217 = vmatmul.f32.gmra.mxu0 %v632_v24  ;;  %1359 = vmatmul.f32.gmra.mxu2 %v744_v25  ;;  %v640_v25 = vsel %vm621_vm3, %v637_v57, %v639_v14  ;;  %v645_v14 = vrot.slane %v3156_v19, 4 }
  0xe7   : > { %1288 = vmatmul.f32.gmra.mxu1 %v688_v27  ;;  %v752_v27 = vsel %vm733_vm4, %v749_v62, %v751_v15 }
  0xe8   : > { %v3351_v32 = vpop.f32.mrf.mxu2 }
  0xea   : > { %v3354_v34 = vpop.f32.mrf.mxu0 }
  0xec   : > { %v3358_v41 = vpop.f32.mrf.mxu1 }
  0xed   : > { %1220 = vmatmul.f32.gmra.mxu0 %v634_v35  ;;  %1362 = vmatmul.f32.gmra.mxu2 %v746_v38  ;;  %v753_v35 = vrot.slane %v3136_v3, 6  ;;  %v699_v3 = vrot.slane %v3146_v11, 5 }
  0xef   : > { %1291 = vmatmul.f32.gmra.mxu1 %v690_v42  ;;  %v754_v45 = vsel %vm733_vm4, %v751_v15, %v753_v35  ;;  %v757_v15 = vrot.slane %v3156_v19, 6 }
  0xf0   : > { %v3363_v46 = vpop.f32.mrf.mxu2 }
  0xf2   : > { %v3366_v48 = vpop.f32.mrf.mxu0 }
  0xf4   : > { %v3370_v9 = vpop.f32.mrf.mxu1 }
  0xf5   : > { %1223 = vmatmul.f32.gmra.mxu0 %v636_v49  ;;  %1365 = vmatmul.f32.gmra.mxu2 %v748_v52  ;;  %v698_v49 = vsel %vm677_vm5, %v695_v53, %v697_v60  ;;  %v643_v52 = vrot.slane %v3146_v11, 4 }
  0xf7   : > { %1294 = vmatmul.f32.gmra.mxu1 %v692_v56  ;;  %v755_v56 = vrot.slane %v3146_v11, 6  ;;  %v644_v44 = vsel %vm621_vm3, %v641_v30, %v643_v52  ;;  %v701_v11 = vrot.slane %v3156_v19, 5 }
  0xf8   : > { %v3375_v63 = vpop.f32.mrf.mxu2 }
  0xfa   : > { %v3378_v0 = vpop.f32.mrf.mxu0 }
  0xfc   : > { %v3382_v8 = vpop.f32.mrf.mxu1 }
  0xfd   : > { %1226 = vmatmul.f32.gmra.mxu0 %v638_v16  ;;  %1368 = vmatmul.f32.gmra.mxu2 %v750_v5  ;;  %v756_v16 = vsel %vm733_vm4, %v753_v35, %v755_v56  ;;  %v702_v35 = vsel %vm677_vm5, %v699_v3, %v701_v11 }
  0xff   : > { %1297 = vmatmul.f32.gmra.mxu1 %v694_v12  ;;  %v700_v12 = vsel %vm677_vm5, %v697_v60, %v699_v3  ;;  %v3433_v60 = vpop.f32.mrf.mxu3 }
 0x100   : > { %v3387_v23 = vpop.f32.mrf.mxu2 }
 0x102   : > { %v3390_v24 = vpop.f32.mrf.mxu0 }
 0x104   : > { %v3394_v28 = vpop.f32.mrf.mxu1 }
 0x105   : > { %1229 = vmatmul.f32.gmra.mxu0 %v640_v25  ;;  %1371 = vmatmul.f32.gmra.mxu2 %v752_v27  ;;  %v646_v27 = vsel %vm621_vm3, %v643_v52, %v645_v14 }
 0x107   : > { %1300 = vmatmul.f32.gmra.mxu1 %v696_v31  ;;  %v758_v31 = vsel %vm733_vm4, %v755_v56, %v757_v15 }
 0x108   : > { %v3399_v38 = vpop.f32.mrf.mxu2 }
 0x10a   : > { %v3402_v42 = vpop.f32.mrf.mxu0 }
 0x10c   : > { %v3406_v37 = vpop.f32.mrf.mxu1 }
 0x10d   : > { %1232 = vmatmul.f32.gmra.mxu0 %v642_v51  ;;  %1374 = vmatmul.f32.gmra.mxu2 %v754_v45  ;;  %v647_v51 = vrot.slane %v3176_v39, 4  ;;  %v759_v45 = vrot.slane %v3176_v39, 6 }
 0x10f   : > { %1303 = vmatmul.f32.gmra.mxu1 %v698_v49  ;;  %v703_v49 = vrot.slane %v3176_v39, 5  ;;  %v648_v56 = vsel %vm621_vm3, %v645_v14, %v647_v51 }
 0x110   : > { %v3411_v57 = vpop.f32.mrf.mxu2 }
 0x112   : > { %v3414_v62 = vpop.f32.mrf.mxu0 }
 0x114   : > { %v3418_v5 = vpop.f32.mrf.mxu1 }
 0x115   : > { %4142 = vst [vmem:[#allocation2_spill] sm:$0xff] %v3418_v5  ;;  %1235 = vmatmul.f32.gmra.mxu0 %v644_v44  ;;  %1377 = vmatmul.f32.gmra.mxu2 %v756_v16  ;;  %v760_v44 = vsel %vm733_vm4, %v757_v15, %v759_v45  ;;  %v704_v16 = vsel %vm677_vm5, %v701_v11, %v703_v49 }
 0x117   : > { %1306 = vmatmul.f32.gmra.mxu1 %v700_v12  ;;  %v649_v12 = vrot.slane %v3196_v61, 4 }
 0x118   : > { %v3423_v53 = vpop.f32.mrf.mxu2 }
 0x119   : > { %4143 = vst [vmem:[#allocation3_spill] sm:$0xff] %v3423_v53  ;;  %v650_v15 = vsel %vm621_vm3, %v647_v51, %v649_v12 }
 0x11a   : > { %v3426_v25 = vpop.f32.mrf.mxu0 }
 0x11c   : > { %v3430_v30 = vpop.f32.mrf.mxu1 }
 0x11d   : > { %4144 = vst [vmem:[#allocation4_spill] sm:$0xff] %v3430_v30  ;;  %1238 = vmatmul.f32.gmra.mxu0 %v646_v27  ;;  %1380 = vmatmul.f32.gmra.mxu2 %v758_v31  ;;  %v761_v27 = vrot.slane %v3196_v61, 6  ;;  %v3449_v31 = vpop.f32.mrf.mxu3 }
 0x11f   : > { %1309 = vmatmul.f32.gmra.mxu1 %v702_v35  ;;  %v705_v35 = vrot.slane %v3196_v61, 5  ;;  %v762_v53 = vsel %vm733_vm4, %v759_v45, %v761_v27  ;;  %v707_v61 = vrot.slane %v3216_v18, 5 }
 0x120   : > { %v3437_v19 = vpop.f32.mrf.mxu2 }
 0x121   : > { %4145 = vst [vmem:[#allocation5_spill] sm:$0xff] %v3437_v19 }
 0x122   : > { %v3440_v52 = vpop.f32.mrf.mxu0 }
 0x124   : > { %v3444_v3 = vpop.f32.mrf.mxu1 }
 0x125   : > { %1241 = vmatmul.f32.gmra.mxu0 %v648_v56  ;;  %1383 = vmatmul.f32.gmra.mxu2 %v760_v44  ;;  %v706_v56 = vsel %vm677_vm5, %v703_v49, %v705_v35  ;;  %v651_v44 = vrot.slane %v3216_v18, 4 }
 0x127   : > { %1312 = vmatmul.f32.gmra.mxu1 %v704_v16  ;;  %v763_v16 = vrot.slane %v3216_v18, 6  ;;  %v652_v45 = vsel %vm621_vm3, %v649_v12, %v651_v44  ;;  %v653_v18 = vrot.slane %v3236_v40, 4 }
 0x128   : > { %v3451_v39 = vpop.f32.mrf.mxu2 }
 0x129   : > { %4146 = vst [vmem:[#allocation6_spill] sm:$0xff] %v3451_v39  ;;  %v3466_v39 = vpop.f32.mrf.mxu3  ;;  %v764_v5 = vsel %vm733_vm4, %v761_v27, %v763_v16  ;;  %v709_v27 = vrot.slane %v3236_v40, 5 }
 0x12a   : > { %v3454_v14 = vpop.f32.mrf.mxu0 }
 0x12b   : > { %v710_v30 = vsel %vm677_vm5, %v707_v61, %v709_v27 }
 0x12c   : > { %v3458_v11 = vpop.f32.mrf.mxu1 }
 0x12d   : > { %1244 = vmatmul.f32.gmra.mxu0 %v650_v15  ;;  %1386 = vmatmul.f32.gmra.mxu2 %v762_v53  ;;  %v708_v53 = vsel %vm677_vm5, %v705_v35, %v707_v61  ;;  %v3480_v15 = vld [vmem:[%s390_s21] ss:$0 sm:$0xff]  ;;  %s406_s21 = scalar_lea.vmem %s4140_s6, %s4181_s25 }
 0x12e   : > { %v923_v35 = vadd.f32 %v3480_v15, %v3262_v4  ;;  %v655_v4 = vrot.slane %v3254_v59, 4 }
 0x12f   : > { %1315 = vmatmul.f32.gmra.mxu1 %v706_v56  ;;  %v765_v56 = vrot.slane %v3236_v40, 6  ;;  %v926_v40 = vadd.f32 %v3480_v15, %v3278_v17 }
 0x130   : > { %v3463_v19 = vpop.f32.mrf.mxu2 }
 0x131   : > { %4147 = vst [vmem:[#allocation7_spill] sm:$0xff] %v3463_v19  ;;  %v766_v19 = vsel %vm733_vm4, %v763_v16, %v765_v56  ;;  %v711_v16 = vrot.slane %v3254_v59, 5  ;;  %v997_v61 = vadd.f32 %v3281_v21, %v926_v40  ;;  %v769_v21 = vrot.slane %v3266_v6, 6 }
 0x132   : > { %v3468_v51 = vpop.f32.mrf.mxu0 }
 0x133   : > { %4148 = vst [vmem:[#allocation8_spill] sm:$0xff] %v3468_v51  ;;  %v654_v51 = vsel %vm621_vm3, %v651_v44, %v653_v18 }
 0x134   : > { %v3472_v49 = vpop.f32.mrf.mxu1 }
 0x135   : > { %4149 = vst [vmem:[#allocation9_spill] sm:$0xff] %v3472_v49  ;;  %1247 = vmatmul.f32.gmra.mxu0 %v652_v45  ;;  %1389 = vmatmul.f32.gmra.mxu2 %v764_v5  ;;  %v3493_v45 = vpop.f32.mrf.mxu3 }
 0x137   : > { %1318 = vmatmul.f32.gmra.mxu1 %v708_v53  ;;  %v994_v53 = vadd.f32 %v3268_v7, %v923_v35  ;;  %v656_v7 = vsel %vm621_vm3, %v653_v18, %v655_v4 }
 0x138   : > { %v3484_v12 = vpop.f32.mrf.mxu2 }
 0x139   : > { %4150 = vst [vmem:[#allocation10_spill] sm:$0xff] %v3484_v12 }
 0x13a   : > { %v3489_v49 = vpop.f32.mrf.mxu0 }
 0x13b   : > { %4151 = vst [vmem:[#allocation11_spill] sm:$0xff] %v3489_v49  ;;  %v767_v49 = vrot.slane %v3254_v59, 6 }
 0x13c   : > { %v3495_v5 = vpop.f32.mrf.mxu1 }
 0x13d   : > { %4152 = vst [vmem:[#allocation12_spill] sm:$0xff] %v3495_v5  ;;  %1250 = vmatmul.f32.gmra.mxu0 %v654_v51  ;;  %1392 = vmatmul.f32.gmra.mxu2 %v766_v19  ;;  %v1065_v5 = vadd.f32 %v3274_v13, %v994_v53  ;;  %v768_v17 = vsel %vm733_vm4, %v765_v56, %v767_v49  ;;  %v1147_v59 = vpop.f32.mrf.mxu3  ;;  %v657_v13 = vrot.slane %v3266_v6, 4  ;;  %v713_v53 = vrot.slane %v3266_v6, 5 }
 0x13e   : > { %v712_v19 = vsel %vm677_vm5, %v709_v27, %v711_v16 }
 0x13f   : > { %1321 = vmatmul.f32.gmra.mxu1 %v710_v30  ;;  %v1136_v35 = vadd.f32 %v3433_v60, %v1065_v5  ;;  %v1068_v30 = vadd.f32 %v3290_v29, %v997_v61  ;;  %v658_v5 = vsel %vm621_vm3, %v655_v4, %v657_v13 }
 0x140   : > { %v3503_v44 = vpop.f32.mrf.mxu2 }
 0x141   : > { %4153 = vst [vmem:[#allocation13_spill] sm:$0xff] %v3503_v44  ;;  %v929_v44 = vadd.f32 %v3480_v15, %v3294_v33  ;;  %v1139_v27 = vadd.f32 %v3449_v31, %v1068_v30  ;;  %v770_v33 = vsel %vm733_vm4, %v767_v49, %v769_v21 }
 0x142   : > { %v1206_v12 = vpop.f32.mrf.mxu0 }
 0x143   : > { %v1207_v18 = vadd.f32 %v1206_v12, %v1136_v35  ;;  %v1000_v60 = vadd.f32 %v3298_v36, %v929_v44  ;;  %v714_v12 = vsel %vm677_vm5, %v711_v16, %v713_v53 }
 0x144   : > { %v1277_v51 = vpop.f32.mrf.mxu1 }
 0x145   : > { %1253 = vmatmul.f32.gmra.mxu0 %v656_v7  ;;  %1395 = vmatmul.f32.gmra.mxu2 %v768_v17  ;;  %v1278_v40 = vadd.f32 %v1277_v51, %v1207_v18  ;;  %v932_v7 = vadd.f32 %v3480_v15, %v3306_v43  ;;  %v1150_v4 = vpop.f32.mrf.mxu3 }
 0x147   : > { %1324 = vmatmul.f32.gmra.mxu1 %v712_v19  ;;  %v1071_v19 = vadd.f32 %v3303_v50, %v1000_v60  ;;  %v1003_v36 = vadd.f32 %v3310_v47, %v932_v7  ;;  %v935_v50 = vadd.f32 %v3480_v15, %v3318_v55 }
 0x148   : > { %v1348_v56 = vpop.f32.mrf.mxu2 }
 0x149   : > { %v1349_v6 = vadd.f32 %v1348_v56, %v1278_v40  ;;  %v1142_v49 = vadd.f32 %v3466_v39, %v1071_v19  ;;  %v1074_v16 = vadd.f32 %v3315_v54, %v1003_v36  ;;  %v1006_v40 = vadd.f32 %v3322_v58, %v935_v50 }
 0x14a   : > { %v1209_v29 = vpop.f32.mrf.mxu0 }
 0x14b   : > { %v1210_v61 = vadd.f32 %v1209_v29, %v1139_v27  ;;  %v1402_v51 = vmax.f32 %v1349_v6, 0.0  ;;  %v1077_v6 = vadd.f32 %v3327_v1, %v1006_v40 }
 0x14c   : > { %v1280_v17 = vpop.f32.mrf.mxu1 }
 0x14d   : > { %1256 = vmatmul.f32.gmra.mxu0 %v658_v5  ;;  %1398 = vmatmul.f32.gmra.mxu2 %v770_v33  ;;  %v1281_v31 = vadd.f32 %v1280_v17, %v1210_v61  ;;  %v1438_v18 = vrot.slane %v1402_v51, 1  ;;  %v1509_v56 = vrot.slane %v1402_v51, 2  ;;  %v1145_v33 = vadd.f32 %v3493_v45, %v1074_v16  ;;  %v1153_v61 = vpop.f32.mrf.mxu3 }
 0x14f   : > { %1327 = vmatmul.f32.gmra.mxu1 %v714_v12 }
 0x150   : > { %v1351_v44 = vpop.f32.mrf.mxu2 }
 0x151   : > { %v1352_v35 = vadd.f32 %v1351_v44, %v1281_v31  ;;  %v938_v31 = vadd.f32 %v3480_v15, %v3330_v2 }
 0x152   : > { %v1212_v30 = vpop.f32.mrf.mxu0 }
 0x153   : > { %v1403_v43 = vmax.f32 %v1352_v35, 0.0  ;;  %v1213_v13 = vadd.f32 %v1212_v30, %v1142_v49  ;;  %v1148_v30 = vadd.f32 %v1147_v59, %v1077_v6  ;;  %v944_v6 = vadd.f32 %v3480_v15, %v3354_v34 }
 0x154   : > { %v1283_v21 = vpop.f32.mrf.mxu1  ;;  %v947_v34 = vadd.f32 %v3480_v15, %v3366_v48 }
 0x155   : > { %v1439_v53 = vrot.slane %v1403_v43, 1  ;;  %v1510_v27 = vrot.slane %v1403_v43, 2  ;;  %v1284_v47 = vadd.f32 %v1283_v21, %v1213_v13  ;;  %v1009_v13 = vadd.f32 %v3334_v10, %v938_v31 }
 0x157   : > { %v1440_v60 = vsel %vm453_vm1, %v1438_v18, %v1439_v53  ;;  %v1511_v39 = vsel %vm509_vm0, %v1509_v56, %v1510_v27  ;;  %v1156_v56 = vpop.f32.mrf.mxu3 }
 0x158   : > { %v1354_v29 = vpop.f32.mrf.mxu2  ;;  %v1491_v5 = vmax.f32 %v1402_v51, %v1440_v60 }
 0x159   : > { %v1355_v54 = vadd.f32 %v1354_v29, %v1284_v47  ;;  %v1080_v47 = vadd.f32 %v3339_v20, %v1009_v13 }
 0x15a   : > { %v1215_v7 = vpop.f32.mrf.mxu0  ;;  %v3535_v55 = vmax.f32 %v1491_v5, %v1511_v39 }
 0x15b   : > { %v1404_v17 = vmax.f32 %v1355_v54, 0.0  ;;  %v1216_v12 = vadd.f32 %v1215_v7, %v1145_v33  ;;  %v1151_v5 = vadd.f32 %v1150_v4, %v1080_v47 }
 0x15c   : > { %v1286_v19 = vpop.f32.mrf.mxu1 }
 0x15d   : > { %v1441_v36 = vrot.slane %v1404_v17, 1  ;;  %v1512_v44 = vrot.slane %v1404_v17, 2  ;;  %v1287_v49 = vadd.f32 %v1286_v19, %v1216_v12 }
 0x15f   : > { %v1442_v45 = vsel %vm453_vm1, %v1439_v53, %v1441_v36  ;;  %v1513_v58 = vsel %vm509_vm0, %v1510_v27, %v1512_v44  ;;  %v941_v53 = vadd.f32 %v3480_v15, %v3342_v22 }
 0x160   : > { %v1357_v51 = vpop.f32.mrf.mxu2  ;;  %v1492_v35 = vmax.f32 %v1403_v43, %v1442_v45 }
 0x161   : > { %v1358_v16 = vadd.f32 %v1357_v51, %v1287_v49  ;;  %v1012_v33 = vadd.f32 %v3346_v26, %v941_v53  ;;  %v1015_v51 = vadd.f32 %v3358_v41, %v944_v6  ;;  %v1018_v41 = vadd.f32 %v3370_v9, %v947_v34 }
 0x162   : > { %v1218_v50 = vpop.f32.mrf.mxu0  ;;  %v3543_v21 = vmax.f32 %v1492_v35, %v1513_v58 }
 0x163   : > { %v1405_v1 = vmax.f32 %v1358_v16, 0.0  ;;  %v1219_v18 = vadd.f32 %v1218_v50, %v1148_v30  ;;  %v1083_v22 = vadd.f32 %v3351_v32, %v1012_v33 }
 0x164   : > { %v1289_v2 = vpop.f32.mrf.mxu1 }
 0x165   : > { %v1443_v60 = vrot.slane %v1405_v1, 1  ;;  %v1514_v27 = vrot.slane %v1405_v1, 2  ;;  %v1290_v39 = vadd.f32 %v1289_v2, %v1219_v18  ;;  %v1154_v58 = vadd.f32 %v1153_v61, %v1083_v22 }
 0x166   : > { %v1086_v18 = vadd.f32 %v3363_v46, %v1015_v51  ;;  %v1089_v46 = vadd.f32 %v3375_v63, %v1018_v41  ;;  %v956_v41 = vadd.f32 %v3480_v15, %v3402_v42 }
 0x167   : > { %v1444_v59 = vsel %vm453_vm1, %v1441_v36, %v1443_v60  ;;  %v1515_v10 = vsel %vm509_vm0, %v1512_v44, %v1514_v27  ;;  %v1159_v44 = vpop.f32.mrf.mxu3 }
 0x168   : > { %v1360_v43 = vpop.f32.mrf.mxu2  ;;  %v1493_v29 = vmax.f32 %v1404_v17, %v1444_v59  ;;  %v1157_v59 = vadd.f32 %v1156_v56, %v1086_v18  ;;  %v1160_v6 = vadd.f32 %v1159_v44, %v1089_v46 }
 0x169   : > { %v1361_v40 = vadd.f32 %v1360_v43, %v1290_v39 }
 0x16a   : > { %v1221_v54 = vpop.f32.mrf.mxu0  ;;  %v3551_v7 = vmax.f32 %v1493_v29, %v1515_v10 }
 0x16b   : > { %v1406_v20 = vmax.f32 %v1361_v40, 0.0  ;;  %v1222_v12 = vadd.f32 %v1221_v54, %v1151_v5  ;;  %v950_v40 = vadd.f32 %v3480_v15, %v3378_v0  ;;  %v953_v0 = vadd.f32 %v3480_v15, %v3390_v24 }
 0x16c   : > { %v1292_v19 = vpop.f32.mrf.mxu1 }
 0x16d   : > { %v1445_v31 = vrot.slane %v1406_v20, 1  ;;  %v1516_v36 = vrot.slane %v1406_v20, 2  ;;  %v1293_v49 = vadd.f32 %v1292_v19, %v1222_v12 }
 0x16f   : > { %v1446_v4 = vsel %vm453_vm1, %v1443_v60, %v1445_v31  ;;  %v1517_v26 = vsel %vm509_vm0, %v1514_v27, %v1516_v36  ;;  %v1162_v60 = vpop.f32.mrf.mxu3 }
 0x170   : > { %v1363_v17 = vpop.f32.mrf.mxu2  ;;  %v1494_v45 = vmax.f32 %v1405_v1, %v1446_v4 }
 0x171   : > { %v1364_v35 = vadd.f32 %v1363_v17, %v1293_v49 }
 0x172   : > { %v1224_v30 = vpop.f32.mrf.mxu0  ;;  %v3559_v13 = vmax.f32 %v1494_v45, %v1517_v26 }
 0x173   : > { %v1407_v32 = vmax.f32 %v1364_v35, 0.0  ;;  %v1225_v16 = vadd.f32 %v1224_v30, %v1154_v58 }
 0x174   : > { %v1295_v50 = vpop.f32.mrf.mxu1 }
 0x175   : > { %v1447_v2 = vrot.slane %v1407_v32, 1  ;;  %v1518_v47 = vrot.slane %v1407_v32, 2  ;;  %v1296_v53 = vadd.f32 %v1295_v50, %v1225_v16 }
 0x177   : > { %v1448_v1 = vsel %vm453_vm1, %v1445_v31, %v1447_v2  ;;  %v1519_v61 = vsel %vm509_vm0, %v1516_v36, %v1518_v47  ;;  %v1021_v31 = vadd.f32 %v3382_v8, %v950_v40  ;;  %v1165_v49 = vpop.f32.mrf.mxu3 }
 0x178   : > { %v1366_v27 = vpop.f32.mrf.mxu2  ;;  %v1495_v39 = vmax.f32 %v1406_v20, %v1448_v1 }
 0x179   : > { %v1367_v10 = vadd.f32 %v1366_v27, %v1296_v53  ;;  %v1092_v58 = vadd.f32 %v3387_v23, %v1021_v31 }
 0x17a   : > { %v1227_v43 = vpop.f32.mrf.mxu0  ;;  %v3567_v29 = vmax.f32 %v1495_v39, %v1519_v61 }
 0x17b   : > { %v1408_v48 = vmax.f32 %v1367_v10, 0.0  ;;  %v1228_v5 = vadd.f32 %v1227_v43, %v1157_v59  ;;  %v1163_v50 = vadd.f32 %v1162_v60, %v1092_v58 }
 0x17c   : > { %v1298_v33 = vpop.f32.mrf.mxu1 }
 0x17d   : > { %v1449_v54 = vrot.slane %v1408_v48, 1  ;;  %v1520_v12 = vrot.slane %v1408_v48, 2  ;;  %v1299_v19 = vadd.f32 %v1298_v33, %v1228_v5  ;;  %v1027_v5 = vadd.f32 %v3406_v37, %v956_v41 }
 0x17f   : > { %v1450_v9 = vsel %vm453_vm1, %v1447_v2, %v1449_v54  ;;  %v1521_v20 = vsel %vm509_vm0, %v1518_v47, %v1520_v12  ;;  %v1168_v1 = vpop.f32.mrf.mxu3  ;;  %v1098_v42 = vadd.f32 %v3411_v57, %v1027_v5 }
 0x180   : > { %v1369_v56 = vpop.f32.mrf.mxu2  ;;  %v1496_v22 = vmax.f32 %v1407_v32, %v1450_v9  ;;  %v1024_v32 = vadd.f32 %v3394_v28, %v953_v0 }
 0x181   : > { %v1370_v36 = vadd.f32 %v1369_v56, %v1299_v19 }
 0x182   : > { %v1230_v4 = vpop.f32.mrf.mxu0  ;;  %v3575_v63 = vmax.f32 %v1496_v22, %v1521_v20  ;;  %v1095_v23 = vadd.f32 %v3399_v38, %v1024_v32 }
 0x183   : > { %v1409_v26 = vmax.f32 %v1370_v36, 0.0  ;;  %v1231_v17 = vadd.f32 %v1230_v4, %v1160_v6  ;;  %v1169_v36 = vadd.f32 %v1168_v1, %v1098_v42  ;;  %v4154_v42 = vld [vmem:[#allocation4_spill] sm:$0xff] }
 0x184   : > { %v1301_v45 = vpop.f32.mrf.mxu1 }
 0x185   : > { %v1451_v51 = vrot.slane %v1409_v26, 1  ;;  %v1522_v35 = vrot.slane %v1409_v26, 2  ;;  %v1302_v30 = vadd.f32 %v1301_v45, %v1231_v17 }
 0x187   : > { %v1452_v44 = vsel %vm453_vm1, %v1449_v54, %v1451_v51  ;;  %v1523_v8 = vsel %vm509_vm0, %v1520_v12, %v1522_v35  ;;  %v3594_v20 = vpop.f32.mrf.mxu3 }
 0x188   : > { %v1372_v16 = vpop.f32.mrf.mxu2  ;;  %v1497_v34 = vmax.f32 %v1408_v48, %v1452_v44  ;;  %v1166_v48 = vadd.f32 %v1165_v49, %v1095_v23 }
 0x189   : > { %v1373_v18 = vadd.f32 %v1372_v16, %v1302_v30 }
 0x18a   : > { %v1233_v2 = vpop.f32.mrf.mxu0  ;;  %v3583_v47 = vmax.f32 %v1497_v34, %v1523_v8 }
 0x18b   : > { %v1410_v24 = vmax.f32 %v1373_v18, 0.0  ;;  %v1234_v53 = vadd.f32 %v1233_v2, %v1163_v50 }
 0x18c   : > { %v1304_v61 = vpop.f32.mrf.mxu1 }
 0x18d   : > { %v1453_v27 = vrot.slane %v1410_v24, 1  ;;  %v1524_v39 = vrot.slane %v1410_v24, 2  ;;  %v1305_v59 = vadd.f32 %v1304_v61, %v1234_v53 }
 0x18f   : > { %v1454_v28 = vsel %vm453_vm1, %v1451_v51, %v1453_v27  ;;  %v1525_v60 = vsel %vm509_vm0, %v1522_v35, %v1524_v39  ;;  %v1174_v44 = vpop.f32.mrf.mxu3 }
 0x190   : > { %v1375_v10 = vpop.f32.mrf.mxu2  ;;  %v1498_v43 = vmax.f32 %v1409_v26, %v1454_v28 }
 0x191   : > { %v1376_v46 = vadd.f32 %v1375_v10, %v1305_v59  ;;  %v965_v10 = vadd.f32 %v3480_v15, %v3440_v52 }
 0x192   : > { %v1236_v33 = vpop.f32.mrf.mxu0  ;;  %v3591_v38 = vmax.f32 %v1498_v43, %v1525_v60  ;;  %v968_v60 = vadd.f32 %v3480_v15, %v3454_v14  ;;  %v4155_v14 = vld [vmem:[#allocation7_spill] sm:$0xff] }
 0x193   : > { %v1411_v40 = vmax.f32 %v1376_v46, 0.0  ;;  %v1237_v54 = vadd.f32 %v1236_v33, %v1166_v48  ;;  %v962_v48 = vadd.f32 %v3480_v15, %v3426_v25  ;;  %v959_v33 = vadd.f32 %v3480_v15, %v3414_v62  ;;  %v4158_v25 = vld [vmem:[#allocation6_spill] sm:$0xff]  ;;  %v4160_v62 = vld [vmem:[#allocation9_spill] sm:$0xff] }
 0x194   : > { %v1307_v12 = vpop.f32.mrf.mxu1  ;;  %v1039_v5 = vadd.f32 %v3458_v11, %v968_v60 }
 0x195   : > { %v1455_v19 = vrot.slane %v1411_v40, 1  ;;  %v1526_v9 = vrot.slane %v1411_v40, 2  ;;  %v1308_v56 = vadd.f32 %v1307_v12, %v1237_v54 }
 0x197   : > { %v1456_v22 = vsel %vm453_vm1, %v1453_v27, %v1455_v19  ;;  %v1527_v6 = vsel %vm509_vm0, %v1524_v39, %v1526_v9  ;;  %v1177_v27 = vpop.f32.mrf.mxu3 }
 0x198   : > { %v1378_v31 = vpop.f32.mrf.mxu2  ;;  %v1499_v37 = vmax.f32 %v1410_v24, %v1456_v22  ;;  %v4157_v22 = vld [vmem:[#allocation2_spill] sm:$0xff] }
 0x199   : > { %v1379_v49 = vadd.f32 %v1378_v31, %v1308_v56  ;;  %v4156_v56 = vld [vmem:[#allocation8_spill] sm:$0xff] }
 0x19a   : > { %v1239_v4 = vpop.f32.mrf.mxu0  ;;  %v3598_v26 = vmax.f32 %v1499_v37, %v1527_v6  ;;  %v971_v52 = vadd.f32 %v3480_v15, %v4156_v56  ;;  %v1030_v6 = vadd.f32 %v4157_v22, %v959_v33  ;;  %v4159_v37 = vld [vmem:[#allocation5_spill] sm:$0xff] }
 0x19b   : > { %v1412_v17 = vmax.f32 %v1379_v49, 0.0  ;;  %v1240_v0 = vadd.f32 %v1239_v4, %v1169_v36 }
 0x19c   : > { %v1310_v45 = vpop.f32.mrf.mxu1  ;;  %v1042_v4 = vadd.f32 %v4160_v62, %v971_v52 }
 0x19d   : > { %v1457_v57 = vrot.slane %v1412_v17, 1  ;;  %v1528_v58 = vrot.slane %v1412_v17, 2  ;;  %v1311_v51 = vadd.f32 %v1310_v45, %v1240_v0 }
 0x19f   : > { %v1458_v35 = vsel %vm453_vm1, %v1455_v19, %v1457_v57  ;;  %v1529_v30 = vsel %vm509_vm0, %v1526_v9, %v1528_v58  ;;  %v1180_v54 = vpop.f32.mrf.mxu3  ;;  %v1033_v19 = vadd.f32 %v4154_v42, %v962_v48  ;;  %v1110_v9 = vadd.f32 %v4155_v14, %v1039_v5 }
 0x1a0   : > { %v1381_v8 = vpop.f32.mrf.mxu2  ;;  %v1500_v32 = vmax.f32 %v1411_v40, %v1458_v35  ;;  %v1036_v40 = vadd.f32 %v3444_v3, %v965_v10  ;;  %v4162_v35 = vld [vmem:[#allocation10_spill] sm:$0xff] }
 0x1a1   : > { %v1382_v16 = vadd.f32 %v1381_v8, %v1311_v51  ;;  %v1104_v36 = vadd.f32 %v4159_v37, %v1033_v19  ;;  %v1181_v49 = vadd.f32 %v1180_v54, %v1110_v9 }
 0x1a2   : > { %v1242_v34 = vpop.f32.mrf.mxu0  ;;  %v3602_v50 = vmax.f32 %v1500_v32, %v1529_v30  ;;  %v1107_v31 = vadd.f32 %v4158_v25, %v1036_v40  ;;  %v1113_v30 = vadd.f32 %v4162_v35, %v1042_v4 }
 0x1a3   : > { %v3604_v18 = vmax.f32 %v1382_v16, 0.0  ;;  %v1175_v51 = vadd.f32 %v1174_v44, %v1104_v36 }
 0x1a4   : > { %v1313_v2 = vpop.f32.mrf.mxu1  ;;  %v1178_v45 = vadd.f32 %v1177_v27, %v1107_v31 }
 0x1a5   : > { %v1459_v24 = vrot.slane %v3604_v18, 1  ;;  %v1530_v53 = vrot.slane %v3604_v18, 2 }
 0x1a7   : > { %v1460_v23 = vsel %vm453_vm1, %v1457_v57, %v1459_v24  ;;  %v1531_v1 = vsel %vm509_vm0, %v1528_v58, %v1530_v53  ;;  %v1183_v32 = vpop.f32.mrf.mxu3 }
 0x1a8   : > { %v1384_v61 = vpop.f32.mrf.mxu2  ;;  %v1501_v41 = vmax.f32 %v1412_v17, %v1460_v23  ;;  %v4161_v17 = vld [vmem:[#allocation3_spill] sm:$0xff]  ;;  %v1184_v60 = vadd.f32 %v1183_v32, %v1113_v30 }
 0x1a9   : > { %v1101_v0 = vadd.f32 %v4161_v17, %v1030_v6 }
 0x1aa   : > { %v1245_v39 = vpop.f32.mrf.mxu0  ;;  %v3614_v59 = vmax.f32 %v1501_v41, %v1531_v1 }
 0x1ab   : > { %v1172_v16 = vadd.f32 %v3594_v20, %v1101_v0  ;;  %v1246_v23 = vadd.f32 %v1245_v39, %v1175_v51 }
 0x1ac   : > { %v1316_v28 = vpop.f32.mrf.mxu1 }
 0x1ad   : > { %v1243_v10 = vadd.f32 %v1242_v34, %v1172_v16  ;;  %v1317_v40 = vadd.f32 %v1316_v28, %v1246_v23  ;;  %v4165_v16 = vld [vmem:[#allocation13_spill] sm:$0xff] }
 0x1af   : > { %v1314_v19 = vadd.f32 %v1313_v2, %v1243_v10 }
 0x1b0   : > { %v1387_v43 = vpop.f32.mrf.mxu2 }
 0x1b1   : > { %v1388_v44 = vadd.f32 %v1387_v43, %v1317_v40  ;;  %v1385_v9 = vadd.f32 %v1384_v61, %v1314_v19 }
 0x1b2   : > { %v1248_v46 = vpop.f32.mrf.mxu0 }
 0x1b3   : > { %v1249_v8 = vadd.f32 %v1248_v46, %v1178_v45  ;;  %v1415_v20 = vmax.f32 %v1388_v44, 0.0  ;;  %v1414_v6 = vmax.f32 %v1385_v9, 0.0 }
 0x1b4   : > { %v1319_v12 = vpop.f32.mrf.mxu1 }
 0x1b5   : > { %v1320_v48 = vadd.f32 %v1319_v12, %v1249_v8  ;;  %v4163_v12 = vld [vmem:[#allocation11_spill] sm:$0xff]  ;;  %v1463_v31 = vrot.slane %v1415_v20, 1  ;;  %v1461_v43 = vrot.slane %v1414_v6, 1  ;;  %v1534_v51 = vrot.slane %v1415_v20, 2 }
 0x1b6   : > { %v974_v28 = vadd.f32 %v3480_v15, %v4163_v12 }
 0x1b7   : > { %v1464_v45 = vsel %vm453_vm1, %v1461_v43, %v1463_v31  ;;  %v1462_v30 = vsel %vm453_vm1, %v1459_v24, %v1461_v43 }
 0x1b8   : > { %v1390_v11 = vpop.f32.mrf.mxu2  ;;  %v1503_v32 = vmax.f32 %v1414_v6, %v1464_v45  ;;  %v1863_v45 = vld [vmem:[%s3707_s11 + $0xf8] sm:$0xff] }
 0x1b9   : > { %v1391_v54 = vadd.f32 %v1390_v11, %v1320_v48  ;;  %v1502_v48 = vmax.f32 %v3604_v18, %v1462_v30  ;;  %1983 = vmatpush.msra.mxu0 %v1863_v45  ;;  %v1882_v45 = vld [vmem:[%s3707_s11 + $0x190] sm:$0xff] }
 0x1ba   : > { %v1251_v3 = vpop.f32.mrf.mxu0 }
 0x1bb   : > { %v1252_v57 = vadd.f32 %v1251_v3, %v1181_v49  ;;  %v1416_v46 = vmax.f32 %v1391_v54, 0.0  ;;  %v4164_v3 = vld [vmem:[#allocation12_spill] sm:$0xff] }
 0x1bc   : > { %v1322_v58 = vpop.f32.mrf.mxu1  ;;  %v1045_v17 = vadd.f32 %v4164_v3, %v974_v28  ;;  %v1847_v3 = vld [vmem:[%s3707_s11 + $0x78] sm:$0xff] }
 0x1bd   : > { %v1323_v1 = vadd.f32 %v1322_v58, %v1252_v57  ;;  %v1465_v25 = vrot.slane %v1416_v46, 1  ;;  %v1536_v0 = vrot.slane %v1416_v46, 2 }
 0x1be   : > { %v1116_v23 = vadd.f32 %v4165_v16, %v1045_v17  ;;  %v1846_v17 = vld [vmem:[%s3707_s11 + $0x70] sm:$0xff] }
 0x1bf   : > { %v1466_v49 = vsel %vm453_vm1, %v1463_v31, %v1465_v25  ;;  %v1878_v16 = vld [vmem:[%s3707_s11 + $0x170] sm:$0xff] }
 0x1c0   : > { %v1393_v41 = vpop.f32.mrf.mxu2  ;;  %v1504_v58 = vmax.f32 %v1415_v20, %v1466_v49 }
 0x1c1   : > { %v1394_v5 = vadd.f32 %v1393_v41, %v1323_v1  ;;  %v1532_v1 = vrot.slane %v1414_v6, 2  ;;  %v1537_v41 = vsel %vm509_vm0, %v1534_v51, %v1536_v0 }
 0x1c2   : > { %v1254_v33 = vpop.f32.mrf.mxu0  ;;  %v1575_v10 = vmax.f32 %v1504_v58, %v1537_v41  ;;  %v1843_v58 = vld [vmem:[%s3707_s11 + $0x58] sm:$0xff]  ;;  %v1877_v41 = vld [vmem:[%s3707_s11 + $0x168] sm:$0xff] }
 0x1c3   : > { %v1255_v27 = vadd.f32 %v1254_v33, %v1184_v60  ;;  %v1417_v14 = vmax.f32 %v1394_v5, 0.0  ;;  %v1186_v60 = vpop.f32.mrf.mxu3  ;;  %v1535_v5 = vsel %vm509_vm0, %v1532_v1, %v1534_v51  ;;  %v1533_v24 = vsel %vm509_vm0, %v1530_v53, %v1532_v1  ;;  %v1842_v51 = vld [vmem:[%s3707_s11 + $0x50] sm:$0xff]  ;;  %v1861_v1 = vld [vmem:[%s3707_s11 + $0xe8] sm:$0xff] }
 0x1c4   : > { %v1325_v42 = vpop.f32.mrf.mxu1  ;;  %v1574_v40 = vmax.f32 %v1503_v32, %v1535_v5  ;;  %v1187_v54 = vadd.f32 %v1186_v60, %v1116_v23  ;;  %v1862_v32 = vld [vmem:[%s3707_s11 + $0xf0] sm:$0xff]  ;;  %v1840_v23 = vld [vmem:[%s3707_s11 + $0x40] sm:$0xff]  ;;  %v1839_v60 = vld [vmem:[%s3707_s11 + $0x38] sm:$0xff] }
 0x1c5   : > { %v1326_v56 = vadd.f32 %v1325_v42, %v1255_v27  ;;  %v1467_v39 = vrot.slane %v1417_v14, 1  ;;  %v1538_v37 = vrot.slane %v1417_v14, 2  ;;  %v1573_v27 = vmax.f32 %v1502_v48, %v1533_v24  ;;  %1984 = vmatpush.msra.mxu0 %v1862_v32  ;;  %v1876_v48 = vld [vmem:[%s3707_s11 + $0x160] sm:$0xff]  ;;  %v1838_v5 = vld [vmem:[%s3707_s11 + $0x30] sm:$0xff]  ;;  %v1893_v24 = vld [vmem:[%s3707_s11 + $0x1e8] sm:$0xff] }
 0x1c7   : > { %v1468_v61 = vsel %vm453_vm1, %v1465_v25, %v1467_v39  ;;  %v1539_v35 = vsel %vm509_vm0, %v1536_v0, %v1538_v37  ;;  %v1845_v0 = vld [vmem:[%s3707_s11 + $0x68] sm:$0xff]  ;;  %1985 = vmatpush.msra.mxu0 %v1861_v1  ;;  %v1907_v1 = vld [vmem:[%s3707_s11 + $0x258] sm:$0xff] }
 0x1c8   : > { %v1396_v52 = vpop.f32.mrf.mxu2  ;;  %v1505_v4 = vmax.f32 %v1416_v46, %v1468_v61  ;;  %v1580_v46 = vlaneseq  ;;  %v2877_v61 = vmov 0.0  }
 0x1c9   : > { %v1397_v22 = vadd.f32 %v1396_v52, %v1326_v56 }
 0x1ca   : > { %v1576_v8 = vmax.f32 %v1505_v4, %v1539_v35  ;;  %v1257_v33 = vpop.f32.mrf.mxu0  ;;  %v1581_v53 = vshrl.u32 %v1580_v46, 7  ;;  %v1895_v35 = vld [vmem:[%s3707_s11 + $0x1f8] sm:$0xff] }
 0x1cb   : > { %v3637_v34 = vmax.f32 %v1397_v22, 0.0  ;;  %v1258_v42 = vadd.f32 %v1257_v33, %v1187_v54  ;;  %2053 = vmatpush.msra.mxu2 %v1895_v35  ;;  %v1859_v33 = vld [vmem:[%s3707_s11 + $0xd8] sm:$0xff]  ;;  %v2328_v22 = vld [vmem:[%s3961_s19 + $0xc8] sm:$0xff] }
 0x1cc   : > { %v1328_v19 = vpop.f32.mrf.mxu1  ;;  %v1590_v52 = vmul.u32 3, %v1581_v53  ;;  %v1583_v6 = vadd.s32 16, %v1581_v53  ;;  %v1584_v25 = vadd.s32 24, %v1581_v53  ;;  %v1585_v12 = vadd.s32 32, %v1581_v53  ;;  %v1875_v54 = vld [vmem:[%s3707_s11 + $0x158] sm:$0xff] }
 0x1cd   : > { %v1469_v11 = vrot.slane %v3637_v34, 1  ;;  %v1540_v2 = vrot.slane %v3637_v34, 2  ;;  %v1586_v31 = vadd.s32 40, %v1581_v53  ;;  %v1911_v35 = vld [vmem:[%s3707_s11 + $0x278] sm:$0xff] }
 0x1ce   : > { %v1594_v28 = vmul.u32 3, %v1585_v12  ;;  %v1852_v12 = vld [vmem:[%s3707_s11 + $0xa0] sm:$0xff] }
 0x1cf   : > { %v1470_v36 = vsel %vm453_vm1, %v1467_v39, %v1469_v11  ;;  %v1541_v15 = vsel %vm509_vm0, %v1538_v37, %v1540_v2 }
 0x1d0   : > { %v1506_v62 = vmax.f32 %v1417_v14, %v1470_v36  ;;  %v1399_v44 = vpop.f32.mrf.mxu2  ;;  %v1329_v14 = vadd.f32 %v1328_v19, %v1258_v42  ;;  %v1891_v42 = vld [vmem:[%s3707_s11 + $0x1d8] sm:$0xff] }
 0x1d2   : > { %v1577_v57 = vmax.f32 %v1506_v62, %v1541_v15  ;;  %v1400_v9 = vadd.f32 %v1399_v44, %v1329_v14  ;;  %v1844_v15 = vld [vmem:[%s3707_s11 + $0x60] sm:$0xff]  ;;  %v1837_v44 = vld [vmem:[%s3707_s11 + $0x28] sm:$0xff]  ;;  %v1858_v14 = vld [vmem:[%s3707_s11 + $0xd0] sm:$0xff] }
 0x1d4   : > { %1654 = vmatpush.msrb.mxu3 %v1577_v57  ;;  %v1419_v18 = vmax.f32 %v1400_v9, 0.0  ;;  %v1879_v57 = vld [vmem:[%s3707_s11 + $0x178] sm:$0xff]  ;;  %v1874_v9 = vld [vmem:[%s3707_s11 + $0x150] sm:$0xff] }
 0x1d5   : > { %2018 = vmatpush.msra.mxu1 %v1879_v57  ;;  %v1881_v57 = vld [vmem:[%s3707_s11 + $0x188] sm:$0xff] }
 0x1d6   : > { %1655 = vmatpush.msrb.mxu3 %v1576_v8  ;;  %v1471_v56 = vrot.slane %v1419_v18, 1  ;;  %v1841_v8 = vld [vmem:[%s3707_s11 + $0x48] sm:$0xff] }
 0x1d7   : > { %2019 = vmatpush.msra.mxu1 %v1878_v16  ;;  %v1909_v16 = vld [vmem:[%s3707_s11 + $0x268] sm:$0xff] }
 0x1d8   : > { %1656 = vmatpush.msrb.mxu3 %v1575_v10  ;;  %v1508_v20 = vmax.f32 %v1419_v18, %v1471_v56  ;;  %v1860_v10 = vld [vmem:[%s3707_s11 + $0xe0] sm:$0xff] }
 0x1d9   : > { %2020 = vmatpush.msra.mxu1 %v1877_v41  ;;  %1986 = vmatpush.msra.mxu0 %v1860_v10  ;;  %v1906_v41 = vld [vmem:[%s3707_s11 + $0x250] sm:$0xff]  ;;  %v1943_v10 = vld [vmem:[%s3707_s11 + $0x378] sm:$0xff] }
 0x1da   : > { %1657 = vmatpush.msrb.mxu3 %v1574_v40  ;;  %v1894_v40 = vld [vmem:[%s3707_s11 + $0x1f0] sm:$0xff] }
 0x1db   : > { %2021 = vmatpush.msra.mxu1 %v1876_v48  ;;  %2054 = vmatpush.msra.mxu2 %v1894_v40  ;;  %v1926_v40 = vld [vmem:[%s3707_s11 + $0x2f0] sm:$0xff] }
 0x1dc   : > { %1658 = vmatpush.msrb.mxu3 %v1573_v27  ;;  %1987 = vmatpush.msra.mxu0 %v1859_v33  ;;  %v1892_v27 = vld [vmem:[%s3707_s11 + $0x1e0] sm:$0xff] }
 0x1dd   : > { %2022 = vmatpush.msra.mxu1 %v1875_v54  ;;  %2055 = vmatpush.msra.mxu2 %v1893_v24  ;;  %v1942_v54 = vld [vmem:[%s3707_s11 + $0x370] sm:$0xff]  ;;  %v1904_v24 = vld [vmem:[%s3707_s11 + $0x240] sm:$0xff] }
 0x1de   : > { %1659 = vmatpush.msrb.mxu3 %v3614_v59  ;;  %v1588_v59 = vand.u32 127, %v1580_v46  ;;  %1988 = vmatpush.msra.mxu0 %v1858_v14  ;;  %v1836_v46 = vld [vmem:[%s3707_s11 + $0x20] sm:$0xff] }
 0x1df   : > { %2023 = vmatpush.msra.mxu1 %v1874_v9  ;;  %2056 = vmatpush.msra.mxu2 %v1892_v27  ;;  %v1925_v27 = vld [vmem:[%s3707_s11 + $0x2e8] sm:$0xff]  ;;  %v1940_v14 = vld [vmem:[%s3707_s11 + $0x360] sm:$0xff]  ;;  %v1902_v9 = vld [vmem:[%s3707_s11 + $0x230] sm:$0xff] }
 0x1e0   : > { %1660 = vmatpush.msrb.mxu3 %v3602_v50  ;;  %v1472_v50 = vsel %vm453_vm1, %v1469_v11, %v1471_v56  ;;  %vm3673_vm6 = vcmp.eq.s32.totalorder %v1588_v59, %v1590_v52  ;;  %vm1604_vm10 = vcmp.eq.s32.totalorder %v1588_v59, %v1594_v28  ;;  %v1595_v11 = vmul.u32 3, %v1586_v31  ;;  %v1835_v56 = vld [vmem:[%s3707_s11 + $0x18] sm:$0xff]  ;;  %v1886_v31 = vld [vmem:[%s3707_s11 + $0x1b0] sm:$0xff] }
 0x1e1   : > { %2057 = vmatpush.msra.mxu2 %v1891_v42  ;;  %v1941_v42 = vld [vmem:[%s3707_s11 + $0x368] sm:$0xff] }
 0x1e2   : > { %1661 = vmatpush.msrb.mxu3 %v3598_v26  ;;  %v1582_v26 = vadd.s32 8, %v1581_v53  ;;  %vm1606_vm11 = vcmp.eq.s32.totalorder %v1588_v59, %v1595_v11  ;;  %v1873_v53 = vld [vmem:[%s3707_s11 + $0x148] sm:$0xff] }
 0x1e3   : > { %2024 = vmatpush.msra.mxu1 %v1873_v53 }
 0x1e4   : > { %1662 = vmatpush.msrb.mxu3 %v3591_v38  ;;  %v1542_v38 = vrot.slane %v1419_v18, 2  ;;  %v1591_v39 = vmul.u32 3, %v1582_v26  ;;  %v1857_v18 = vld [vmem:[%s3707_s11 + $0xc8] sm:$0xff] }
 0x1e5   : > { %1989 = vmatpush.msra.mxu0 %v1857_v18  ;;  %v1889_v26 = vld [vmem:[%s3707_s11 + $0x1c8] sm:$0xff]  ;;  %v1939_v18 = vld [vmem:[%s3707_s11 + $0x358] sm:$0xff] }
 0x1e6   : > { %1663 = vmatpush.msrb.mxu3 %v3583_v47  ;;  %vm3685_vm7 = vcmp.eq.s32.totalorder %v1588_v59, %v1591_v39  ;;  %v2333_v47 = vld [vmem:[%s3961_s19 + $0xf0] sm:$0xff] }
 0x1e8   : > { %1664 = vmatpush.msrb.mxu3 %v3575_v63  ;;  %v1507_v63 = vmax.f32 %v3637_v34, %v1472_v50  ;;  %v1593_v34 = vmul.u32 3, %v1584_v25  ;;  %v1834_v50 = vld [vmem:[%s3707_s11 + $0x10] sm:$0xff]  ;;  %v1853_v25 = vld [vmem:[%s3707_s11 + $0xa8] sm:$0xff] }
 0x1ea   : > { %1665 = vmatpush.msrb.mxu3 %v3567_v29  ;;  %v1579_v29 = vmax.f32 %v1508_v20, %v1542_v38  ;;  %vm1602_vm9 = vcmp.eq.s32.totalorder %v1588_v59, %v1593_v34  ;;  %v1855_v20 = vld [vmem:[%s3707_s11 + $0xb8] sm:$0xff] }
 0x1ec   : > { %1666 = vmatpush.msrb.mxu3 %v3559_v13  ;;  %v2876_v13 = vmov 1.0  }
 0x1ee   : > { %1667 = vmatpush.msrb.mxu3 %v3551_v7  ;;  %v1543_v7 = vsel %vm509_vm0, %v1540_v2, %v1542_v38  ;;  %v1589_v2 = vadd.s32 128, %v1588_v59  ;;  %v1890_v38 = vld [vmem:[%s3707_s11 + $0x1d0] sm:$0xff] }
 0x1ef   : > { %2058 = vmatpush.msra.mxu2 %v1890_v38 }
 0x1f0   : > { %1668 = vmatpush.msrb.mxu3 %v3543_v21  ;;  %v1578_v21 = vmax.f32 %v1507_v63, %v1543_v7  ;;  %vm1597_vm12 = vcmp.eq.s32.totalorder %v1589_v2, %v1590_v52  ;;  %vm1599_vm14 = vcmp.eq.s32.totalorder %v1589_v2, %v1591_v39  ;;  %v1872_v52 = vld [vmem:[%s3707_s11 + $0x140] sm:$0xff]  ;;  %v1871_v63 = vld [vmem:[%s3707_s11 + $0x138] sm:$0xff]  ;;  %v1870_v39 = vld [vmem:[%s3707_s11 + $0x130] sm:$0xff] }
 0x1f1   : > { %v2758_v43 = vsel %vm1597_vm12, 1.0, %v2877_v61  ;;  %v2760_v37 = vsel %vm1599_vm14, 1.0, %v2877_v61  ;;  %2025 = vmatpush.msra.mxu1 %v1872_v52  ;;  %2059 = vmatpush.msra.mxu2 %v1889_v26  ;;  %v1888_v7 = vld [vmem:[%s3707_s11 + $0x1c0] sm:$0xff]  ;;  %v1922_v52 = vld [vmem:[%s3707_s11 + $0x2d0] sm:$0xff] }
 0x1f2   : > { %1669 = vmatpush.msrb.mxu3 %v3535_v55  ;;  %v1592_v55 = vmul.u32 3, %v1583_v6  ;;  %v1832_v6 = vld [vmem:[%s3707_s11] sm:$0xff] }
 0x1f3   : > { %2769 = vmatmul.msk.f32.vlgmr.msrb.gmra.mxu3 %vm3673_vm6, %v2876_v13  ;;  %2026 = vmatpush.msra.mxu1 %v1871_v63 }
 0x1f4   : > { %2775 = vmatpush.msk.msra.mxu3 %vm509_vm0, %v1579_v29  ;;  %vm1600_vm8 = vcmp.eq.s32.totalorder %v1588_v59, %v1592_v55  ;;  %vm1601_vm15 = vcmp.eq.s32.totalorder %v1589_v2, %v1592_v55  ;;  %v1856_v59 = vld [vmem:[%s3707_s11 + $0xc0] sm:$0xff]  ;;  %v1887_v55 = vld [vmem:[%s3707_s11 + $0x1b8] sm:$0xff]  ;;  %2060 = vmatpush.msra.mxu2 %v1888_v7 }
 0x1f5   : > { %v2762_v36 = vsel %vm1601_vm15, 1.0, %v2877_v61  ;;  %1990 = vmatpush.msra.mxu0 %v1856_v59  ;;  %2027 = vmatpush.msra.mxu1 %v1870_v39  ;;  %v1937_v39 = vld [vmem:[%s3707_s11 + $0x348] sm:$0xff] }
 0x1f6   : > { %1704 = vmatpush.msra.mxu3 %v1578_v21  ;;  %v1854_v21 = vld [vmem:[%s3707_s11 + $0xb0] sm:$0xff]  ;;  %2061 = vmatpush.msra.mxu2 %v1887_v55 }
 0x1f7   : > { %1991 = vmatpush.msra.mxu0 %v1855_v20  ;;  %v1900_v20 = vld [vmem:[%s3707_s11 + $0x220] sm:$0xff] }
 0x1f8   : > { %1948 = vmatpush.msrb.mxu3 %v1847_v3  ;;  %2062 = vmatpush.msra.mxu2 %v1886_v31  ;;  %v1849_v3 = vld [vmem:[%s3707_s11 + $0x88] sm:$0xff]  ;;  %v1898_v31 = vld [vmem:[%s3707_s11 + $0x210] sm:$0xff] }
 0x1f9   : > { %1992 = vmatpush.msra.mxu0 %v1854_v21  ;;  %v1921_v21 = vld [vmem:[%s3707_s11 + $0x2c8] sm:$0xff] }
 0x1fa   : > { %1949 = vmatpush.msrb.mxu3 %v1846_v17  ;;  %v1865_v17 = vld [vmem:[%s3707_s11 + $0x108] sm:$0xff] }
 0x1fb   : > { %2770 = vmatmul.msk.f32.gmra.mxu3 %vm3685_vm7, %v2876_v13  ;;  %1993 = vmatpush.msra.mxu0 %v1853_v25 }
 0x1fc   : > { %1950 = vmatpush.msrb.mxu3 %v1845_v0  ;;  %v1848_v0 = vld [vmem:[%s3707_s11 + $0x80] sm:$0xff] }
 0x1fd   : > { %1994 = vmatpush.msra.mxu0 %v1852_v12  ;;  %v1920_v12 = vld [vmem:[%s3707_s11 + $0x2c0] sm:$0xff] }
 0x1fe   : > { %1951 = vmatpush.msrb.mxu3 %v1844_v15  ;;  %v1864_v15 = vld [vmem:[%s3707_s11 + $0x100] sm:$0xff] }
 0x200   : > { %1952 = vmatpush.msrb.mxu3 %v1843_v58 }
 0x202   : > { %1953 = vmatpush.msrb.mxu3 %v1842_v51  ;;  %v1880_v51 = vld [vmem:[%s3707_s11 + $0x180] sm:$0xff] }
 0x203   : > { %2771 = vmatmul.msk.f32.gmra.mxu3 %vm1600_vm8, %v2876_v13  ;;  %vm1603_vm8 = vcmp.eq.s32.totalorder %v1589_v2, %v1593_v34  ;;  %v1869_v34 = vld [vmem:[%s3707_s11 + $0x128] sm:$0xff] }
 0x204   : > { %v2764_v49 = vsel %vm1603_vm8, 1.0, %v2877_v61  ;;  %1954 = vmatpush.msrb.mxu3 %v1841_v8  ;;  %2028 = vmatpush.msra.mxu1 %v1869_v34  ;;  %v1910_v8 = vld [vmem:[%s3707_s11 + $0x270] sm:$0xff] }
 0x206   : > { %1955 = vmatpush.msrb.mxu3 %v1840_v23  ;;  %v1908_v23 = vld [vmem:[%s3707_s11 + $0x260] sm:$0xff] }
 0x208   : > { %1956 = vmatpush.msrb.mxu3 %v1839_v60  ;;  %v1927_v60 = vld [vmem:[%s3707_s11 + $0x2f8] sm:$0xff] }
 0x20a   : > { %1957 = vmatpush.msrb.mxu3 %v1838_v5  ;;  %v1905_v5 = vld [vmem:[%s3707_s11 + $0x248] sm:$0xff] }
 0x20b   : > { %2772 = vmatmul.msk.f32.gmra.mxu3 %vm1602_vm9, %v2876_v13  ;;  %vm1605_vm9 = vcmp.eq.s32.totalorder %v1589_v2, %v1594_v28  ;;  %v1868_v28 = vld [vmem:[%s3707_s11 + $0x120] sm:$0xff] }
 0x20c   : > { %v2766_v62 = vsel %vm1605_vm9, 1.0, %v2877_v61  ;;  %1958 = vmatpush.msrb.mxu3 %v1837_v44  ;;  %2029 = vmatpush.msra.mxu1 %v1868_v28  ;;  %v1903_v44 = vld [vmem:[%s3707_s11 + $0x238] sm:$0xff]  ;;  %v1936_v28 = vld [vmem:[%s3707_s11 + $0x340] sm:$0xff] }
 0x20e   : > { %1959 = vmatpush.msrb.mxu3 %v1836_v46  ;;  %v1923_v46 = vld [vmem:[%s3707_s11 + $0x2d8] sm:$0xff] }
 0x210   : > { %1960 = vmatpush.msrb.mxu3 %v1835_v56  ;;  %v1901_v56 = vld [vmem:[%s3707_s11 + $0x228] sm:$0xff] }
 0x212   : > { %1961 = vmatpush.msrb.mxu3 %v1834_v50  ;;  %v1938_v50 = vld [vmem:[%s3707_s11 + $0x350] sm:$0xff] }
 0x213   : > { %2773 = vmatmul.msk.f32.gmra.mxu3 %vm1604_vm10, %v2876_v13  ;;  %vm1607_vm10 = vcmp.eq.s32.totalorder %v1589_v2, %v1595_v11  ;;  %v1851_v11 = vld [vmem:[%s3707_s11 + $0x98] sm:$0xff] }
 0x214   : > { %v2768_v4 = vsel %vm1607_vm10, 1.0, %v2877_v61  ;;  %v1867_v2 = vld [vmem:[%s3707_s11 + $0x118] sm:$0xff]  ;;  %1995 = vmatpush.msra.mxu0 %v1851_v11 }
 0x215   : > { %2030 = vmatpush.msra.mxu1 %v1867_v2  ;;  %v1919_v11 = vld [vmem:[%s3707_s11 + $0x2b8] sm:$0xff] }
 0x216   : > { %v1935_v2 = vld [vmem:[%s3707_s11 + $0x338] sm:$0xff] }
 0x21b   : > { %2774 = vmatmul.msk.f32.gmra.mxu3 %vm1606_vm11, %v2876_v13  ;;  %v1833_v13 = vld [vmem:[%s3707_s11 + $0x8] sm:$0xff]  ;;  %vm2247_vm11 = vcmask 326656  }
 0x21c   : > { %1962 = vmatpush.msrb.mxu3 %v1833_v13 }
 0x21e   : > { %1963 = vmatpush.msrb.mxu3 %v1832_v6  ;;  %v1899_v6 = vld [vmem:[%s3707_s11 + $0x218] sm:$0xff] }
 0x223   : > { %2776 = vmatmul.msk.f32.vlgmr.msra.gmra.mxu3 %vm1632_vm13, %v2758_v43  ;;  %v1885_v43 = vld [vmem:[%s3707_s11 + $0x1a8] sm:$0xff] }
 0x224   : > { %2063 = vmatpush.msra.mxu2 %v1885_v43  ;;  %2088 = vmatpush.msra.mxu3 %v1911_v35  ;;  %v1933_v35 = vld [vmem:[%s3707_s11 + $0x328] sm:$0xff] }
 0x226   : > { %2089 = vmatpush.msra.mxu3 %v1910_v8  ;;  %v1916_v8 = vld [vmem:[%s3707_s11 + $0x2a0] sm:$0xff] }
 0x228   : > { %2090 = vmatpush.msra.mxu3 %v1909_v16  ;;  %v1932_v16 = vld [vmem:[%s3707_s11 + $0x320] sm:$0xff] }
 0x22a   : > { %2091 = vmatpush.msra.mxu3 %v1908_v23 }
 0x22b   : > { %2777 = vmatmul.msk.f32.gmra.mxu3 %vm1632_vm13, %v2760_v37 }
 0x22c   : > { %2092 = vmatpush.msra.mxu3 %v1907_v1 }
 0x22e   : > { %2093 = vmatpush.msra.mxu3 %v1906_v41  ;;  %v1915_v41 = vld [vmem:[%s3707_s11 + $0x298] sm:$0xff] }
 0x230   : > { %2094 = vmatpush.msra.mxu3 %v1905_v5 }
 0x232   : > { %2095 = vmatpush.msra.mxu3 %v1904_v24 }
 0x233   : > { %2778 = vmatmul.msk.f32.gmra.mxu3 %vm1632_vm13, %v2762_v36  ;;  %v1884_v36 = vld [vmem:[%s3707_s11 + $0x1a0] sm:$0xff] }
 0x234   : > { %2064 = vmatpush.msra.mxu2 %v1884_v36  ;;  %2096 = vmatpush.msra.mxu3 %v1903_v44  ;;  %v1929_v44 = vld [vmem:[%s3707_s11 + $0x308] sm:$0xff] }
 0x236   : > { %2097 = vmatpush.msra.mxu3 %v1902_v9 }
 0x238   : > { %2098 = vmatpush.msra.mxu3 %v1901_v56 }
 0x23a   : > { %2099 = vmatpush.msra.mxu3 %v1900_v20 }
 0x23b   : > { %2779 = vmatmul.msk.f32.gmra.mxu3 %vm1632_vm13, %v2764_v49  ;;  %v1850_v49 = vld [vmem:[%s3707_s11 + $0x90] sm:$0xff] }
 0x23c   : > { %1996 = vmatpush.msra.mxu0 %v1850_v49  ;;  %2100 = vmatpush.msra.mxu3 %v1899_v6  ;;  %v1897_v49 = vld [vmem:[%s3707_s11 + $0x208] sm:$0xff] }
 0x23e   : > { %1997 = vmatpush.msra.mxu0 %v1849_v3  ;;  %2101 = vmatpush.msra.mxu3 %v1898_v31 }
 0x240   : > { %1998 = vmatpush.msra.mxu0 %v1848_v0  ;;  %2102 = vmatpush.msra.mxu3 %v1897_v49 }
 0x242   : > { %2123 = vmatpush.msrb.mxu0 %v1927_v60  ;;  %v1931_v60 = vld [vmem:[%s3707_s11 + $0x318] sm:$0xff] }
 0x243   : > { %2780 = vmatmul.msk.f32.gmra.mxu3 %vm1632_vm13, %v2766_v62  ;;  %v1866_v62 = vld [vmem:[%s3707_s11 + $0x110] sm:$0xff] }
 0x244   : > { %2031 = vmatpush.msra.mxu1 %v1866_v62  ;;  %2124 = vmatpush.msrb.mxu0 %v1926_v40  ;;  %v1918_v62 = vld [vmem:[%s3707_s11 + $0x2b0] sm:$0xff] }
 0x245   : > { %v1914_v40 = vld [vmem:[%s3707_s11 + $0x290] sm:$0xff] }
 0x246   : > { %2032 = vmatpush.msra.mxu1 %v1865_v17  ;;  %2125 = vmatpush.msrb.mxu0 %v1925_v27  ;;  %v1930_v27 = vld [vmem:[%s3707_s11 + $0x310] sm:$0xff] }
 0x248   : > { %2033 = vmatpush.msra.mxu1 %v1864_v15 }
 0x24a   : > { %2158 = vmatpush.msrb.mxu1 %v1943_v10 }
 0x24b   : > { %2781 = vmatmul.msk.f32.gmra.mxu3 %vm1632_vm13, %v2768_v4  ;;  %v1883_v4 = vld [vmem:[%s3707_s11 + $0x198] sm:$0xff] }
 0x24c   : > { %2065 = vmatpush.msra.mxu2 %v1883_v4  ;;  %2159 = vmatpush.msrb.mxu1 %v1942_v54  ;;  %v1934_v4 = vld [vmem:[%s3707_s11 + $0x330] sm:$0xff] }
 0x24e   : > { %2066 = vmatpush.msra.mxu2 %v1882_v45  ;;  %2160 = vmatpush.msrb.mxu1 %v1941_v42  ;;  %v1913_v42 = vld [vmem:[%s3707_s11 + $0x288] sm:$0xff] }
 0x250   : > { %2067 = vmatpush.msra.mxu2 %v1881_v57  ;;  %2161 = vmatpush.msrb.mxu1 %v1940_v14  ;;  %v1912_v14 = vld [vmem:[%s3707_s11 + $0x280] sm:$0xff] }
 0x252   : > { %2068 = vmatpush.msra.mxu2 %v1880_v51  ;;  %2162 = vmatpush.msrb.mxu1 %v1939_v18  ;;  %v1917_v51 = vld [vmem:[%s3707_s11 + $0x2a8] sm:$0xff] }
 0x254   : > { %2163 = vmatpush.msrb.mxu1 %v1938_v50 }
 0x256   : > { %2164 = vmatpush.msrb.mxu1 %v1937_v39 }
 0x258   : > { %2165 = vmatpush.msrb.mxu1 %v1936_v28 }
 0x25a   : > { %2166 = vmatpush.msrb.mxu1 %v1935_v2 }
 0x25c   : > { %2167 = vmatpush.msrb.mxu1 %v1934_v4 }
 0x25e   : > { %2168 = vmatpush.msrb.mxu1 %v1933_v35 }
 0x260   : > { %2169 = vmatpush.msrb.mxu1 %v1932_v16 }
 0x262   : > { %2170 = vmatpush.msrb.mxu1 %v1931_v60 }
 0x264   : > { %2171 = vmatpush.msrb.mxu1 %v1930_v27 }
 0x266   : > { %2172 = vmatpush.msrb.mxu1 %v1929_v44 }
 0x276   : > { %v3718_v30 = vpop.f32.mrf.mxu3 }
 0x27e   : > { %v3736_v19 = vpop.f32.mrf.mxu3 }
 0x286   : > { %v3752_v29 = vpop.f32.mrf.mxu3 }
 0x28e   : > { %v3772_v37 = vpop.f32.mrf.mxu3 }
 0x296   : > { %v3784_v58 = vpop.f32.mrf.mxu3 }
 0x29e   : > { %v3789_v32 = vpop.f32.mrf.mxu3 }
 0x2a6   : > { %v1706_v48 = vpop.f32.mrf.mxu3 }
 0x2a7   : > { %v3799_v33 = vadd.f32 %v1706_v48, %v3718_v30  ;;  %v1924_v30 = vld [vmem:[%s3707_s11 + $0x2e0] sm:$0xff] }
 0x2a8   : > { %2126 = vmatpush.msrb.mxu0 %v1924_v30 }
 0x2a9   : > { %1964 = vmatmul.f32.vlgmr.msrb.gmra.mxu3 %v3799_v33  ;;  %v1730_v38 = vrot.slane %v3799_v33, 1  ;;  %v1747_v63 = vrot.slane %v3799_v33, 2  ;;  %v1764_v13 = vrot.slane %v3799_v33, 3  ;;  %v1798_v28 = vrot.slane %v3799_v33, 5 }
 0x2aa   : > { %2127 = vmatpush.msrb.mxu0 %v1923_v46  ;;  %v1928_v46 = vld [vmem:[%s3707_s11 + $0x300] sm:$0xff]  ;;  %v1815_v31 = vrot.slane %v3799_v33, 6 }
 0x2ab   : > { %2173 = vmatpush.msrb.mxu1 %v1928_v46 }
 0x2ac   : > { %2128 = vmatpush.msrb.mxu0 %v1922_v52 }
 0x2ae   : > { %v1709_v53 = vpop.f32.mrf.mxu3  ;;  %2129 = vmatpush.msrb.mxu0 %v1921_v21 }
 0x2af   : > { %v3815_v59 = vadd.f32 %v1709_v53, %v3736_v19 }
 0x2b0   : > { %2130 = vmatpush.msrb.mxu0 %v1920_v12 }
 0x2b1   : > { %1967 = vmatmul.f32.gmra.mxu3 %v3815_v59  ;;  %v1731_v26 = vrot.slane %v3815_v59, 1  ;;  %v1748_v19 = vrot.slane %v3815_v59, 2  ;;  %v1765_v7 = vrot.slane %v3815_v59, 3  ;;  %v1782_v39 = vrot.slane %v3815_v59, 4 }
 0x2b2   : > { %2131 = vmatpush.msrb.mxu0 %v1919_v11 }
 0x2b3   : > { %v1732_v55 = vsel %vm453_vm1, %v1730_v38, %v1731_v26  ;;  %v1749_v25 = vsel %vm509_vm0, %v1747_v63, %v1748_v19  ;;  %v1766_v34 = vsel %vm565_vm2, %v1764_v13, %v1765_v7 }
 0x2b4   : > { %1999 = vmatmul.f32.vlgmr.msra.gmra.mxu0 %v1732_v55  ;;  %2034 = vmatmul.f32.vlgmr.msra.gmra.mxu1 %v1749_v25  ;;  %v1799_v25 = vrot.slane %v3815_v59, 5 }
 0x2b5   : > { %2069 = vmatmul.f32.vlgmr.msra.gmra.mxu2 %v1766_v34  ;;  %2132 = vmatpush.msrb.mxu0 %v1918_v62  ;;  %v1816_v34 = vrot.slane %v3815_v59, 6 }
 0x2b6   : > { %v1712_v43 = vpop.f32.mrf.mxu3  ;;  %v1800_v11 = vsel %vm677_vm5, %v1798_v28, %v1799_v25 }
 0x2b7   : > { %v3839_v36 = vadd.f32 %v1712_v43, %v3752_v29  ;;  %v1896_v29 = vld [vmem:[%s3707_s11 + $0x200] sm:$0xff]  ;;  %2133 = vmatpush.msrb.mxu0 %v1917_v51  ;;  %v1817_v2 = vsel %vm733_vm4, %v1815_v31, %v1816_v34  ;;  %s2756_s11 = sshll.u32 %s412_s10, 1 }
 0x2b8   : > { %2103 = vmatpush.msra.mxu3 %v1896_v29 }
 0x2b9   : > { %1970 = vmatmul.f32.gmra.mxu3 %v3839_v36  ;;  %v1733_v3 = vrot.slane %v3839_v36, 1  ;;  %v1750_v17 = vrot.slane %v3839_v36, 2  ;;  %v1767_v0 = vrot.slane %v3839_v36, 3  ;;  %2134 = vmatpush.msrb.mxu0 %v1916_v8  ;;  %v1784_v55 = vrot.slane %v3839_v36, 4 }
 0x2ba   : > { %v1801_v49 = vrot.slane %v3839_v36, 5  ;;  %v1818_v62 = vrot.slane %v3839_v36, 6 }
 0x2bb   : > { %v1734_v15 = vsel %vm453_vm1, %v1731_v26, %v1733_v3  ;;  %v1751_v45 = vsel %vm509_vm0, %v1748_v19, %v1750_v17  ;;  %v1768_v57 = vsel %vm565_vm2, %v1765_v7, %v1767_v0  ;;  %2135 = vmatpush.msrb.mxu0 %v1915_v41  ;;  %v1785_v12 = vsel %vm621_vm3, %v1782_v39, %v1784_v55 }
 0x2bc   : > { %2002 = vmatmul.f32.gmra.mxu0 %v1734_v15  ;;  %2037 = vmatmul.f32.gmra.mxu1 %v1751_v45  ;;  %v1802_v4 = vsel %vm677_vm5, %v1799_v25, %v1801_v49 }
 0x2bd   : > { %2072 = vmatmul.f32.gmra.mxu2 %v1768_v57  ;;  %2136 = vmatpush.msrb.mxu0 %v1914_v40 }
 0x2be   : > { %v1715_v23 = vpop.f32.mrf.mxu3 }
 0x2bf   : > { %v3857_v1 = vadd.f32 %v1715_v23, %v3772_v37  ;;  %2137 = vmatpush.msrb.mxu0 %v1913_v42 }
 0x2c1   : > { %1973 = vmatmul.f32.gmra.mxu3 %v3857_v1  ;;  %v1735_v10 = vrot.slane %v3857_v1, 1  ;;  %v1752_v48 = vrot.slane %v3857_v1, 2  ;;  %v1769_v5 = vrot.slane %v3857_v1, 3  ;;  %2138 = vmatpush.msrb.mxu0 %v1912_v14  ;;  %v1786_v43 = vrot.slane %v3857_v1, 4 }
 0x2c3   : > { %v1736_v37 = vsel %vm453_vm1, %v1733_v3, %v1735_v10  ;;  %v1753_v54 = vsel %vm509_vm0, %v1750_v17, %v1752_v48  ;;  %v1770_v24 = vsel %vm565_vm2, %v1767_v0, %v1769_v5  ;;  %v1787_v59 = vsel %vm621_vm3, %v1784_v55, %v1786_v43 }
 0x2c4   : > { %2005 = vmatmul.f32.gmra.mxu0 %v1736_v37  ;;  %2040 = vmatmul.f32.gmra.mxu1 %v1753_v54  ;;  %v1819_v3 = vsel %vm733_vm4, %v1816_v34, %v1818_v62  ;;  %v1803_v17 = vrot.slane %v3857_v1, 5  ;;  %v1820_v0 = vrot.slane %v3857_v1, 6 }
 0x2c5   : > { %2075 = vmatmul.f32.gmra.mxu2 %v1770_v24 }
 0x2c6   : > { %v1718_v30 = vpop.f32.mrf.mxu3  ;;  %v1804_v36 = vsel %vm677_vm5, %v1801_v49, %v1803_v17  ;;  %v1821_v15 = vsel %vm733_vm4, %v1818_v62, %v1820_v0 }
 0x2c7   : > { %v3874_v9 = vadd.f32 %v1718_v30, %v3784_v58 }
 0x2c9   : > { %1976 = vmatmul.f32.gmra.mxu3 %v3874_v9  ;;  %v1737_v18 = vrot.slane %v3874_v9, 1  ;;  %v1754_v53 = vrot.slane %v3874_v9, 2  ;;  %v1771_v56 = vrot.slane %v3874_v9, 3  ;;  %v1805_v57 = vrot.slane %v3874_v9, 5 }
 0x2ca   : > { %v1822_v51 = vrot.slane %v3874_v9, 6 }
 0x2cb   : > { %v1738_v52 = vsel %vm453_vm1, %v1735_v10, %v1737_v18  ;;  %v1755_v50 = vsel %vm509_vm0, %v1752_v48, %v1754_v53  ;;  %v1772_v58 = vsel %vm565_vm2, %v1769_v5, %v1771_v56  ;;  %v1806_v8 = vsel %vm677_vm5, %v1803_v17, %v1805_v57  ;;  %v3932_v10 = vld [vmem:[%s398_s14] ss:$0 sm:$0xff]  ;;  %s414_s14 = scalar_lea.vmem %s4141_s7, %s2756_s11 }
 0x2cc   : > { %2008 = vmatmul.f32.gmra.mxu0 %v1738_v52  ;;  %2043 = vmatmul.f32.gmra.mxu1 %v1755_v50  ;;  %v1823_v16 = vsel %vm733_vm4, %v1820_v0, %v1822_v51 }
 0x2cd   : > { %2078 = vmatmul.f32.gmra.mxu2 %v1772_v58 }
 0x2ce   : > { %v1721_v20 = vpop.f32.mrf.mxu3 }
 0x2cf   : > { %v3885_v38 = vadd.f32 %v1721_v20, %v3789_v32  ;;  %v1781_v32 = vrot.slane %v3799_v33, 4  ;;  %v1788_v33 = vrot.slane %v3874_v9, 4 }
 0x2d1   : > { %1979 = vmatmul.f32.gmra.mxu3 %v3885_v38  ;;  %v1739_v63 = vrot.slane %v3885_v38, 1  ;;  %v1756_v26 = vrot.slane %v3885_v38, 2  ;;  %v1773_v19 = vrot.slane %v3885_v38, 3  ;;  %v1783_v6 = vsel %vm621_vm3, %v1781_v32, %v1782_v39 }
 0x2d2   : > { %v1789_v29 = vsel %vm621_vm3, %v1786_v43, %v1788_v33  ;;  %v1790_v45 = vrot.slane %v3885_v38, 4  ;;  %v1807_v23 = vrot.slane %v3885_v38, 5  ;;  %v1824_v1 = vrot.slane %v3885_v38, 6 }
 0x2d3   : > { %v1740_v13 = vsel %vm453_vm1, %v1737_v18, %v1739_v63  ;;  %v1757_v7 = vsel %vm509_vm0, %v1754_v53, %v1756_v26  ;;  %v1774_v21 = vsel %vm565_vm2, %v1771_v56, %v1773_v19 }
 0x2d4   : > { %2011 = vmatmul.f32.gmra.mxu0 %v1740_v13  ;;  %2046 = vmatmul.f32.gmra.mxu1 %v1757_v7  ;;  %v1791_v35 = vsel %vm621_vm3, %v1788_v33, %v1790_v45  ;;  %v1808_v41 = vsel %vm677_vm5, %v1805_v57, %v1807_v23  ;;  %v1825_v60 = vsel %vm733_vm4, %v1822_v51, %v1824_v1 }
 0x2d5   : > { %2081 = vmatmul.f32.gmra.mxu2 %v1774_v21 }
 0x2d9   : > { %2104 = vmatmul.f32.vlgmr.msra.gmra.mxu3 %v1783_v6 }
 0x2dc   : > { %2014 = vmatmul.f32.gmra.mxu0 %v1739_v63  ;;  %2049 = vmatmul.f32.gmra.mxu1 %v1756_v26 }
 0x2dd   : > { %2084 = vmatmul.f32.gmra.mxu2 %v1773_v19 }
 0x2e1   : > { %2107 = vmatmul.f32.gmra.mxu3 %v1785_v12 }
 0x2e4   : > { %2139 = vmatmul.f32.vlgmr.msrb.gmra.mxu0 %v1800_v11  ;;  %2174 = vmatmul.f32.vlgmr.msrb.gmra.mxu1 %v1817_v2 }
 0x2e9   : > { %2110 = vmatmul.f32.gmra.mxu3 %v1787_v59 }
 0x2ec   : > { %2142 = vmatmul.f32.gmra.mxu0 %v1802_v4  ;;  %2177 = vmatmul.f32.gmra.mxu1 %v1819_v3 }
 0x2f1   : > { %2113 = vmatmul.f32.gmra.mxu3 %v1789_v29 }
 0x2f4   : > { %2145 = vmatmul.f32.gmra.mxu0 %v1804_v36  ;;  %2180 = vmatmul.f32.gmra.mxu1 %v1821_v15 }
 0x2f9   : > { %2116 = vmatmul.f32.gmra.mxu3 %v1791_v35 }
 0x2fc   : > { %2148 = vmatmul.f32.gmra.mxu0 %v1806_v8  ;;  %2183 = vmatmul.f32.gmra.mxu1 %v1823_v16 }
 0x301   : > { %2119 = vmatmul.f32.gmra.mxu3 %v1790_v45 }
 0x304   : > { %2151 = vmatmul.f32.gmra.mxu0 %v1808_v41  ;;  %2186 = vmatmul.f32.gmra.mxu1 %v1825_v60 }
 0x30c   : > { %2154 = vmatmul.f32.gmra.mxu0 %v1807_v23  ;;  %2189 = vmatmul.f32.gmra.mxu1 %v1824_v1 }
 0x32c   : > { %v1965_v48 = vpop.f32.mrf.mxu3 }
 0x32d   : > { %v1966_v5 = vadd.f32 %v3932_v10, %v1965_v48 }
 0x331   : > { %v2000_v40 = vpop.f32.mrf.mxu0  ;;  %v2035_v37 = vpop.f32.mrf.mxu1 }
 0x332   : > { %v2001_v54 = vadd.f32 %v2000_v40, %v1966_v5 }
 0x334   : > { %v2036_v24 = vadd.f32 %v2035_v37, %v2001_v54  ;;  %v1968_v27 = vpop.f32.mrf.mxu3 }
 0x335   : > { %v1969_v42 = vadd.f32 %v3932_v10, %v1968_v27 }
 0x338   : > { %v2070_v26 = vpop.f32.mrf.mxu2 }
 0x339   : > { %v2003_v44 = vpop.f32.mrf.mxu0  ;;  %v2038_v30 = vpop.f32.mrf.mxu1  ;;  %v2071_v55 = vadd.f32 %v2070_v26, %v2036_v24 }
 0x33a   : > { %v2004_v14 = vadd.f32 %v2003_v44, %v1969_v42 }
 0x33c   : > { %v2039_v9 = vadd.f32 %v2038_v30, %v2004_v14  ;;  %v1971_v46 = vpop.f32.mrf.mxu3 }
 0x33d   : > { %v1972_v18 = vadd.f32 %v3932_v10, %v1971_v46 }
 0x340   : > { %v2073_v32 = vpop.f32.mrf.mxu2 }
 0x341   : > { %v2006_v53 = vpop.f32.mrf.mxu0  ;;  %v2041_v56 = vpop.f32.mrf.mxu1  ;;  %v2074_v2 = vadd.f32 %v2073_v32, %v2039_v9 }
 0x342   : > { %v2007_v52 = vadd.f32 %v2006_v53, %v1972_v18 }
 0x344   : > { %v2042_v50 = vadd.f32 %v2041_v56, %v2007_v52  ;;  %v1974_v58 = vpop.f32.mrf.mxu3 }
 0x345   : > { %v1975_v37 = vadd.f32 %v3932_v10, %v1974_v58 }
 0x348   : > { %v2076_v31 = vpop.f32.mrf.mxu2 }
 0x349   : > { %v2009_v20 = vpop.f32.mrf.mxu0  ;;  %v2044_v38 = vpop.f32.mrf.mxu1  ;;  %v2077_v0 = vadd.f32 %v2076_v31, %v2042_v50 }
 0x34a   : > { %v2010_v27 = vadd.f32 %v2009_v20, %v1975_v37  ;;  %v2311_v37 = vld [vmem:[%s3961_s19 + $0x40] sm:$0xff] }
 0x34c   : > { %v1977_v63 = vpop.f32.mrf.mxu3  ;;  %v2045_v52 = vadd.f32 %v2044_v38, %v2010_v27 }
 0x34d   : > { %v1978_v54 = vadd.f32 %v3932_v10, %v1977_v63 }
 0x350   : > { %v2079_v29 = vpop.f32.mrf.mxu2 }
 0x351   : > { %v2012_v19 = vpop.f32.mrf.mxu0  ;;  %v2047_v13 = vpop.f32.mrf.mxu1  ;;  %v2080_v26 = vadd.f32 %v2079_v29, %v2045_v52  ;;  %v3987_v52 = vsel %vm3673_vm6, 1.0, %v2877_v61 }
 0x352   : > { %v2013_v42 = vadd.f32 %v2012_v19, %v1978_v54 }
 0x354   : > { %v1980_v7 = vpop.f32.mrf.mxu3  ;;  %v2048_v50 = vadd.f32 %v2047_v13, %v2013_v42 }
 0x355   : > { %v1981_v63 = vadd.f32 %v3932_v10, %v1980_v7 }
 0x358   : > { %v2082_v44 = vpop.f32.mrf.mxu2 }
 0x359   : > { %v2015_v21 = vpop.f32.mrf.mxu0  ;;  %v3937_v39 = vpop.f32.mrf.mxu1  ;;  %v2083_v19 = vadd.f32 %v2082_v44, %v2048_v50  ;;  %v2310_v44 = vld [vmem:[%s3961_s19 + $0x38] sm:$0xff]  ;;  %v2305_v50 = vld [vmem:[%s3961_s19 + $0x10] sm:$0xff] }
 0x35a   : > { %v2016_v32 = vadd.f32 %v2015_v21, %v1981_v63  ;;  %v2303_v63 = vld [vmem:[%s3961_s19] sm:$0xff] }
 0x35c   : > { %v2105_v6 = vpop.f32.mrf.mxu3 }
 0x35d   : > { %v2106_v25 = vadd.f32 %v2105_v6, %v2071_v55 }
 0x360   : > { %v2085_v31 = vpop.f32.mrf.mxu2 }
 0x361   : > { %v2140_v34 = vpop.f32.mrf.mxu0  ;;  %v2175_v12 = vpop.f32.mrf.mxu1 }
 0x362   : > { %v2141_v28 = vadd.f32 %v2140_v34, %v2106_v25 }
 0x364   : > { %v2108_v11 = vpop.f32.mrf.mxu3  ;;  %v2176_v43 = vadd.f32 %v2175_v12, %v2141_v28 }
 0x365   : > { %v2109_v49 = vadd.f32 %v2108_v11, %v2074_v2  ;;  %v2051_v11 = vadd.f32 %v3937_v39, %v2016_v32  ;;  %v2330_v32 = vld [vmem:[%s3961_s19 + $0xd8] sm:$0xff] }
 0x366   : > { %v2193_v3 = vmax.f32 %v2176_v43, 0.0  ;;  %v2318_v43 = vld [vmem:[%s3961_s19 + $0x78] sm:$0xff] }
 0x367   : > { %v2086_v10 = vadd.f32 %v2085_v31, %v2051_v11  ;;  %2419 = vmatpush.msrb.mxu3 %v2318_v43  ;;  %v2345_v31 = vld [vmem:[%s3961_s19 + $0x150] sm:$0xff] }
 0x368   : > { %v2205_v15 = vrot.slane %v2193_v3, 1  ;;  %v2226_v45 = vrot.slane %v2193_v3, 2  ;;  %v2325_v11 = vld [vmem:[%s3961_s19 + $0xb0] sm:$0xff] }
 0x369   : > { %v2143_v62 = vpop.f32.mrf.mxu0  ;;  %v2178_v59 = vpop.f32.mrf.mxu1  ;;  %v2341_v43 = vld [vmem:[%s3961_s19 + $0x130] sm:$0xff] }
 0x36a   : > { %v2144_v4 = vadd.f32 %v2143_v62, %v2109_v49  ;;  %v2317_v49 = vld [vmem:[%s3961_s19 + $0x70] sm:$0xff] }
 0x36b   : > { %2420 = vmatpush.msrb.mxu3 %v2317_v49  ;;  %v2321_v49 = vld [vmem:[%s3961_s19 + $0x90] sm:$0xff] }
 0x36c   : > { %v2179_v33 = vadd.f32 %v2178_v59, %v2144_v4  ;;  %v2111_v17 = vpop.f32.mrf.mxu3  ;;  %v2316_v4 = vld [vmem:[%s3961_s19 + $0x68] sm:$0xff] }
 0x36d   : > { %v2112_v35 = vadd.f32 %v2111_v17, %v2077_v0  ;;  %v2315_v0 = vld [vmem:[%s3961_s19 + $0x60] sm:$0xff]  ;;  %2421 = vmatpush.msrb.mxu3 %v2316_v4 }
 0x36e   : > { %v2194_v36 = vmax.f32 %v2179_v33, 0.0  ;;  %v2319_v4 = vld [vmem:[%s3961_s19 + $0x80] sm:$0xff] }
 0x36f   : > { %2422 = vmatpush.msrb.mxu3 %v2315_v0  ;;  %v2336_v0 = vld [vmem:[%s3961_s19 + $0x108] sm:$0xff] }
 0x370   : > { %v2206_v57 = vrot.slane %v2194_v36, 1  ;;  %v2227_v51 = vrot.slane %v2194_v36, 2 }
 0x371   : > { %v2146_v8 = vpop.f32.mrf.mxu0  ;;  %v2181_v16 = vpop.f32.mrf.mxu1 }
 0x372   : > { %v2147_v23 = vadd.f32 %v2146_v8, %v2112_v35  ;;  %v2207_v1 = vsel %vm453_vm1, %v2205_v15, %v2206_v57  ;;  %v2228_v41 = vsel %vm509_vm0, %v2226_v45, %v2227_v51  ;;  %v2314_v15 = vld [vmem:[%s3961_s19 + $0x58] sm:$0xff]  ;;  %v2313_v35 = vld [vmem:[%s3961_s19 + $0x50] sm:$0xff] }
 0x373   : > { %v2221_v60 = vmax.f32 %v2193_v3, %v2207_v1  ;;  %2423 = vmatpush.msrb.mxu3 %v2314_v15  ;;  %v2312_v1 = vld [vmem:[%s3961_s19 + $0x48] sm:$0xff]  ;;  %v2365_v15 = vld [vmem:[%s3961_s19 + $0x1f0] sm:$0xff] }
 0x374   : > { %v2182_v48 = vadd.f32 %v2181_v16, %v2147_v23  ;;  %v2114_v5 = vpop.f32.mrf.mxu3 }
 0x375   : > { %v3941_v40 = vmax.f32 %v2221_v60, %v2228_v41  ;;  %v2115_v6 = vadd.f32 %v2114_v5, %v2080_v26  ;;  %2424 = vmatpush.msrb.mxu3 %v2313_v35  ;;  %v2331_v26 = vld [vmem:[%s3961_s19 + $0xe0] sm:$0xff] }
 0x376   : > { %v3945_v24 = vmax.f32 %v2182_v48, 0.0  ;;  %v2363_v35 = vld [vmem:[%s3961_s19 + $0x1e0] sm:$0xff] }
 0x377   : > { %2425 = vmatpush.msrb.mxu3 %v2312_v1  ;;  %v2397_v1 = vld [vmem:[%s3961_s19 + $0x2f0] sm:$0xff] }
 0x378   : > { %v2208_v30 = vrot.slane %v3945_v24, 1  ;;  %v2229_v14 = vrot.slane %v3945_v24, 2 }
 0x379   : > { %v2149_v9 = vpop.f32.mrf.mxu0  ;;  %v2184_v46 = vpop.f32.mrf.mxu1  ;;  %2426 = vmatpush.msrb.mxu3 %v2311_v37  ;;  %v2376_v37 = vld [vmem:[%s3961_s19 + $0x248] sm:$0xff] }
 0x37a   : > { %v2209_v18 = vsel %vm453_vm1, %v2206_v57, %v2208_v30  ;;  %v2230_v53 = vsel %vm509_vm0, %v2227_v51, %v2229_v14  ;;  %v2150_v12 = vadd.f32 %v2149_v9, %v2115_v6  ;;  %v2349_v6 = vld [vmem:[%s3961_s19 + $0x170] sm:$0xff] }
 0x37b   : > { %v2222_v56 = vmax.f32 %v2194_v36, %v2209_v18  ;;  %2427 = vmatpush.msrb.mxu3 %v2310_v44  ;;  %v2394_v44 = vld [vmem:[%s3961_s19 + $0x2d8] sm:$0xff] }
 0x37c   : > { %v2117_v58 = vpop.f32.mrf.mxu3  ;;  %v2185_v7 = vadd.f32 %v2184_v46, %v2150_v12  ;;  %v2309_v46 = vld [vmem:[%s3961_s19 + $0x30] sm:$0xff]  ;;  %v2346_v12 = vld [vmem:[%s3961_s19 + $0x158] sm:$0xff] }
 0x37d   : > { %v3953_v20 = vmax.f32 %v2222_v56, %v2230_v53  ;;  %v2118_v55 = vadd.f32 %v2117_v58, %v2083_v19  ;;  %v2308_v53 = vld [vmem:[%s3961_s19 + $0x28] sm:$0xff]  ;;  %2428 = vmatpush.msrb.mxu3 %v2309_v46  ;;  %v2307_v56 = vld [vmem:[%s3961_s19 + $0x20] sm:$0xff]  ;;  %v2350_v19 = vld [vmem:[%s3961_s19 + $0x178] sm:$0xff] }
 0x37e   : > { %v2196_v39 = vmax.f32 %v2185_v7, 0.0  ;;  %v2304_v58 = vld [vmem:[%s3961_s19 + $0x8] sm:$0xff]  ;;  %v2323_v7 = vld [vmem:[%s3961_s19 + $0xa0] sm:$0xff]  ;;  %v2393_v46 = vld [vmem:[%s3961_s19 + $0x2d0] sm:$0xff] }
 0x37f   : > { %2429 = vmatpush.msrb.mxu3 %v2308_v53  ;;  %v2373_v53 = vld [vmem:[%s3961_s19 + $0x230] sm:$0xff] }
 0x380   : > { %v2210_v29 = vrot.slane %v2196_v39, 1  ;;  %v2231_v48 = vrot.slane %v2196_v39, 2 }
 0x381   : > { %v2152_v25 = vpop.f32.mrf.mxu0  ;;  %v2187_v34 = vpop.f32.mrf.mxu1  ;;  %2430 = vmatpush.msrb.mxu3 %v2307_v56  ;;  %v2335_v56 = vld [vmem:[%s3961_s19 + $0x100] sm:$0xff] }
 0x382   : > { %v2153_v28 = vadd.f32 %v2152_v25, %v2118_v55  ;;  %v2211_v23 = vsel %vm453_vm1, %v2208_v30, %v2210_v29  ;;  %v2232_v9 = vsel %vm509_vm0, %v2229_v14, %v2231_v48  ;;  %v2334_v14 = vld [vmem:[%s3961_s19 + $0xf8] sm:$0xff]  ;;  %v2329_v55 = vld [vmem:[%s3961_s19 + $0xd0] sm:$0xff]  ;;  %v2348_v25 = vld [vmem:[%s3961_s19 + $0x168] sm:$0xff] }
 0x383   : > { %v2223_v27 = vmax.f32 %v3945_v24, %v2211_v23  ;;  %v2306_v24 = vld [vmem:[%s3961_s19 + $0x18] sm:$0xff] }
 0x384   : > { %v2188_v38 = vadd.f32 %v2187_v34, %v2153_v28  ;;  %v2120_v13 = vpop.f32.mrf.mxu3  ;;  %2431 = vmatpush.msrb.mxu3 %v2306_v24  ;;  %v2327_v34 = vld [vmem:[%s3961_s19 + $0xc0] sm:$0xff]  ;;  %v2326_v28 = vld [vmem:[%s3961_s19 + $0xb8] sm:$0xff]  ;;  %v2392_v24 = vld [vmem:[%s3961_s19 + $0x2c8] sm:$0xff] }
 0x385   : > { %v2121_v2 = vadd.f32 %v2120_v13, %v2086_v10  ;;  %v2244_v18 = vmax.f32 %v2223_v27, %v2232_v9  ;;  %v2324_v13 = vld [vmem:[%s3961_s19 + $0xa8] sm:$0xff]  ;;  %v2343_v10 = vld [vmem:[%s3961_s19 + $0x140] sm:$0xff]  ;;  %v2378_v23 = vld [vmem:[%s3961_s19 + $0x258] sm:$0xff] }
 0x386   : > { %v2197_v21 = vmax.f32 %v2188_v38, 0.0  ;;  %2432 = vmatpush.msrb.mxu3 %v2305_v50  ;;  %v2344_v38 = vld [vmem:[%s3961_s19 + $0x148] sm:$0xff]  ;;  %v2359_v27 = vld [vmem:[%s3961_s19 + $0x1c0] sm:$0xff]  ;;  %v2374_v9 = vld [vmem:[%s3961_s19 + $0x238] sm:$0xff] }
 0x387   : > { %v2372_v50 = vld [vmem:[%s3961_s19 + $0x228] sm:$0xff] }
 0x388   : > { %v2212_v33 = vrot.slane %v2197_v21, 1  ;;  %v2233_v8 = vrot.slane %v2197_v21, 2  ;;  %2433 = vmatpush.msrb.mxu3 %v2304_v58  ;;  %v2355_v58 = vld [vmem:[%s3961_s19 + $0x1a0] sm:$0xff] }
 0x389   : > { %v2155_v62 = vpop.f32.mrf.mxu0  ;;  %v2190_v3 = vpop.f32.mrf.mxu1 }
 0x38a   : > { %v2156_v59 = vadd.f32 %v2155_v62, %v2121_v2  ;;  %v2213_v51 = vsel %vm453_vm1, %v2210_v29, %v2212_v33  ;;  %v2234_v42 = vsel %vm509_vm0, %v2231_v48, %v2233_v8  ;;  %2434 = vmatpush.msrb.mxu3 %v2303_v63  ;;  %v2322_v2 = vld [vmem:[%s3961_s19 + $0x98] sm:$0xff]  ;;  %v2340_v62 = vld [vmem:[%s3961_s19 + $0x128] sm:$0xff] }
 0x38b   : > { %v2224_v60 = vmax.f32 %v2196_v39, %v2213_v51  ;;  %v2320_v39 = vld [vmem:[%s3961_s19 + $0x88] sm:$0xff]  ;;  %v2366_v29 = vld [vmem:[%s3961_s19 + $0x1f8] sm:$0xff] }
 0x38c   : > { %v2191_v17 = vadd.f32 %v2190_v3, %v2156_v59  ;;  %2459 = vmatpush.msra.mxu3 %v2350_v19  ;;  %v2339_v59 = vld [vmem:[%s3961_s19 + $0x120] sm:$0xff]  ;;  %v2338_v3 = vld [vmem:[%s3961_s19 + $0x118] sm:$0xff]  ;;  %2479 = vmatpush.msra.mxu0 %v2366_v29  ;;  %v2380_v51 = vld [vmem:[%s3961_s19 + $0x268] sm:$0xff] }
 0x38d   : > { %v2245_v30 = vmax.f32 %v2224_v60, %v2234_v42  ;;  %v2377_v60 = vld [vmem:[%s3961_s19 + $0x250] sm:$0xff]  ;;  %v2396_v48 = vld [vmem:[%s3961_s19 + $0x2e8] sm:$0xff]  ;;  %v2375_v42 = vld [vmem:[%s3961_s19 + $0x240] sm:$0xff] }
 0x38e   : > { %v2198_v36 = vmax.f32 %v2191_v17, 0.0  ;;  %2460 = vmatpush.msra.mxu3 %v2349_v6  ;;  %v2337_v17 = vld [vmem:[%s3961_s19 + $0x110] sm:$0xff]  ;;  %2480 = vmatpush.msra.mxu0 %v2365_v15  ;;  %v2390_v63 = vld [vmem:[%s3961_s19 + $0x2b8] sm:$0xff] }
 0x38f   : > { %v2389_v19 = vld [vmem:[%s3961_s19 + $0x2b0] sm:$0xff] }
 0x390   : > { %v2214_v45 = vrot.slane %v2198_v36, 1  ;;  %v2235_v57 = vrot.slane %v2198_v36, 2  ;;  %2461 = vmatpush.msra.mxu3 %v2348_v25  ;;  %v2382_v36 = vld [vmem:[%s3961_s19 + $0x278] sm:$0xff]  ;;  %v2369_v6 = vld [vmem:[%s3961_s19 + $0x210] sm:$0xff]  ;;  %v2352_v25 = vld [vmem:[%s3961_s19 + $0x188] sm:$0xff] }
 0x391   : > { %2499 = vmatpush.msra.mxu1 %v2382_v36  ;;  %v2408_v36 = vld [vmem:[%s3961_s19 + $0x348] sm:$0xff] }
 0x392   : > { %v2215_v16 = vsel %vm453_vm1, %v2212_v33, %v2214_v45  ;;  %v2236_v5 = vsel %vm509_vm0, %v2233_v8, %v2235_v57  ;;  %v2398_v33 = vld [vmem:[%s3961_s19 + $0x2f8] sm:$0xff]  ;;  %v2381_v45 = vld [vmem:[%s3961_s19 + $0x270] sm:$0xff]  ;;  %v2364_v57 = vld [vmem:[%s3961_s19 + $0x1e8] sm:$0xff] }
 0x393   : > { %v2225_v41 = vmax.f32 %v2197_v21, %v2215_v16  ;;  %v2342_v21 = vld [vmem:[%s3961_s19 + $0x138] sm:$0xff]  ;;  %2500 = vmatpush.msra.mxu1 %v2381_v45  ;;  %2481 = vmatpush.msra.mxu0 %v2364_v57  ;;  %v2379_v8 = vld [vmem:[%s3961_s19 + $0x260] sm:$0xff] }
 0x394   : > { %v2362_v16 = vld [vmem:[%s3961_s19 + $0x1d8] sm:$0xff] }
 0x395   : > { %v2246_v54 = vmax.f32 %v2225_v41, %v2236_v5  ;;  %2501 = vmatpush.msra.mxu1 %v2380_v51  ;;  %2482 = vmatpush.msra.mxu0 %v2363_v35  ;;  %v2361_v41 = vld [vmem:[%s3961_s19 + $0x1d0] sm:$0xff]  ;;  %v2360_v5 = vld [vmem:[%s3961_s19 + $0x1c8] sm:$0xff]  ;;  %v2407_v35 = vld [vmem:[%s3961_s19 + $0x340] sm:$0xff] }
 0x397   : > { %2265 = vmatpush.msrb.mxu2 %v2246_v54  ;;  %2502 = vmatpush.msra.mxu1 %v2379_v8  ;;  %v2395_v54 = vld [vmem:[%s3961_s19 + $0x2e0] sm:$0xff]  ;;  %v2406_v8 = vld [vmem:[%s3961_s19 + $0x338] sm:$0xff] }
 0x398   : > { %2483 = vmatpush.msra.mxu0 %v2362_v16 }
 0x399   : > { %2266 = vmatpush.msrb.mxu2 %v2245_v30  ;;  %2503 = vmatpush.msra.mxu1 %v2378_v23  ;;  %v2358_v30 = vld [vmem:[%s3961_s19 + $0x1b8] sm:$0xff]  ;;  %v2405_v23 = vld [vmem:[%s3961_s19 + $0x330] sm:$0xff] }
 0x39a   : > { %2484 = vmatpush.msra.mxu0 %v2361_v41  ;;  %v2404_v41 = vld [vmem:[%s3961_s19 + $0x328] sm:$0xff] }
 0x39b   : > { %2267 = vmatpush.msrb.mxu2 %v2244_v18  ;;  %2504 = vmatpush.msra.mxu1 %v2377_v60  ;;  %v2357_v18 = vld [vmem:[%s3961_s19 + $0x1b0] sm:$0xff] }
 0x39c   : > { %2485 = vmatpush.msra.mxu0 %v2360_v5  ;;  %v2402_v5 = vld [vmem:[%s3961_s19 + $0x318] sm:$0xff] }
 0x39d   : > { %2268 = vmatpush.msrb.mxu2 %v3953_v20  ;;  %v2332_v20 = vld [vmem:[%s3961_s19 + $0xe8] sm:$0xff]  ;;  %2505 = vmatpush.msra.mxu1 %v2376_v37  ;;  %v2401_v37 = vld [vmem:[%s3961_s19 + $0x310] sm:$0xff] }
 0x39e   : > { %2486 = vmatpush.msra.mxu0 %v2359_v27 }
 0x39f   : > { %2269 = vmatpush.msrb.mxu2 %v3941_v40  ;;  %v2759_v40 = vsel %vm3685_vm7, 1.0, %v2877_v61  ;;  %v2347_v61 = vld [vmem:[%s3961_s19 + $0x160] sm:$0xff]  ;;  %2506 = vmatpush.msra.mxu1 %v2375_v42 }
 0x3a0   : > { %2782 = vmatmul.msk.f32.vlgmr.msrb.gmra.mxu2 %vm2247_vm11, %v3987_v52  ;;  %2462 = vmatpush.msra.mxu3 %v2347_v61  ;;  %v2387_v61 = vld [vmem:[%s3961_s19 + $0x2a0] sm:$0xff] }
 0x3a1   : > { %2439 = vmatpush.msra.mxu2 %v2334_v14  ;;  %2487 = vmatpush.msra.mxu0 %v2358_v30  ;;  %v2356_v14 = vld [vmem:[%s3961_s19 + $0x1a8] sm:$0xff]  ;;  %v2399_v42 = vld [vmem:[%s3961_s19 + $0x300] sm:$0xff] }
 0x3a2   : > { %2463 = vmatpush.msra.mxu3 %v2346_v12  ;;  %2507 = vmatpush.msra.mxu1 %v2374_v9  ;;  %v2367_v12 = vld [vmem:[%s3961_s19 + $0x200] sm:$0xff] }
 0x3a3   : > { %2440 = vmatpush.msra.mxu2 %v2333_v47  ;;  %2488 = vmatpush.msra.mxu0 %v2357_v18  ;;  %v2391_v47 = vld [vmem:[%s3961_s19 + $0x2c0] sm:$0xff] }
 0x3a4   : > { %2464 = vmatpush.msra.mxu3 %v2345_v31  ;;  %2508 = vmatpush.msra.mxu1 %v2373_v53  ;;  %v2385_v31 = vld [vmem:[%s3961_s19 + $0x290] sm:$0xff]  ;;  %v2835_v9 = vld [vmem:[%s406_s21] ss:$0 sm:$0xff] }
 0x3a5   : > { %2441 = vmatpush.msra.mxu2 %v2332_v20  ;;  %2489 = vmatpush.msra.mxu0 %v2356_v14  ;;  %v2371_v20 = vld [vmem:[%s3961_s19 + $0x220] sm:$0xff] }
 0x3a6   : > { %2465 = vmatpush.msra.mxu3 %v2344_v38  ;;  %2509 = vmatpush.msra.mxu1 %v2372_v50  ;;  %v2383_v38 = vld [vmem:[%s3961_s19 + $0x280] sm:$0xff] }
 0x3a7   : > { %2442 = vmatpush.msra.mxu2 %v2331_v26  ;;  %2490 = vmatpush.msra.mxu0 %v2355_v58  ;;  %v2354_v26 = vld [vmem:[%s3961_s19 + $0x198] sm:$0xff] }
 0x3a8   : > { %2783 = vmatmul.msk.f32.gmra.mxu2 %vm2247_vm11, %v2759_v40  ;;  %2466 = vmatpush.msra.mxu3 %v2343_v10  ;;  %v2370_v40 = vld [vmem:[%s3961_s19 + $0x218] sm:$0xff] }
 0x3a9   : > { %2443 = vmatpush.msra.mxu2 %v2330_v32  ;;  %2510 = vmatpush.msra.mxu1 %v2371_v20  ;;  %v2353_v32 = vld [vmem:[%s3961_s19 + $0x190] sm:$0xff] }
 0x3aa   : > { %2467 = vmatpush.msra.mxu3 %v2342_v21  ;;  %2491 = vmatpush.msra.mxu0 %v2354_v26  ;;  %v2412_v21 = vld [vmem:[%s3961_s19 + $0x368] sm:$0xff] }
 0x3ab   : > { %2444 = vmatpush.msra.mxu2 %v2329_v55  ;;  %2511 = vmatpush.msra.mxu1 %v2370_v40  ;;  %v2388_v55 = vld [vmem:[%s3961_s19 + $0x2a8] sm:$0xff] }
 0x3ac   : > { %2468 = vmatpush.msra.mxu3 %v2341_v43  ;;  %2492 = vmatpush.msra.mxu0 %v2353_v32  ;;  %v2410_v43 = vld [vmem:[%s3961_s19 + $0x358] sm:$0xff] }
 0x3ad   : > { %2445 = vmatpush.msra.mxu2 %v2328_v22  ;;  %2512 = vmatpush.msra.mxu1 %v2369_v6  ;;  %v2368_v22 = vld [vmem:[%s3961_s19 + $0x208] sm:$0xff] }
 0x3ae   : > { %2469 = vmatpush.msra.mxu3 %v2340_v62  ;;  %2493 = vmatpush.msra.mxu0 %v2352_v25 }
 0x3af   : > { %2446 = vmatpush.msra.mxu2 %v2327_v34  ;;  %v2351_v34 = vld [vmem:[%s3961_s19 + $0x180] sm:$0xff]  ;;  %2513 = vmatpush.msra.mxu1 %v2368_v22 }
 0x3b0   : > { %2470 = vmatpush.msra.mxu3 %v2339_v59  ;;  %2494 = vmatpush.msra.mxu0 %v2351_v34  ;;  %v2409_v59 = vld [vmem:[%s3961_s19 + $0x350] sm:$0xff] }
 0x3b1   : > { %2447 = vmatpush.msra.mxu2 %v2326_v28  ;;  %v2386_v28 = vld [vmem:[%s3961_s19 + $0x298] sm:$0xff]  ;;  %2514 = vmatpush.msra.mxu1 %v2367_v12 }
 0x3b2   : > { %2471 = vmatpush.msra.mxu3 %v2338_v3 }
 0x3b3   : > { %2448 = vmatpush.msra.mxu2 %v2325_v11  ;;  %v2384_v11 = vld [vmem:[%s3961_s19 + $0x288] sm:$0xff] }
 0x3b4   : > { %2472 = vmatpush.msra.mxu3 %v2337_v17 }
 0x3b5   : > { %2449 = vmatpush.msra.mxu2 %v2324_v13  ;;  %v2414_v13 = vld [vmem:[%s3961_s19 + $0x378] sm:$0xff] }
 0x3b6   : > { %2473 = vmatpush.msra.mxu3 %v2336_v0 }
 0x3b7   : > { %2450 = vmatpush.msra.mxu2 %v2323_v7  ;;  %v2413_v7 = vld [vmem:[%s3961_s19 + $0x370] sm:$0xff] }
 0x3b8   : > { %2474 = vmatpush.msra.mxu3 %v2335_v56 }
 0x3b9   : > { %2451 = vmatpush.msra.mxu2 %v2322_v2  ;;  %v2411_v2 = vld [vmem:[%s3961_s19 + $0x360] sm:$0xff] }
 0x3bb   : > { %2452 = vmatpush.msra.mxu2 %v2321_v49 }
 0x3bd   : > { %2453 = vmatpush.msra.mxu2 %v2320_v39 }
 0x3bf   : > { %2454 = vmatpush.msra.mxu2 %v2319_v4 }
 0x3c1   : > { %2519 = vmatpush.msrb.mxu2 %v2398_v33 }
 0x3c3   : > { %2520 = vmatpush.msrb.mxu2 %v2397_v1 }
 0x3c5   : > { %2521 = vmatpush.msrb.mxu2 %v2396_v48  ;;  %v2403_v48 = vld [vmem:[%s3961_s19 + $0x320] sm:$0xff] }
 0x3c7   : > { %2522 = vmatpush.msrb.mxu2 %v2395_v54  ;;  %v2400_v54 = vld [vmem:[%s3961_s19 + $0x308] sm:$0xff] }
 0x3c9   : > { %2523 = vmatpush.msrb.mxu2 %v2394_v44 }
 0x3cb   : > { %2524 = vmatpush.msrb.mxu2 %v2393_v46 }
 0x3cd   : > { %2525 = vmatpush.msrb.mxu2 %v2392_v24 }
 0x3cf   : > { %2526 = vmatpush.msrb.mxu2 %v2391_v47 }
 0x3d1   : > { %2527 = vmatpush.msrb.mxu2 %v2390_v63 }
 0x3d3   : > { %2528 = vmatpush.msrb.mxu2 %v2389_v19 }
 0x3d5   : > { %2529 = vmatpush.msrb.mxu2 %v2388_v55 }
 0x3d7   : > { %2530 = vmatpush.msrb.mxu2 %v2387_v61 }
 0x3d9   : > { %2531 = vmatpush.msrb.mxu2 %v2386_v28 }
 0x3db   : > { %2532 = vmatpush.msrb.mxu2 %v2385_v31 }
 0x3dd   : > { %2533 = vmatpush.msrb.mxu2 %v2384_v11 }
 0x3df   : > { %2534 = vmatpush.msrb.mxu2 %v2383_v38 }
 0x423   : > { %v2271_v10 = vpop.f32.mrf.mxu2 }
 0x424   : > { %2435 = vmatmul.f32.vlgmr.msrb.gmra.mxu3 %v2271_v10  ;;  %v2279_v62 = vrot.slane %v2271_v10, 1  ;;  %v2283_v39 = vrot.slane %v2271_v10, 2  ;;  %v2287_v33 = vrot.slane %v2271_v10, 3  ;;  %v2291_v0 = vrot.slane %v2271_v10, 4 }
 0x425   : > { %2539 = vmatpush.msrb.mxu3 %v2414_v13  ;;  %v2295_v1 = vrot.slane %v2271_v10, 5  ;;  %v2299_v44 = vrot.slane %v2271_v10, 6 }
 0x427   : > { %2540 = vmatpush.msrb.mxu3 %v2413_v7 }
 0x429   : > { %2541 = vmatpush.msrb.mxu3 %v2412_v21 }
 0x42b   : > { %2542 = vmatpush.msrb.mxu3 %v2411_v2  ;;  %v2274_v49 = vpop.f32.mrf.mxu2 }
 0x42c   : > { %v2280_v4 = vrot.slane %v2274_v49, 1  ;;  %v2284_v3 = vrot.slane %v2274_v49, 2  ;;  %v2288_v17 = vrot.slane %v2274_v49, 3  ;;  %v2292_v29 = vrot.slane %v2274_v49, 4 }
 0x42d   : > { %2543 = vmatpush.msrb.mxu3 %v2410_v43  ;;  %v2296_v16 = vrot.slane %v2274_v49, 5  ;;  %v2300_v27 = vrot.slane %v2274_v49, 6 }
 0x42e   : > { %v2281_v15 = vsel %vm453_vm1, %v2279_v62, %v2280_v4  ;;  %v2285_v45 = vsel %vm509_vm0, %v2283_v39, %v2284_v3  ;;  %v2289_v57 = vsel %vm565_vm2, %v2287_v33, %v2288_v17  ;;  %v2293_v51 = vsel %vm621_vm3, %v2291_v0, %v2292_v29 }
 0x42f   : > { %2544 = vmatpush.msrb.mxu3 %v2409_v59  ;;  %2455 = vmatmul.f32.vlgmr.msra.gmra.mxu2 %v2281_v15  ;;  %v2297_v60 = vsel %vm677_vm5, %v2295_v1, %v2296_v16  ;;  %v2301_v30 = vsel %vm733_vm4, %v2299_v44, %v2300_v27  ;;  %vm2567_vm1 = vcmask 48128  }
 0x430   : > { %2475 = vmatmul.f32.vlgmr.msra.gmra.mxu3 %v2285_v45  ;;  %2495 = vmatmul.f32.vlgmr.msra.gmra.mxu0 %v2289_v57 }
 0x431   : > { %2545 = vmatpush.msrb.mxu3 %v2408_v36  ;;  %2515 = vmatmul.f32.vlgmr.msra.gmra.mxu1 %v2293_v51 }
 0x433   : > { %2546 = vmatpush.msrb.mxu3 %v2407_v35 }
 0x435   : > { %2547 = vmatpush.msrb.mxu3 %v2406_v8 }
 0x437   : > { %2548 = vmatpush.msrb.mxu3 %v2405_v23  ;;  %2535 = vmatmul.f32.vlgmr.msrb.gmra.mxu2 %v2297_v60 }
 0x439   : > { %2549 = vmatpush.msrb.mxu3 %v2404_v41 }
 0x43b   : > { %2550 = vmatpush.msrb.mxu3 %v2403_v48 }
 0x43d   : > { %2551 = vmatpush.msrb.mxu3 %v2402_v5 }
 0x43f   : > { %2552 = vmatpush.msrb.mxu3 %v2401_v37 }
 0x441   : > { %2553 = vmatpush.msrb.mxu3 %v2400_v54 }
 0x443   : > { %2554 = vmatpush.msrb.mxu3 %v2399_v42 }
 0x444   : > { %2555 = vmatmul.f32.vlgmr.msrb.gmra.mxu3 %v2301_v30 }
 0x4a7   : > { %v2436_v46 = vpop.f32.mrf.mxu3 }
 0x4a8   : > { %v2437_v53 = vadd.f32 %v2835_v9, %v2436_v46 }
 0x4ad   : > { %v2496_v50 = vpop.f32.mrf.mxu0 }
 0x4ae   : > { %v2516_v58 = vpop.f32.mrf.mxu1 }
 0x4b2   : > { %v2456_v18 = vpop.f32.mrf.mxu2 }
 0x4b3   : > { %v2457_v56 = vadd.f32 %v2456_v18, %v2437_v53  ;;  %v2476_v24 = vpop.f32.mrf.mxu3 }
 0x4b5   : > { %v2477_v14 = vadd.f32 %v2476_v24, %v2457_v56 }
 0x4b7   : > { %v2497_v47 = vadd.f32 %v2496_v50, %v2477_v14 }
 0x4b9   : > { %v2517_v20 = vadd.f32 %v2516_v58, %v2497_v47 }
 0x4ba   : > { %v2536_v63 = vpop.f32.mrf.mxu2 }
 0x4bb   : > { %v2537_v26 = vadd.f32 %v2536_v63, %v2517_v20 }
 0x4c7   : > { %v2556_v40 = vpop.f32.mrf.mxu3 }
 0x4c8   : > { %v2557_v19 = vadd.f32 %v2556_v40, %v2537_v26 }
 0x4ca   : > { %v2559_v32 = vmax.f32 %v2557_v19, 0.0 }
 0x4cc   : > { %v2561_v6 = vrot.slane %v2559_v32, 1  ;;  %v2564_v25 = vrot.slane %v2559_v32, 2 }
 0x4ce   : > { %v2563_v55 = vmax.f32 %v2559_v32, %v2561_v6 }
 0x4d0   : > { %v2566_v22 = vmax.f32 %v2563_v55, %v2564_v25 }
 0x4d2   : > { %2784 = vmatpush.msk.msrb.mxu0 %vm509_vm0, %v2566_v22 }
 0x4d3   : > { %2785 = vmatmul.msk.f32.vlgmr.msrb.gmra.mxu0 %vm2567_vm1, %v3987_v52 }
 0x550   : > { %v2590_v61 = vpop.f32.mrf.mxu0 }
 0x551   : > { %2593 = vst [vmem:[%s414_s14] sm:$0x3] %v2590_v61 }
 0x552 PF: > { %s17_s28 = sadd.s32 1, %s2874_s28   ;;  %s4170_s24 = smov %s2866_s26 }
 0x553   : > { %p14_p7 = scmp.ge.s32.totalorder %s17_s28, 6   ;;  %s4171_s25 = smov %s2870_s27 }
 0x554   : > { %s4172_s26 = smov %s4175_s29  ;;  %s4173_s27 = smov %s4179_s30 }
 0x555   :  { %16 = sbr.rel (!%p14_p7) target bundleno = 3 (0x3), region = 96 }

// kernel: tcnn_forward.3
= control target key start
LH: loop header
LB: loop body
LE: loop exit
PB: predicated region body
PF: predicated region fallthrough
CT: control target
= control target key end

     0   :  { %vm2986_vm0 = vcmask 7168   ;;  %s7052_s1 = inlined_call_operand.vmem [shape: f32[256,1024], index: 1, kind: input, shape index: {}]   ;;  %s7053_s0 = inlined_call_operand.vmem [shape: f32[8,256], index: 0, kind: input, shape index: {}]   ;;  %s7054_s3 = inlined_call_operand.vmem [shape: f32[1024,1024], index: 3, kind: input, shape index: {}]   ;;  %s7055_s2 = inlined_call_operand.vmem [shape: f32[1,1024], index: 2, kind: input, shape index: {}]   ;;  %s7056_s4 = inlined_call_operand.vmem [shape: f32[1,1024], index: 4, kind: input, shape index: {}]   ;;  %s7057_s5 = inlined_call_operand.vmem [shape: f32[1,1024], index: 5, kind: input, shape index: {}]   ;;  %s7058_s6 = inlined_call_operand.<no memory space> [shape: f32[1,1], index: 6, kind: input, shape index: {}]   ;;  %s7059_s7 = inlined_call_operand.vmem [shape: f32[8,1], index: 7, kind: output, shape index: {}]  }
   0x1   :  { %v150_v0 = vld [vmem:[%s7052_s1 + $0x3c0] sm:$0xff]  ;;  %v151_v1 = vld [vmem:[%s7052_s1 + $0x3c8] sm:$0xff]  ;;  %v152_v62 = vld [vmem:[%s7052_s1 + $0x3d0] sm:$0xff] }
   0x2   :  { %v142_v2 = vld [vmem:[%s7052_s1 + $0x380] sm:$0xff]  ;;  %304 = vmatpush.msra.mxu0 %v150_v0  ;;  %344 = vmatpush.msra.mxu2 %v151_v1  ;;  %v143_v4 = vld [vmem:[%s7052_s1 + $0x388] sm:$0xff]  ;;  %v153_v63 = vld [vmem:[%s7052_s1 + $0x3d8] sm:$0xff] }
   0x3   :  { %v278_v3 = vld [vmem:[%s7052_s1 + $0x7c0] sm:$0xff]  ;;  %v279_v5 = vld [vmem:[%s7052_s1 + $0x7c8] sm:$0xff] }
   0x4   :  { %324 = vmatpush.msra.mxu1 %v278_v3  ;;  %364 = vmatpush.msra.mxu3 %v279_v5  ;;  %v134_v6 = vld [vmem:[%s7052_s1 + $0x340] sm:$0xff]  ;;  %v135_v8 = vld [vmem:[%s7052_s1 + $0x348] sm:$0xff]  ;;  %v280_v3 = vld [vmem:[%s7052_s1 + $0x7d0] sm:$0xff] }
   0x5   :  { %v270_v7 = vld [vmem:[%s7052_s1 + $0x780] sm:$0xff]  ;;  %305 = vmatpush.msra.mxu0 %v142_v2  ;;  %345 = vmatpush.msra.mxu2 %v143_v4  ;;  %v271_v9 = vld [vmem:[%s7052_s1 + $0x788] sm:$0xff]  ;;  %v144_v2 = vld [vmem:[%s7052_s1 + $0x390] sm:$0xff] }
   0x6   :  { %v262_v10 = vld [vmem:[%s7052_s1 + $0x740] sm:$0xff]  ;;  %325 = vmatpush.msra.mxu1 %v270_v7  ;;  %365 = vmatpush.msra.mxu3 %v271_v9  ;;  %v127_v12 = vld [vmem:[%s7052_s1 + $0x308] sm:$0xff]  ;;  %v145_v4 = vld [vmem:[%s7052_s1 + $0x398] sm:$0xff] }
   0x7   :  { %v126_v11 = vld [vmem:[%s7052_s1 + $0x300] sm:$0xff]  ;;  %v263_v13 = vld [vmem:[%s7052_s1 + $0x748] sm:$0xff]  ;;  %306 = vmatpush.msra.mxu0 %v134_v6  ;;  %346 = vmatpush.msra.mxu2 %v135_v8  ;;  %v281_v5 = vld [vmem:[%s7052_s1 + $0x7d8] sm:$0xff] }
   0x8   :  { %v254_v14 = vld [vmem:[%s7052_s1 + $0x700] sm:$0xff]  ;;  %v255_v15 = vld [vmem:[%s7052_s1 + $0x708] sm:$0xff]  ;;  %326 = vmatpush.msra.mxu1 %v262_v10  ;;  %366 = vmatpush.msra.mxu3 %v263_v13  ;;  %v136_v6 = vld [vmem:[%s7052_s1 + $0x350] sm:$0xff] }
   0x9   :  { %v118_v16 = vld [vmem:[%s7052_s1 + $0x2c0] sm:$0xff]  ;;  %v119_v17 = vld [vmem:[%s7052_s1 + $0x2c8] sm:$0xff]  ;;  %307 = vmatpush.msra.mxu0 %v126_v11  ;;  %347 = vmatpush.msra.mxu2 %v127_v12  ;;  %v272_v7 = vld [vmem:[%s7052_s1 + $0x790] sm:$0xff] }
   0xa   :  { %v246_v18 = vld [vmem:[%s7052_s1 + $0x6c0] sm:$0xff]  ;;  %v247_v19 = vld [vmem:[%s7052_s1 + $0x6c8] sm:$0xff]  ;;  %327 = vmatpush.msra.mxu1 %v254_v14  ;;  %367 = vmatpush.msra.mxu3 %v255_v15  ;;  %v137_v8 = vld [vmem:[%s7052_s1 + $0x358] sm:$0xff] }
   0xb   :  { %v110_v20 = vld [vmem:[%s7052_s1 + $0x280] sm:$0xff]  ;;  %v111_v21 = vld [vmem:[%s7052_s1 + $0x288] sm:$0xff]  ;;  %308 = vmatpush.msra.mxu0 %v118_v16  ;;  %348 = vmatpush.msra.mxu2 %v119_v17  ;;  %v273_v9 = vld [vmem:[%s7052_s1 + $0x798] sm:$0xff] }
   0xc   :  { %v238_v22 = vld [vmem:[%s7052_s1 + $0x680] sm:$0xff]  ;;  %v239_v23 = vld [vmem:[%s7052_s1 + $0x688] sm:$0xff]  ;;  %328 = vmatpush.msra.mxu1 %v246_v18  ;;  %368 = vmatpush.msra.mxu3 %v247_v19  ;;  %v128_v10 = vld [vmem:[%s7052_s1 + $0x310] sm:$0xff] }
   0xd   :  { %v102_v24 = vld [vmem:[%s7052_s1 + $0x240] sm:$0xff]  ;;  %v103_v25 = vld [vmem:[%s7052_s1 + $0x248] sm:$0xff]  ;;  %309 = vmatpush.msra.mxu0 %v110_v20  ;;  %349 = vmatpush.msra.mxu2 %v111_v21  ;;  %v264_v11 = vld [vmem:[%s7052_s1 + $0x750] sm:$0xff] }
   0xe   :  { %v230_v26 = vld [vmem:[%s7052_s1 + $0x640] sm:$0xff]  ;;  %v231_v27 = vld [vmem:[%s7052_s1 + $0x648] sm:$0xff]  ;;  %329 = vmatpush.msra.mxu1 %v238_v22  ;;  %369 = vmatpush.msra.mxu3 %v239_v23  ;;  %v129_v12 = vld [vmem:[%s7052_s1 + $0x318] sm:$0xff] }
   0xf   :  { %v94_v28 = vld [vmem:[%s7052_s1 + $0x200] sm:$0xff]  ;;  %v95_v29 = vld [vmem:[%s7052_s1 + $0x208] sm:$0xff]  ;;  %310 = vmatpush.msra.mxu0 %v102_v24  ;;  %350 = vmatpush.msra.mxu2 %v103_v25  ;;  %v265_v13 = vld [vmem:[%s7052_s1 + $0x758] sm:$0xff] }
  0x10   :  { %v222_v30 = vld [vmem:[%s7052_s1 + $0x600] sm:$0xff]  ;;  %v223_v31 = vld [vmem:[%s7052_s1 + $0x608] sm:$0xff]  ;;  %330 = vmatpush.msra.mxu1 %v230_v26  ;;  %370 = vmatpush.msra.mxu3 %v231_v27  ;;  %v120_v14 = vld [vmem:[%s7052_s1 + $0x2d0] sm:$0xff] }
  0x11   :  { %v86_v32 = vld [vmem:[%s7052_s1 + $0x1c0] sm:$0xff]  ;;  %v87_v33 = vld [vmem:[%s7052_s1 + $0x1c8] sm:$0xff]  ;;  %311 = vmatpush.msra.mxu0 %v94_v28  ;;  %351 = vmatpush.msra.mxu2 %v95_v29  ;;  %v256_v15 = vld [vmem:[%s7052_s1 + $0x710] sm:$0xff] }
  0x12   :  { %v214_v34 = vld [vmem:[%s7052_s1 + $0x5c0] sm:$0xff]  ;;  %v215_v35 = vld [vmem:[%s7052_s1 + $0x5c8] sm:$0xff]  ;;  %331 = vmatpush.msra.mxu1 %v222_v30  ;;  %371 = vmatpush.msra.mxu3 %v223_v31  ;;  %v121_v16 = vld [vmem:[%s7052_s1 + $0x2d8] sm:$0xff] }
  0x13   :  { %v78_v36 = vld [vmem:[%s7052_s1 + $0x180] sm:$0xff]  ;;  %v79_v37 = vld [vmem:[%s7052_s1 + $0x188] sm:$0xff]  ;;  %312 = vmatpush.msra.mxu0 %v86_v32  ;;  %352 = vmatpush.msra.mxu2 %v87_v33  ;;  %v257_v17 = vld [vmem:[%s7052_s1 + $0x718] sm:$0xff] }
  0x14   :  { %v206_v38 = vld [vmem:[%s7052_s1 + $0x580] sm:$0xff]  ;;  %v207_v39 = vld [vmem:[%s7052_s1 + $0x588] sm:$0xff]  ;;  %332 = vmatpush.msra.mxu1 %v214_v34  ;;  %372 = vmatpush.msra.mxu3 %v215_v35  ;;  %v112_v18 = vld [vmem:[%s7052_s1 + $0x290] sm:$0xff] }
  0x15   :  { %v70_v40 = vld [vmem:[%s7052_s1 + $0x140] sm:$0xff]  ;;  %v71_v41 = vld [vmem:[%s7052_s1 + $0x148] sm:$0xff]  ;;  %313 = vmatpush.msra.mxu0 %v78_v36  ;;  %353 = vmatpush.msra.mxu2 %v79_v37  ;;  %v248_v19 = vld [vmem:[%s7052_s1 + $0x6d0] sm:$0xff] }
  0x16   :  { %v198_v42 = vld [vmem:[%s7052_s1 + $0x540] sm:$0xff]  ;;  %v199_v43 = vld [vmem:[%s7052_s1 + $0x548] sm:$0xff]  ;;  %333 = vmatpush.msra.mxu1 %v206_v38  ;;  %373 = vmatpush.msra.mxu3 %v207_v39  ;;  %v113_v20 = vld [vmem:[%s7052_s1 + $0x298] sm:$0xff] }
  0x17   :  { %v62_v44 = vld [vmem:[%s7052_s1 + $0x100] sm:$0xff]  ;;  %v63_v45 = vld [vmem:[%s7052_s1 + $0x108] sm:$0xff]  ;;  %314 = vmatpush.msra.mxu0 %v70_v40  ;;  %354 = vmatpush.msra.mxu2 %v71_v41  ;;  %v249_v21 = vld [vmem:[%s7052_s1 + $0x6d8] sm:$0xff] }
  0x18   :  { %v190_v46 = vld [vmem:[%s7052_s1 + $0x500] sm:$0xff]  ;;  %v191_v47 = vld [vmem:[%s7052_s1 + $0x508] sm:$0xff]  ;;  %334 = vmatpush.msra.mxu1 %v198_v42  ;;  %374 = vmatpush.msra.mxu3 %v199_v43  ;;  %v104_v22 = vld [vmem:[%s7052_s1 + $0x250] sm:$0xff] }
  0x19   :  { %v54_v48 = vld [vmem:[%s7052_s1 + $0xc0] sm:$0xff]  ;;  %v55_v49 = vld [vmem:[%s7052_s1 + $0xc8] sm:$0xff]  ;;  %315 = vmatpush.msra.mxu0 %v62_v44  ;;  %355 = vmatpush.msra.mxu2 %v63_v45  ;;  %v240_v23 = vld [vmem:[%s7052_s1 + $0x690] sm:$0xff] }
  0x1a   :  { %v182_v50 = vld [vmem:[%s7052_s1 + $0x4c0] sm:$0xff]  ;;  %v183_v51 = vld [vmem:[%s7052_s1 + $0x4c8] sm:$0xff]  ;;  %335 = vmatpush.msra.mxu1 %v190_v46  ;;  %375 = vmatpush.msra.mxu3 %v191_v47  ;;  %v105_v24 = vld [vmem:[%s7052_s1 + $0x258] sm:$0xff] }
  0x1b   :  { %v46_v52 = vld [vmem:[%s7052_s1 + $0x80] sm:$0xff]  ;;  %v47_v53 = vld [vmem:[%s7052_s1 + $0x88] sm:$0xff]  ;;  %316 = vmatpush.msra.mxu0 %v54_v48  ;;  %356 = vmatpush.msra.mxu2 %v55_v49  ;;  %v241_v25 = vld [vmem:[%s7052_s1 + $0x698] sm:$0xff] }
  0x1c   :  { %v174_v54 = vld [vmem:[%s7052_s1 + $0x480] sm:$0xff]  ;;  %v175_v55 = vld [vmem:[%s7052_s1 + $0x488] sm:$0xff]  ;;  %336 = vmatpush.msra.mxu1 %v182_v50  ;;  %376 = vmatpush.msra.mxu3 %v183_v51  ;;  %v96_v26 = vld [vmem:[%s7052_s1 + $0x210] sm:$0xff] }
  0x1d   :  { %v38_v56 = vld [vmem:[%s7052_s1 + $0x40] sm:$0xff]  ;;  %v39_v57 = vld [vmem:[%s7052_s1 + $0x48] sm:$0xff]  ;;  %317 = vmatpush.msra.mxu0 %v46_v52  ;;  %357 = vmatpush.msra.mxu2 %v47_v53  ;;  %v232_v27 = vld [vmem:[%s7052_s1 + $0x650] sm:$0xff] }
  0x1e   :  { %v166_v58 = vld [vmem:[%s7052_s1 + $0x440] sm:$0xff]  ;;  %v167_v59 = vld [vmem:[%s7052_s1 + $0x448] sm:$0xff]  ;;  %337 = vmatpush.msra.mxu1 %v174_v54  ;;  %377 = vmatpush.msra.mxu3 %v175_v55  ;;  %v97_v28 = vld [vmem:[%s7052_s1 + $0x218] sm:$0xff] }
  0x1f   :  { %v30_v60 = vld [vmem:[%s7052_s1] sm:$0xff]  ;;  %v31_v61 = vld [vmem:[%s7052_s1 + $0x8] sm:$0xff]  ;;  %318 = vmatpush.msra.mxu0 %v38_v56  ;;  %358 = vmatpush.msra.mxu2 %v39_v57  ;;  %v233_v29 = vld [vmem:[%s7052_s1 + $0x658] sm:$0xff] }
  0x20   :  { %338 = vmatpush.msra.mxu1 %v166_v58  ;;  %378 = vmatpush.msra.mxu3 %v167_v59  ;;  %v158_v0 = vld [vmem:[%s7052_s1 + $0x400] sm:$0xff]  ;;  %v159_v1 = vld [vmem:[%s7052_s1 + $0x408] sm:$0xff]  ;;  %v88_v30 = vld [vmem:[%s7052_s1 + $0x1d0] sm:$0xff] }
  0x21   :  { %319 = vmatpush.msra.mxu0 %v30_v60  ;;  %359 = vmatpush.msra.mxu2 %v31_v61  ;;  %v224_v31 = vld [vmem:[%s7052_s1 + $0x610] sm:$0xff]  ;;  %v89_v32 = vld [vmem:[%s7052_s1 + $0x1d8] sm:$0xff]  ;;  %v3368_v46 = vld [vmem:[%s7053_s0] sm:$0xff] }
  0x22   :  { %339 = vmatpush.msra.mxu1 %v158_v0  ;;  %379 = vmatpush.msra.mxu3 %v159_v1  ;;  %v225_v33 = vld [vmem:[%s7052_s1 + $0x618] sm:$0xff]  ;;  %v80_v34 = vld [vmem:[%s7052_s1 + $0x190] sm:$0xff]  ;;  %v3386_v51 = vld [vmem:[%s7053_s0 + $0x8] sm:$0xff] }
  0x23   :  { %384 = vmatpush.msrb.mxu0 %v152_v62  ;;  %424 = vmatpush.msrb.mxu2 %v153_v63  ;;  %v216_v35 = vld [vmem:[%s7052_s1 + $0x5d0] sm:$0xff]  ;;  %v81_v36 = vld [vmem:[%s7052_s1 + $0x198] sm:$0xff]  ;;  %v154_v0 = vld [vmem:[%s7052_s1 + $0x3e0] sm:$0xff] }
  0x24   :  { %404 = vmatpush.msrb.mxu1 %v280_v3  ;;  %444 = vmatpush.msrb.mxu3 %v281_v5  ;;  %v217_v37 = vld [vmem:[%s7052_s1 + $0x5d8] sm:$0xff]  ;;  %v72_v38 = vld [vmem:[%s7052_s1 + $0x150] sm:$0xff]  ;;  %v155_v1 = vld [vmem:[%s7052_s1 + $0x3e8] sm:$0xff] }
  0x25   :  { %385 = vmatpush.msrb.mxu0 %v144_v2  ;;  %425 = vmatpush.msrb.mxu2 %v145_v4  ;;  %v208_v39 = vld [vmem:[%s7052_s1 + $0x590] sm:$0xff]  ;;  %v73_v40 = vld [vmem:[%s7052_s1 + $0x158] sm:$0xff]  ;;  %v146_v4 = vld [vmem:[%s7052_s1 + $0x3a0] sm:$0xff] }
  0x26   :  { %405 = vmatpush.msrb.mxu1 %v272_v7  ;;  %445 = vmatpush.msrb.mxu3 %v273_v9  ;;  %v209_v41 = vld [vmem:[%s7052_s1 + $0x598] sm:$0xff]  ;;  %v64_v42 = vld [vmem:[%s7052_s1 + $0x110] sm:$0xff]  ;;  %v282_v5 = vld [vmem:[%s7052_s1 + $0x7e0] sm:$0xff] }
  0x27   :  { %386 = vmatpush.msrb.mxu0 %v136_v6  ;;  %426 = vmatpush.msrb.mxu2 %v137_v8  ;;  %v200_v43 = vld [vmem:[%s7052_s1 + $0x550] sm:$0xff]  ;;  %v65_v44 = vld [vmem:[%s7052_s1 + $0x118] sm:$0xff]  ;;  %v147_v6 = vld [vmem:[%s7052_s1 + $0x3a8] sm:$0xff] }
  0x28   :  { %406 = vmatpush.msrb.mxu1 %v264_v11  ;;  %446 = vmatpush.msrb.mxu3 %v265_v13  ;;  %v201_v45 = vld [vmem:[%s7052_s1 + $0x558] sm:$0xff]  ;;  %v56_v47 = vld [vmem:[%s7052_s1 + $0xd0] sm:$0xff]  ;;  %v283_v7 = vld [vmem:[%s7052_s1 + $0x7e8] sm:$0xff] }
  0x29   :  { %387 = vmatpush.msrb.mxu0 %v128_v10  ;;  %427 = vmatpush.msrb.mxu2 %v129_v12  ;;  %v192_v48 = vld [vmem:[%s7052_s1 + $0x510] sm:$0xff]  ;;  %v57_v49 = vld [vmem:[%s7052_s1 + $0xd8] sm:$0xff]  ;;  %v138_v8 = vld [vmem:[%s7052_s1 + $0x360] sm:$0xff] }
  0x2a   :  { %407 = vmatpush.msrb.mxu1 %v256_v15  ;;  %447 = vmatpush.msrb.mxu3 %v257_v17  ;;  %v193_v50 = vld [vmem:[%s7052_s1 + $0x518] sm:$0xff]  ;;  %v48_v52 = vld [vmem:[%s7052_s1 + $0x90] sm:$0xff]  ;;  %v274_v9 = vld [vmem:[%s7052_s1 + $0x7a0] sm:$0xff] }
  0x2b   :  { %388 = vmatpush.msrb.mxu0 %v120_v14  ;;  %428 = vmatpush.msrb.mxu2 %v121_v16  ;;  %v184_v53 = vld [vmem:[%s7052_s1 + $0x4d0] sm:$0xff]  ;;  %v49_v54 = vld [vmem:[%s7052_s1 + $0x98] sm:$0xff]  ;;  %v139_v10 = vld [vmem:[%s7052_s1 + $0x368] sm:$0xff] }
  0x2c   :  { %408 = vmatpush.msrb.mxu1 %v248_v19  ;;  %448 = vmatpush.msrb.mxu3 %v249_v21  ;;  %v185_v55 = vld [vmem:[%s7052_s1 + $0x4d8] sm:$0xff]  ;;  %v40_v56 = vld [vmem:[%s7052_s1 + $0x50] sm:$0xff]  ;;  %v275_v11 = vld [vmem:[%s7052_s1 + $0x7a8] sm:$0xff] }
  0x2d   :  { %389 = vmatpush.msrb.mxu0 %v112_v18  ;;  %429 = vmatpush.msrb.mxu2 %v113_v20  ;;  %v176_v57 = vld [vmem:[%s7052_s1 + $0x490] sm:$0xff]  ;;  %v41_v58 = vld [vmem:[%s7052_s1 + $0x58] sm:$0xff]  ;;  %v130_v12 = vld [vmem:[%s7052_s1 + $0x320] sm:$0xff] }
  0x2e   :  { %409 = vmatpush.msrb.mxu1 %v240_v23  ;;  %449 = vmatpush.msrb.mxu3 %v241_v25  ;;  %v177_v59 = vld [vmem:[%s7052_s1 + $0x498] sm:$0xff]  ;;  %v32_v60 = vld [vmem:[%s7052_s1 + $0x10] sm:$0xff]  ;;  %v266_v13 = vld [vmem:[%s7052_s1 + $0x760] sm:$0xff] }
  0x2f   :  { %390 = vmatpush.msrb.mxu0 %v104_v22  ;;  %430 = vmatpush.msrb.mxu2 %v105_v24  ;;  %v168_v61 = vld [vmem:[%s7052_s1 + $0x450] sm:$0xff]  ;;  %v33_v62 = vld [vmem:[%s7052_s1 + $0x18] sm:$0xff]  ;;  %v131_v14 = vld [vmem:[%s7052_s1 + $0x328] sm:$0xff] }
  0x30   :  { %410 = vmatpush.msrb.mxu1 %v232_v27  ;;  %450 = vmatpush.msrb.mxu3 %v233_v29  ;;  %v169_v63 = vld [vmem:[%s7052_s1 + $0x458] sm:$0xff]  ;;  %v160_v2 = vld [vmem:[%s7052_s1 + $0x410] sm:$0xff]  ;;  %v267_v15 = vld [vmem:[%s7052_s1 + $0x768] sm:$0xff] }
  0x31   :  { %391 = vmatpush.msrb.mxu0 %v96_v26  ;;  %431 = vmatpush.msrb.mxu2 %v97_v28  ;;  %v161_v3 = vld [vmem:[%s7052_s1 + $0x418] sm:$0xff]  ;;  %v122_v16 = vld [vmem:[%s7052_s1 + $0x2e0] sm:$0xff]  ;;  %v123_v18 = vld [vmem:[%s7052_s1 + $0x2e8] sm:$0xff] }
  0x32   :  { %411 = vmatpush.msrb.mxu1 %v224_v31  ;;  %451 = vmatpush.msrb.mxu3 %v225_v33  ;;  %v258_v17 = vld [vmem:[%s7052_s1 + $0x720] sm:$0xff]  ;;  %v259_v19 = vld [vmem:[%s7052_s1 + $0x728] sm:$0xff] }
  0x33   :  { %392 = vmatpush.msrb.mxu0 %v88_v30  ;;  %432 = vmatpush.msrb.mxu2 %v89_v32  ;;  %v114_v20 = vld [vmem:[%s7052_s1 + $0x2a0] sm:$0xff]  ;;  %v115_v22 = vld [vmem:[%s7052_s1 + $0x2a8] sm:$0xff] }
  0x34   :  { %412 = vmatpush.msrb.mxu1 %v216_v35  ;;  %452 = vmatpush.msrb.mxu3 %v217_v37  ;;  %v250_v21 = vld [vmem:[%s7052_s1 + $0x6e0] sm:$0xff]  ;;  %v251_v23 = vld [vmem:[%s7052_s1 + $0x6e8] sm:$0xff] }
  0x35   :  { %393 = vmatpush.msrb.mxu0 %v80_v34  ;;  %433 = vmatpush.msrb.mxu2 %v81_v36  ;;  %v106_v24 = vld [vmem:[%s7052_s1 + $0x260] sm:$0xff]  ;;  %v107_v26 = vld [vmem:[%s7052_s1 + $0x268] sm:$0xff] }
  0x36   :  { %413 = vmatpush.msrb.mxu1 %v208_v39  ;;  %453 = vmatpush.msrb.mxu3 %v209_v41  ;;  %v242_v25 = vld [vmem:[%s7052_s1 + $0x6a0] sm:$0xff]  ;;  %v243_v27 = vld [vmem:[%s7052_s1 + $0x6a8] sm:$0xff] }
  0x37   :  { %394 = vmatpush.msrb.mxu0 %v72_v38  ;;  %434 = vmatpush.msrb.mxu2 %v73_v40  ;;  %v98_v28 = vld [vmem:[%s7052_s1 + $0x220] sm:$0xff]  ;;  %v99_v30 = vld [vmem:[%s7052_s1 + $0x228] sm:$0xff] }
  0x38   :  { %414 = vmatpush.msrb.mxu1 %v200_v43  ;;  %454 = vmatpush.msrb.mxu3 %v201_v45  ;;  %v234_v29 = vld [vmem:[%s7052_s1 + $0x660] sm:$0xff]  ;;  %v235_v31 = vld [vmem:[%s7052_s1 + $0x668] sm:$0xff] }
  0x39   :  { %395 = vmatpush.msrb.mxu0 %v64_v42  ;;  %435 = vmatpush.msrb.mxu2 %v65_v44  ;;  %v90_v32 = vld [vmem:[%s7052_s1 + $0x1e0] sm:$0xff]  ;;  %v91_v34 = vld [vmem:[%s7052_s1 + $0x1e8] sm:$0xff] }
  0x3a   :  { %360 = vmatmul.f32.vlgmr.msra.gmra.mxu2 %v3368_v46  ;;  %415 = vmatpush.msrb.mxu1 %v192_v48  ;;  %v226_v33 = vld [vmem:[%s7052_s1 + $0x620] sm:$0xff]  ;;  %v227_v35 = vld [vmem:[%s7052_s1 + $0x628] sm:$0xff] }
  0x3b   :  { %396 = vmatpush.msrb.mxu0 %v56_v47  ;;  %436 = vmatpush.msrb.mxu2 %v57_v49  ;;  %v82_v36 = vld [vmem:[%s7052_s1 + $0x1a0] sm:$0xff]  ;;  %v83_v38 = vld [vmem:[%s7052_s1 + $0x1a8] sm:$0xff] }
  0x3c   :  { %455 = vmatpush.msrb.mxu3 %v193_v50  ;;  %320 = vmatmul.f32.vlgmr.msra.gmra.mxu0 %v3368_v46  ;;  %v218_v37 = vld [vmem:[%s7052_s1 + $0x5e0] sm:$0xff]  ;;  %v219_v39 = vld [vmem:[%s7052_s1 + $0x5e8] sm:$0xff] }
  0x3d   :  { %380 = vmatmul.f32.vlgmr.msra.gmra.mxu3 %v3386_v51  ;;  %397 = vmatpush.msrb.mxu0 %v48_v52  ;;  %v74_v40 = vld [vmem:[%s7052_s1 + $0x160] sm:$0xff]  ;;  %v75_v42 = vld [vmem:[%s7052_s1 + $0x168] sm:$0xff] }
  0x3e   :  { %416 = vmatpush.msrb.mxu1 %v184_v53  ;;  %437 = vmatpush.msrb.mxu2 %v49_v54  ;;  %v210_v41 = vld [vmem:[%s7052_s1 + $0x5a0] sm:$0xff]  ;;  %v211_v43 = vld [vmem:[%s7052_s1 + $0x5a8] sm:$0xff] }
  0x3f   :  { %456 = vmatpush.msrb.mxu3 %v185_v55  ;;  %340 = vmatmul.f32.vlgmr.msra.gmra.mxu1 %v3386_v51  ;;  %v66_v44 = vld [vmem:[%s7052_s1 + $0x120] sm:$0xff]  ;;  %v67_v47 = vld [vmem:[%s7052_s1 + $0x128] sm:$0xff] }
  0x40   :  { %398 = vmatpush.msrb.mxu0 %v40_v56  ;;  %417 = vmatpush.msrb.mxu1 %v176_v57  ;;  %v202_v45 = vld [vmem:[%s7052_s1 + $0x560] sm:$0xff]  ;;  %v203_v48 = vld [vmem:[%s7052_s1 + $0x568] sm:$0xff] }
  0x41   :  { %438 = vmatpush.msrb.mxu2 %v41_v58  ;;  %457 = vmatpush.msrb.mxu3 %v177_v59  ;;  %v58_v49 = vld [vmem:[%s7052_s1 + $0xe0] sm:$0xff]  ;;  %v59_v52 = vld [vmem:[%s7052_s1 + $0xe8] sm:$0xff] }
  0x42   :  { %399 = vmatpush.msrb.mxu0 %v32_v60  ;;  %418 = vmatpush.msrb.mxu1 %v168_v61  ;;  %v194_v50 = vld [vmem:[%s7052_s1 + $0x520] sm:$0xff]  ;;  %v195_v53 = vld [vmem:[%s7052_s1 + $0x528] sm:$0xff] }
  0x43   :  { %439 = vmatpush.msrb.mxu2 %v33_v62  ;;  %458 = vmatpush.msrb.mxu3 %v169_v63  ;;  %v50_v54 = vld [vmem:[%s7052_s1 + $0xa0] sm:$0xff]  ;;  %v51_v56 = vld [vmem:[%s7052_s1 + $0xa8] sm:$0xff] }
  0x44   :  { %440 = vmatmul.f32.vlgmr.msrb.gmra.mxu2 %v3368_v46  ;;  %464 = vmatpush.msra.mxu0 %v154_v0  ;;  %v186_v55 = vld [vmem:[%s7052_s1 + $0x4e0] sm:$0xff]  ;;  %v187_v57 = vld [vmem:[%s7052_s1 + $0x4e8] sm:$0xff] }
  0x45   :  { %504 = vmatpush.msra.mxu2 %v155_v1  ;;  %419 = vmatpush.msrb.mxu1 %v160_v2  ;;  %v42_v58 = vld [vmem:[%s7052_s1 + $0x60] sm:$0xff]  ;;  %v43_v60 = vld [vmem:[%s7052_s1 + $0x68] sm:$0xff]  ;;  %v156_v2 = vld [vmem:[%s7052_s1 + $0x3f0] sm:$0xff] }
  0x46   :  { %459 = vmatpush.msrb.mxu3 %v161_v3  ;;  %400 = vmatmul.f32.vlgmr.msrb.gmra.mxu0 %v3368_v46  ;;  %v178_v59 = vld [vmem:[%s7052_s1 + $0x4a0] sm:$0xff]  ;;  %v179_v61 = vld [vmem:[%s7052_s1 + $0x4a8] sm:$0xff]  ;;  %v157_v3 = vld [vmem:[%s7052_s1 + $0x3f8] sm:$0xff] }
  0x47   :  { %460 = vmatmul.f32.vlgmr.msrb.gmra.mxu3 %v3386_v51  ;;  %465 = vmatpush.msra.mxu0 %v146_v4  ;;  %v34_v62 = vld [vmem:[%s7052_s1 + $0x20] sm:$0xff]  ;;  %v35_v0 = vld [vmem:[%s7052_s1 + $0x28] sm:$0xff] }
  0x48   :  { %484 = vmatpush.msra.mxu1 %v282_v5  ;;  %505 = vmatpush.msra.mxu2 %v147_v6  ;;  %v170_v63 = vld [vmem:[%s7052_s1 + $0x460] sm:$0xff]  ;;  %v171_v1 = vld [vmem:[%s7052_s1 + $0x468] sm:$0xff]  ;;  %v148_v6 = vld [vmem:[%s7052_s1 + $0x3b0] sm:$0xff] }
  0x49   :  { %524 = vmatpush.msra.mxu3 %v283_v7  ;;  %420 = vmatmul.f32.vlgmr.msrb.gmra.mxu1 %v3386_v51  ;;  %v162_v4 = vld [vmem:[%s7052_s1 + $0x420] sm:$0xff]  ;;  %v163_v5 = vld [vmem:[%s7052_s1 + $0x428] sm:$0xff]  ;;  %v284_v7 = vld [vmem:[%s7052_s1 + $0x7f0] sm:$0xff] }
  0x4a   :  { %466 = vmatpush.msra.mxu0 %v138_v8  ;;  %485 = vmatpush.msra.mxu1 %v274_v9  ;;  %v149_v8 = vld [vmem:[%s7052_s1 + $0x3b8] sm:$0xff] }
  0x4b   :  { %506 = vmatpush.msra.mxu2 %v139_v10  ;;  %525 = vmatpush.msra.mxu3 %v275_v11  ;;  %v285_v9 = vld [vmem:[%s7052_s1 + $0x7f8] sm:$0xff]  ;;  %v140_v10 = vld [vmem:[%s7052_s1 + $0x370] sm:$0xff] }
  0x4c   :  { %467 = vmatpush.msra.mxu0 %v130_v12  ;;  %486 = vmatpush.msra.mxu1 %v266_v13  ;;  %v276_v11 = vld [vmem:[%s7052_s1 + $0x7b0] sm:$0xff]  ;;  %v141_v12 = vld [vmem:[%s7052_s1 + $0x378] sm:$0xff] }
  0x4d   :  { %507 = vmatpush.msra.mxu2 %v131_v14  ;;  %526 = vmatpush.msra.mxu3 %v267_v15  ;;  %v277_v13 = vld [vmem:[%s7052_s1 + $0x7b8] sm:$0xff]  ;;  %v132_v14 = vld [vmem:[%s7052_s1 + $0x330] sm:$0xff] }
  0x4e   :  { %468 = vmatpush.msra.mxu0 %v122_v16  ;;  %487 = vmatpush.msra.mxu1 %v258_v17  ;;  %v268_v15 = vld [vmem:[%s7052_s1 + $0x770] sm:$0xff]  ;;  %v133_v16 = vld [vmem:[%s7052_s1 + $0x338] sm:$0xff] }
  0x4f   :  { %508 = vmatpush.msra.mxu2 %v123_v18  ;;  %527 = vmatpush.msra.mxu3 %v259_v19  ;;  %v269_v17 = vld [vmem:[%s7052_s1 + $0x778] sm:$0xff]  ;;  %v124_v18 = vld [vmem:[%s7052_s1 + $0x2f0] sm:$0xff] }
  0x50   :  { %469 = vmatpush.msra.mxu0 %v114_v20  ;;  %488 = vmatpush.msra.mxu1 %v250_v21  ;;  %v260_v19 = vld [vmem:[%s7052_s1 + $0x730] sm:$0xff]  ;;  %v125_v20 = vld [vmem:[%s7052_s1 + $0x2f8] sm:$0xff] }
  0x51   :  { %509 = vmatpush.msra.mxu2 %v115_v22  ;;  %528 = vmatpush.msra.mxu3 %v251_v23  ;;  %v261_v21 = vld [vmem:[%s7052_s1 + $0x738] sm:$0xff]  ;;  %v116_v22 = vld [vmem:[%s7052_s1 + $0x2b0] sm:$0xff] }
  0x52   :  { %470 = vmatpush.msra.mxu0 %v106_v24  ;;  %489 = vmatpush.msra.mxu1 %v242_v25  ;;  %v252_v23 = vld [vmem:[%s7052_s1 + $0x6f0] sm:$0xff]  ;;  %v117_v24 = vld [vmem:[%s7052_s1 + $0x2b8] sm:$0xff] }
  0x53   :  { %510 = vmatpush.msra.mxu2 %v107_v26  ;;  %529 = vmatpush.msra.mxu3 %v243_v27  ;;  %v253_v25 = vld [vmem:[%s7052_s1 + $0x6f8] sm:$0xff]  ;;  %v108_v26 = vld [vmem:[%s7052_s1 + $0x270] sm:$0xff] }
  0x54   :  { %471 = vmatpush.msra.mxu0 %v98_v28  ;;  %490 = vmatpush.msra.mxu1 %v234_v29  ;;  %v244_v27 = vld [vmem:[%s7052_s1 + $0x6b0] sm:$0xff]  ;;  %v109_v28 = vld [vmem:[%s7052_s1 + $0x278] sm:$0xff] }
  0x55   :  { %511 = vmatpush.msra.mxu2 %v99_v30  ;;  %530 = vmatpush.msra.mxu3 %v235_v31  ;;  %v245_v29 = vld [vmem:[%s7052_s1 + $0x6b8] sm:$0xff]  ;;  %v100_v30 = vld [vmem:[%s7052_s1 + $0x230] sm:$0xff] }
  0x56   :  { %472 = vmatpush.msra.mxu0 %v90_v32  ;;  %491 = vmatpush.msra.mxu1 %v226_v33  ;;  %v236_v31 = vld [vmem:[%s7052_s1 + $0x670] sm:$0xff]  ;;  %v101_v32 = vld [vmem:[%s7052_s1 + $0x238] sm:$0xff] }
  0x57   :  { %512 = vmatpush.msra.mxu2 %v91_v34  ;;  %531 = vmatpush.msra.mxu3 %v227_v35  ;;  %v237_v33 = vld [vmem:[%s7052_s1 + $0x678] sm:$0xff]  ;;  %v92_v34 = vld [vmem:[%s7052_s1 + $0x1f0] sm:$0xff] }
  0x58   :  { %473 = vmatpush.msra.mxu0 %v82_v36  ;;  %492 = vmatpush.msra.mxu1 %v218_v37  ;;  %v228_v35 = vld [vmem:[%s7052_s1 + $0x630] sm:$0xff]  ;;  %v93_v36 = vld [vmem:[%s7052_s1 + $0x1f8] sm:$0xff] }
  0x59   :  { %513 = vmatpush.msra.mxu2 %v83_v38  ;;  %532 = vmatpush.msra.mxu3 %v219_v39  ;;  %v229_v37 = vld [vmem:[%s7052_s1 + $0x638] sm:$0xff]  ;;  %v84_v38 = vld [vmem:[%s7052_s1 + $0x1b0] sm:$0xff] }
  0x5a   :  { %474 = vmatpush.msra.mxu0 %v74_v40  ;;  %493 = vmatpush.msra.mxu1 %v210_v41  ;;  %v220_v39 = vld [vmem:[%s7052_s1 + $0x5f0] sm:$0xff]  ;;  %v85_v40 = vld [vmem:[%s7052_s1 + $0x1b8] sm:$0xff] }
  0x5b   :  { %514 = vmatpush.msra.mxu2 %v75_v42  ;;  %533 = vmatpush.msra.mxu3 %v211_v43  ;;  %v221_v41 = vld [vmem:[%s7052_s1 + $0x5f8] sm:$0xff]  ;;  %v76_v42 = vld [vmem:[%s7052_s1 + $0x170] sm:$0xff] }
  0x5c   :  { %475 = vmatpush.msra.mxu0 %v66_v44  ;;  %494 = vmatpush.msra.mxu1 %v202_v45  ;;  %v212_v43 = vld [vmem:[%s7052_s1 + $0x5b0] sm:$0xff]  ;;  %v77_v44 = vld [vmem:[%s7052_s1 + $0x178] sm:$0xff] }
  0x5d   :  { %515 = vmatpush.msra.mxu2 %v67_v47  ;;  %534 = vmatpush.msra.mxu3 %v203_v48  ;;  %v213_v45 = vld [vmem:[%s7052_s1 + $0x5b8] sm:$0xff]  ;;  %v68_v47 = vld [vmem:[%s7052_s1 + $0x130] sm:$0xff] }
  0x5e   :  { %476 = vmatpush.msra.mxu0 %v58_v49  ;;  %495 = vmatpush.msra.mxu1 %v194_v50  ;;  %v204_v48 = vld [vmem:[%s7052_s1 + $0x570] sm:$0xff]  ;;  %v69_v49 = vld [vmem:[%s7052_s1 + $0x138] sm:$0xff] }
  0x5f   :  { %516 = vmatpush.msra.mxu2 %v59_v52  ;;  %535 = vmatpush.msra.mxu3 %v195_v53  ;;  %v205_v50 = vld [vmem:[%s7052_s1 + $0x578] sm:$0xff]  ;;  %v60_v52 = vld [vmem:[%s7052_s1 + $0xf0] sm:$0xff] }
  0x60   :  { %477 = vmatpush.msra.mxu0 %v50_v54  ;;  %496 = vmatpush.msra.mxu1 %v186_v55  ;;  %v196_v53 = vld [vmem:[%s7052_s1 + $0x530] sm:$0xff]  ;;  %v61_v54 = vld [vmem:[%s7052_s1 + $0xf8] sm:$0xff] }
  0x61   :  { %517 = vmatpush.msra.mxu2 %v51_v56  ;;  %536 = vmatpush.msra.mxu3 %v187_v57  ;;  %v197_v55 = vld [vmem:[%s7052_s1 + $0x538] sm:$0xff]  ;;  %v52_v56 = vld [vmem:[%s7052_s1 + $0xb0] sm:$0xff] }
  0x62   :  { %478 = vmatpush.msra.mxu0 %v42_v58  ;;  %497 = vmatpush.msra.mxu1 %v178_v59  ;;  %v188_v57 = vld [vmem:[%s7052_s1 + $0x4f0] sm:$0xff]  ;;  %v53_v58 = vld [vmem:[%s7052_s1 + $0xb8] sm:$0xff] }
  0x63   :  { %518 = vmatpush.msra.mxu2 %v43_v60  ;;  %537 = vmatpush.msra.mxu3 %v179_v61  ;;  %v189_v59 = vld [vmem:[%s7052_s1 + $0x4f8] sm:$0xff]  ;;  %v44_v60 = vld [vmem:[%s7052_s1 + $0x70] sm:$0xff] }
  0x64   :  { %479 = vmatpush.msra.mxu0 %v34_v62  ;;  %498 = vmatpush.msra.mxu1 %v170_v63  ;;  %v180_v61 = vld [vmem:[%s7052_s1 + $0x4b0] sm:$0xff]  ;;  %v45_v62 = vld [vmem:[%s7052_s1 + $0x78] sm:$0xff] }
  0x65   :  { %519 = vmatpush.msra.mxu2 %v35_v0  ;;  %538 = vmatpush.msra.mxu3 %v171_v1  ;;  %v181_v63 = vld [vmem:[%s7052_s1 + $0x4b8] sm:$0xff]  ;;  %v36_v0 = vld [vmem:[%s7052_s1 + $0x30] sm:$0xff] }
  0x66   :  { %480 = vmatmul.f32.vlgmr.msra.gmra.mxu0 %v3368_v46  ;;  %520 = vmatmul.f32.vlgmr.msra.gmra.mxu2 %v3368_v46  ;;  %v172_v1 = vld [vmem:[%s7052_s1 + $0x470] sm:$0xff] }
  0x67   :  { %544 = vmatpush.msrb.mxu0 %v156_v2  ;;  %584 = vmatpush.msrb.mxu2 %v157_v3  ;;  %v37_v2 = vld [vmem:[%s7052_s1 + $0x38] sm:$0xff] }
  0x68   :  { %499 = vmatpush.msra.mxu1 %v162_v4  ;;  %539 = vmatpush.msra.mxu3 %v163_v5  ;;  %v173_v3 = vld [vmem:[%s7052_s1 + $0x478] sm:$0xff]  ;;  %v164_v4 = vld [vmem:[%s7052_s1 + $0x430] sm:$0xff] }
  0x69   :  { %500 = vmatmul.f32.vlgmr.msra.gmra.mxu1 %v3386_v51  ;;  %540 = vmatmul.f32.vlgmr.msra.gmra.mxu3 %v3386_v51  ;;  %v165_v5 = vld [vmem:[%s7052_s1 + $0x438] sm:$0xff] }
  0x6a   :  { %545 = vmatpush.msrb.mxu0 %v148_v6  ;;  %564 = vmatpush.msrb.mxu1 %v284_v7  ;;  %v744_v6 = vld [vmem:[%s7054_s3 + $0x3c0] sm:$0xff] }
  0x6b   :  { %585 = vmatpush.msrb.mxu2 %v149_v8  ;;  %604 = vmatpush.msrb.mxu3 %v285_v9  ;;  %v872_v7 = vld [vmem:[%s7054_s3 + $0x7c0] sm:$0xff] }
  0x6c   :  { %546 = vmatpush.msrb.mxu0 %v140_v10  ;;  %565 = vmatpush.msrb.mxu1 %v276_v11  ;;  %v1000_v8 = vld [vmem:[%s7054_s3 + $0xbc0] sm:$0xff] }
  0x6d   :  { %586 = vmatpush.msrb.mxu2 %v141_v12  ;;  %605 = vmatpush.msrb.mxu3 %v277_v13  ;;  %v864_v9 = vld [vmem:[%s7054_s3 + $0x780] sm:$0xff] }
  0x6e   :  { %547 = vmatpush.msrb.mxu0 %v132_v14  ;;  %566 = vmatpush.msrb.mxu1 %v268_v15  ;;  %v992_v10 = vld [vmem:[%s7054_s3 + $0xb80] sm:$0xff] }
  0x6f   :  { %587 = vmatpush.msrb.mxu2 %v133_v16  ;;  %606 = vmatpush.msrb.mxu3 %v269_v17  ;;  %v728_v11 = vld [vmem:[%s7054_s3 + $0x340] sm:$0xff] }
  0x70   :  { %548 = vmatpush.msrb.mxu0 %v124_v18  ;;  %567 = vmatpush.msrb.mxu1 %v260_v19  ;;  %v984_v12 = vld [vmem:[%s7054_s3 + $0xb40] sm:$0xff] }
  0x71   :  { %588 = vmatpush.msrb.mxu2 %v125_v20  ;;  %607 = vmatpush.msrb.mxu3 %v261_v21  ;;  %v720_v13 = vld [vmem:[%s7054_s3 + $0x300] sm:$0xff] }
  0x72   :  { %549 = vmatpush.msrb.mxu0 %v116_v22  ;;  %568 = vmatpush.msrb.mxu1 %v252_v23  ;;  %v848_v14 = vld [vmem:[%s7054_s3 + $0x700] sm:$0xff] }
  0x73   :  { %589 = vmatpush.msrb.mxu2 %v117_v24  ;;  %608 = vmatpush.msrb.mxu3 %v253_v25  ;;  %v1128_v15 = vld [vmem:[%s7054_s3 + $0xfc0] sm:$0xff] }
  0x74   :  { %550 = vmatpush.msrb.mxu0 %v108_v26  ;;  %569 = vmatpush.msrb.mxu1 %v244_v27  ;;  %v976_v16 = vld [vmem:[%s7054_s3 + $0xb00] sm:$0xff] }
  0x75   :  { %590 = vmatpush.msrb.mxu2 %v109_v28  ;;  %609 = vmatpush.msrb.mxu3 %v245_v29  ;;  %v712_v17 = vld [vmem:[%s7054_s3 + $0x2c0] sm:$0xff] }
  0x76   :  { %551 = vmatpush.msrb.mxu0 %v100_v30  ;;  %570 = vmatpush.msrb.mxu1 %v236_v31  ;;  %v840_v18 = vld [vmem:[%s7054_s3 + $0x6c0] sm:$0xff] }
  0x77   :  { %591 = vmatpush.msrb.mxu2 %v101_v32  ;;  %610 = vmatpush.msrb.mxu3 %v237_v33  ;;  %v1120_v19 = vld [vmem:[%s7054_s3 + $0xf80] sm:$0xff] }
  0x78   :  { %552 = vmatpush.msrb.mxu0 %v92_v34  ;;  %571 = vmatpush.msrb.mxu1 %v228_v35  ;;  %v968_v20 = vld [vmem:[%s7054_s3 + $0xac0] sm:$0xff] }
  0x79   :  { %592 = vmatpush.msrb.mxu2 %v93_v36  ;;  %611 = vmatpush.msrb.mxu3 %v229_v37  ;;  %v704_v21 = vld [vmem:[%s7054_s3 + $0x280] sm:$0xff] }
  0x7a   :  { %553 = vmatpush.msrb.mxu0 %v84_v38  ;;  %572 = vmatpush.msrb.mxu1 %v220_v39  ;;  %v832_v22 = vld [vmem:[%s7054_s3 + $0x680] sm:$0xff] }
  0x7b   :  { %593 = vmatpush.msrb.mxu2 %v85_v40  ;;  %612 = vmatpush.msrb.mxu3 %v221_v41  ;;  %v1112_v23 = vld [vmem:[%s7054_s3 + $0xf40] sm:$0xff] }
  0x7c   :  { %554 = vmatpush.msrb.mxu0 %v76_v42  ;;  %573 = vmatpush.msrb.mxu1 %v212_v43  ;;  %v960_v24 = vld [vmem:[%s7054_s3 + $0xa80] sm:$0xff] }
  0x7d   :  { %594 = vmatpush.msrb.mxu2 %v77_v44  ;;  %613 = vmatpush.msrb.mxu3 %v213_v45  ;;  %v696_v25 = vld [vmem:[%s7054_s3 + $0x240] sm:$0xff] }
  0x7e   :  { %555 = vmatpush.msrb.mxu0 %v68_v47  ;;  %574 = vmatpush.msrb.mxu1 %v204_v48  ;;  %v824_v26 = vld [vmem:[%s7054_s3 + $0x640] sm:$0xff] }
  0x7f   :  { %595 = vmatpush.msrb.mxu2 %v69_v49  ;;  %614 = vmatpush.msrb.mxu3 %v205_v50  ;;  %v1104_v27 = vld [vmem:[%s7054_s3 + $0xf00] sm:$0xff] }
  0x80   :  { %556 = vmatpush.msrb.mxu0 %v60_v52  ;;  %575 = vmatpush.msrb.mxu1 %v196_v53  ;;  %v952_v28 = vld [vmem:[%s7054_s3 + $0xa40] sm:$0xff] }
  0x81   :  { %596 = vmatpush.msrb.mxu2 %v61_v54  ;;  %615 = vmatpush.msrb.mxu3 %v197_v55  ;;  %v688_v29 = vld [vmem:[%s7054_s3 + $0x200] sm:$0xff] }
  0x82   :  { %557 = vmatpush.msrb.mxu0 %v52_v56  ;;  %576 = vmatpush.msrb.mxu1 %v188_v57  ;;  %v816_v30 = vld [vmem:[%s7054_s3 + $0x600] sm:$0xff] }
  0x83   :  { %597 = vmatpush.msrb.mxu2 %v53_v58  ;;  %616 = vmatpush.msrb.mxu3 %v189_v59  ;;  %v1096_v31 = vld [vmem:[%s7054_s3 + $0xec0] sm:$0xff] }
  0x84   :  { %558 = vmatpush.msrb.mxu0 %v44_v60  ;;  %577 = vmatpush.msrb.mxu1 %v180_v61  ;;  %v944_v32 = vld [vmem:[%s7054_s3 + $0xa00] sm:$0xff] }
  0x85   :  { %598 = vmatpush.msrb.mxu2 %v45_v62  ;;  %617 = vmatpush.msrb.mxu3 %v181_v63  ;;  %v680_v33 = vld [vmem:[%s7054_s3 + $0x1c0] sm:$0xff] }
  0x86   :  { %559 = vmatpush.msrb.mxu0 %v36_v0  ;;  %578 = vmatpush.msrb.mxu1 %v172_v1  ;;  %v808_v34 = vld [vmem:[%s7054_s3 + $0x5c0] sm:$0xff] }
  0x87   :  { %599 = vmatpush.msrb.mxu2 %v37_v2  ;;  %618 = vmatpush.msrb.mxu3 %v173_v3  ;;  %v1088_v35 = vld [vmem:[%s7054_s3 + $0xe80] sm:$0xff] }
  0x88   :  { %560 = vmatmul.f32.vlgmr.msrb.gmra.mxu0 %v3368_v46  ;;  %600 = vmatmul.f32.vlgmr.msrb.gmra.mxu2 %v3368_v46  ;;  %v736_v46 = vld [vmem:[%s7054_s3 + $0x380] sm:$0xff] }
  0x89   :  { %579 = vmatpush.msrb.mxu1 %v164_v4  ;;  %619 = vmatpush.msrb.mxu3 %v165_v5  ;;  %v936_v36 = vld [vmem:[%s7054_s3 + $0x9c0] sm:$0xff] }
  0x8a   :  { %580 = vmatmul.f32.vlgmr.msrb.gmra.mxu1 %v3386_v51  ;;  %620 = vmatmul.f32.vlgmr.msrb.gmra.mxu3 %v3386_v51  ;;  %v856_v51 = vld [vmem:[%s7054_s3 + $0x740] sm:$0xff] }
  0x8b   :  { %1666 = vmatpush.msra.mxu0 %v744_v6  ;;  %1686 = vmatpush.msra.mxu1 %v872_v7  ;;  %v672_v37 = vld [vmem:[%s7054_s3 + $0x180] sm:$0xff] }
  0x8c   :  { %1706 = vmatpush.msra.mxu2 %v1000_v8  ;;  %1726 = vmatpush.msra.mxu3 %v1128_v15  ;;  %v800_v38 = vld [vmem:[%s7054_s3 + $0x580] sm:$0xff] }
  0x8d   :  { %1667 = vmatpush.msra.mxu0 %v736_v46  ;;  %1687 = vmatpush.msra.mxu1 %v864_v9  ;;  %v1080_v39 = vld [vmem:[%s7054_s3 + $0xe40] sm:$0xff] }
  0x8e   :  { %1707 = vmatpush.msra.mxu2 %v992_v10  ;;  %1727 = vmatpush.msra.mxu3 %v1120_v19  ;;  %v928_v40 = vld [vmem:[%s7054_s3 + $0x980] sm:$0xff] }
  0x8f   :  { %1668 = vmatpush.msra.mxu0 %v728_v11  ;;  %1688 = vmatpush.msra.mxu1 %v856_v51  ;;  %v664_v41 = vld [vmem:[%s7054_s3 + $0x140] sm:$0xff] }
  0x90   :  { %1708 = vmatpush.msra.mxu2 %v984_v12  ;;  %1728 = vmatpush.msra.mxu3 %v1112_v23  ;;  %v792_v42 = vld [vmem:[%s7054_s3 + $0x540] sm:$0xff] }
  0x91   :  { %1669 = vmatpush.msra.mxu0 %v720_v13  ;;  %1689 = vmatpush.msra.mxu1 %v848_v14  ;;  %v920_v43 = vld [vmem:[%s7054_s3 + $0x940] sm:$0xff] }
  0x92   :  { %1709 = vmatpush.msra.mxu2 %v976_v16  ;;  %1729 = vmatpush.msra.mxu3 %v1104_v27  ;;  %v1072_v44 = vld [vmem:[%s7054_s3 + $0xe00] sm:$0xff] }
  0x93   :  { %1670 = vmatpush.msra.mxu0 %v712_v17  ;;  %1690 = vmatpush.msra.mxu1 %v840_v18  ;;  %v656_v45 = vld [vmem:[%s7054_s3 + $0x100] sm:$0xff] }
  0x94   :  { %1710 = vmatpush.msra.mxu2 %v968_v20  ;;  %1730 = vmatpush.msra.mxu3 %v1096_v31  ;;  %v784_v47 = vld [vmem:[%s7054_s3 + $0x500] sm:$0xff] }
  0x95   :  { %1671 = vmatpush.msra.mxu0 %v704_v21  ;;  %1691 = vmatpush.msra.mxu1 %v832_v22  ;;  %v1064_v48 = vld [vmem:[%s7054_s3 + $0xdc0] sm:$0xff] }
  0x96   :  { %1711 = vmatpush.msra.mxu2 %v960_v24  ;;  %1731 = vmatpush.msra.mxu3 %v1088_v35  ;;  %v912_v49 = vld [vmem:[%s7054_s3 + $0x900] sm:$0xff] }
  0x97   :  { %1672 = vmatpush.msra.mxu0 %v696_v25  ;;  %1692 = vmatpush.msra.mxu1 %v824_v26  ;;  %v648_v50 = vld [vmem:[%s7054_s3 + $0xc0] sm:$0xff] }
  0x98   :  { %1712 = vmatpush.msra.mxu2 %v952_v28  ;;  %1732 = vmatpush.msra.mxu3 %v1080_v39  ;;  %v776_v52 = vld [vmem:[%s7054_s3 + $0x4c0] sm:$0xff] }
  0x99   :  { %1673 = vmatpush.msra.mxu0 %v688_v29  ;;  %1693 = vmatpush.msra.mxu1 %v816_v30  ;;  %v1056_v53 = vld [vmem:[%s7054_s3 + $0xd80] sm:$0xff] }
  0x9a   :  { %1713 = vmatpush.msra.mxu2 %v944_v32  ;;  %1733 = vmatpush.msra.mxu3 %v1072_v44  ;;  %v904_v54 = vld [vmem:[%s7054_s3 + $0x8c0] sm:$0xff] }
  0x9b   :  { %1674 = vmatpush.msra.mxu0 %v680_v33  ;;  %1694 = vmatpush.msra.mxu1 %v808_v34  ;;  %v640_v55 = vld [vmem:[%s7054_s3 + $0x80] sm:$0xff] }
  0x9c   :  { %1714 = vmatpush.msra.mxu2 %v936_v36  ;;  %1734 = vmatpush.msra.mxu3 %v1064_v48  ;;  %v768_v56 = vld [vmem:[%s7054_s3 + $0x480] sm:$0xff] }
  0x9d   :  { %1675 = vmatpush.msra.mxu0 %v672_v37  ;;  %1695 = vmatpush.msra.mxu1 %v800_v38  ;;  %v1048_v57 = vld [vmem:[%s7054_s3 + $0xd40] sm:$0xff] }
  0x9e   :  { %1715 = vmatpush.msra.mxu2 %v928_v40  ;;  %1735 = vmatpush.msra.mxu3 %v1056_v53  ;;  %v896_v58 = vld [vmem:[%s7054_s3 + $0x880] sm:$0xff] }
  0x9f   :  { %1676 = vmatpush.msra.mxu0 %v664_v41  ;;  %1696 = vmatpush.msra.mxu1 %v792_v42  ;;  %v632_v59 = vld [vmem:[%s7054_s3 + $0x40] sm:$0xff] }
  0xa0   :  { %1716 = vmatpush.msra.mxu2 %v920_v43  ;;  %v760_v60 = vld [vmem:[%s7054_s3 + $0x440] sm:$0xff]  ;;  %1736 = vmatpush.msra.mxu3 %v1048_v57 }
  0xa1   :  { %1677 = vmatpush.msra.mxu0 %v656_v45  ;;  %1697 = vmatpush.msra.mxu1 %v784_v47  ;;  %v1040_v61 = vld [vmem:[%s7054_s3 + $0xd00] sm:$0xff] }
  0xa2   :  { %1717 = vmatpush.msra.mxu2 %v912_v49  ;;  %v888_v62 = vld [vmem:[%s7054_s3 + $0x840] sm:$0xff]  ;;  %1737 = vmatpush.msra.mxu3 %v1040_v61 }
  0xa3   :  { %1678 = vmatpush.msra.mxu0 %v648_v50  ;;  %1698 = vmatpush.msra.mxu1 %v776_v52  ;;  %v624_v63 = vld [vmem:[%s7054_s3] sm:$0xff] }
  0xa4   :  { %1718 = vmatpush.msra.mxu2 %v904_v54  ;;  %v752_v0 = vld [vmem:[%s7054_s3 + $0x400] sm:$0xff] }
  0xa5   :  { %1679 = vmatpush.msra.mxu0 %v640_v55  ;;  %1699 = vmatpush.msra.mxu1 %v768_v56  ;;  %v1256_v1 = vld [vmem:[%s7054_s3 + $0x13c0] sm:$0xff] }
  0xa6   :  { %1719 = vmatpush.msra.mxu2 %v896_v58  ;;  %v1384_v2 = vld [vmem:[%s7054_s3 + $0x17c0] sm:$0xff] }
  0xa7   :  { %1680 = vmatpush.msra.mxu0 %v632_v59  ;;  %1700 = vmatpush.msra.mxu1 %v760_v60  ;;  %v1032_v3 = vld [vmem:[%s7054_s3 + $0xcc0] sm:$0xff] }
  0xa8   :  { %1720 = vmatpush.msra.mxu2 %v888_v62  ;;  %v880_v4 = vld [vmem:[%s7054_s3 + $0x800] sm:$0xff]  ;;  %1738 = vmatpush.msra.mxu3 %v1032_v3 }
  0xa9   :  { %1681 = vmatpush.msra.mxu0 %v624_v63  ;;  %v1248_v5 = vld [vmem:[%s7054_s3 + $0x1380] sm:$0xff]  ;;  %1701 = vmatpush.msra.mxu1 %v752_v0 }
  0xaa   :  { %v1376_v6 = vld [vmem:[%s7054_s3 + $0x1780] sm:$0xff]  ;;  %1721 = vmatpush.msra.mxu2 %v880_v4 }
  0xab   :  { %v1024_v7 = vld [vmem:[%s7054_s3 + $0xc80] sm:$0xff]  ;;  %1746 = vmatpush.msrb.mxu0 %v1256_v1  ;;  %1766 = vmatpush.msrb.mxu1 %v1384_v2 }
  0xac   :  { %v1512_v8 = vld [vmem:[%s7054_s3 + $0x1bc0] sm:$0xff]  ;;  %1739 = vmatpush.msra.mxu3 %v1024_v7 }
  0xad   :  { %v1240_v46 = vld [vmem:[%s7054_s3 + $0x1340] sm:$0xff]  ;;  %1747 = vmatpush.msrb.mxu0 %v1248_v5  ;;  %1767 = vmatpush.msrb.mxu1 %v1376_v6 }
  0xae   :  { %v1368_v9 = vld [vmem:[%s7054_s3 + $0x1740] sm:$0xff]  ;;  %1786 = vmatpush.msrb.mxu2 %v1512_v8 }
  0xaf   :  { %v1016_v10 = vld [vmem:[%s7054_s3 + $0xc40] sm:$0xff]  ;;  %1748 = vmatpush.msrb.mxu0 %v1240_v46  ;;  %1768 = vmatpush.msrb.mxu1 %v1368_v9 }
  0xb0   :  { %v1504_v11 = vld [vmem:[%s7054_s3 + $0x1b80] sm:$0xff]  ;;  %1740 = vmatpush.msra.mxu3 %v1016_v10 }
  0xb1   :  { %v1232_v51 = vld [vmem:[%s7054_s3 + $0x1300] sm:$0xff]  ;;  %1787 = vmatpush.msrb.mxu2 %v1504_v11 }
  0xb2   :  { %v1360_v12 = vld [vmem:[%s7054_s3 + $0x1700] sm:$0xff]  ;;  %1749 = vmatpush.msrb.mxu0 %v1232_v51 }
  0xb3   :  { %v1008_v13 = vld [vmem:[%s7054_s3 + $0xc00] sm:$0xff]  ;;  %1769 = vmatpush.msrb.mxu1 %v1360_v12  ;;  %v745_v12 = vld [vmem:[%s7054_s3 + $0x3c8] sm:$0xff] }
  0xb4   :  { %v1496_v14 = vld [vmem:[%s7054_s3 + $0x1b40] sm:$0xff]  ;;  %1741 = vmatpush.msra.mxu3 %v1008_v13 }
  0xb5   :  { %v1640_v15 = vld [vmem:[%s7054_s3 + $0x1fc0] sm:$0xff]  ;;  %1788 = vmatpush.msrb.mxu2 %v1496_v14 }
  0xb6   :  { %v1224_v16 = vld [vmem:[%s7054_s3 + $0x12c0] sm:$0xff]  ;;  %1806 = vmatpush.msrb.mxu3 %v1640_v15  ;;  %v873_v15 = vld [vmem:[%s7054_s3 + $0x7c8] sm:$0xff] }
  0xb7   :  { %v1352_v17 = vld [vmem:[%s7054_s3 + $0x16c0] sm:$0xff]  ;;  %1750 = vmatpush.msrb.mxu0 %v1224_v16 }
  0xb8   :  { %v1488_v18 = vld [vmem:[%s7054_s3 + $0x1b00] sm:$0xff]  ;;  %1770 = vmatpush.msrb.mxu1 %v1352_v17 }
  0xb9   :  { %v1632_v19 = vld [vmem:[%s7054_s3 + $0x1f80] sm:$0xff]  ;;  %1789 = vmatpush.msrb.mxu2 %v1488_v18  ;;  %v321_v39 = vpop.f32.mrf.mxu0  ;;  %v737_v18 = vld [vmem:[%s7054_s3 + $0x388] sm:$0xff] }
  0xba   :  { %v1216_v20 = vld [vmem:[%s7054_s3 + $0x1280] sm:$0xff]  ;;  %1807 = vmatpush.msrb.mxu3 %v1632_v19 }
  0xbb   :  { %v1344_v21 = vld [vmem:[%s7054_s3 + $0x1680] sm:$0xff]  ;;  %1751 = vmatpush.msrb.mxu0 %v1216_v20  ;;  %v865_v20 = vld [vmem:[%s7054_s3 + $0x788] sm:$0xff] }
  0xbc   :  { %v1480_v22 = vld [vmem:[%s7054_s3 + $0x1ac0] sm:$0xff]  ;;  %1771 = vmatpush.msrb.mxu1 %v1344_v21  ;;  %v341_v48 = vpop.f32.mrf.mxu1 }
  0xbd   :  { %v1624_v23 = vld [vmem:[%s7054_s3 + $0x1f40] sm:$0xff]  ;;  %1790 = vmatpush.msrb.mxu2 %v1480_v22  ;;  %v361_v53 = vpop.f32.mrf.mxu2 }
  0xbe   :  { %v1208_v24 = vld [vmem:[%s7054_s3 + $0x1240] sm:$0xff]  ;;  %1808 = vmatpush.msrb.mxu3 %v1624_v23  ;;  %v729_v23 = vld [vmem:[%s7054_s3 + $0x348] sm:$0xff] }
  0xbf   :  { %v1336_v25 = vld [vmem:[%s7054_s3 + $0x1640] sm:$0xff]  ;;  %1752 = vmatpush.msrb.mxu0 %v1208_v24 }
  0xc0   :  { %v4090_v26 = vld [vmem:[%s7055_s2] sm:$0xff]  ;;  %1772 = vmatpush.msrb.mxu1 %v1336_v25  ;;  %v381_v60 = vpop.f32.mrf.mxu3  ;;  %v857_v25 = vld [vmem:[%s7054_s3 + $0x748] sm:$0xff] }
  0xc1   :  { %v1472_v27 = vld [vmem:[%s7054_s3 + $0x1a80] sm:$0xff]  ;;  %v288_v31 = vperm.slane %v4090_v26, 0  ;;  %v289_v42 = vperm.slane %v4090_v26, 1  ;;  %v290_v61 = vperm.slane %v4090_v26, 2  ;;  %v291_v8 = vperm.slane %v4090_v26, 3 }
  0xc2   :  { %v1616_v28 = vld [vmem:[%s7054_s3 + $0x1f00] sm:$0xff]  ;;  %1791 = vmatpush.msrb.mxu2 %v1472_v27 }
  0xc3   :  { %v1200_v29 = vld [vmem:[%s7054_s3 + $0x1200] sm:$0xff]  ;;  %1809 = vmatpush.msrb.mxu3 %v1616_v28  ;;  %v322_v41 = vadd.f32 %v321_v39, %v288_v31  ;;  %v362_v55 = vadd.f32 %v361_v53, %v289_v42  ;;  %v401_v4 = vpop.f32.mrf.mxu0  ;;  %v721_v28 = vld [vmem:[%s7054_s3 + $0x308] sm:$0xff] }
  0xc4   :  { %v1328_v30 = vld [vmem:[%s7054_s3 + $0x1600] sm:$0xff]  ;;  %1753 = vmatpush.msrb.mxu0 %v1200_v29  ;;  %v402_v7 = vadd.f32 %v401_v4, %v290_v61  ;;  %v1001_v31 = vld [vmem:[%s7054_s3 + $0xbc8] sm:$0xff] }
  0xc5   :  { %v1464_v32 = vld [vmem:[%s7054_s3 + $0x1a40] sm:$0xff]  ;;  %1773 = vmatpush.msrb.mxu1 %v1328_v30  ;;  %v4145_v50 = vadd.f32 %v341_v48, %v322_v41  ;;  %v4170_v63 = vadd.f32 %v381_v60, %v362_v55  ;;  %v849_v30 = vld [vmem:[%s7054_s3 + $0x708] sm:$0xff] }
  0xc6   :  { %v1608_v33 = vld [vmem:[%s7054_s3 + $0x1ec0] sm:$0xff]  ;;  %1792 = vmatpush.msrb.mxu2 %v1464_v32  ;;  %v421_v51 = vpop.f32.mrf.mxu1  ;;  %v713_v32 = vld [vmem:[%s7054_s3 + $0x2c8] sm:$0xff] }
  0xc7   :  { %v1192_v34 = vld [vmem:[%s7054_s3 + $0x11c0] sm:$0xff]  ;;  %1810 = vmatpush.msrb.mxu3 %v1608_v33  ;;  %1682 = vmatmul.f32.vlgmr.msra.gmra.mxu0 %v4145_v50  ;;  %v4207_v13 = vadd.f32 %v421_v51, %v402_v7  ;;  %v441_v14 = vpop.f32.mrf.mxu2  ;;  %v985_v39 = vld [vmem:[%s7054_s3 + $0xb48] sm:$0xff] }
  0xc8   :  { %v1320_v35 = vld [vmem:[%s7054_s3 + $0x15c0] sm:$0xff]  ;;  %1754 = vmatpush.msrb.mxu0 %v1192_v34  ;;  %1702 = vmatmul.f32.vlgmr.msra.gmra.mxu1 %v4170_v63  ;;  %v442_v17 = vadd.f32 %v441_v14, %v291_v8  ;;  %v841_v34 = vld [vmem:[%s7054_s3 + $0x6c8] sm:$0xff]  ;;  %v292_v8 = vperm.slane %v4090_v26, 4 }
  0xc9   :  { %v1456_v36 = vld [vmem:[%s7054_s3 + $0x1a00] sm:$0xff]  ;;  %1774 = vmatpush.msrb.mxu1 %v1320_v35  ;;  %1722 = vmatmul.f32.vlgmr.msra.gmra.mxu2 %v4207_v13  ;;  %v993_v35 = vld [vmem:[%s7054_s3 + $0xb88] sm:$0xff] }
  0xca   :  { %v1600_v37 = vld [vmem:[%s7054_s3 + $0x1e80] sm:$0xff]  ;;  %1793 = vmatpush.msrb.mxu2 %v1456_v36  ;;  %v461_v22 = vpop.f32.mrf.mxu3  ;;  %v705_v36 = vld [vmem:[%s7054_s3 + $0x288] sm:$0xff] }
  0xcb   :  { %v1184_v38 = vld [vmem:[%s7054_s3 + $0x1180] sm:$0xff]  ;;  %1811 = vmatpush.msrb.mxu3 %v1600_v37  ;;  %v4231_v24 = vadd.f32 %v461_v22, %v442_v17  ;;  %v825_v42 = vld [vmem:[%s7054_s3 + $0x648] sm:$0xff] }
  0xcc   :  { %v1312_v40 = vld [vmem:[%s7054_s3 + $0x1580] sm:$0xff]  ;;  %1755 = vmatpush.msrb.mxu0 %v1184_v38  ;;  %v833_v38 = vld [vmem:[%s7054_s3 + $0x688] sm:$0xff] }
  0xcd   :  { %v1448_v43 = vld [vmem:[%s7054_s3 + $0x19c0] sm:$0xff]  ;;  %1775 = vmatpush.msrb.mxu1 %v1312_v40  ;;  %1742 = vmatmul.f32.vlgmr.msra.gmra.mxu3 %v4231_v24  ;;  %v697_v40 = vld [vmem:[%s7054_s3 + $0x248] sm:$0xff] }
  0xce   :  { %v1592_v44 = vld [vmem:[%s7054_s3 + $0x1e40] sm:$0xff]  ;;  %1794 = vmatpush.msrb.mxu2 %v1448_v43  ;;  %v977_v43 = vld [vmem:[%s7054_s3 + $0xb08] sm:$0xff] }
  0xcf   :  { %v1176_v45 = vld [vmem:[%s7054_s3 + $0x1140] sm:$0xff]  ;;  %1812 = vmatpush.msrb.mxu3 %v1592_v44  ;;  %v689_v44 = vld [vmem:[%s7054_s3 + $0x208] sm:$0xff] }
  0xd0   :  { %v1304_v47 = vld [vmem:[%s7054_s3 + $0x1540] sm:$0xff]  ;;  %1756 = vmatpush.msrb.mxu0 %v1176_v45  ;;  %v1129_v45 = vld [vmem:[%s7054_s3 + $0xfc8] sm:$0xff] }
  0xd1   :  { %v1440_v49 = vld [vmem:[%s7054_s3 + $0x1980] sm:$0xff]  ;;  %1776 = vmatpush.msrb.mxu1 %v1304_v47  ;;  %v817_v47 = vld [vmem:[%s7054_s3 + $0x608] sm:$0xff] }
  0xd2   :  { %v1168_v52 = vld [vmem:[%s7054_s3 + $0x1100] sm:$0xff]  ;;  %1795 = vmatpush.msrb.mxu2 %v1440_v49  ;;  %v969_v48 = vld [vmem:[%s7054_s3 + $0xac8] sm:$0xff] }
  0xd3   :  { %v1296_v54 = vld [vmem:[%s7054_s3 + $0x1500] sm:$0xff]  ;;  %1757 = vmatpush.msrb.mxu0 %v1168_v52  ;;  %v681_v49 = vld [vmem:[%s7054_s3 + $0x1c8] sm:$0xff] }
  0xd4   :  { %v1432_v56 = vld [vmem:[%s7054_s3 + $0x1940] sm:$0xff]  ;;  %1777 = vmatpush.msrb.mxu1 %v1296_v54  ;;  %v1121_v52 = vld [vmem:[%s7054_s3 + $0xf88] sm:$0xff] }
  0xd5   :  { %v1584_v57 = vld [vmem:[%s7054_s3 + $0x1e00] sm:$0xff]  ;;  %1796 = vmatpush.msrb.mxu2 %v1432_v56  ;;  %v809_v53 = vld [vmem:[%s7054_s3 + $0x5c8] sm:$0xff] }
  0xd6   :  { %v1160_v58 = vld [vmem:[%s7054_s3 + $0x10c0] sm:$0xff]  ;;  %1813 = vmatpush.msrb.mxu3 %v1584_v57  ;;  %v961_v54 = vld [vmem:[%s7054_s3 + $0xa88] sm:$0xff] }
  0xd7   :  { %v1288_v59 = vld [vmem:[%s7054_s3 + $0x14c0] sm:$0xff]  ;;  %1758 = vmatpush.msrb.mxu0 %v1160_v58  ;;  %v673_v55 = vld [vmem:[%s7054_s3 + $0x188] sm:$0xff] }
  0xd8   :  { %v1424_v62 = vld [vmem:[%s7054_s3 + $0x1900] sm:$0xff]  ;;  %1778 = vmatpush.msrb.mxu1 %v1288_v59  ;;  %v1113_v56 = vld [vmem:[%s7054_s3 + $0xf48] sm:$0xff] }
  0xd9   :  { %v1152_v0 = vld [vmem:[%s7054_s3 + $0x1080] sm:$0xff]  ;;  %1797 = vmatpush.msrb.mxu2 %v1424_v62  ;;  %v801_v57 = vld [vmem:[%s7054_s3 + $0x588] sm:$0xff] }
  0xda   :  { %v1280_v1 = vld [vmem:[%s7054_s3 + $0x1480] sm:$0xff]  ;;  %1759 = vmatpush.msrb.mxu0 %v1152_v0  ;;  %v953_v58 = vld [vmem:[%s7054_s3 + $0xa48] sm:$0xff] }
  0xdb   :  { %v1576_v2 = vld [vmem:[%s7054_s3 + $0x1dc0] sm:$0xff]  ;;  %1779 = vmatpush.msrb.mxu1 %v1280_v1  ;;  %v665_v59 = vld [vmem:[%s7054_s3 + $0x148] sm:$0xff] }
  0xdc   :  { %v1416_v3 = vld [vmem:[%s7054_s3 + $0x18c0] sm:$0xff]  ;;  %1814 = vmatpush.msrb.mxu3 %v1576_v2  ;;  %v1105_v60 = vld [vmem:[%s7054_s3 + $0xf08] sm:$0xff] }
  0xdd   :  { %v1144_v5 = vld [vmem:[%s7054_s3 + $0x1040] sm:$0xff]  ;;  %1798 = vmatpush.msrb.mxu2 %v1416_v3  ;;  %v793_v61 = vld [vmem:[%s7054_s3 + $0x548] sm:$0xff] }
  0xde   :  { %v1272_v6 = vld [vmem:[%s7054_s3 + $0x1440] sm:$0xff]  ;;  %1760 = vmatpush.msrb.mxu0 %v1144_v5  ;;  %v945_v62 = vld [vmem:[%s7054_s3 + $0xa08] sm:$0xff] }
  0xdf   :  { %v1568_v46 = vld [vmem:[%s7054_s3 + $0x1d80] sm:$0xff]  ;;  %1780 = vmatpush.msrb.mxu1 %v1272_v6  ;;  %v657_v0 = vld [vmem:[%s7054_s3 + $0x108] sm:$0xff] }
  0xe0   :  { %v1408_v9 = vld [vmem:[%s7054_s3 + $0x1880] sm:$0xff]  ;;  %1815 = vmatpush.msrb.mxu3 %v1568_v46  ;;  %v1097_v1 = vld [vmem:[%s7054_s3 + $0xec8] sm:$0xff] }
  0xe1   :  { %v1136_v10 = vld [vmem:[%s7054_s3 + $0x1000] sm:$0xff]  ;;  %1799 = vmatpush.msrb.mxu2 %v1408_v9  ;;  %v785_v2 = vld [vmem:[%s7054_s3 + $0x508] sm:$0xff] }
  0xe2   :  { %v1264_v11 = vld [vmem:[%s7054_s3 + $0x1400] sm:$0xff]  ;;  %1761 = vmatpush.msrb.mxu0 %v1136_v10  ;;  %v937_v3 = vld [vmem:[%s7054_s3 + $0x9c8] sm:$0xff] }
  0xe3   :  { %v1560_v16 = vld [vmem:[%s7054_s3 + $0x1d40] sm:$0xff]  ;;  %1781 = vmatpush.msrb.mxu1 %v1264_v11  ;;  %v649_v4 = vld [vmem:[%s7054_s3 + $0xc8] sm:$0xff]  ;;  %v481_v14 = vpop.f32.mrf.mxu0 }
  0xe4   :  { %v1400_v19 = vld [vmem:[%s7054_s3 + $0x1840] sm:$0xff]  ;;  %1826 = vmatpush.msra.mxu0 %v745_v12  ;;  %1816 = vmatpush.msrb.mxu3 %v1560_v16  ;;  %v1089_v5 = vld [vmem:[%s7054_s3 + $0xe88] sm:$0xff]  ;;  %v482_v17 = vadd.f32 %v481_v14, %v292_v8 }
  0xe5   :  { %v1552_v21 = vld [vmem:[%s7054_s3 + $0x1d00] sm:$0xff]  ;;  %1846 = vmatpush.msra.mxu1 %v873_v15  ;;  %1800 = vmatpush.msrb.mxu2 %v1400_v19  ;;  %v777_v6 = vld [vmem:[%s7054_s3 + $0x4c8] sm:$0xff] }
  0xe6   :  { %1827 = vmatpush.msra.mxu0 %v737_v18  ;;  %v1392_v27 = vld [vmem:[%s7054_s3 + $0x1800] sm:$0xff]  ;;  %1817 = vmatpush.msrb.mxu3 %v1552_v21  ;;  %v929_v7 = vld [vmem:[%s7054_s3 + $0x988] sm:$0xff]  ;;  %v501_v22 = vpop.f32.mrf.mxu1 }
  0xe7   :  { %1847 = vmatpush.msra.mxu1 %v865_v20  ;;  %v1544_v29 = vld [vmem:[%s7054_s3 + $0x1cc0] sm:$0xff]  ;;  %1801 = vmatpush.msrb.mxu2 %v1392_v27  ;;  %v641_v46 = vld [vmem:[%s7054_s3 + $0x88] sm:$0xff]  ;;  %v4401_v27 = vadd.f32 %v501_v22, %v482_v17 }
  0xe8   :  { %1828 = vmatpush.msra.mxu0 %v729_v23  ;;  %v1536_v33 = vld [vmem:[%s7054_s3 + $0x1c80] sm:$0xff]  ;;  %1818 = vmatpush.msrb.mxu3 %v1544_v29  ;;  %v1081_v9 = vld [vmem:[%s7054_s3 + $0xe48] sm:$0xff]  ;;  %v293_v23 = vperm.slane %v4090_v26, 5 }
  0xe9   :  { %1848 = vmatpush.msra.mxu1 %v857_v25  ;;  %1866 = vmatpush.msra.mxu2 %v1001_v31  ;;  %v1528_v37 = vld [vmem:[%s7054_s3 + $0x1c40] sm:$0xff]  ;;  %v769_v10 = vld [vmem:[%s7054_s3 + $0x488] sm:$0xff]  ;;  %v521_v31 = vpop.f32.mrf.mxu2 }
  0xea   :  { %1829 = vmatpush.msra.mxu0 %v721_v28  ;;  %1819 = vmatpush.msrb.mxu3 %v1536_v33  ;;  %v1520_v41 = vld [vmem:[%s7054_s3 + $0x1c00] sm:$0xff]  ;;  %v921_v11 = vld [vmem:[%s7054_s3 + $0x948] sm:$0xff] }
  0xeb   :  { %1849 = vmatpush.msra.mxu1 %v849_v30  ;;  %1867 = vmatpush.msra.mxu2 %v993_v35  ;;  %v633_v51 = vld [vmem:[%s7054_s3 + $0x48] sm:$0xff] }
  0xec   :  { %1830 = vmatpush.msra.mxu0 %v713_v32  ;;  %1820 = vmatpush.msrb.mxu3 %v1528_v37  ;;  %v1073_v12 = vld [vmem:[%s7054_s3 + $0xe08] sm:$0xff] }
  0xed   :  { %1850 = vmatpush.msra.mxu1 %v841_v34  ;;  %1868 = vmatpush.msra.mxu2 %v985_v39  ;;  %v761_v15 = vld [vmem:[%s7054_s3 + $0x448] sm:$0xff]  ;;  %v522_v34 = vadd.f32 %v521_v31, %v293_v23 }
  0xee   :  { %1831 = vmatpush.msra.mxu0 %v705_v36  ;;  %1821 = vmatpush.msrb.mxu3 %v1520_v41  ;;  %v913_v16 = vld [vmem:[%s7054_s3 + $0x908] sm:$0xff] }
  0xef   :  { %1851 = vmatpush.msra.mxu1 %v833_v38  ;;  %1869 = vmatpush.msra.mxu2 %v977_v43  ;;  %v625_v18 = vld [vmem:[%s7054_s3 + $0x8] sm:$0xff]  ;;  %v541_v38 = vpop.f32.mrf.mxu3 }
  0xf0   :  { %1832 = vmatpush.msra.mxu0 %v697_v40  ;;  %1886 = vmatpush.msra.mxu3 %v1129_v45  ;;  %v1065_v19 = vld [vmem:[%s7054_s3 + $0xdc8] sm:$0xff]  ;;  %v4431_v40 = vadd.f32 %v541_v38, %v522_v34 }
  0xf1   :  { %1852 = vmatpush.msra.mxu1 %v825_v42  ;;  %1870 = vmatpush.msra.mxu2 %v969_v48  ;;  %v753_v20 = vld [vmem:[%s7054_s3 + $0x408] sm:$0xff] }
  0xf2   :  { %1833 = vmatpush.msra.mxu0 %v689_v44  ;;  %1887 = vmatpush.msra.mxu3 %v1121_v52  ;;  %v905_v21 = vld [vmem:[%s7054_s3 + $0x8c8] sm:$0xff] }
  0xf3   :  { %1853 = vmatpush.msra.mxu1 %v817_v47  ;;  %1871 = vmatpush.msra.mxu2 %v961_v54  ;;  %v1057_v25 = vld [vmem:[%s7054_s3 + $0xd88] sm:$0xff] }
  0xf4   :  { %1834 = vmatpush.msra.mxu0 %v681_v49  ;;  %1888 = vmatpush.msra.mxu3 %v1113_v56  ;;  %v1257_v28 = vld [vmem:[%s7054_s3 + $0x13c8] sm:$0xff] }
  0xf5   :  { %1854 = vmatpush.msra.mxu1 %v809_v53  ;;  %1872 = vmatpush.msra.mxu2 %v953_v58  ;;  %v897_v29 = vld [vmem:[%s7054_s3 + $0x888] sm:$0xff] }
  0xf6   :  { %1835 = vmatpush.msra.mxu0 %v673_v55  ;;  %1889 = vmatpush.msra.mxu3 %v1105_v60  ;;  %v1049_v30 = vld [vmem:[%s7054_s3 + $0xd48] sm:$0xff] }
  0xf7   :  { %1855 = vmatpush.msra.mxu1 %v801_v57  ;;  %1873 = vmatpush.msra.mxu2 %v945_v62  ;;  %v1249_v32 = vld [vmem:[%s7054_s3 + $0x1388] sm:$0xff] }
  0xf8   :  { %1836 = vmatpush.msra.mxu0 %v665_v59  ;;  %1890 = vmatpush.msra.mxu3 %v1097_v1  ;;  %v889_v33 = vld [vmem:[%s7054_s3 + $0x848] sm:$0xff] }
  0xf9   :  { %1856 = vmatpush.msra.mxu1 %v793_v61  ;;  %1874 = vmatpush.msra.mxu2 %v937_v3  ;;  %v1041_v35 = vld [vmem:[%s7054_s3 + $0xd08] sm:$0xff] }
  0xfa   :  { %1837 = vmatpush.msra.mxu0 %v657_v0  ;;  %1891 = vmatpush.msra.mxu3 %v1089_v5  ;;  %v1241_v36 = vld [vmem:[%s7054_s3 + $0x1348] sm:$0xff] }
  0xfb   :  { %1857 = vmatpush.msra.mxu1 %v785_v2  ;;  %1875 = vmatpush.msra.mxu2 %v929_v7  ;;  %v881_v37 = vld [vmem:[%s7054_s3 + $0x808] sm:$0xff] }
  0xfc   :  { %1838 = vmatpush.msra.mxu0 %v649_v4  ;;  %1892 = vmatpush.msra.mxu3 %v1081_v9  ;;  %v1033_v39 = vld [vmem:[%s7054_s3 + $0xcc8] sm:$0xff] }
  0xfd   :  { %1858 = vmatpush.msra.mxu1 %v777_v6  ;;  %1876 = vmatpush.msra.mxu2 %v921_v11  ;;  %v1233_v41 = vld [vmem:[%s7054_s3 + $0x1308] sm:$0xff]  ;;  %v294_v6 = vperm.slane %v4090_v26, 6 }
  0xfe   :  { %1839 = vmatpush.msra.mxu0 %v641_v46  ;;  %1893 = vmatpush.msra.mxu3 %v1073_v12  ;;  %v1385_v42 = vld [vmem:[%s7054_s3 + $0x17c8] sm:$0xff]  ;;  %v746_v12 = vld [vmem:[%s7054_s3 + $0x3d0] sm:$0xff] }
  0xff   :  { %1859 = vmatpush.msra.mxu1 %v769_v10  ;;  %1877 = vmatpush.msra.mxu2 %v913_v16  ;;  %v1025_v43 = vld [vmem:[%s7054_s3 + $0xc88] sm:$0xff]  ;;  %v295_v16 = vperm.slane %v4090_v26, 7 }
 0x100   :  { %1840 = vmatpush.msra.mxu0 %v633_v51  ;;  %1894 = vmatpush.msra.mxu3 %v1065_v19  ;;  %v1225_v44 = vld [vmem:[%s7054_s3 + $0x12c8] sm:$0xff] }
 0x101   :  { %1860 = vmatpush.msra.mxu1 %v761_v15  ;;  %1878 = vmatpush.msra.mxu2 %v905_v21  ;;  %v1377_v45 = vld [vmem:[%s7054_s3 + $0x1788] sm:$0xff]  ;;  %v730_v21 = vld [vmem:[%s7054_s3 + $0x350] sm:$0xff] }
 0x102   :  { %1841 = vmatpush.msra.mxu0 %v625_v18  ;;  %1895 = vmatpush.msra.mxu3 %v1057_v25  ;;  %v1017_v47 = vld [vmem:[%s7054_s3 + $0xc48] sm:$0xff]  ;;  %v738_v18 = vld [vmem:[%s7054_s3 + $0x390] sm:$0xff] }
 0x103   :  { %1861 = vmatpush.msra.mxu1 %v753_v20  ;;  %1762 = vmatmul.f32.vlgmr.msrb.gmra.mxu0 %v4401_v27  ;;  %v1217_v48 = vld [vmem:[%s7054_s3 + $0x1288] sm:$0xff] }
 0x104   :  { %1906 = vmatpush.msrb.mxu0 %v1257_v28  ;;  %1879 = vmatpush.msra.mxu2 %v897_v29  ;;  %v1369_v49 = vld [vmem:[%s7054_s3 + $0x1748] sm:$0xff] }
 0x105   :  { %1896 = vmatpush.msra.mxu3 %v1049_v30  ;;  %1782 = vmatmul.f32.vlgmr.msrb.gmra.mxu1 %v4431_v40  ;;  %v1009_v52 = vld [vmem:[%s7054_s3 + $0xc08] sm:$0xff]  ;;  %v561_v46 = vpop.f32.mrf.mxu0 }
 0x106   :  { %1907 = vmatpush.msrb.mxu0 %v1249_v32  ;;  %1880 = vmatpush.msra.mxu2 %v889_v33  ;;  %v1209_v53 = vld [vmem:[%s7054_s3 + $0x1248] sm:$0xff]  ;;  %v562_v11 = vadd.f32 %v561_v46, %v294_v6  ;;  %v722_v32 = vld [vmem:[%s7054_s3 + $0x310] sm:$0xff] }
 0x107   :  { %1897 = vmatpush.msra.mxu3 %v1041_v35  ;;  %1926 = vmatpush.msrb.mxu1 %v1385_v42  ;;  %v1361_v54 = vld [vmem:[%s7054_s3 + $0x1708] sm:$0xff]  ;;  %v581_v51 = vpop.f32.mrf.mxu1  ;;  %v874_v33 = vld [vmem:[%s7054_s3 + $0x7d0] sm:$0xff] }
 0x108   :  { %1908 = vmatpush.msrb.mxu0 %v1241_v36  ;;  %1881 = vmatpush.msra.mxu2 %v881_v37  ;;  %v1201_v55 = vld [vmem:[%s7054_s3 + $0x1208] sm:$0xff]  ;;  %v4527_v14 = vadd.f32 %v581_v51, %v562_v11  ;;  %v714_v36 = vld [vmem:[%s7054_s3 + $0x2d0] sm:$0xff] }
 0x109   :  { %1898 = vmatpush.msra.mxu3 %v1033_v39  ;;  %1927 = vmatpush.msrb.mxu1 %v1377_v45  ;;  %v1353_v56 = vld [vmem:[%s7054_s3 + $0x16c8] sm:$0xff]  ;;  %v866_v37 = vld [vmem:[%s7054_s3 + $0x790] sm:$0xff] }
 0x10a   :  { %1909 = vmatpush.msrb.mxu0 %v1233_v41  ;;  %v1193_v57 = vld [vmem:[%s7054_s3 + $0x11c8] sm:$0xff]  ;;  %1802 = vmatmul.f32.vlgmr.msrb.gmra.mxu2 %v4527_v14  ;;  %v706_v41 = vld [vmem:[%s7054_s3 + $0x290] sm:$0xff] }
 0x10b   :  { %1842 = vmatmul.f32.vlgmr.msra.gmra.mxu0 %v4145_v50  ;;  %1899 = vmatpush.msra.mxu3 %v1025_v43  ;;  %v1345_v58 = vld [vmem:[%s7054_s3 + $0x1688] sm:$0xff]  ;;  %v601_v20 = vpop.f32.mrf.mxu2  ;;  %v858_v42 = vld [vmem:[%s7054_s3 + $0x750] sm:$0xff] }
 0x10c   :  { %1910 = vmatpush.msrb.mxu0 %v1225_v44  ;;  %1928 = vmatpush.msrb.mxu1 %v1369_v49  ;;  %v1185_v59 = vld [vmem:[%s7054_s3 + $0x1188] sm:$0xff]  ;;  %v602_v22 = vadd.f32 %v601_v20, %v295_v16  ;;  %v698_v45 = vld [vmem:[%s7054_s3 + $0x250] sm:$0xff] }
 0x10d   :  { %1900 = vmatpush.msra.mxu3 %v1017_v47  ;;  %1862 = vmatmul.f32.vlgmr.msra.gmra.mxu1 %v4170_v63  ;;  %v1337_v60 = vld [vmem:[%s7054_s3 + $0x1648] sm:$0xff]  ;;  %v621_v28 = vpop.f32.mrf.mxu3  ;;  %v850_v47 = vld [vmem:[%s7054_s3 + $0x710] sm:$0xff] }
 0x10e   :  { %1911 = vmatpush.msrb.mxu0 %v1217_v48  ;;  %1929 = vmatpush.msrb.mxu1 %v1361_v54  ;;  %v1177_v61 = vld [vmem:[%s7054_s3 + $0x1148] sm:$0xff]  ;;  %v4556_v29 = vadd.f32 %v621_v28, %v602_v22  ;;  %v810_v6 = vld [vmem:[%s7054_s3 + $0x5d0] sm:$0xff] }
 0x10f   :  { %1901 = vmatpush.msra.mxu3 %v1009_v52  ;;  %v1329_v62 = vld [vmem:[%s7054_s3 + $0x1608] sm:$0xff]  ;;  %v690_v52 = vld [vmem:[%s7054_s3 + $0x210] sm:$0xff] }
 0x110   :  { %1912 = vmatpush.msrb.mxu0 %v1209_v53  ;;  %1930 = vmatpush.msrb.mxu1 %v1353_v56  ;;  %v1169_v0 = vld [vmem:[%s7054_s3 + $0x1108] sm:$0xff]  ;;  %v842_v53 = vld [vmem:[%s7054_s3 + $0x6d0] sm:$0xff] }
 0x111   :  { %v1321_v1 = vld [vmem:[%s7054_s3 + $0x15c8] sm:$0xff]  ;;  %1822 = vmatmul.f32.vlgmr.msrb.gmra.mxu3 %v4556_v29  ;;  %v682_v56 = vld [vmem:[%s7054_s3 + $0x1d0] sm:$0xff] }
 0x112   :  { %1913 = vmatpush.msrb.mxu0 %v1201_v55  ;;  %1931 = vmatpush.msrb.mxu1 %v1345_v58  ;;  %v1161_v2 = vld [vmem:[%s7054_s3 + $0x10c8] sm:$0xff]  ;;  %v650_v46 = vld [vmem:[%s7054_s3 + $0xd0] sm:$0xff] }
 0x113   :  { %v1313_v3 = vld [vmem:[%s7054_s3 + $0x1588] sm:$0xff]  ;;  %1882 = vmatmul.f32.vlgmr.msra.gmra.mxu2 %v4207_v13  ;;  %v642_v51 = vld [vmem:[%s7054_s3 + $0x90] sm:$0xff] }
 0x114   :  { %1914 = vmatpush.msrb.mxu0 %v1193_v57  ;;  %1932 = vmatpush.msrb.mxu1 %v1337_v60  ;;  %v1153_v4 = vld [vmem:[%s7054_s3 + $0x1088] sm:$0xff]  ;;  %v834_v57 = vld [vmem:[%s7054_s3 + $0x690] sm:$0xff] }
 0x115   :  { %v1305_v5 = vld [vmem:[%s7054_s3 + $0x1548] sm:$0xff]  ;;  %v674_v60 = vld [vmem:[%s7054_s3 + $0x190] sm:$0xff] }
 0x116   :  { %1915 = vmatpush.msrb.mxu0 %v1185_v59  ;;  %1933 = vmatpush.msrb.mxu1 %v1329_v62  ;;  %v1145_v7 = vld [vmem:[%s7054_s3 + $0x1048] sm:$0xff]  ;;  %v626_v20 = vld [vmem:[%s7054_s3 + $0x10] sm:$0xff] }
 0x117   :  { %v1297_v8 = vld [vmem:[%s7054_s3 + $0x1508] sm:$0xff]  ;;  %v1002_v22 = vld [vmem:[%s7054_s3 + $0xbd0] sm:$0xff] }
 0x118   :  { %1916 = vmatpush.msrb.mxu0 %v1177_v61  ;;  %1934 = vmatpush.msrb.mxu1 %v1321_v1  ;;  %v1137_v9 = vld [vmem:[%s7054_s3 + $0x1008] sm:$0xff]  ;;  %v826_v61 = vld [vmem:[%s7054_s3 + $0x650] sm:$0xff] }
 0x119   :  { %v1289_v10 = vld [vmem:[%s7054_s3 + $0x14c8] sm:$0xff]  ;;  %1902 = vmatmul.f32.vlgmr.msra.gmra.mxu3 %v4231_v24  ;;  %v666_v1 = vld [vmem:[%s7054_s3 + $0x150] sm:$0xff] }
 0x11a   :  { %1917 = vmatpush.msrb.mxu0 %v1169_v0  ;;  %1935 = vmatpush.msrb.mxu1 %v1313_v3  ;;  %v1513_v15 = vld [vmem:[%s7054_s3 + $0x1bc8] sm:$0xff]  ;;  %v770_v28 = vld [vmem:[%s7054_s3 + $0x490] sm:$0xff] }
 0x11b   :  { %v1281_v17 = vld [vmem:[%s7054_s3 + $0x1488] sm:$0xff]  ;;  %1946 = vmatpush.msrb.mxu2 %v1513_v15 }
 0x11c   :  { %1918 = vmatpush.msrb.mxu0 %v1161_v2  ;;  %1936 = vmatpush.msrb.mxu1 %v1305_v5  ;;  %v1505_v19 = vld [vmem:[%s7054_s3 + $0x1b88] sm:$0xff]  ;;  %v818_v2 = vld [vmem:[%s7054_s3 + $0x610] sm:$0xff] }
 0x11d   :  { %v1273_v26 = vld [vmem:[%s7054_s3 + $0x1448] sm:$0xff]  ;;  %1947 = vmatpush.msrb.mxu2 %v1505_v19  ;;  %v658_v5 = vld [vmem:[%s7054_s3 + $0x110] sm:$0xff] }
 0x11e   :  { %1919 = vmatpush.msrb.mxu0 %v1153_v4  ;;  %1937 = vmatpush.msrb.mxu1 %v1297_v8  ;;  %v1497_v23 = vld [vmem:[%s7054_s3 + $0x1b48] sm:$0xff] }
 0x11f   :  { %v1265_v25 = vld [vmem:[%s7054_s3 + $0x1408] sm:$0xff]  ;;  %1948 = vmatpush.msrb.mxu2 %v1497_v23  ;;  %v1258_v23 = vld [vmem:[%s7054_s3 + $0x13d0] sm:$0xff] }
 0x120   :  { %1920 = vmatpush.msrb.mxu0 %v1145_v7  ;;  %1938 = vmatpush.msrb.mxu1 %v1289_v10  ;;  %v1489_v30 = vld [vmem:[%s7054_s3 + $0x1b08] sm:$0xff] }
 0x121   :  { %v1641_v31 = vld [vmem:[%s7054_s3 + $0x1fc8] sm:$0xff]  ;;  %1949 = vmatpush.msrb.mxu2 %v1489_v30  ;;  %v994_v30 = vld [vmem:[%s7054_s3 + $0xb90] sm:$0xff] }
 0x122   :  { %1921 = vmatpush.msrb.mxu0 %v1137_v9  ;;  %1939 = vmatpush.msrb.mxu1 %v1281_v17  ;;  %v1633_v34 = vld [vmem:[%s7054_s3 + $0x1f88] sm:$0xff]  ;;  %v802_v9 = vld [vmem:[%s7054_s3 + $0x590] sm:$0xff] }
 0x123   :  { %1922 = vmatmul.f32.vlgmr.msrb.gmra.mxu0 %v4401_v27  ;;  %1966 = vmatpush.msrb.mxu3 %v1641_v31  ;;  %v1481_v35 = vld [vmem:[%s7054_s3 + $0x1ac8] sm:$0xff]  ;;  %v634_v17 = vld [vmem:[%s7054_s3 + $0x50] sm:$0xff] }
 0x124   :  { %1986 = vmatpush.msra.mxu0 %v746_v12  ;;  %1940 = vmatpush.msrb.mxu1 %v1273_v26  ;;  %v1625_v38 = vld [vmem:[%s7054_s3 + $0x1f48] sm:$0xff]  ;;  %v794_v12 = vld [vmem:[%s7054_s3 + $0x550] sm:$0xff] }
 0x125   :  { %1967 = vmatpush.msrb.mxu3 %v1633_v34  ;;  %v1473_v39 = vld [vmem:[%s7054_s3 + $0x1a88] sm:$0xff]  ;;  %1950 = vmatpush.msrb.mxu2 %v1481_v35  ;;  %v1250_v31 = vld [vmem:[%s7054_s3 + $0x1390] sm:$0xff] }
 0x126   :  { %1987 = vmatpush.msra.mxu0 %v738_v18  ;;  %1941 = vmatpush.msrb.mxu1 %v1265_v25  ;;  %v1617_v43 = vld [vmem:[%s7054_s3 + $0x1f08] sm:$0xff]  ;;  %v786_v18 = vld [vmem:[%s7054_s3 + $0x510] sm:$0xff] }
 0x127   :  { %1942 = vmatmul.f32.vlgmr.msrb.gmra.mxu1 %v4431_v40  ;;  %1968 = vmatpush.msrb.mxu3 %v1625_v38  ;;  %v1465_v44 = vld [vmem:[%s7054_s3 + $0x1a48] sm:$0xff]  ;;  %v986_v34 = vld [vmem:[%s7054_s3 + $0xb50] sm:$0xff] }
 0x128   :  { %1988 = vmatpush.msra.mxu0 %v730_v21  ;;  %2006 = vmatpush.msra.mxu1 %v874_v33  ;;  %v1457_v48 = vld [vmem:[%s7054_s3 + $0x1a08] sm:$0xff]  ;;  %v778_v21 = vld [vmem:[%s7054_s3 + $0x4d0] sm:$0xff] }
 0x129   :  { %1951 = vmatpush.msrb.mxu2 %v1473_v39  ;;  %1969 = vmatpush.msrb.mxu3 %v1617_v43  ;;  %v1609_v49 = vld [vmem:[%s7054_s3 + $0x1ec8] sm:$0xff]  ;;  %v762_v33 = vld [vmem:[%s7054_s3 + $0x450] sm:$0xff] }
 0x12a   :  { %1989 = vmatpush.msra.mxu0 %v722_v32  ;;  %2007 = vmatpush.msra.mxu1 %v866_v37  ;;  %v1449_v54 = vld [vmem:[%s7054_s3 + $0x19c8] sm:$0xff]  ;;  %v1242_v35 = vld [vmem:[%s7054_s3 + $0x1350] sm:$0xff] }
 0x12b   :  { %1952 = vmatpush.msrb.mxu2 %v1465_v44  ;;  %v1601_v55 = vld [vmem:[%s7054_s3 + $0x1e88] sm:$0xff]  ;;  %1970 = vmatpush.msrb.mxu3 %v1609_v49  ;;  %v754_v37 = vld [vmem:[%s7054_s3 + $0x410] sm:$0xff] }
 0x12c   :  { %1990 = vmatpush.msra.mxu0 %v714_v36  ;;  %2008 = vmatpush.msra.mxu1 %v858_v42  ;;  %v1441_v58 = vld [vmem:[%s7054_s3 + $0x1988] sm:$0xff]  ;;  %v978_v38 = vld [vmem:[%s7054_s3 + $0xb10] sm:$0xff] }
 0x12d   :  { %1953 = vmatpush.msrb.mxu2 %v1457_v48  ;;  %v1593_v59 = vld [vmem:[%s7054_s3 + $0x1e48] sm:$0xff]  ;;  %1971 = vmatpush.msrb.mxu3 %v1601_v55  ;;  %v1130_v39 = vld [vmem:[%s7054_s3 + $0xfd0] sm:$0xff] }
 0x12e   :  { %1991 = vmatpush.msra.mxu0 %v706_v41  ;;  %2009 = vmatpush.msra.mxu1 %v850_v47  ;;  %v1433_v62 = vld [vmem:[%s7054_s3 + $0x1948] sm:$0xff]  ;;  %v1234_v41 = vld [vmem:[%s7054_s3 + $0x1310] sm:$0xff] }
 0x12f   :  { %1954 = vmatpush.msrb.mxu2 %v1449_v54  ;;  %v1585_v0 = vld [vmem:[%s7054_s3 + $0x1e08] sm:$0xff]  ;;  %1972 = vmatpush.msrb.mxu3 %v1593_v59  ;;  %v1386_v42 = vld [vmem:[%s7054_s3 + $0x17d0] sm:$0xff]  ;;  %v4797_v54 = vld [vmem:[%s7056_s4] sm:$0xff] }
 0x130   :  { %1992 = vmatpush.msra.mxu0 %v698_v45  ;;  %2010 = vmatpush.msra.mxu1 %v842_v53  ;;  %v1425_v3 = vld [vmem:[%s7054_s3 + $0x1908] sm:$0xff]  ;;  %v970_v43 = vld [vmem:[%s7054_s3 + $0xad0] sm:$0xff] }
 0x131   :  { %1955 = vmatpush.msrb.mxu2 %v1441_v58  ;;  %v1577_v4 = vld [vmem:[%s7054_s3 + $0x1dc8] sm:$0xff]  ;;  %1973 = vmatpush.msrb.mxu3 %v1585_v0  ;;  %v1122_v44 = vld [vmem:[%s7054_s3 + $0xf90] sm:$0xff] }
 0x132   :  { %1993 = vmatpush.msra.mxu0 %v690_v52  ;;  %2011 = vmatpush.msra.mxu1 %v834_v57  ;;  %v1417_v7 = vld [vmem:[%s7054_s3 + $0x18c8] sm:$0xff]  ;;  %v1226_v45 = vld [vmem:[%s7054_s3 + $0x12d0] sm:$0xff] }
 0x133   :  { %1956 = vmatpush.msrb.mxu2 %v1433_v62  ;;  %v1569_v8 = vld [vmem:[%s7054_s3 + $0x1d88] sm:$0xff]  ;;  %1974 = vmatpush.msrb.mxu3 %v1577_v4  ;;  %v1378_v47 = vld [vmem:[%s7054_s3 + $0x1790] sm:$0xff] }
 0x134   :  { %1994 = vmatpush.msra.mxu0 %v682_v56  ;;  %2012 = vmatpush.msra.mxu1 %v826_v61  ;;  %v1409_v10 = vld [vmem:[%s7054_s3 + $0x1888] sm:$0xff]  ;;  %v962_v48 = vld [vmem:[%s7054_s3 + $0xa90] sm:$0xff]  ;;  %v1650_v61 = vperm.slane %v4797_v54, 0 }
 0x135   :  { %1957 = vmatpush.msrb.mxu2 %v1425_v3  ;;  %v1561_v11 = vld [vmem:[%s7054_s3 + $0x1d48] sm:$0xff]  ;;  %1975 = vmatpush.msrb.mxu3 %v1569_v8  ;;  %v1114_v49 = vld [vmem:[%s7054_s3 + $0xf50] sm:$0xff] }
 0x136   :  { %1995 = vmatpush.msra.mxu0 %v674_v60  ;;  %2013 = vmatpush.msra.mxu1 %v818_v2  ;;  %v1401_v15 = vld [vmem:[%s7054_s3 + $0x1848] sm:$0xff]  ;;  %v1218_v52 = vld [vmem:[%s7054_s3 + $0x1290] sm:$0xff] }
 0x137   :  { %1958 = vmatpush.msrb.mxu2 %v1417_v7  ;;  %v1553_v16 = vld [vmem:[%s7054_s3 + $0x1d08] sm:$0xff]  ;;  %1976 = vmatpush.msrb.mxu3 %v1561_v11  ;;  %v1370_v53 = vld [vmem:[%s7054_s3 + $0x1750] sm:$0xff] }
 0x138   :  { %1996 = vmatpush.msra.mxu0 %v666_v1  ;;  %2014 = vmatpush.msra.mxu1 %v810_v6  ;;  %v1393_v19 = vld [vmem:[%s7054_s3 + $0x1808] sm:$0xff]  ;;  %v954_v55 = vld [vmem:[%s7054_s3 + $0xa50] sm:$0xff] }
 0x139   :  { %1959 = vmatpush.msrb.mxu2 %v1409_v10  ;;  %v1545_v26 = vld [vmem:[%s7054_s3 + $0x1cc8] sm:$0xff]  ;;  %1977 = vmatpush.msrb.mxu3 %v1553_v16  ;;  %v1106_v56 = vld [vmem:[%s7054_s3 + $0xf10] sm:$0xff] }
 0x13a   :  { %1997 = vmatpush.msra.mxu0 %v658_v5  ;;  %2015 = vmatpush.msra.mxu1 %v802_v9  ;;  %v1537_v25 = vld [vmem:[%s7054_s3 + $0x1c88] sm:$0xff]  ;;  %v1210_v57 = vld [vmem:[%s7054_s3 + $0x1250] sm:$0xff] }
 0x13b   :  { %1960 = vmatpush.msrb.mxu2 %v1401_v15  ;;  %1978 = vmatpush.msrb.mxu3 %v1545_v26  ;;  %v1529_v32 = vld [vmem:[%s7054_s3 + $0x1c48] sm:$0xff]  ;;  %v1362_v58 = vld [vmem:[%s7054_s3 + $0x1710] sm:$0xff] }
 0x13c   :  { %1998 = vmatpush.msra.mxu0 %v650_v46  ;;  %2016 = vmatpush.msra.mxu1 %v794_v12  ;;  %v1521_v36 = vld [vmem:[%s7054_s3 + $0x1c08] sm:$0xff]  ;;  %v946_v59 = vld [vmem:[%s7054_s3 + $0xa10] sm:$0xff] }
 0x13d   :  { %1961 = vmatpush.msrb.mxu2 %v1393_v19  ;;  %1979 = vmatpush.msrb.mxu3 %v1537_v25  ;;  %v1098_v60 = vld [vmem:[%s7054_s3 + $0xed0] sm:$0xff] }
 0x13e   :  { %1999 = vmatpush.msra.mxu0 %v642_v51  ;;  %2017 = vmatpush.msra.mxu1 %v786_v18  ;;  %v1202_v62 = vld [vmem:[%s7054_s3 + $0x1210] sm:$0xff] }
 0x13f   :  { %1962 = vmatmul.f32.vlgmr.msrb.gmra.mxu2 %v4527_v14  ;;  %1980 = vmatpush.msrb.mxu3 %v1529_v32  ;;  %v1354_v0 = vld [vmem:[%s7054_s3 + $0x16d0] sm:$0xff] }
 0x140   :  { %2000 = vmatpush.msra.mxu0 %v634_v17  ;;  %2018 = vmatpush.msra.mxu1 %v778_v21  ;;  %v938_v1 = vld [vmem:[%s7054_s3 + $0x9d0] sm:$0xff] }
 0x141   :  { %2026 = vmatpush.msra.mxu2 %v1002_v22  ;;  %1981 = vmatpush.msrb.mxu3 %v1521_v36  ;;  %v1090_v2 = vld [vmem:[%s7054_s3 + $0xe90] sm:$0xff] }
 0x142   :  { %2001 = vmatpush.msra.mxu0 %v626_v20  ;;  %2019 = vmatpush.msra.mxu1 %v770_v28  ;;  %v1194_v3 = vld [vmem:[%s7054_s3 + $0x11d0] sm:$0xff] }
 0x143   :  { %2002 = vmatmul.f32.vlgmr.msra.gmra.mxu0 %v4145_v50  ;;  %2027 = vmatpush.msra.mxu2 %v994_v30  ;;  %v1346_v4 = vld [vmem:[%s7054_s3 + $0x1690] sm:$0xff] }
 0x144   :  { %2066 = vmatpush.msrb.mxu0 %v1258_v23  ;;  %2020 = vmatpush.msra.mxu1 %v762_v33  ;;  %v1683_v5 = vpop.f32.mrf.mxu0  ;;  %v930_v6 = vld [vmem:[%s7054_s3 + $0x990] sm:$0xff] }
 0x145   :  { %2028 = vmatpush.msra.mxu2 %v986_v34  ;;  %1982 = vmatmul.f32.vlgmr.msrb.gmra.mxu3 %v4556_v29  ;;  %v1082_v7 = vld [vmem:[%s7054_s3 + $0xe50] sm:$0xff]  ;;  %v1684_v8 = vadd.f32 %v1683_v5, %v1650_v61  ;;  %v1703_v15 = vpop.f32.mrf.mxu1  ;;  %v723_v61 = vld [vmem:[%s7054_s3 + $0x318] sm:$0xff] }
 0x146   :  { %2067 = vmatpush.msrb.mxu0 %v1250_v31  ;;  %2021 = vmatpush.msra.mxu1 %v754_v37  ;;  %v1186_v46 = vld [vmem:[%s7054_s3 + $0x1190] sm:$0xff] }
 0x147   :  { %2022 = vmatmul.f32.vlgmr.msra.gmra.mxu1 %v4170_v63  ;;  %2029 = vmatpush.msra.mxu2 %v978_v38  ;;  %v1338_v9 = vld [vmem:[%s7054_s3 + $0x1650] sm:$0xff]  ;;  %v1704_v18 = vadd.f32 %v1703_v15, %v1684_v8  ;;  %v843_v15 = vld [vmem:[%s7054_s3 + $0x6d8] sm:$0xff] }
 0x148   :  { %2068 = vmatpush.msrb.mxu0 %v1242_v35  ;;  %2046 = vmatpush.msra.mxu3 %v1130_v39  ;;  %v922_v10 = vld [vmem:[%s7054_s3 + $0x950] sm:$0xff] }
 0x149   :  { %2086 = vmatpush.msrb.mxu1 %v1386_v42  ;;  %2030 = vmatpush.msra.mxu2 %v970_v43  ;;  %v1074_v11 = vld [vmem:[%s7054_s3 + $0xe10] sm:$0xff]  ;;  %v747_v42 = vld [vmem:[%s7054_s3 + $0x3d8] sm:$0xff] }
 0x14a   :  { %2069 = vmatpush.msrb.mxu0 %v1234_v41  ;;  %2047 = vmatpush.msra.mxu3 %v1122_v44  ;;  %v1178_v51 = vld [vmem:[%s7054_s3 + $0x1150] sm:$0xff] }
 0x14b   :  { %2087 = vmatpush.msrb.mxu1 %v1378_v47  ;;  %2031 = vmatpush.msra.mxu2 %v962_v48  ;;  %v1330_v12 = vld [vmem:[%s7054_s3 + $0x1610] sm:$0xff] }
 0x14c   :  { %2070 = vmatpush.msrb.mxu0 %v1226_v45  ;;  %2048 = vmatpush.msra.mxu3 %v1114_v49  ;;  %v914_v16 = vld [vmem:[%s7054_s3 + $0x910] sm:$0xff]  ;;  %v1723_v43 = vpop.f32.mrf.mxu2  ;;  %v739_v49 = vld [vmem:[%s7054_s3 + $0x398] sm:$0xff] }
 0x14d   :  { %2088 = vmatpush.msrb.mxu1 %v1370_v53  ;;  %2032 = vmatpush.msra.mxu2 %v954_v55  ;;  %v1066_v17 = vld [vmem:[%s7054_s3 + $0xdd0] sm:$0xff]  ;;  %v4932_v47 = vadd.f32 %v1723_v43, %v1704_v18  ;;  %v683_v18 = vld [vmem:[%s7054_s3 + $0x1d8] sm:$0xff] }
 0x14e   :  { %2071 = vmatpush.msrb.mxu0 %v1218_v52  ;;  %2049 = vmatpush.msra.mxu3 %v1106_v56  ;;  %v1170_v19 = vld [vmem:[%s7054_s3 + $0x1110] sm:$0xff]  ;;  %v731_v56 = vld [vmem:[%s7054_s3 + $0x358] sm:$0xff] }
 0x14f   :  { %2089 = vmatpush.msrb.mxu1 %v1362_v58  ;;  %2033 = vmatpush.msra.mxu2 %v946_v59  ;;  %v1322_v26 = vld [vmem:[%s7054_s3 + $0x15d0] sm:$0xff] }
 0x150   :  { %2072 = vmatpush.msrb.mxu0 %v1210_v57  ;;  %2050 = vmatpush.msra.mxu3 %v1098_v60  ;;  %v906_v20 = vld [vmem:[%s7054_s3 + $0x8d0] sm:$0xff] }
 0x151   :  { %2090 = vmatpush.msrb.mxu1 %v1354_v0  ;;  %2034 = vmatpush.msra.mxu2 %v938_v1  ;;  %v1058_v21 = vld [vmem:[%s7054_s3 + $0xd90] sm:$0xff] }
 0x152   :  { %2073 = vmatpush.msrb.mxu0 %v1202_v62  ;;  %2051 = vmatpush.msra.mxu3 %v1090_v2  ;;  %v1162_v22 = vld [vmem:[%s7054_s3 + $0x10d0] sm:$0xff]  ;;  %v875_v62 = vld [vmem:[%s7054_s3 + $0x7d8] sm:$0xff] }
 0x153   :  { %2091 = vmatpush.msrb.mxu1 %v1346_v4  ;;  %2035 = vmatpush.msra.mxu2 %v930_v6  ;;  %v1314_v23 = vld [vmem:[%s7054_s3 + $0x1590] sm:$0xff]  ;;  %v715_v2 = vld [vmem:[%s7054_s3 + $0x2d8] sm:$0xff] }
 0x154   :  { %2074 = vmatpush.msrb.mxu0 %v1194_v3  ;;  %2052 = vmatpush.msra.mxu3 %v1082_v7  ;;  %v898_v25 = vld [vmem:[%s7054_s3 + $0x890] sm:$0xff]  ;;  %v867_v3 = vld [vmem:[%s7054_s3 + $0x798] sm:$0xff] }
 0x155   :  { %2092 = vmatpush.msrb.mxu1 %v1338_v9  ;;  %2036 = vmatpush.msra.mxu2 %v922_v10  ;;  %v1050_v28 = vld [vmem:[%s7054_s3 + $0xd50] sm:$0xff]  ;;  %v707_v6 = vld [vmem:[%s7054_s3 + $0x298] sm:$0xff] }
 0x156   :  { %2075 = vmatpush.msrb.mxu0 %v1186_v46  ;;  %2053 = vmatpush.msra.mxu3 %v1074_v11  ;;  %v1154_v30 = vld [vmem:[%s7054_s3 + $0x1090] sm:$0xff]  ;;  %v859_v7 = vld [vmem:[%s7054_s3 + $0x758] sm:$0xff] }
 0x157   :  { %2093 = vmatpush.msrb.mxu1 %v1330_v12  ;;  %2037 = vmatpush.msra.mxu2 %v914_v16  ;;  %v1306_v31 = vld [vmem:[%s7054_s3 + $0x1550] sm:$0xff]  ;;  %v699_v9 = vld [vmem:[%s7054_s3 + $0x258] sm:$0xff] }
 0x158   :  { %2076 = vmatpush.msrb.mxu0 %v1178_v51  ;;  %2054 = vmatpush.msra.mxu3 %v1066_v17  ;;  %v890_v32 = vld [vmem:[%s7054_s3 + $0x850] sm:$0xff]  ;;  %v851_v10 = vld [vmem:[%s7054_s3 + $0x718] sm:$0xff] }
 0x159   :  { %2094 = vmatpush.msrb.mxu1 %v1322_v26  ;;  %2038 = vmatpush.msra.mxu2 %v906_v20  ;;  %v1042_v33 = vld [vmem:[%s7054_s3 + $0xd10] sm:$0xff]  ;;  %v691_v12 = vld [vmem:[%s7054_s3 + $0x218] sm:$0xff] }
 0x15a   :  { %2077 = vmatpush.msrb.mxu0 %v1170_v19  ;;  %2055 = vmatpush.msra.mxu3 %v1058_v21  ;;  %v1146_v34 = vld [vmem:[%s7054_s3 + $0x1050] sm:$0xff]  ;;  %v835_v19 = vld [vmem:[%s7054_s3 + $0x698] sm:$0xff] }
 0x15b   :  { %2095 = vmatpush.msrb.mxu1 %v1314_v23  ;;  %2039 = vmatpush.msra.mxu2 %v898_v25  ;;  %v1298_v35 = vld [vmem:[%s7054_s3 + $0x1510] sm:$0xff]  ;;  %v675_v21 = vld [vmem:[%s7054_s3 + $0x198] sm:$0xff] }
 0x15c   :  { %2078 = vmatpush.msrb.mxu0 %v1162_v22  ;;  %2056 = vmatpush.msra.mxu3 %v1050_v28  ;;  %v882_v36 = vld [vmem:[%s7054_s3 + $0x810] sm:$0xff]  ;;  %v827_v22 = vld [vmem:[%s7054_s3 + $0x658] sm:$0xff]  ;;  %v1743_v28 = vpop.f32.mrf.mxu3 }
 0x15d   :  { %2096 = vmatpush.msrb.mxu1 %v1306_v31  ;;  %v1034_v37 = vld [vmem:[%s7054_s3 + $0xcd0] sm:$0xff]  ;;  %2040 = vmatpush.msra.mxu2 %v890_v32  ;;  %v819_v31 = vld [vmem:[%s7054_s3 + $0x618] sm:$0xff] }
 0x15e   :  { %2079 = vmatpush.msrb.mxu0 %v1154_v30  ;;  %2057 = vmatpush.msra.mxu3 %v1042_v33  ;;  %v1138_v38 = vld [vmem:[%s7054_s3 + $0x1010] sm:$0xff]  ;;  %v667_v30 = vld [vmem:[%s7054_s3 + $0x158] sm:$0xff] }
 0x15f   :  { %v1290_v39 = vld [vmem:[%s7054_s3 + $0x14d0] sm:$0xff]  ;;  %2097 = vmatpush.msrb.mxu1 %v1298_v35  ;;  %2041 = vmatpush.msra.mxu2 %v882_v36  ;;  %v811_v35 = vld [vmem:[%s7054_s3 + $0x5d8] sm:$0xff]  ;;  %v1744_v36 = vadd.f32 %v1743_v28, %v4932_v47 }
 0x160   :  { %2080 = vmatpush.msrb.mxu0 %v1146_v34  ;;  %2058 = vmatpush.msra.mxu3 %v1034_v37  ;;  %v1514_v41 = vld [vmem:[%s7054_s3 + $0x1bd0] sm:$0xff]  ;;  %v659_v34 = vld [vmem:[%s7054_s3 + $0x118] sm:$0xff] }
 0x161   :  { %2098 = vmatpush.msrb.mxu1 %v1290_v39  ;;  %v1026_v44 = vld [vmem:[%s7054_s3 + $0xc90] sm:$0xff]  ;;  %2042 = vmatmul.f32.vlgmr.msra.gmra.mxu2 %v4207_v13  ;;  %v651_v39 = vld [vmem:[%s7054_s3 + $0xd8] sm:$0xff] }
 0x162   :  { %2081 = vmatpush.msrb.mxu0 %v1138_v38  ;;  %v1282_v45 = vld [vmem:[%s7054_s3 + $0x1490] sm:$0xff]  ;;  %2106 = vmatpush.msrb.mxu2 %v1514_v41  ;;  %v803_v41 = vld [vmem:[%s7054_s3 + $0x598] sm:$0xff] }
 0x163   :  { %2082 = vmatmul.f32.vlgmr.msrb.gmra.mxu0 %v4401_v27  ;;  %v1506_v48 = vld [vmem:[%s7054_s3 + $0x1b90] sm:$0xff]  ;;  %2059 = vmatpush.msra.mxu3 %v1026_v44  ;;  %v643_v47 = vld [vmem:[%s7054_s3 + $0x98] sm:$0xff] }
 0x164   :  { %2146 = vmatpush.msra.mxu0 %v747_v42  ;;  %v1018_v52 = vld [vmem:[%s7054_s3 + $0xc50] sm:$0xff]  ;;  %2099 = vmatpush.msrb.mxu1 %v1282_v45  ;;  %v1219_v28 = vld [vmem:[%s7054_s3 + $0x1298] sm:$0xff] }
 0x165   :  { %v1274_v53 = vld [vmem:[%s7054_s3 + $0x1450] sm:$0xff]  ;;  %2107 = vmatpush.msrb.mxu2 %v1506_v48  ;;  %2060 = vmatpush.msra.mxu3 %v1018_v52  ;;  %v795_v48 = vld [vmem:[%s7054_s3 + $0x558] sm:$0xff] }
 0x166   :  { %v1498_v55 = vld [vmem:[%s7054_s3 + $0x1b50] sm:$0xff]  ;;  %2147 = vmatpush.msra.mxu0 %v739_v49  ;;  %2100 = vmatpush.msrb.mxu1 %v1274_v53  ;;  %v635_v53 = vld [vmem:[%s7054_s3 + $0x58] sm:$0xff] }
 0x167   :  { %v1010_v57 = vld [vmem:[%s7054_s3 + $0xc10] sm:$0xff]  ;;  %2108 = vmatpush.msrb.mxu2 %v1498_v55  ;;  %v787_v55 = vld [vmem:[%s7054_s3 + $0x518] sm:$0xff] }
 0x168   :  { %v1266_v58 = vld [vmem:[%s7054_s3 + $0x1410] sm:$0xff]  ;;  %2148 = vmatpush.msra.mxu0 %v731_v56  ;;  %2061 = vmatpush.msra.mxu3 %v1010_v57 }
 0x169   :  { %v1490_v59 = vld [vmem:[%s7054_s3 + $0x1b10] sm:$0xff]  ;;  %2101 = vmatpush.msrb.mxu1 %v1266_v58  ;;  %2062 = vmatmul.f32.vlgmr.msra.gmra.mxu3 %v4231_v24  ;;  %v627_v58 = vld [vmem:[%s7054_s3 + $0x18] sm:$0xff] }
 0x16a   :  { %v1642_v60 = vld [vmem:[%s7054_s3 + $0x1fd0] sm:$0xff]  ;;  %2102 = vmatmul.f32.vlgmr.msrb.gmra.mxu1 %v4431_v40  ;;  %2109 = vmatpush.msrb.mxu2 %v1490_v59  ;;  %v779_v59 = vld [vmem:[%s7054_s3 + $0x4d8] sm:$0xff] }
 0x16b   :  { %v1482_v0 = vld [vmem:[%s7054_s3 + $0x1ad0] sm:$0xff]  ;;  %2126 = vmatpush.msrb.mxu3 %v1642_v60  ;;  %2149 = vmatpush.msra.mxu0 %v723_v61 }
 0x16c   :  { %v1634_v1 = vld [vmem:[%s7054_s3 + $0x1f90] sm:$0xff]  ;;  %2166 = vmatpush.msra.mxu1 %v875_v62  ;;  %2110 = vmatpush.msrb.mxu2 %v1482_v0  ;;  %v1003_v62 = vld [vmem:[%s7054_s3 + $0xbd8] sm:$0xff] }
 0x16d   :  { %v1474_v4 = vld [vmem:[%s7054_s3 + $0x1a90] sm:$0xff]  ;;  %2127 = vmatpush.msrb.mxu3 %v1634_v1  ;;  %2150 = vmatpush.msra.mxu0 %v715_v2  ;;  %v1259_v0 = vld [vmem:[%s7054_s3 + $0x13d8] sm:$0xff] }
 0x16e   :  { %v1626_v5 = vld [vmem:[%s7054_s3 + $0x1f50] sm:$0xff]  ;;  %2167 = vmatpush.msra.mxu1 %v867_v3  ;;  %2111 = vmatpush.msrb.mxu2 %v1474_v4  ;;  %v771_v2 = vld [vmem:[%s7054_s3 + $0x498] sm:$0xff]  ;;  %v1651_v3 = vperm.slane %v4797_v54, 1 }
 0x16f   :  { %v1466_v8 = vld [vmem:[%s7054_s3 + $0x1a50] sm:$0xff]  ;;  %2128 = vmatpush.msrb.mxu3 %v1626_v5  ;;  %2151 = vmatpush.msra.mxu0 %v707_v6  ;;  %v995_v4 = vld [vmem:[%s7054_s3 + $0xb98] sm:$0xff] }
 0x170   :  { %v1618_v46 = vld [vmem:[%s7054_s3 + $0x1f10] sm:$0xff]  ;;  %2168 = vmatpush.msra.mxu1 %v859_v7  ;;  %2112 = vmatpush.msrb.mxu2 %v1466_v8  ;;  %v1251_v5 = vld [vmem:[%s7054_s3 + $0x1398] sm:$0xff] }
 0x171   :  { %v1458_v11 = vld [vmem:[%s7054_s3 + $0x1a10] sm:$0xff]  ;;  %2129 = vmatpush.msrb.mxu3 %v1618_v46  ;;  %2152 = vmatpush.msra.mxu0 %v699_v9  ;;  %v763_v8 = vld [vmem:[%s7054_s3 + $0x458] sm:$0xff] }
 0x172   :  { %v1610_v51 = vld [vmem:[%s7054_s3 + $0x1ed0] sm:$0xff]  ;;  %2169 = vmatpush.msra.mxu1 %v851_v10  ;;  %2113 = vmatpush.msrb.mxu2 %v1458_v11  ;;  %v987_v46 = vld [vmem:[%s7054_s3 + $0xb58] sm:$0xff] }
 0x173   :  { %v1450_v16 = vld [vmem:[%s7054_s3 + $0x19d0] sm:$0xff]  ;;  %2130 = vmatpush.msrb.mxu3 %v1610_v51  ;;  %2153 = vmatpush.msra.mxu0 %v691_v12  ;;  %v1243_v9 = vld [vmem:[%s7054_s3 + $0x1358] sm:$0xff] }
 0x174   :  { %v1602_v17 = vld [vmem:[%s7054_s3 + $0x1e90] sm:$0xff]  ;;  %2170 = vmatpush.msra.mxu1 %v843_v15  ;;  %2114 = vmatpush.msrb.mxu2 %v1450_v16  ;;  %v755_v11 = vld [vmem:[%s7054_s3 + $0x418] sm:$0xff] }
 0x175   :  { %v1442_v26 = vld [vmem:[%s7054_s3 + $0x1990] sm:$0xff]  ;;  %2131 = vmatpush.msrb.mxu3 %v1602_v17  ;;  %2154 = vmatpush.msra.mxu0 %v683_v18  ;;  %v979_v15 = vld [vmem:[%s7054_s3 + $0xb18] sm:$0xff] }
 0x176   :  { %v1594_v20 = vld [vmem:[%s7054_s3 + $0x1e50] sm:$0xff]  ;;  %2171 = vmatpush.msra.mxu1 %v835_v19  ;;  %2115 = vmatpush.msrb.mxu2 %v1442_v26  ;;  %v1131_v16 = vld [vmem:[%s7054_s3 + $0xfd8] sm:$0xff] }
 0x177   :  { %v1434_v23 = vld [vmem:[%s7054_s3 + $0x1950] sm:$0xff]  ;;  %2132 = vmatpush.msrb.mxu3 %v1594_v20  ;;  %2155 = vmatpush.msra.mxu0 %v675_v21  ;;  %v1235_v18 = vld [vmem:[%s7054_s3 + $0x1318] sm:$0xff] }
 0x178   :  { %v1586_v25 = vld [vmem:[%s7054_s3 + $0x1e10] sm:$0xff]  ;;  %2172 = vmatpush.msra.mxu1 %v827_v22  ;;  %2116 = vmatpush.msrb.mxu2 %v1434_v23  ;;  %v1387_v19 = vld [vmem:[%s7054_s3 + $0x17d8] sm:$0xff] }
 0x179   :  { %v1426_v32 = vld [vmem:[%s7054_s3 + $0x1910] sm:$0xff]  ;;  %2133 = vmatpush.msrb.mxu3 %v1586_v25  ;;  %2156 = vmatpush.msra.mxu0 %v667_v30  ;;  %v971_v26 = vld [vmem:[%s7054_s3 + $0xad8] sm:$0xff] }
 0x17a   :  { %v1578_v33 = vld [vmem:[%s7054_s3 + $0x1dd0] sm:$0xff]  ;;  %2173 = vmatpush.msra.mxu1 %v819_v31  ;;  %2117 = vmatpush.msrb.mxu2 %v1426_v32  ;;  %v1123_v20 = vld [vmem:[%s7054_s3 + $0xf98] sm:$0xff] }
 0x17b   :  { %v1418_v37 = vld [vmem:[%s7054_s3 + $0x18d0] sm:$0xff]  ;;  %2134 = vmatpush.msrb.mxu3 %v1578_v33  ;;  %2157 = vmatpush.msra.mxu0 %v659_v34  ;;  %v1227_v21 = vld [vmem:[%s7054_s3 + $0x12d8] sm:$0xff] }
 0x17c   :  { %v1570_v38 = vld [vmem:[%s7054_s3 + $0x1d90] sm:$0xff]  ;;  %2174 = vmatpush.msra.mxu1 %v811_v35  ;;  %2118 = vmatpush.msrb.mxu2 %v1418_v37  ;;  %v1379_v22 = vld [vmem:[%s7054_s3 + $0x1798] sm:$0xff] }
 0x17d   :  { %v1410_v43 = vld [vmem:[%s7054_s3 + $0x1890] sm:$0xff]  ;;  %2135 = vmatpush.msrb.mxu3 %v1570_v38  ;;  %2158 = vmatpush.msra.mxu0 %v651_v39  ;;  %v963_v23 = vld [vmem:[%s7054_s3 + $0xa98] sm:$0xff] }
 0x17e   :  { %v1562_v44 = vld [vmem:[%s7054_s3 + $0x1d50] sm:$0xff]  ;;  %2175 = vmatpush.msra.mxu1 %v803_v41  ;;  %2119 = vmatpush.msrb.mxu2 %v1410_v43  ;;  %v1115_v25 = vld [vmem:[%s7054_s3 + $0xf58] sm:$0xff] }
 0x17f   :  { %v1402_v49 = vld [vmem:[%s7054_s3 + $0x1850] sm:$0xff]  ;;  %2136 = vmatpush.msrb.mxu3 %v1562_v44  ;;  %2159 = vmatpush.msra.mxu0 %v643_v47  ;;  %v1371_v30 = vld [vmem:[%s7054_s3 + $0x1758] sm:$0xff] }
 0x180   :  { %v1763_v42 = vpop.f32.mrf.mxu0  ;;  %v1554_v52 = vld [vmem:[%s7054_s3 + $0x1d10] sm:$0xff]  ;;  %2176 = vmatpush.msra.mxu1 %v795_v48  ;;  %2120 = vmatpush.msrb.mxu2 %v1402_v49  ;;  %v955_v31 = vld [vmem:[%s7054_s3 + $0xa58] sm:$0xff] }
 0x181   :  { %v1764_v45 = vadd.f32 %v1763_v42, %v1744_v36  ;;  %v1394_v56 = vld [vmem:[%s7054_s3 + $0x1810] sm:$0xff]  ;;  %2137 = vmatpush.msrb.mxu3 %v1554_v52  ;;  %2160 = vmatpush.msra.mxu0 %v635_v53  ;;  %v1107_v32 = vld [vmem:[%s7054_s3 + $0xf18] sm:$0xff] }
 0x182   :  { %v1546_v57 = vld [vmem:[%s7054_s3 + $0x1cd0] sm:$0xff]  ;;  %v1783_v60 = vpop.f32.mrf.mxu1  ;;  %2177 = vmatpush.msra.mxu1 %v787_v55  ;;  %2121 = vmatpush.msrb.mxu2 %v1394_v56  ;;  %v1211_v33 = vld [vmem:[%s7054_s3 + $0x1258] sm:$0xff] }
 0x183   :  { %v5119_v61 = vadd.f32 %v1783_v60, %v1764_v45  ;;  %2138 = vmatpush.msrb.mxu3 %v1546_v57  ;;  %2161 = vmatpush.msra.mxu0 %v627_v58  ;;  %v1538_v1 = vld [vmem:[%s7054_s3 + $0x1c90] sm:$0xff]  ;;  %v1363_v34 = vld [vmem:[%s7054_s3 + $0x1718] sm:$0xff] }
 0x184   :  { %2178 = vmatpush.msra.mxu1 %v779_v59  ;;  %2122 = vmatmul.f32.vlgmr.msrb.gmra.mxu2 %v4527_v14  ;;  %v1530_v7 = vld [vmem:[%s7054_s3 + $0x1c50] sm:$0xff]  ;;  %v947_v35 = vld [vmem:[%s7054_s3 + $0xa18] sm:$0xff] }
 0x185   :  { %2162 = vmatmul.f32.vlgmr.msra.gmra.mxu0 %v4145_v50  ;;  %2186 = vmatpush.msra.mxu2 %v1003_v62  ;;  %v1522_v10 = vld [vmem:[%s7054_s3 + $0x1c10] sm:$0xff]  ;;  %v1099_v36 = vld [vmem:[%s7054_s3 + $0xed8] sm:$0xff] }
 0x186   :  { %2226 = vmatpush.msrb.mxu0 %v1259_v0  ;;  %2139 = vmatpush.msrb.mxu3 %v1538_v1  ;;  %v1203_v37 = vld [vmem:[%s7054_s3 + $0x1218] sm:$0xff] }
 0x187   :  { %2179 = vmatpush.msra.mxu1 %v771_v2  ;;  %2187 = vmatpush.msra.mxu2 %v995_v4  ;;  %v1355_v38 = vld [vmem:[%s7054_s3 + $0x16d8] sm:$0xff] }
 0x188   :  { %v1843_v6 = vpop.f32.mrf.mxu0  ;;  %2227 = vmatpush.msrb.mxu0 %v1251_v5  ;;  %2140 = vmatpush.msrb.mxu3 %v1530_v7  ;;  %v939_v39 = vld [vmem:[%s7054_s3 + $0x9d8] sm:$0xff] }
 0x189   :  { %v1844_v51 = vadd.f32 %v1843_v6, %v1651_v3  ;;  %2180 = vmatpush.msra.mxu1 %v763_v8  ;;  %2188 = vmatpush.msra.mxu2 %v987_v46  ;;  %v1091_v41 = vld [vmem:[%s7054_s3 + $0xe98] sm:$0xff] }
 0x18a   :  { %v1863_v12 = vpop.f32.mrf.mxu1  ;;  %2228 = vmatpush.msrb.mxu0 %v1243_v9  ;;  %2141 = vmatpush.msrb.mxu3 %v1522_v10  ;;  %v1195_v42 = vld [vmem:[%s7054_s3 + $0x11d8] sm:$0xff] }
 0x18b   :  { %v5166_v17 = vadd.f32 %v1863_v12, %v1844_v51  ;;  %2181 = vmatpush.msra.mxu1 %v755_v11  ;;  %2142 = vmatmul.f32.vlgmr.msrb.gmra.mxu3 %v4556_v29  ;;  %v1347_v43 = vld [vmem:[%s7054_s3 + $0x1698] sm:$0xff] }
 0x18c   :  { %2182 = vmatmul.f32.vlgmr.msra.gmra.mxu1 %v4170_v63  ;;  %2189 = vmatpush.msra.mxu2 %v979_v15  ;;  %v931_v44 = vld [vmem:[%s7054_s3 + $0x998] sm:$0xff] }
 0x18d   :  { %2206 = vmatpush.msra.mxu3 %v1131_v16  ;;  %2229 = vmatpush.msrb.mxu0 %v1235_v18  ;;  %v1083_v45 = vld [vmem:[%s7054_s3 + $0xe58] sm:$0xff]  ;;  %v1803_v11 = vpop.f32.mrf.mxu2  ;;  %v748_v18 = vld [vmem:[%s7054_s3 + $0x3e0] sm:$0xff] }
 0x18e   :  { %2246 = vmatpush.msrb.mxu1 %v1387_v19  ;;  %2190 = vmatpush.msra.mxu2 %v971_v26  ;;  %v1187_v47 = vld [vmem:[%s7054_s3 + $0x1198] sm:$0xff]  ;;  %v1804_v15 = vadd.f32 %v1803_v11, %v5119_v61 }
 0x18f   :  { %2207 = vmatpush.msra.mxu3 %v1123_v20  ;;  %2230 = vmatpush.msrb.mxu0 %v1227_v21  ;;  %v1339_v48 = vld [vmem:[%s7054_s3 + $0x1658] sm:$0xff]  ;;  %v740_v20 = vld [vmem:[%s7054_s3 + $0x3a0] sm:$0xff] }
 0x190   :  { %2247 = vmatpush.msrb.mxu1 %v1379_v22  ;;  %2191 = vmatpush.msra.mxu2 %v963_v23  ;;  %v923_v49 = vld [vmem:[%s7054_s3 + $0x958] sm:$0xff] }
 0x191   :  { %2208 = vmatpush.msra.mxu3 %v1115_v25  ;;  %2231 = vmatpush.msrb.mxu0 %v1219_v28  ;;  %v1075_v52 = vld [vmem:[%s7054_s3 + $0xe18] sm:$0xff]  ;;  %v732_v28 = vld [vmem:[%s7054_s3 + $0x360] sm:$0xff] }
 0x192   :  { %2248 = vmatpush.msrb.mxu1 %v1371_v30  ;;  %2192 = vmatpush.msra.mxu2 %v955_v31  ;;  %v1179_v53 = vld [vmem:[%s7054_s3 + $0x1158] sm:$0xff] }
 0x193   :  { %2209 = vmatpush.msra.mxu3 %v1107_v32  ;;  %2232 = vmatpush.msrb.mxu0 %v1211_v33  ;;  %v1331_v55 = vld [vmem:[%s7054_s3 + $0x1618] sm:$0xff] }
 0x194   :  { %2249 = vmatpush.msrb.mxu1 %v1363_v34  ;;  %2193 = vmatpush.msra.mxu2 %v947_v35  ;;  %v915_v56 = vld [vmem:[%s7054_s3 + $0x918] sm:$0xff]  ;;  %v1823_v23 = vpop.f32.mrf.mxu3 }
 0x195   :  { %2210 = vmatpush.msra.mxu3 %v1099_v36  ;;  %2233 = vmatpush.msrb.mxu0 %v1203_v37  ;;  %v1067_v57 = vld [vmem:[%s7054_s3 + $0xdd8] sm:$0xff]  ;;  %v5353_v30 = vadd.f32 %v1823_v23, %v1804_v15  ;;  %v724_v37 = vld [vmem:[%s7054_s3 + $0x320] sm:$0xff] }
 0x196   :  { %2250 = vmatpush.msrb.mxu1 %v1355_v38  ;;  %2194 = vmatpush.msra.mxu2 %v939_v39  ;;  %v1171_v58 = vld [vmem:[%s7054_s3 + $0x1118] sm:$0xff]  ;;  %v1883_v33 = vpop.f32.mrf.mxu2  ;;  %v876_v38 = vld [vmem:[%s7054_s3 + $0x7e0] sm:$0xff] }
 0x197   :  { %2211 = vmatpush.msra.mxu3 %v1091_v41  ;;  %2234 = vmatpush.msrb.mxu0 %v1195_v42  ;;  %v1323_v59 = vld [vmem:[%s7054_s3 + $0x15d8] sm:$0xff]  ;;  %v1884_v36 = vadd.f32 %v1883_v33, %v5166_v17  ;;  %v716_v41 = vld [vmem:[%s7054_s3 + $0x2e0] sm:$0xff] }
 0x198   :  { %2251 = vmatpush.msrb.mxu1 %v1347_v43  ;;  %2195 = vmatpush.msra.mxu2 %v931_v44  ;;  %v907_v60 = vld [vmem:[%s7054_s3 + $0x8d8] sm:$0xff]  ;;  %v868_v42 = vld [vmem:[%s7054_s3 + $0x7a0] sm:$0xff] }
 0x199   :  { %2212 = vmatpush.msra.mxu3 %v1083_v45  ;;  %2235 = vmatpush.msrb.mxu0 %v1187_v47  ;;  %v1059_v62 = vld [vmem:[%s7054_s3 + $0xd98] sm:$0xff]  ;;  %v708_v45 = vld [vmem:[%s7054_s3 + $0x2a0] sm:$0xff] }
 0x19a   :  { %2252 = vmatpush.msrb.mxu1 %v1339_v48  ;;  %2196 = vmatpush.msra.mxu2 %v923_v49  ;;  %v1163_v0 = vld [vmem:[%s7054_s3 + $0x10d8] sm:$0xff]  ;;  %v860_v47 = vld [vmem:[%s7054_s3 + $0x760] sm:$0xff] }
 0x19b   :  { %2213 = vmatpush.msra.mxu3 %v1075_v52  ;;  %2236 = vmatpush.msrb.mxu0 %v1179_v53  ;;  %v1315_v1 = vld [vmem:[%s7054_s3 + $0x1598] sm:$0xff] }
 0x19c   :  { %2253 = vmatpush.msrb.mxu1 %v1331_v55  ;;  %2197 = vmatpush.msra.mxu2 %v915_v56  ;;  %v899_v2 = vld [vmem:[%s7054_s3 + $0x898] sm:$0xff]  ;;  %v1903_v48 = vpop.f32.mrf.mxu3  ;;  %v700_v56 = vld [vmem:[%s7054_s3 + $0x260] sm:$0xff] }
 0x19d   :  { %2214 = vmatpush.msra.mxu3 %v1067_v57  ;;  %2237 = vmatpush.msrb.mxu0 %v1171_v58  ;;  %v1051_v3 = vld [vmem:[%s7054_s3 + $0xd58] sm:$0xff]  ;;  %v1904_v53 = vadd.f32 %v1903_v48, %v1884_v36  ;;  %v852_v57 = vld [vmem:[%s7054_s3 + $0x720] sm:$0xff] }
 0x19e   :  { %2254 = vmatpush.msrb.mxu1 %v1323_v59  ;;  %2198 = vmatpush.msra.mxu2 %v907_v60  ;;  %v1155_v4 = vld [vmem:[%s7054_s3 + $0x1098] sm:$0xff]  ;;  %v1260_v48 = vld [vmem:[%s7054_s3 + $0x13e0] sm:$0xff] }
 0x19f   :  { %2215 = vmatpush.msra.mxu3 %v1059_v62  ;;  %v1307_v5 = vld [vmem:[%s7054_s3 + $0x1558] sm:$0xff]  ;;  %2238 = vmatpush.msrb.mxu0 %v1163_v0  ;;  %v692_v0 = vld [vmem:[%s7054_s3 + $0x220] sm:$0xff] }
 0x1a0   :  { %2255 = vmatpush.msrb.mxu1 %v1315_v1  ;;  %v891_v6 = vld [vmem:[%s7054_s3 + $0x858] sm:$0xff]  ;;  %2199 = vmatpush.msra.mxu2 %v899_v2  ;;  %v1923_v55 = vpop.f32.mrf.mxu0  ;;  %v844_v1 = vld [vmem:[%s7054_s3 + $0x6e0] sm:$0xff] }
 0x1a1   :  { %v1043_v7 = vld [vmem:[%s7054_s3 + $0xd18] sm:$0xff]  ;;  %2216 = vmatpush.msra.mxu3 %v1051_v3  ;;  %2239 = vmatpush.msrb.mxu0 %v1155_v4  ;;  %v1924_v60 = vadd.f32 %v1923_v55, %v1904_v53  ;;  %v996_v53 = vld [vmem:[%s7054_s3 + $0xba0] sm:$0xff] }
 0x1a2   :  { %v1147_v8 = vld [vmem:[%s7054_s3 + $0x1058] sm:$0xff]  ;;  %2256 = vmatpush.msrb.mxu1 %v1307_v5  ;;  %2200 = vmatpush.msra.mxu2 %v891_v6  ;;  %v684_v5 = vld [vmem:[%s7054_s3 + $0x1e0] sm:$0xff] }
 0x1a3   :  { %v1299_v46 = vld [vmem:[%s7054_s3 + $0x1518] sm:$0xff]  ;;  %2217 = vmatpush.msra.mxu3 %v1043_v7  ;;  %2240 = vmatpush.msrb.mxu0 %v1147_v8  ;;  %v836_v6 = vld [vmem:[%s7054_s3 + $0x6a0] sm:$0xff] }
 0x1a4   :  { %v883_v9 = vld [vmem:[%s7054_s3 + $0x818] sm:$0xff]  ;;  %2257 = vmatpush.msrb.mxu1 %v1299_v46  ;;  %v1943_v62 = vpop.f32.mrf.mxu1  ;;  %v676_v46 = vld [vmem:[%s7054_s3 + $0x1a0] sm:$0xff] }
 0x1a5   :  { %v1035_v10 = vld [vmem:[%s7054_s3 + $0xcd8] sm:$0xff]  ;;  %2201 = vmatpush.msra.mxu2 %v883_v9  ;;  %v5430_v4 = vadd.f32 %v1943_v62, %v1924_v60  ;;  %v828_v9 = vld [vmem:[%s7054_s3 + $0x660] sm:$0xff] }
 0x1a6   :  { %v1139_v51 = vld [vmem:[%s7054_s3 + $0x1018] sm:$0xff]  ;;  %2218 = vmatpush.msra.mxu3 %v1035_v10  ;;  %2202 = vmatmul.f32.vlgmr.msra.gmra.mxu2 %v4207_v13  ;;  %v1252_v55 = vld [vmem:[%s7054_s3 + $0x13a0] sm:$0xff] }
 0x1a7   :  { %v1291_v12 = vld [vmem:[%s7054_s3 + $0x14d8] sm:$0xff]  ;;  %2241 = vmatpush.msrb.mxu0 %v1139_v51  ;;  %v668_v51 = vld [vmem:[%s7054_s3 + $0x160] sm:$0xff] }
 0x1a8   :  { %v1515_v16 = vld [vmem:[%s7054_s3 + $0x1bd8] sm:$0xff]  ;;  %2258 = vmatpush.msrb.mxu1 %v1291_v12  ;;  %2242 = vmatmul.f32.vlgmr.msrb.gmra.mxu0 %v4401_v27  ;;  %v820_v12 = vld [vmem:[%s7054_s3 + $0x620] sm:$0xff] }
 0x1a9   :  { %v1027_v19 = vld [vmem:[%s7054_s3 + $0xc98] sm:$0xff]  ;;  %2266 = vmatpush.msrb.mxu2 %v1515_v16  ;;  %2306 = vmatpush.msra.mxu0 %v748_v18  ;;  %v660_v18 = vld [vmem:[%s7054_s3 + $0x120] sm:$0xff] }
 0x1aa   :  { %v1283_v61 = vld [vmem:[%s7054_s3 + $0x1498] sm:$0xff]  ;;  %2219 = vmatpush.msra.mxu3 %v1027_v19  ;;  %v812_v19 = vld [vmem:[%s7054_s3 + $0x5e0] sm:$0xff] }
 0x1ab   :  { %v1507_v26 = vld [vmem:[%s7054_s3 + $0x1b98] sm:$0xff]  ;;  %2259 = vmatpush.msrb.mxu1 %v1283_v61  ;;  %2307 = vmatpush.msra.mxu0 %v740_v20  ;;  %v652_v20 = vld [vmem:[%s7054_s3 + $0xe0] sm:$0xff] }
 0x1ac   :  { %v1019_v21 = vld [vmem:[%s7054_s3 + $0xc58] sm:$0xff]  ;;  %2267 = vmatpush.msrb.mxu2 %v1507_v26  ;;  %v988_v60 = vld [vmem:[%s7054_s3 + $0xb60] sm:$0xff] }
 0x1ad   :  { %v1275_v22 = vld [vmem:[%s7054_s3 + $0x1458] sm:$0xff]  ;;  %2220 = vmatpush.msra.mxu3 %v1019_v21  ;;  %2308 = vmatpush.msra.mxu0 %v732_v28  ;;  %v804_v21 = vld [vmem:[%s7054_s3 + $0x5a0] sm:$0xff] }
 0x1ae   :  { %v1499_v25 = vld [vmem:[%s7054_s3 + $0x1b58] sm:$0xff]  ;;  %2260 = vmatpush.msrb.mxu1 %v1275_v22  ;;  %v644_v28 = vld [vmem:[%s7054_s3 + $0xa0] sm:$0xff] }
 0x1af   :  { %v1011_v31 = vld [vmem:[%s7054_s3 + $0xc18] sm:$0xff]  ;;  %2268 = vmatpush.msrb.mxu2 %v1499_v25  ;;  %2309 = vmatpush.msra.mxu0 %v724_v37  ;;  %v1652_v25 = vperm.slane %v4797_v54, 2  ;;  %v1244_v62 = vld [vmem:[%s7054_s3 + $0x1360] sm:$0xff] }
 0x1b0   :  { %v1267_v32 = vld [vmem:[%s7054_s3 + $0x1418] sm:$0xff]  ;;  %2221 = vmatpush.msra.mxu3 %v1011_v31  ;;  %v796_v31 = vld [vmem:[%s7054_s3 + $0x560] sm:$0xff] }
 0x1b1   :  { %v1491_v34 = vld [vmem:[%s7054_s3 + $0x1b18] sm:$0xff]  ;;  %2261 = vmatpush.msrb.mxu1 %v1267_v32  ;;  %2222 = vmatmul.f32.vlgmr.msra.gmra.mxu3 %v4231_v24 }
 0x1b2   :  { %v1643_v35 = vld [vmem:[%s7054_s3 + $0x1fd8] sm:$0xff]  ;;  %2262 = vmatmul.f32.vlgmr.msrb.gmra.mxu1 %v4431_v40  ;;  %2269 = vmatpush.msrb.mxu2 %v1491_v34  ;;  %v636_v34 = vld [vmem:[%s7054_s3 + $0x60] sm:$0xff] }
 0x1b3   :  { %v1483_v39 = vld [vmem:[%s7054_s3 + $0x1ad8] sm:$0xff]  ;;  %2286 = vmatpush.msrb.mxu3 %v1643_v35  ;;  %2326 = vmatpush.msra.mxu1 %v876_v38  ;;  %v788_v35 = vld [vmem:[%s7054_s3 + $0x520] sm:$0xff] }
 0x1b4   :  { %v1635_v17 = vld [vmem:[%s7054_s3 + $0x1f98] sm:$0xff]  ;;  %2270 = vmatpush.msrb.mxu2 %v1483_v39  ;;  %2310 = vmatpush.msra.mxu0 %v716_v41  ;;  %v780_v41 = vld [vmem:[%s7054_s3 + $0x4e0] sm:$0xff] }
 0x1b5   :  { %v1475_v43 = vld [vmem:[%s7054_s3 + $0x1a98] sm:$0xff]  ;;  %2287 = vmatpush.msrb.mxu3 %v1635_v17  ;;  %2327 = vmatpush.msra.mxu1 %v868_v42  ;;  %v628_v17 = vld [vmem:[%s7054_s3 + $0x20] sm:$0xff] }
 0x1b6   :  { %v1627_v44 = vld [vmem:[%s7054_s3 + $0x1f58] sm:$0xff]  ;;  %2271 = vmatpush.msrb.mxu2 %v1475_v43  ;;  %2311 = vmatpush.msra.mxu0 %v708_v45  ;;  %v5529_v45 = vld [vmem:[%s7057_s5] sm:$0xff] }
 0x1b7   :  { %v1467_v49 = vld [vmem:[%s7054_s3 + $0x1a58] sm:$0xff]  ;;  %2288 = vmatpush.msrb.mxu3 %v1627_v44  ;;  %2328 = vmatpush.msra.mxu1 %v860_v47  ;;  %v1004_v47 = vld [vmem:[%s7054_s3 + $0xbe0] sm:$0xff] }
 0x1b8   :  { %v1619_v52 = vld [vmem:[%s7054_s3 + $0x1f18] sm:$0xff]  ;;  %2272 = vmatpush.msrb.mxu2 %v1467_v49  ;;  %2312 = vmatpush.msra.mxu0 %v700_v56  ;;  %v2948_v56 = vperm.slane %v5529_v45, 0 }
 0x1b9   :  { %v1459_v58 = vld [vmem:[%s7054_s3 + $0x1a18] sm:$0xff]  ;;  %2289 = vmatpush.msrb.mxu3 %v1619_v52  ;;  %2329 = vmatpush.msra.mxu1 %v852_v57  ;;  %v772_v52 = vld [vmem:[%s7054_s3 + $0x4a0] sm:$0xff] }
 0x1ba   :  { %v1611_v59 = vld [vmem:[%s7054_s3 + $0x1ed8] sm:$0xff]  ;;  %2273 = vmatpush.msrb.mxu2 %v1459_v58  ;;  %2313 = vmatpush.msra.mxu0 %v692_v0  ;;  %v764_v58 = vld [vmem:[%s7054_s3 + $0x460] sm:$0xff] }
 0x1bb   :  { %v1451_v2 = vld [vmem:[%s7054_s3 + $0x19d8] sm:$0xff]  ;;  %2290 = vmatpush.msrb.mxu3 %v1611_v59  ;;  %2330 = vmatpush.msra.mxu1 %v844_v1  ;;  %v2949_v59 = vperm.slane %v5529_v45, 1 }
 0x1bc   :  { %v1603_v3 = vld [vmem:[%s7054_s3 + $0x1e98] sm:$0xff]  ;;  %2274 = vmatpush.msrb.mxu2 %v1451_v2  ;;  %2314 = vmatpush.msra.mxu0 %v684_v5  ;;  %v756_v2 = vld [vmem:[%s7054_s3 + $0x420] sm:$0xff] }
 0x1bd   :  { %v1443_v7 = vld [vmem:[%s7054_s3 + $0x1998] sm:$0xff]  ;;  %2291 = vmatpush.msrb.mxu3 %v1603_v3  ;;  %2331 = vmatpush.msra.mxu1 %v836_v6  ;;  %v980_v5 = vld [vmem:[%s7054_s3 + $0xb20] sm:$0xff] }
 0x1be   :  { %v1595_v8 = vld [vmem:[%s7054_s3 + $0x1e58] sm:$0xff]  ;;  %2275 = vmatpush.msrb.mxu2 %v1443_v7  ;;  %2315 = vmatpush.msra.mxu0 %v676_v46  ;;  %v1132_v6 = vld [vmem:[%s7054_s3 + $0xfe0] sm:$0xff] }
 0x1bf   :  { %v1435_v10 = vld [vmem:[%s7054_s3 + $0x1958] sm:$0xff]  ;;  %2292 = vmatpush.msrb.mxu3 %v1595_v8  ;;  %2332 = vmatpush.msra.mxu1 %v828_v9  ;;  %v1236_v8 = vld [vmem:[%s7054_s3 + $0x1320] sm:$0xff] }
 0x1c0   :  { %v1587_v11 = vld [vmem:[%s7054_s3 + $0x1e18] sm:$0xff]  ;;  %2276 = vmatpush.msrb.mxu2 %v1435_v10  ;;  %2316 = vmatpush.msra.mxu0 %v668_v51  ;;  %v2003_v32 = vpop.f32.mrf.mxu0  ;;  %v972_v46 = vld [vmem:[%s7054_s3 + $0xae0] sm:$0xff] }
 0x1c1   :  { %v1427_v15 = vld [vmem:[%s7054_s3 + $0x1918] sm:$0xff]  ;;  %2293 = vmatpush.msrb.mxu3 %v1587_v11  ;;  %2333 = vmatpush.msra.mxu1 %v820_v12  ;;  %v2004_v38 = vadd.f32 %v2003_v32, %v1652_v25  ;;  %v1124_v9 = vld [vmem:[%s7054_s3 + $0xfa0] sm:$0xff] }
 0x1c2   :  { %v1579_v16 = vld [vmem:[%s7054_s3 + $0x1dd8] sm:$0xff]  ;;  %2277 = vmatpush.msrb.mxu2 %v1427_v15  ;;  %2317 = vmatpush.msra.mxu0 %v660_v18  ;;  %v1963_v39 = vpop.f32.mrf.mxu2  ;;  %v1228_v11 = vld [vmem:[%s7054_s3 + $0x12e0] sm:$0xff] }
 0x1c3   :  { %v1419_v61 = vld [vmem:[%s7054_s3 + $0x18d8] sm:$0xff]  ;;  %2294 = vmatpush.msrb.mxu3 %v1579_v16  ;;  %2334 = vmatpush.msra.mxu1 %v812_v19  ;;  %v1964_v42 = vadd.f32 %v1963_v39, %v5430_v4  ;;  %v2964_v4 = vmul.f32 %v2948_v56, %v5353_v30  ;;  %v1388_v30 = vld [vmem:[%s7054_s3 + $0x17e0] sm:$0xff] }
 0x1c4   :  { %v1571_v26 = vld [vmem:[%s7054_s3 + $0x1d98] sm:$0xff]  ;;  %2278 = vmatpush.msrb.mxu2 %v1419_v61  ;;  %2318 = vmatpush.msra.mxu0 %v652_v20  ;;  %v2023_v43 = vpop.f32.mrf.mxu1  ;;  %v1380_v51 = vld [vmem:[%s7054_s3 + $0x17a0] sm:$0xff] }
 0x1c5   :  { %v1411_v22 = vld [vmem:[%s7054_s3 + $0x1898] sm:$0xff]  ;;  %2295 = vmatpush.msrb.mxu3 %v1571_v26  ;;  %2335 = vmatpush.msra.mxu1 %v804_v21  ;;  %v5524_v44 = vadd.f32 %v2023_v43, %v2004_v38  ;;  %v964_v12 = vld [vmem:[%s7054_s3 + $0xaa0] sm:$0xff] }
 0x1c6   :  { %v1563_v23 = vld [vmem:[%s7054_s3 + $0x1d58] sm:$0xff]  ;;  %2279 = vmatpush.msrb.mxu2 %v1411_v22  ;;  %2319 = vmatpush.msra.mxu0 %v644_v28  ;;  %v1116_v15 = vld [vmem:[%s7054_s3 + $0xf60] sm:$0xff] }
 0x1c7   :  { %v1403_v33 = vld [vmem:[%s7054_s3 + $0x1858] sm:$0xff]  ;;  %2296 = vmatpush.msrb.mxu3 %v1563_v23  ;;  %2336 = vmatpush.msra.mxu1 %v796_v31  ;;  %v1220_v16 = vld [vmem:[%s7054_s3 + $0x12a0] sm:$0xff] }
 0x1c8   :  { %v1555_v54 = vld [vmem:[%s7054_s3 + $0x1d18] sm:$0xff]  ;;  %2280 = vmatpush.msrb.mxu2 %v1403_v33  ;;  %2320 = vmatpush.msra.mxu0 %v636_v34  ;;  %v1983_v0 = vpop.f32.mrf.mxu3  ;;  %v1372_v18 = vld [vmem:[%s7054_s3 + $0x1760] sm:$0xff] }
 0x1c9   :  { %v1395_v36 = vld [vmem:[%s7054_s3 + $0x1818] sm:$0xff]  ;;  %2297 = vmatpush.msrb.mxu3 %v1555_v54  ;;  %2337 = vmatpush.msra.mxu1 %v788_v35  ;;  %v1984_v3 = vadd.f32 %v1983_v0, %v1964_v42  ;;  %v956_v19 = vld [vmem:[%s7054_s3 + $0xa60] sm:$0xff] }
 0x1ca   :  { %v1547_v37 = vld [vmem:[%s7054_s3 + $0x1cd8] sm:$0xff]  ;;  %2281 = vmatpush.msrb.mxu2 %v1395_v36  ;;  %2321 = vmatpush.msra.mxu0 %v628_v17  ;;  %v1108_v61 = vld [vmem:[%s7054_s3 + $0xf20] sm:$0xff] }
 0x1cb   :  { %2298 = vmatpush.msrb.mxu3 %v1547_v37  ;;  %2338 = vmatpush.msra.mxu1 %v780_v41  ;;  %v1539_v49 = vld [vmem:[%s7054_s3 + $0x1c98] sm:$0xff]  ;;  %v2965_v7 = vmul.f32 %v2949_v59, %v1984_v3  ;;  %v1212_v26 = vld [vmem:[%s7054_s3 + $0x1260] sm:$0xff] }
 0x1cc   :  { %2282 = vmatmul.f32.vlgmr.msrb.gmra.mxu2 %v4527_v14  ;;  %2322 = vmatmul.f32.vlgmr.msra.gmra.mxu0 %v4145_v50  ;;  %v1531_v57 = vld [vmem:[%s7054_s3 + $0x1c58] sm:$0xff]  ;;  %v1364_v20 = vld [vmem:[%s7054_s3 + $0x1720] sm:$0xff] }
 0x1cd   :  { %2346 = vmatpush.msra.mxu2 %v1004_v47  ;;  %2386 = vmatpush.msrb.mxu0 %v1260_v48  ;;  %v1523_v1 = vld [vmem:[%s7054_s3 + $0x1c18] sm:$0xff]  ;;  %v5592_v10 = vadd.f32 %v2965_v7, %v2964_v4  ;;  %v948_v21 = vld [vmem:[%s7054_s3 + $0xa20] sm:$0xff] }
 0x1ce   :  { %2299 = vmatpush.msrb.mxu3 %v1539_v49  ;;  %2339 = vmatpush.msra.mxu1 %v772_v52  ;;  %v1100_v22 = vld [vmem:[%s7054_s3 + $0xee0] sm:$0xff] }
 0x1cf   :  { %2347 = vmatpush.msra.mxu2 %v996_v53  ;;  %2387 = vmatpush.msrb.mxu0 %v1252_v55  ;;  %v1204_v23 = vld [vmem:[%s7054_s3 + $0x1220] sm:$0xff] }
 0x1d0   :  { %2300 = vmatpush.msrb.mxu3 %v1531_v57  ;;  %2340 = vmatpush.msra.mxu1 %v764_v58  ;;  %v1356_v25 = vld [vmem:[%s7054_s3 + $0x16e0] sm:$0xff] }
 0x1d1   :  { %2348 = vmatpush.msra.mxu2 %v988_v60  ;;  %2388 = vmatpush.msrb.mxu0 %v1244_v62  ;;  %v940_v28 = vld [vmem:[%s7054_s3 + $0x9e0] sm:$0xff] }
 0x1d2   :  { %2301 = vmatpush.msrb.mxu3 %v1523_v1  ;;  %2341 = vmatpush.msra.mxu1 %v756_v2  ;;  %v1092_v31 = vld [vmem:[%s7054_s3 + $0xea0] sm:$0xff] }
 0x1d3   :  { %2302 = vmatmul.f32.vlgmr.msrb.gmra.mxu3 %v4556_v29  ;;  %2342 = vmatmul.f32.vlgmr.msra.gmra.mxu1 %v4170_v63  ;;  %v1196_v32 = vld [vmem:[%s7054_s3 + $0x11e0] sm:$0xff] }
 0x1d4   :  { %2349 = vmatpush.msra.mxu2 %v980_v5  ;;  %2366 = vmatpush.msra.mxu3 %v1132_v6  ;;  %v1348_v33 = vld [vmem:[%s7054_s3 + $0x16a0] sm:$0xff] }
 0x1d5   :  { %2389 = vmatpush.msrb.mxu0 %v1236_v8  ;;  %2406 = vmatpush.msrb.mxu1 %v1388_v30  ;;  %v932_v54 = vld [vmem:[%s7054_s3 + $0x9a0] sm:$0xff]  ;;  %v749_v8 = vld [vmem:[%s7054_s3 + $0x3e8] sm:$0xff] }
 0x1d6   :  { %2350 = vmatpush.msra.mxu2 %v972_v46  ;;  %2367 = vmatpush.msra.mxu3 %v1124_v9  ;;  %v1084_v34 = vld [vmem:[%s7054_s3 + $0xe60] sm:$0xff]  ;;  %v741_v9 = vld [vmem:[%s7054_s3 + $0x3a8] sm:$0xff] }
 0x1d7   :  { %2390 = vmatpush.msrb.mxu0 %v1228_v11  ;;  %2407 = vmatpush.msrb.mxu1 %v1380_v51  ;;  %v1188_v35 = vld [vmem:[%s7054_s3 + $0x11a0] sm:$0xff] }
 0x1d8   :  { %2351 = vmatpush.msra.mxu2 %v964_v12  ;;  %2368 = vmatpush.msra.mxu3 %v1116_v15  ;;  %v1340_v36 = vld [vmem:[%s7054_s3 + $0x1660] sm:$0xff]  ;;  %v733_v15 = vld [vmem:[%s7054_s3 + $0x368] sm:$0xff] }
 0x1d9   :  { %2391 = vmatpush.msrb.mxu0 %v1220_v16  ;;  %2408 = vmatpush.msrb.mxu1 %v1372_v18  ;;  %v924_v37 = vld [vmem:[%s7054_s3 + $0x960] sm:$0xff] }
 0x1da   :  { %2352 = vmatpush.msra.mxu2 %v956_v19  ;;  %2369 = vmatpush.msra.mxu3 %v1108_v61  ;;  %v1076_v38 = vld [vmem:[%s7054_s3 + $0xe20] sm:$0xff] }
 0x1db   :  { %2392 = vmatpush.msrb.mxu0 %v1212_v26  ;;  %2409 = vmatpush.msrb.mxu1 %v1364_v20  ;;  %v1180_v39 = vld [vmem:[%s7054_s3 + $0x1160] sm:$0xff] }
 0x1dc   :  { %2353 = vmatpush.msra.mxu2 %v948_v21  ;;  %2370 = vmatpush.msra.mxu3 %v1100_v22  ;;  %v1332_v17 = vld [vmem:[%s7054_s3 + $0x1620] sm:$0xff] }
 0x1dd   :  { %2393 = vmatpush.msrb.mxu0 %v1204_v23  ;;  %2410 = vmatpush.msrb.mxu1 %v1356_v25  ;;  %v916_v41 = vld [vmem:[%s7054_s3 + $0x920] sm:$0xff]  ;;  %v725_v23 = vld [vmem:[%s7054_s3 + $0x328] sm:$0xff] }
 0x1de   :  { %2354 = vmatpush.msra.mxu2 %v940_v28  ;;  %2371 = vmatpush.msra.mxu3 %v1092_v31  ;;  %v1068_v42 = vld [vmem:[%s7054_s3 + $0xde0] sm:$0xff]  ;;  %v877_v25 = vld [vmem:[%s7054_s3 + $0x7e8] sm:$0xff] }
 0x1df   :  { %2394 = vmatpush.msrb.mxu0 %v1196_v32  ;;  %2411 = vmatpush.msrb.mxu1 %v1348_v33  ;;  %v1172_v43 = vld [vmem:[%s7054_s3 + $0x1120] sm:$0xff] }
 0x1e0   :  { %2355 = vmatpush.msra.mxu2 %v932_v54  ;;  %2372 = vmatpush.msra.mxu3 %v1084_v34  ;;  %v1324_v47 = vld [vmem:[%s7054_s3 + $0x15e0] sm:$0xff]  ;;  %v2083_v26 = vpop.f32.mrf.mxu0  ;;  %v717_v54 = vld [vmem:[%s7054_s3 + $0x2e8] sm:$0xff] }
 0x1e1   :  { %2395 = vmatpush.msrb.mxu0 %v1188_v35  ;;  %2412 = vmatpush.msrb.mxu1 %v1340_v36  ;;  %v908_v48 = vld [vmem:[%s7054_s3 + $0x8e0] sm:$0xff]  ;;  %v869_v34 = vld [vmem:[%s7054_s3 + $0x7a8] sm:$0xff] }
 0x1e2   :  { %2356 = vmatpush.msra.mxu2 %v924_v37  ;;  %2373 = vmatpush.msra.mxu3 %v1076_v38  ;;  %v1060_v49 = vld [vmem:[%s7054_s3 + $0xda0] sm:$0xff]  ;;  %v709_v37 = vld [vmem:[%s7054_s3 + $0x2a8] sm:$0xff] }
 0x1e3   :  { %2396 = vmatpush.msrb.mxu0 %v1180_v39  ;;  %2413 = vmatpush.msrb.mxu1 %v1332_v17  ;;  %v1164_v52 = vld [vmem:[%s7054_s3 + $0x10e0] sm:$0xff]  ;;  %v861_v38 = vld [vmem:[%s7054_s3 + $0x768] sm:$0xff] }
 0x1e4   :  { %2357 = vmatpush.msra.mxu2 %v916_v41  ;;  %2374 = vmatpush.msra.mxu3 %v1068_v42  ;;  %v1316_v53 = vld [vmem:[%s7054_s3 + $0x15a0] sm:$0xff]  ;;  %v2043_v3 = vpop.f32.mrf.mxu2  ;;  %v701_v41 = vld [vmem:[%s7054_s3 + $0x268] sm:$0xff] }
 0x1e5   :  { %2397 = vmatpush.msrb.mxu0 %v1172_v43  ;;  %2414 = vmatpush.msrb.mxu1 %v1324_v47  ;;  %v900_v55 = vld [vmem:[%s7054_s3 + $0x8a0] sm:$0xff]  ;;  %v2044_v6 = vadd.f32 %v2043_v3, %v5524_v44  ;;  %v853_v42 = vld [vmem:[%s7054_s3 + $0x728] sm:$0xff] }
 0x1e6   :  { %v1052_v56 = vld [vmem:[%s7054_s3 + $0xd60] sm:$0xff]  ;;  %2358 = vmatpush.msra.mxu2 %v908_v48  ;;  %2375 = vmatpush.msra.mxu3 %v1060_v49  ;;  %v693_v48 = vld [vmem:[%s7054_s3 + $0x228] sm:$0xff] }
 0x1e7   :  { %v1156_v57 = vld [vmem:[%s7054_s3 + $0x10a0] sm:$0xff]  ;;  %2398 = vmatpush.msrb.mxu0 %v1164_v52  ;;  %2415 = vmatpush.msrb.mxu1 %v1316_v53  ;;  %v2103_v28 = vpop.f32.mrf.mxu1  ;;  %v845_v49 = vld [vmem:[%s7054_s3 + $0x6e8] sm:$0xff] }
 0x1e8   :  { %v1308_v58 = vld [vmem:[%s7054_s3 + $0x1560] sm:$0xff]  ;;  %2359 = vmatpush.msra.mxu2 %v900_v55  ;;  %2376 = vmatpush.msra.mxu3 %v1052_v56  ;;  %v685_v55 = vld [vmem:[%s7054_s3 + $0x1e8] sm:$0xff] }
 0x1e9   :  { %v892_v59 = vld [vmem:[%s7054_s3 + $0x860] sm:$0xff]  ;;  %2399 = vmatpush.msrb.mxu0 %v1156_v57  ;;  %2416 = vmatpush.msrb.mxu1 %v1308_v58  ;;  %v837_v56 = vld [vmem:[%s7054_s3 + $0x6a8] sm:$0xff] }
 0x1ea   :  { %v1044_v60 = vld [vmem:[%s7054_s3 + $0xd20] sm:$0xff]  ;;  %2360 = vmatpush.msra.mxu2 %v892_v59  ;;  %v677_v59 = vld [vmem:[%s7054_s3 + $0x1a8] sm:$0xff] }
 0x1eb   :  { %v1148_v62 = vld [vmem:[%s7054_s3 + $0x1060] sm:$0xff]  ;;  %2377 = vmatpush.msra.mxu3 %v1044_v60  ;;  %v829_v60 = vld [vmem:[%s7054_s3 + $0x668] sm:$0xff] }
 0x1ec   :  { %v1300_v0 = vld [vmem:[%s7054_s3 + $0x1520] sm:$0xff]  ;;  %2400 = vmatpush.msrb.mxu0 %v1148_v62  ;;  %v2063_v16 = vpop.f32.mrf.mxu3 }
 0x1ed   :  { %v884_v1 = vld [vmem:[%s7054_s3 + $0x820] sm:$0xff]  ;;  %2417 = vmatpush.msrb.mxu1 %v1300_v0  ;;  %v2064_v61 = vadd.f32 %v2063_v16, %v2044_v6  ;;  %v813_v6 = vld [vmem:[%s7054_s3 + $0x5e8] sm:$0xff] }
 0x1ee   :  { %v1036_v2 = vld [vmem:[%s7054_s3 + $0xce0] sm:$0xff]  ;;  %2361 = vmatpush.msra.mxu2 %v884_v1  ;;  %v669_v1 = vld [vmem:[%s7054_s3 + $0x168] sm:$0xff] }
 0x1ef   :  { %v1140_v4 = vld [vmem:[%s7054_s3 + $0x1020] sm:$0xff]  ;;  %2378 = vmatpush.msra.mxu3 %v1036_v2  ;;  %2362 = vmatmul.f32.vlgmr.msra.gmra.mxu2 %v4207_v13  ;;  %v2084_v22 = vadd.f32 %v2083_v26, %v2064_v61  ;;  %v821_v2 = vld [vmem:[%s7054_s3 + $0x628] sm:$0xff] }
 0x1f0   :  { %v1292_v5 = vld [vmem:[%s7054_s3 + $0x14e0] sm:$0xff]  ;;  %2401 = vmatpush.msrb.mxu0 %v1140_v4  ;;  %v637_v16 = vld [vmem:[%s7054_s3 + $0x68] sm:$0xff] }
 0x1f1   :  { %v1516_v7 = vld [vmem:[%s7054_s3 + $0x1be0] sm:$0xff]  ;;  %2418 = vmatpush.msrb.mxu1 %v1292_v5  ;;  %2402 = vmatmul.f32.vlgmr.msrb.gmra.mxu0 %v4401_v27  ;;  %v5791_v33 = vadd.f32 %v2103_v28, %v2084_v22  ;;  %v661_v5 = vld [vmem:[%s7054_s3 + $0x128] sm:$0xff] }
 0x1f2   :  { %v1028_v30 = vld [vmem:[%s7054_s3 + $0xca0] sm:$0xff]  ;;  %2426 = vmatpush.msrb.mxu2 %v1516_v7  ;;  %2466 = vmatpush.msra.mxu0 %v749_v8 }
 0x1f3   :  { %v1284_v44 = vld [vmem:[%s7054_s3 + $0x14a0] sm:$0xff]  ;;  %2379 = vmatpush.msra.mxu3 %v1028_v30  ;;  %v653_v30 = vld [vmem:[%s7054_s3 + $0xe8] sm:$0xff] }
 0x1f4   :  { %v1508_v46 = vld [vmem:[%s7054_s3 + $0x1ba0] sm:$0xff]  ;;  %2419 = vmatpush.msrb.mxu1 %v1284_v44  ;;  %2467 = vmatpush.msra.mxu0 %v741_v9  ;;  %v805_v44 = vld [vmem:[%s7054_s3 + $0x5a8] sm:$0xff] }
 0x1f5   :  { %v1020_v11 = vld [vmem:[%s7054_s3 + $0xc60] sm:$0xff]  ;;  %2427 = vmatpush.msrb.mxu2 %v1508_v46 }
 0x1f6   :  { %v1276_v51 = vld [vmem:[%s7054_s3 + $0x1460] sm:$0xff]  ;;  %2380 = vmatpush.msra.mxu3 %v1020_v11  ;;  %2468 = vmatpush.msra.mxu0 %v733_v15  ;;  %v645_v11 = vld [vmem:[%s7054_s3 + $0xa8] sm:$0xff] }
 0x1f7   :  { %v1500_v12 = vld [vmem:[%s7054_s3 + $0x1b60] sm:$0xff]  ;;  %2420 = vmatpush.msrb.mxu1 %v1276_v51  ;;  %v797_v51 = vld [vmem:[%s7054_s3 + $0x568] sm:$0xff] }
 0x1f8   :  { %v1012_v18 = vld [vmem:[%s7054_s3 + $0xc20] sm:$0xff]  ;;  %2428 = vmatpush.msrb.mxu2 %v1500_v12  ;;  %2469 = vmatpush.msra.mxu0 %v725_v23  ;;  %v1005_v23 = vld [vmem:[%s7054_s3 + $0xbe8] sm:$0xff] }
 0x1f9   :  { %v1268_v19 = vld [vmem:[%s7054_s3 + $0x1420] sm:$0xff]  ;;  %2381 = vmatpush.msra.mxu3 %v1012_v18  ;;  %v789_v18 = vld [vmem:[%s7054_s3 + $0x528] sm:$0xff] }
 0x1fa   :  { %v1492_v20 = vld [vmem:[%s7054_s3 + $0x1b20] sm:$0xff]  ;;  %2421 = vmatpush.msrb.mxu1 %v1268_v19  ;;  %2382 = vmatmul.f32.vlgmr.msra.gmra.mxu3 %v4231_v24 }
 0x1fb   :  { %v1644_v21 = vld [vmem:[%s7054_s3 + $0x1fe0] sm:$0xff]  ;;  %2422 = vmatmul.f32.vlgmr.msrb.gmra.mxu1 %v4431_v40  ;;  %2429 = vmatpush.msrb.mxu2 %v1492_v20  ;;  %v629_v20 = vld [vmem:[%s7054_s3 + $0x28] sm:$0xff] }
 0x1fc   :  { %v1484_v31 = vld [vmem:[%s7054_s3 + $0x1ae0] sm:$0xff]  ;;  %2446 = vmatpush.msrb.mxu3 %v1644_v21  ;;  %2486 = vmatpush.msra.mxu1 %v877_v25  ;;  %v781_v21 = vld [vmem:[%s7054_s3 + $0x4e8] sm:$0xff] }
 0x1fd   :  { %v1636_v32 = vld [vmem:[%s7054_s3 + $0x1fa0] sm:$0xff]  ;;  %2430 = vmatpush.msrb.mxu2 %v1484_v31  ;;  %2470 = vmatpush.msra.mxu0 %v717_v54  ;;  %v1261_v25 = vld [vmem:[%s7054_s3 + $0x13e8] sm:$0xff] }
 0x1fe   :  { %v1476_v35 = vld [vmem:[%s7054_s3 + $0x1aa0] sm:$0xff]  ;;  %2447 = vmatpush.msrb.mxu3 %v1636_v32  ;;  %2487 = vmatpush.msra.mxu1 %v869_v34  ;;  %v773_v31 = vld [vmem:[%s7054_s3 + $0x4a8] sm:$0xff] }
 0x1ff   :  { %v1628_v36 = vld [vmem:[%s7054_s3 + $0x1f60] sm:$0xff]  ;;  %2431 = vmatpush.msrb.mxu2 %v1476_v35  ;;  %2471 = vmatpush.msra.mxu0 %v709_v37  ;;  %v997_v32 = vld [vmem:[%s7054_s3 + $0xba8] sm:$0xff]  ;;  %v2950_v35 = vperm.slane %v5529_v45, 2 }
 0x200   :  { %v1468_v39 = vld [vmem:[%s7054_s3 + $0x1a60] sm:$0xff]  ;;  %2448 = vmatpush.msrb.mxu3 %v1628_v36  ;;  %2488 = vmatpush.msra.mxu1 %v861_v38  ;;  %v765_v34 = vld [vmem:[%s7054_s3 + $0x468] sm:$0xff] }
 0x201   :  { %v1620_v17 = vld [vmem:[%s7054_s3 + $0x1f20] sm:$0xff]  ;;  %2432 = vmatpush.msrb.mxu2 %v1468_v39  ;;  %2472 = vmatpush.msra.mxu0 %v701_v41  ;;  %v989_v36 = vld [vmem:[%s7054_s3 + $0xb68] sm:$0xff] }
 0x202   :  { %v1460_v43 = vld [vmem:[%s7054_s3 + $0x1a20] sm:$0xff]  ;;  %2449 = vmatpush.msrb.mxu3 %v1620_v17  ;;  %2489 = vmatpush.msra.mxu1 %v853_v42  ;;  %v1245_v37 = vld [vmem:[%s7054_s3 + $0x1368] sm:$0xff] }
 0x203   :  { %v1612_v47 = vld [vmem:[%s7054_s3 + $0x1ee0] sm:$0xff]  ;;  %2433 = vmatpush.msrb.mxu2 %v1460_v43  ;;  %2473 = vmatpush.msra.mxu0 %v693_v48  ;;  %v757_v45 = vld [vmem:[%s7054_s3 + $0x428] sm:$0xff] }
 0x204   :  { %v1452_v52 = vld [vmem:[%s7054_s3 + $0x19e0] sm:$0xff]  ;;  %2450 = vmatpush.msrb.mxu3 %v1612_v47  ;;  %2490 = vmatpush.msra.mxu1 %v845_v49  ;;  %v981_v41 = vld [vmem:[%s7054_s3 + $0xb28] sm:$0xff] }
 0x205   :  { %v1604_v53 = vld [vmem:[%s7054_s3 + $0x1ea0] sm:$0xff]  ;;  %2434 = vmatpush.msrb.mxu2 %v1452_v52  ;;  %2474 = vmatpush.msra.mxu0 %v685_v55  ;;  %v1133_v42 = vld [vmem:[%s7054_s3 + $0xfe8] sm:$0xff] }
 0x206   :  { %v1444_v57 = vld [vmem:[%s7054_s3 + $0x19a0] sm:$0xff]  ;;  %2451 = vmatpush.msrb.mxu3 %v1604_v53  ;;  %2491 = vmatpush.msra.mxu1 %v837_v56  ;;  %v1237_v47 = vld [vmem:[%s7054_s3 + $0x1328] sm:$0xff] }
 0x207   :  { %v1596_v58 = vld [vmem:[%s7054_s3 + $0x1e60] sm:$0xff]  ;;  %2435 = vmatpush.msrb.mxu2 %v1444_v57  ;;  %2475 = vmatpush.msra.mxu0 %v677_v59  ;;  %v2123_v26 = vpop.f32.mrf.mxu2  ;;  %v1389_v48 = vld [vmem:[%s7054_s3 + $0x17e8] sm:$0xff] }
 0x208   :  { %v1436_v62 = vld [vmem:[%s7054_s3 + $0x1960] sm:$0xff]  ;;  %2452 = vmatpush.msrb.mxu3 %v1596_v58  ;;  %2492 = vmatpush.msra.mxu1 %v829_v60  ;;  %v2124_v22 = vadd.f32 %v2123_v26, %v5791_v33  ;;  %v1253_v33 = vld [vmem:[%s7054_s3 + $0x13a8] sm:$0xff] }
 0x209   :  { %v1588_v0 = vld [vmem:[%s7054_s3 + $0x1e20] sm:$0xff]  ;;  %2436 = vmatpush.msrb.mxu2 %v1436_v62  ;;  %2476 = vmatpush.msra.mxu0 %v669_v1  ;;  %v973_v49 = vld [vmem:[%s7054_s3 + $0xae8] sm:$0xff] }
 0x20a   :  { %v1428_v3 = vld [vmem:[%s7054_s3 + $0x1920] sm:$0xff]  ;;  %2453 = vmatpush.msrb.mxu3 %v1588_v0  ;;  %2493 = vmatpush.msra.mxu1 %v821_v2  ;;  %v1125_v52 = vld [vmem:[%s7054_s3 + $0xfa8] sm:$0xff] }
 0x20b   :  { %v1580_v4 = vld [vmem:[%s7054_s3 + $0x1de0] sm:$0xff]  ;;  %2437 = vmatpush.msrb.mxu2 %v1428_v3  ;;  %2477 = vmatpush.msra.mxu0 %v661_v5  ;;  %v1229_v55 = vld [vmem:[%s7054_s3 + $0x12e8] sm:$0xff] }
 0x20c   :  { %v1420_v7 = vld [vmem:[%s7054_s3 + $0x18e0] sm:$0xff]  ;;  %2454 = vmatpush.msrb.mxu3 %v1580_v4  ;;  %2494 = vmatpush.msra.mxu1 %v813_v6  ;;  %v1381_v56 = vld [vmem:[%s7054_s3 + $0x17a8] sm:$0xff] }
 0x20d   :  { %v1572_v8 = vld [vmem:[%s7054_s3 + $0x1da0] sm:$0xff]  ;;  %2438 = vmatpush.msrb.mxu2 %v1420_v7  ;;  %2478 = vmatpush.msra.mxu0 %v653_v30  ;;  %v965_v57 = vld [vmem:[%s7054_s3 + $0xaa8] sm:$0xff] }
 0x20e   :  { %v1412_v46 = vld [vmem:[%s7054_s3 + $0x18a0] sm:$0xff]  ;;  %2455 = vmatpush.msrb.mxu3 %v1572_v8  ;;  %2495 = vmatpush.msra.mxu1 %v805_v44  ;;  %v2143_v38 = vpop.f32.mrf.mxu3  ;;  %v1221_v58 = vld [vmem:[%s7054_s3 + $0x12a8] sm:$0xff] }
 0x20f   :  { %v1564_v9 = vld [vmem:[%s7054_s3 + $0x1d60] sm:$0xff]  ;;  %2439 = vmatpush.msrb.mxu2 %v1412_v46  ;;  %2479 = vmatpush.msra.mxu0 %v645_v11  ;;  %v2144_v17 = vadd.f32 %v2143_v38, %v2124_v22  ;;  %v1373_v59 = vld [vmem:[%s7054_s3 + $0x1768] sm:$0xff] }
 0x210   :  { %v1404_v12 = vld [vmem:[%s7054_s3 + $0x1860] sm:$0xff]  ;;  %2456 = vmatpush.msrb.mxu3 %v1564_v9  ;;  %2496 = vmatpush.msra.mxu1 %v797_v51  ;;  %v957_v60 = vld [vmem:[%s7054_s3 + $0xa68] sm:$0xff] }
 0x211   :  { %v1556_v15 = vld [vmem:[%s7054_s3 + $0x1d20] sm:$0xff]  ;;  %2440 = vmatpush.msrb.mxu2 %v1404_v12  ;;  %2480 = vmatpush.msra.mxu0 %v637_v16  ;;  %v2966_v43 = vmul.f32 %v2950_v35, %v2144_v17  ;;  %v1109_v62 = vld [vmem:[%s7054_s3 + $0xf28] sm:$0xff]  ;;  %v750_v17 = vld [vmem:[%s7054_s3 + $0x3f0] sm:$0xff] }
 0x212   :  { %v1396_v19 = vld [vmem:[%s7054_s3 + $0x1820] sm:$0xff]  ;;  %2457 = vmatpush.msrb.mxu3 %v1556_v15  ;;  %2497 = vmatpush.msra.mxu1 %v789_v18  ;;  %v1213_v0 = vld [vmem:[%s7054_s3 + $0x1268] sm:$0xff] }
 0x213   :  { %v1548_v61 = vld [vmem:[%s7054_s3 + $0x1ce0] sm:$0xff]  ;;  %2441 = vmatpush.msrb.mxu2 %v1396_v19  ;;  %2481 = vmatpush.msra.mxu0 %v629_v20  ;;  %v5992_v53 = vadd.f32 %v5592_v10, %v2966_v43  ;;  %v1117_v10 = vld [vmem:[%s7054_s3 + $0xf68] sm:$0xff] }
 0x214   :  { %2458 = vmatpush.msrb.mxu3 %v1548_v61  ;;  %2498 = vmatpush.msra.mxu1 %v781_v21  ;;  %v1540_v28 = vld [vmem:[%s7054_s3 + $0x1ca0] sm:$0xff]  ;;  %v1365_v1 = vld [vmem:[%s7054_s3 + $0x1728] sm:$0xff] }
 0x215   :  { %2442 = vmatmul.f32.vlgmr.msrb.gmra.mxu2 %v4527_v14  ;;  %2482 = vmatmul.f32.vlgmr.msra.gmra.mxu0 %v4145_v50  ;;  %v1532_v54 = vld [vmem:[%s7054_s3 + $0x1c60] sm:$0xff]  ;;  %v949_v2 = vld [vmem:[%s7054_s3 + $0xa28] sm:$0xff] }
 0x216   :  { %2506 = vmatpush.msra.mxu2 %v1005_v23  ;;  %2546 = vmatpush.msrb.mxu0 %v1261_v25  ;;  %v1524_v39 = vld [vmem:[%s7054_s3 + $0x1c20] sm:$0xff]  ;;  %v1101_v3 = vld [vmem:[%s7054_s3 + $0xee8] sm:$0xff] }
 0x217   :  { %2459 = vmatpush.msrb.mxu3 %v1540_v28  ;;  %2499 = vmatpush.msra.mxu1 %v773_v31  ;;  %v1205_v4 = vld [vmem:[%s7054_s3 + $0x1228] sm:$0xff] }
 0x218   :  { %2507 = vmatpush.msra.mxu2 %v997_v32  ;;  %2547 = vmatpush.msrb.mxu0 %v1253_v33  ;;  %v1357_v5 = vld [vmem:[%s7054_s3 + $0x16e8] sm:$0xff] }
 0x219   :  { %2460 = vmatpush.msrb.mxu3 %v1532_v54  ;;  %2500 = vmatpush.msra.mxu1 %v765_v34  ;;  %v941_v6 = vld [vmem:[%s7054_s3 + $0x9e8] sm:$0xff] }
 0x21a   :  { %2508 = vmatpush.msra.mxu2 %v989_v36  ;;  %2548 = vmatpush.msrb.mxu0 %v1245_v37  ;;  %v1093_v7 = vld [vmem:[%s7054_s3 + $0xea8] sm:$0xff] }
 0x21b   :  { %2461 = vmatpush.msrb.mxu3 %v1524_v39  ;;  %2501 = vmatpush.msra.mxu1 %v757_v45  ;;  %v1197_v8 = vld [vmem:[%s7054_s3 + $0x11e8] sm:$0xff] }
 0x21c   :  { %2462 = vmatmul.f32.vlgmr.msrb.gmra.mxu3 %v4556_v29  ;;  %2502 = vmatmul.f32.vlgmr.msra.gmra.mxu1 %v4170_v63  ;;  %v1349_v30 = vld [vmem:[%s7054_s3 + $0x16a8] sm:$0xff] }
 0x21d   :  { %2509 = vmatpush.msra.mxu2 %v981_v41  ;;  %2526 = vmatpush.msra.mxu3 %v1133_v42  ;;  %v933_v44 = vld [vmem:[%s7054_s3 + $0x9a8] sm:$0xff] }
 0x21e   :  { %2549 = vmatpush.msrb.mxu0 %v1237_v47  ;;  %2566 = vmatpush.msrb.mxu1 %v1389_v48  ;;  %v1085_v46 = vld [vmem:[%s7054_s3 + $0xe68] sm:$0xff]  ;;  %v742_v47 = vld [vmem:[%s7054_s3 + $0x3b0] sm:$0xff] }
 0x21f   :  { %2510 = vmatpush.msra.mxu2 %v973_v49  ;;  %2527 = vmatpush.msra.mxu3 %v1125_v52  ;;  %v1189_v9 = vld [vmem:[%s7054_s3 + $0x11a8] sm:$0xff] }
 0x220   :  { %2550 = vmatpush.msrb.mxu0 %v1229_v55  ;;  %2567 = vmatpush.msrb.mxu1 %v1381_v56  ;;  %v1341_v11 = vld [vmem:[%s7054_s3 + $0x1668] sm:$0xff]  ;;  %v734_v55 = vld [vmem:[%s7054_s3 + $0x370] sm:$0xff] }
 0x221   :  { %2511 = vmatpush.msra.mxu2 %v965_v57  ;;  %2528 = vmatpush.msra.mxu3 %v1117_v10  ;;  %v925_v51 = vld [vmem:[%s7054_s3 + $0x968] sm:$0xff] }
 0x222   :  { %2551 = vmatpush.msrb.mxu0 %v1221_v58  ;;  %2568 = vmatpush.msrb.mxu1 %v1373_v59  ;;  %v1077_v12 = vld [vmem:[%s7054_s3 + $0xe28] sm:$0xff]  ;;  %v726_v59 = vld [vmem:[%s7054_s3 + $0x330] sm:$0xff] }
 0x223   :  { %2512 = vmatpush.msra.mxu2 %v957_v60  ;;  %2529 = vmatpush.msra.mxu3 %v1109_v62  ;;  %v1181_v15 = vld [vmem:[%s7054_s3 + $0x1168] sm:$0xff]  ;;  %v878_v60 = vld [vmem:[%s7054_s3 + $0x7f0] sm:$0xff] }
 0x224   :  { %2552 = vmatpush.msrb.mxu0 %v1213_v0  ;;  %2569 = vmatpush.msrb.mxu1 %v1365_v1  ;;  %v1333_v16 = vld [vmem:[%s7054_s3 + $0x1628] sm:$0xff]  ;;  %v718_v1 = vld [vmem:[%s7054_s3 + $0x2f0] sm:$0xff] }
 0x225   :  { %2513 = vmatpush.msra.mxu2 %v949_v2  ;;  %2530 = vmatpush.msra.mxu3 %v1101_v3  ;;  %v917_v18 = vld [vmem:[%s7054_s3 + $0x928] sm:$0xff]  ;;  %v870_v2 = vld [vmem:[%s7054_s3 + $0x7b0] sm:$0xff] }
 0x226   :  { %2553 = vmatpush.msrb.mxu0 %v1205_v4  ;;  %2570 = vmatpush.msrb.mxu1 %v1357_v5  ;;  %v1069_v19 = vld [vmem:[%s7054_s3 + $0xde8] sm:$0xff]  ;;  %v710_v5 = vld [vmem:[%s7054_s3 + $0x2b0] sm:$0xff] }
 0x227   :  { %2514 = vmatpush.msra.mxu2 %v941_v6  ;;  %2531 = vmatpush.msra.mxu3 %v1093_v7  ;;  %v1173_v61 = vld [vmem:[%s7054_s3 + $0x1128] sm:$0xff]  ;;  %v862_v6 = vld [vmem:[%s7054_s3 + $0x770] sm:$0xff] }
 0x228   :  { %2554 = vmatpush.msrb.mxu0 %v1197_v8  ;;  %2571 = vmatpush.msrb.mxu1 %v1349_v30  ;;  %v1325_v26 = vld [vmem:[%s7054_s3 + $0x15e8] sm:$0xff]  ;;  %v702_v30 = vld [vmem:[%s7054_s3 + $0x270] sm:$0xff] }
 0x229   :  { %2515 = vmatpush.msra.mxu2 %v933_v44  ;;  %2532 = vmatpush.msra.mxu3 %v1085_v46  ;;  %v909_v20 = vld [vmem:[%s7054_s3 + $0x8e8] sm:$0xff]  ;;  %v854_v44 = vld [vmem:[%s7054_s3 + $0x730] sm:$0xff] }
 0x22a   :  { %2555 = vmatpush.msrb.mxu0 %v1189_v9  ;;  %2572 = vmatpush.msrb.mxu1 %v1341_v11  ;;  %v1061_v21 = vld [vmem:[%s7054_s3 + $0xda8] sm:$0xff]  ;;  %v694_v11 = vld [vmem:[%s7054_s3 + $0x230] sm:$0xff] }
 0x22b   :  { %2516 = vmatpush.msra.mxu2 %v925_v51  ;;  %2533 = vmatpush.msra.mxu3 %v1077_v12  ;;  %v1165_v22 = vld [vmem:[%s7054_s3 + $0x10e8] sm:$0xff]  ;;  %v846_v51 = vld [vmem:[%s7054_s3 + $0x6f0] sm:$0xff] }
 0x22c   :  { %2556 = vmatpush.msrb.mxu0 %v1181_v15  ;;  %2573 = vmatpush.msrb.mxu1 %v1333_v16  ;;  %v1317_v23 = vld [vmem:[%s7054_s3 + $0x15a8] sm:$0xff]  ;;  %v686_v16 = vld [vmem:[%s7054_s3 + $0x1f0] sm:$0xff] }
 0x22d   :  { %2517 = vmatpush.msra.mxu2 %v917_v18  ;;  %2534 = vmatpush.msra.mxu3 %v1069_v19  ;;  %v901_v25 = vld [vmem:[%s7054_s3 + $0x8a8] sm:$0xff]  ;;  %v838_v18 = vld [vmem:[%s7054_s3 + $0x6b0] sm:$0xff] }
 0x22e   :  { %2557 = vmatpush.msrb.mxu0 %v1173_v61  ;;  %2574 = vmatpush.msrb.mxu1 %v1325_v26  ;;  %v1053_v28 = vld [vmem:[%s7054_s3 + $0xd68] sm:$0xff]  ;;  %v678_v26 = vld [vmem:[%s7054_s3 + $0x1b0] sm:$0xff] }
 0x22f   :  { %2518 = vmatpush.msra.mxu2 %v909_v20  ;;  %2535 = vmatpush.msra.mxu3 %v1061_v21  ;;  %v1157_v31 = vld [vmem:[%s7054_s3 + $0x10a8] sm:$0xff]  ;;  %v830_v20 = vld [vmem:[%s7054_s3 + $0x670] sm:$0xff] }
 0x230   :  { %v1309_v32 = vld [vmem:[%s7054_s3 + $0x1568] sm:$0xff]  ;;  %2558 = vmatpush.msrb.mxu0 %v1165_v22  ;;  %2575 = vmatpush.msrb.mxu1 %v1317_v23  ;;  %v670_v23 = vld [vmem:[%s7054_s3 + $0x170] sm:$0xff] }
 0x231   :  { %v893_v33 = vld [vmem:[%s7054_s3 + $0x868] sm:$0xff]  ;;  %2519 = vmatpush.msra.mxu2 %v901_v25  ;;  %2536 = vmatpush.msra.mxu3 %v1053_v28  ;;  %v822_v25 = vld [vmem:[%s7054_s3 + $0x630] sm:$0xff] }
 0x232   :  { %v1045_v54 = vld [vmem:[%s7054_s3 + $0xd28] sm:$0xff]  ;;  %2559 = vmatpush.msrb.mxu0 %v1157_v31  ;;  %2576 = vmatpush.msrb.mxu1 %v1309_v32  ;;  %v662_v32 = vld [vmem:[%s7054_s3 + $0x130] sm:$0xff] }
 0x233   :  { %v1149_v34 = vld [vmem:[%s7054_s3 + $0x1068] sm:$0xff]  ;;  %2520 = vmatpush.msra.mxu2 %v893_v33  ;;  %2537 = vmatpush.msra.mxu3 %v1045_v54  ;;  %v814_v33 = vld [vmem:[%s7054_s3 + $0x5f0] sm:$0xff] }
 0x234   :  { %v1301_v35 = vld [vmem:[%s7054_s3 + $0x1528] sm:$0xff]  ;;  %2560 = vmatpush.msrb.mxu0 %v1149_v34 }
 0x235   :  { %v885_v36 = vld [vmem:[%s7054_s3 + $0x828] sm:$0xff]  ;;  %2577 = vmatpush.msrb.mxu1 %v1301_v35  ;;  %v654_v35 = vld [vmem:[%s7054_s3 + $0xf0] sm:$0xff] }
 0x236   :  { %v1037_v37 = vld [vmem:[%s7054_s3 + $0xce8] sm:$0xff]  ;;  %2521 = vmatpush.msra.mxu2 %v885_v36  ;;  %v806_v36 = vld [vmem:[%s7054_s3 + $0x5b0] sm:$0xff] }
 0x237   :  { %v1141_v38 = vld [vmem:[%s7054_s3 + $0x1028] sm:$0xff]  ;;  %2538 = vmatpush.msra.mxu3 %v1037_v37  ;;  %2522 = vmatmul.f32.vlgmr.msra.gmra.mxu2 %v4207_v13 }
 0x238   :  { %v1293_v39 = vld [vmem:[%s7054_s3 + $0x14e8] sm:$0xff]  ;;  %2561 = vmatpush.msrb.mxu0 %v1141_v38 }
 0x239   :  { %v1517_v45 = vld [vmem:[%s7054_s3 + $0x1be8] sm:$0xff]  ;;  %2578 = vmatpush.msrb.mxu1 %v1293_v39  ;;  %2562 = vmatmul.f32.vlgmr.msrb.gmra.mxu0 %v4401_v27  ;;  %v646_v39 = vld [vmem:[%s7054_s3 + $0xb0] sm:$0xff] }
 0x23a   :  { %v1029_v41 = vld [vmem:[%s7054_s3 + $0xca8] sm:$0xff]  ;;  %2586 = vmatpush.msrb.mxu2 %v1517_v45  ;;  %2626 = vmatpush.msra.mxu0 %v750_v17  ;;  %v798_v45 = vld [vmem:[%s7054_s3 + $0x570] sm:$0xff] }
 0x23b   :  { %v1285_v42 = vld [vmem:[%s7054_s3 + $0x14a8] sm:$0xff]  ;;  %2539 = vmatpush.msra.mxu3 %v1029_v41 }
 0x23c   :  { %v1509_v43 = vld [vmem:[%s7054_s3 + $0x1ba8] sm:$0xff]  ;;  %2579 = vmatpush.msrb.mxu1 %v1285_v42  ;;  %2627 = vmatpush.msra.mxu0 %v742_v47  ;;  %v638_v42 = vld [vmem:[%s7054_s3 + $0x70] sm:$0xff] }
 0x23d   :  { %v1021_v48 = vld [vmem:[%s7054_s3 + $0xc68] sm:$0xff]  ;;  %2587 = vmatpush.msrb.mxu2 %v1509_v43  ;;  %v790_v43 = vld [vmem:[%s7054_s3 + $0x530] sm:$0xff] }
 0x23e   :  { %v1277_v49 = vld [vmem:[%s7054_s3 + $0x1468] sm:$0xff]  ;;  %2540 = vmatpush.msra.mxu3 %v1021_v48  ;;  %2628 = vmatpush.msra.mxu0 %v734_v55  ;;  %v1006_v55 = vld [vmem:[%s7054_s3 + $0xbf0] sm:$0xff] }
 0x23f   :  { %v1501_v52 = vld [vmem:[%s7054_s3 + $0x1b68] sm:$0xff]  ;;  %2580 = vmatpush.msrb.mxu1 %v1277_v49  ;;  %v630_v49 = vld [vmem:[%s7054_s3 + $0x30] sm:$0xff] }
 0x240   :  { %v1013_v56 = vld [vmem:[%s7054_s3 + $0xc28] sm:$0xff]  ;;  %2588 = vmatpush.msrb.mxu2 %v1501_v52  ;;  %2629 = vmatpush.msra.mxu0 %v726_v59  ;;  %v782_v52 = vld [vmem:[%s7054_s3 + $0x4f0] sm:$0xff] }
 0x241   :  { %v1269_v57 = vld [vmem:[%s7054_s3 + $0x1428] sm:$0xff]  ;;  %2541 = vmatpush.msra.mxu3 %v1013_v56  ;;  %v1262_v56 = vld [vmem:[%s7054_s3 + $0x13f0] sm:$0xff] }
 0x242   :  { %v1493_v10 = vld [vmem:[%s7054_s3 + $0x1b28] sm:$0xff]  ;;  %2581 = vmatpush.msrb.mxu1 %v1269_v57  ;;  %2542 = vmatmul.f32.vlgmr.msra.gmra.mxu3 %v4231_v24  ;;  %v1254_v59 = vld [vmem:[%s7054_s3 + $0x13b0] sm:$0xff] }
 0x243   :  { %v1645_v58 = vld [vmem:[%s7054_s3 + $0x1fe8] sm:$0xff]  ;;  %2582 = vmatmul.f32.vlgmr.msrb.gmra.mxu1 %v4431_v40  ;;  %2589 = vmatpush.msrb.mxu2 %v1493_v10  ;;  %v774_v10 = vld [vmem:[%s7054_s3 + $0x4b0] sm:$0xff] }
 0x244   :  { %v1485_v62 = vld [vmem:[%s7054_s3 + $0x1ae8] sm:$0xff]  ;;  %2606 = vmatpush.msrb.mxu3 %v1645_v58  ;;  %2646 = vmatpush.msra.mxu1 %v878_v60  ;;  %v998_v58 = vld [vmem:[%s7054_s3 + $0xbb0] sm:$0xff] }
 0x245   :  { %v1637_v0 = vld [vmem:[%s7054_s3 + $0x1fa8] sm:$0xff]  ;;  %2590 = vmatpush.msrb.mxu2 %v1485_v62  ;;  %2630 = vmatpush.msra.mxu0 %v718_v1  ;;  %v766_v62 = vld [vmem:[%s7054_s3 + $0x470] sm:$0xff] }
 0x246   :  { %v1477_v3 = vld [vmem:[%s7054_s3 + $0x1aa8] sm:$0xff]  ;;  %2607 = vmatpush.msrb.mxu3 %v1637_v0  ;;  %2647 = vmatpush.msra.mxu1 %v870_v2  ;;  %v990_v0 = vld [vmem:[%s7054_s3 + $0xb70] sm:$0xff] }
 0x247   :  { %v1629_v4 = vld [vmem:[%s7054_s3 + $0x1f68] sm:$0xff]  ;;  %2591 = vmatpush.msrb.mxu2 %v1477_v3  ;;  %2631 = vmatpush.msra.mxu0 %v710_v5  ;;  %v1246_v1 = vld [vmem:[%s7054_s3 + $0x1370] sm:$0xff] }
 0x248   :  { %v1469_v7 = vld [vmem:[%s7054_s3 + $0x1a68] sm:$0xff]  ;;  %2608 = vmatpush.msrb.mxu3 %v1629_v4  ;;  %2648 = vmatpush.msra.mxu1 %v862_v6  ;;  %v758_v3 = vld [vmem:[%s7054_s3 + $0x430] sm:$0xff] }
 0x249   :  { %v1621_v8 = vld [vmem:[%s7054_s3 + $0x1f28] sm:$0xff]  ;;  %2592 = vmatpush.msrb.mxu2 %v1469_v7  ;;  %2632 = vmatpush.msra.mxu0 %v702_v30  ;;  %v982_v4 = vld [vmem:[%s7054_s3 + $0xb30] sm:$0xff] }
 0x24a   :  { %v1461_v46 = vld [vmem:[%s7054_s3 + $0x1a28] sm:$0xff]  ;;  %2609 = vmatpush.msrb.mxu3 %v1621_v8  ;;  %2649 = vmatpush.msra.mxu1 %v854_v44  ;;  %v1134_v5 = vld [vmem:[%s7054_s3 + $0xff0] sm:$0xff] }
 0x24b   :  { %v1613_v9 = vld [vmem:[%s7054_s3 + $0x1ee8] sm:$0xff]  ;;  %2593 = vmatpush.msrb.mxu2 %v1461_v46  ;;  %2633 = vmatpush.msra.mxu0 %v694_v11  ;;  %v1238_v6 = vld [vmem:[%s7054_s3 + $0x1330] sm:$0xff] }
 0x24c   :  { %v1453_v12 = vld [vmem:[%s7054_s3 + $0x19e8] sm:$0xff]  ;;  %2610 = vmatpush.msrb.mxu3 %v1613_v9  ;;  %2650 = vmatpush.msra.mxu1 %v846_v51  ;;  %v1390_v7 = vld [vmem:[%s7054_s3 + $0x17f0] sm:$0xff] }
 0x24d   :  { %v1605_v15 = vld [vmem:[%s7054_s3 + $0x1ea8] sm:$0xff]  ;;  %2594 = vmatpush.msrb.mxu2 %v1453_v12  ;;  %2634 = vmatpush.msra.mxu0 %v686_v16  ;;  %v974_v8 = vld [vmem:[%s7054_s3 + $0xaf0] sm:$0xff] }
 0x24e   :  { %v1445_v19 = vld [vmem:[%s7054_s3 + $0x19a8] sm:$0xff]  ;;  %2611 = vmatpush.msrb.mxu3 %v1605_v15  ;;  %2651 = vmatpush.msra.mxu1 %v838_v18  ;;  %v1126_v30 = vld [vmem:[%s7054_s3 + $0xfb0] sm:$0xff] }
 0x24f   :  { %v1597_v61 = vld [vmem:[%s7054_s3 + $0x1e68] sm:$0xff]  ;;  %2595 = vmatpush.msrb.mxu2 %v1445_v19  ;;  %2635 = vmatpush.msra.mxu0 %v678_v26  ;;  %v1230_v44 = vld [vmem:[%s7054_s3 + $0x12f0] sm:$0xff] }
 0x250   :  { %v1437_v21 = vld [vmem:[%s7054_s3 + $0x1968] sm:$0xff]  ;;  %2612 = vmatpush.msrb.mxu3 %v1597_v61  ;;  %2652 = vmatpush.msra.mxu1 %v830_v20  ;;  %v1382_v46 = vld [vmem:[%s7054_s3 + $0x17b0] sm:$0xff] }
 0x251   :  { %v1589_v22 = vld [vmem:[%s7054_s3 + $0x1e28] sm:$0xff]  ;;  %2596 = vmatpush.msrb.mxu2 %v1437_v21  ;;  %2636 = vmatpush.msra.mxu0 %v670_v23  ;;  %v966_v9 = vld [vmem:[%s7054_s3 + $0xab0] sm:$0xff] }
 0x252   :  { %v1429_v28 = vld [vmem:[%s7054_s3 + $0x1928] sm:$0xff]  ;;  %2613 = vmatpush.msrb.mxu3 %v1589_v22  ;;  %2653 = vmatpush.msra.mxu1 %v822_v25  ;;  %v1118_v11 = vld [vmem:[%s7054_s3 + $0xf70] sm:$0xff] }
 0x253   :  { %v1581_v31 = vld [vmem:[%s7054_s3 + $0x1de8] sm:$0xff]  ;;  %2597 = vmatpush.msrb.mxu2 %v1429_v28  ;;  %2637 = vmatpush.msra.mxu0 %v662_v32  ;;  %v1222_v51 = vld [vmem:[%s7054_s3 + $0x12b0] sm:$0xff] }
 0x254   :  { %v1421_v54 = vld [vmem:[%s7054_s3 + $0x18e8] sm:$0xff]  ;;  %2614 = vmatpush.msrb.mxu3 %v1581_v31  ;;  %2654 = vmatpush.msra.mxu1 %v814_v33  ;;  %v1374_v12 = vld [vmem:[%s7054_s3 + $0x1770] sm:$0xff] }
 0x255   :  { %v1573_v34 = vld [vmem:[%s7054_s3 + $0x1da8] sm:$0xff]  ;;  %2598 = vmatpush.msrb.mxu2 %v1421_v54  ;;  %2638 = vmatpush.msra.mxu0 %v654_v35  ;;  %v958_v15 = vld [vmem:[%s7054_s3 + $0xa70] sm:$0xff] }
 0x256   :  { %v1413_v37 = vld [vmem:[%s7054_s3 + $0x18a8] sm:$0xff]  ;;  %2615 = vmatpush.msrb.mxu3 %v1573_v34  ;;  %2655 = vmatpush.msra.mxu1 %v806_v36  ;;  %v1110_v16 = vld [vmem:[%s7054_s3 + $0xf30] sm:$0xff] }
 0x257   :  { %v1565_v38 = vld [vmem:[%s7054_s3 + $0x1d68] sm:$0xff]  ;;  %2599 = vmatpush.msrb.mxu2 %v1413_v37  ;;  %2639 = vmatpush.msra.mxu0 %v646_v39  ;;  %v1214_v18 = vld [vmem:[%s7054_s3 + $0x1270] sm:$0xff] }
 0x258   :  { %v1405_v17 = vld [vmem:[%s7054_s3 + $0x1868] sm:$0xff]  ;;  %2616 = vmatpush.msrb.mxu3 %v1565_v38  ;;  %2656 = vmatpush.msra.mxu1 %v798_v45  ;;  %v1366_v19 = vld [vmem:[%s7054_s3 + $0x1730] sm:$0xff] }
 0x259   :  { %v1557_v41 = vld [vmem:[%s7054_s3 + $0x1d28] sm:$0xff]  ;;  %2600 = vmatpush.msrb.mxu2 %v1405_v17  ;;  %2640 = vmatpush.msra.mxu0 %v638_v42  ;;  %v950_v61 = vld [vmem:[%s7054_s3 + $0xa30] sm:$0xff] }
 0x25a   :  { %v1397_v47 = vld [vmem:[%s7054_s3 + $0x1828] sm:$0xff]  ;;  %2617 = vmatpush.msrb.mxu3 %v1557_v41  ;;  %2657 = vmatpush.msra.mxu1 %v790_v43  ;;  %v1102_v26 = vld [vmem:[%s7054_s3 + $0xef0] sm:$0xff] }
 0x25b   :  { %v1549_v48 = vld [vmem:[%s7054_s3 + $0x1ce8] sm:$0xff]  ;;  %2601 = vmatpush.msrb.mxu2 %v1397_v47  ;;  %2641 = vmatpush.msra.mxu0 %v630_v49  ;;  %v1206_v20 = vld [vmem:[%s7054_s3 + $0x1230] sm:$0xff] }
 0x25c   :  { %2618 = vmatpush.msrb.mxu3 %v1549_v48  ;;  %2658 = vmatpush.msra.mxu1 %v782_v52  ;;  %v1541_v57 = vld [vmem:[%s7054_s3 + $0x1ca8] sm:$0xff]  ;;  %v1358_v21 = vld [vmem:[%s7054_s3 + $0x16f0] sm:$0xff] }
 0x25d   :  { %2602 = vmatmul.f32.vlgmr.msrb.gmra.mxu2 %v4527_v14  ;;  %2642 = vmatmul.f32.vlgmr.msra.gmra.mxu0 %v4145_v50  ;;  %v1533_v60 = vld [vmem:[%s7054_s3 + $0x1c68] sm:$0xff]  ;;  %v942_v22 = vld [vmem:[%s7054_s3 + $0x9f0] sm:$0xff] }
 0x25e   :  { %2666 = vmatpush.msra.mxu2 %v1006_v55  ;;  %2706 = vmatpush.msrb.mxu0 %v1262_v56  ;;  %v1525_v2 = vld [vmem:[%s7054_s3 + $0x1c28] sm:$0xff]  ;;  %v1094_v23 = vld [vmem:[%s7054_s3 + $0xeb0] sm:$0xff] }
 0x25f   :  { %2619 = vmatpush.msrb.mxu3 %v1541_v57  ;;  %2659 = vmatpush.msra.mxu1 %v774_v10  ;;  %v1198_v25 = vld [vmem:[%s7054_s3 + $0x11f0] sm:$0xff] }
 0x260   :  { %2667 = vmatpush.msra.mxu2 %v998_v58  ;;  %2707 = vmatpush.msrb.mxu0 %v1254_v59  ;;  %v1350_v28 = vld [vmem:[%s7054_s3 + $0x16b0] sm:$0xff] }
 0x261   :  { %2620 = vmatpush.msrb.mxu3 %v1533_v60  ;;  %2660 = vmatpush.msra.mxu1 %v766_v62  ;;  %v934_v31 = vld [vmem:[%s7054_s3 + $0x9b0] sm:$0xff] }
 0x262   :  { %2668 = vmatpush.msra.mxu2 %v990_v0  ;;  %2708 = vmatpush.msrb.mxu0 %v1246_v1  ;;  %v1086_v32 = vld [vmem:[%s7054_s3 + $0xe70] sm:$0xff] }
 0x263   :  { %2621 = vmatpush.msrb.mxu3 %v1525_v2  ;;  %2661 = vmatpush.msra.mxu1 %v758_v3  ;;  %v1190_v33 = vld [vmem:[%s7054_s3 + $0x11b0] sm:$0xff]  ;;  %v751_v2 = vld [vmem:[%s7054_s3 + $0x3f8] sm:$0xff] }
 0x264   :  { %2622 = vmatmul.f32.vlgmr.msrb.gmra.mxu3 %v4556_v29  ;;  %2662 = vmatmul.f32.vlgmr.msra.gmra.mxu1 %v4170_v63  ;;  %v1342_v54 = vld [vmem:[%s7054_s3 + $0x1670] sm:$0xff] }
 0x265   :  { %2669 = vmatpush.msra.mxu2 %v982_v4  ;;  %2686 = vmatpush.msra.mxu3 %v1134_v5  ;;  %v926_v34 = vld [vmem:[%s7054_s3 + $0x970] sm:$0xff] }
 0x266   :  { %2709 = vmatpush.msrb.mxu0 %v1238_v6  ;;  %2726 = vmatpush.msrb.mxu1 %v1390_v7  ;;  %v1078_v35 = vld [vmem:[%s7054_s3 + $0xe30] sm:$0xff]  ;;  %v743_v6 = vld [vmem:[%s7054_s3 + $0x3b8] sm:$0xff] }
 0x267   :  { %2670 = vmatpush.msra.mxu2 %v974_v8  ;;  %2687 = vmatpush.msra.mxu3 %v1126_v30  ;;  %v1182_v36 = vld [vmem:[%s7054_s3 + $0x1170] sm:$0xff] }
 0x268   :  { %2710 = vmatpush.msrb.mxu0 %v1230_v44  ;;  %2727 = vmatpush.msrb.mxu1 %v1382_v46  ;;  %v1334_v37 = vld [vmem:[%s7054_s3 + $0x1630] sm:$0xff]  ;;  %v735_v44 = vld [vmem:[%s7054_s3 + $0x378] sm:$0xff] }
 0x269   :  { %2671 = vmatpush.msra.mxu2 %v966_v9  ;;  %2688 = vmatpush.msra.mxu3 %v1118_v11  ;;  %v918_v38 = vld [vmem:[%s7054_s3 + $0x930] sm:$0xff] }
 0x26a   :  { %2711 = vmatpush.msrb.mxu0 %v1222_v51  ;;  %2728 = vmatpush.msrb.mxu1 %v1374_v12  ;;  %v1070_v39 = vld [vmem:[%s7054_s3 + $0xdf0] sm:$0xff]  ;;  %v727_v12 = vld [vmem:[%s7054_s3 + $0x338] sm:$0xff] }
 0x26b   :  { %2672 = vmatpush.msra.mxu2 %v958_v15  ;;  %2689 = vmatpush.msra.mxu3 %v1110_v16  ;;  %v1174_v45 = vld [vmem:[%s7054_s3 + $0x1130] sm:$0xff]  ;;  %v879_v15 = vld [vmem:[%s7054_s3 + $0x7f8] sm:$0xff] }
 0x26c   :  { %2712 = vmatpush.msrb.mxu0 %v1214_v18  ;;  %2729 = vmatpush.msrb.mxu1 %v1366_v19  ;;  %v1326_v17 = vld [vmem:[%s7054_s3 + $0x15f0] sm:$0xff]  ;;  %v719_v19 = vld [vmem:[%s7054_s3 + $0x2f8] sm:$0xff] }
 0x26d   :  { %2673 = vmatpush.msra.mxu2 %v950_v61  ;;  %2690 = vmatpush.msra.mxu3 %v1102_v26  ;;  %v910_v41 = vld [vmem:[%s7054_s3 + $0x8f0] sm:$0xff]  ;;  %v871_v61 = vld [vmem:[%s7054_s3 + $0x7b8] sm:$0xff] }
 0x26e   :  { %2713 = vmatpush.msrb.mxu0 %v1206_v20  ;;  %2730 = vmatpush.msrb.mxu1 %v1358_v21  ;;  %v1062_v42 = vld [vmem:[%s7054_s3 + $0xdb0] sm:$0xff]  ;;  %v711_v21 = vld [vmem:[%s7054_s3 + $0x2b8] sm:$0xff] }
 0x26f   :  { %2674 = vmatpush.msra.mxu2 %v942_v22  ;;  %2691 = vmatpush.msra.mxu3 %v1094_v23  ;;  %v1166_v43 = vld [vmem:[%s7054_s3 + $0x10f0] sm:$0xff]  ;;  %v863_v22 = vld [vmem:[%s7054_s3 + $0x778] sm:$0xff] }
 0x270   :  { %2714 = vmatpush.msrb.mxu0 %v1198_v25  ;;  %2731 = vmatpush.msrb.mxu1 %v1350_v28  ;;  %v1318_v47 = vld [vmem:[%s7054_s3 + $0x15b0] sm:$0xff]  ;;  %v703_v28 = vld [vmem:[%s7054_s3 + $0x278] sm:$0xff] }
 0x271   :  { %2675 = vmatpush.msra.mxu2 %v934_v31  ;;  %2692 = vmatpush.msra.mxu3 %v1086_v32  ;;  %v902_v48 = vld [vmem:[%s7054_s3 + $0x8b0] sm:$0xff]  ;;  %v855_v31 = vld [vmem:[%s7054_s3 + $0x738] sm:$0xff] }
 0x272   :  { %2715 = vmatpush.msrb.mxu0 %v1190_v33  ;;  %2732 = vmatpush.msrb.mxu1 %v1342_v54  ;;  %v1054_v49 = vld [vmem:[%s7054_s3 + $0xd70] sm:$0xff]  ;;  %v695_v54 = vld [vmem:[%s7054_s3 + $0x238] sm:$0xff] }
 0x273   :  { %2676 = vmatpush.msra.mxu2 %v926_v34  ;;  %2693 = vmatpush.msra.mxu3 %v1078_v35  ;;  %v1158_v52 = vld [vmem:[%s7054_s3 + $0x10b0] sm:$0xff]  ;;  %v847_v34 = vld [vmem:[%s7054_s3 + $0x6f8] sm:$0xff] }
 0x274   :  { %2716 = vmatpush.msrb.mxu0 %v1182_v36  ;;  %2733 = vmatpush.msrb.mxu1 %v1334_v37  ;;  %v1310_v55 = vld [vmem:[%s7054_s3 + $0x1570] sm:$0xff]  ;;  %v687_v37 = vld [vmem:[%s7054_s3 + $0x1f8] sm:$0xff] }
 0x275   :  { %2677 = vmatpush.msra.mxu2 %v918_v38  ;;  %2694 = vmatpush.msra.mxu3 %v1070_v39  ;;  %v894_v56 = vld [vmem:[%s7054_s3 + $0x870] sm:$0xff]  ;;  %v839_v38 = vld [vmem:[%s7054_s3 + $0x6b8] sm:$0xff] }
 0x276   :  { %2717 = vmatpush.msrb.mxu0 %v1174_v45  ;;  %2734 = vmatpush.msrb.mxu1 %v1326_v17  ;;  %v1046_v57 = vld [vmem:[%s7054_s3 + $0xd30] sm:$0xff]  ;;  %v679_v17 = vld [vmem:[%s7054_s3 + $0x1b8] sm:$0xff] }
 0x277   :  { %2678 = vmatpush.msra.mxu2 %v910_v41  ;;  %2695 = vmatpush.msra.mxu3 %v1062_v42  ;;  %v1150_v10 = vld [vmem:[%s7054_s3 + $0x1070] sm:$0xff]  ;;  %v831_v41 = vld [vmem:[%s7054_s3 + $0x678] sm:$0xff] }
 0x278   :  { %2718 = vmatpush.msrb.mxu0 %v1166_v43  ;;  %2735 = vmatpush.msrb.mxu1 %v1318_v47  ;;  %v1302_v58 = vld [vmem:[%s7054_s3 + $0x1530] sm:$0xff]  ;;  %v671_v47 = vld [vmem:[%s7054_s3 + $0x178] sm:$0xff] }
 0x279   :  { %2679 = vmatpush.msra.mxu2 %v902_v48  ;;  %2696 = vmatpush.msra.mxu3 %v1054_v49  ;;  %v886_v59 = vld [vmem:[%s7054_s3 + $0x830] sm:$0xff]  ;;  %v823_v48 = vld [vmem:[%s7054_s3 + $0x638] sm:$0xff] }
 0x27a   :  { %2719 = vmatpush.msrb.mxu0 %v1158_v52  ;;  %2736 = vmatpush.msrb.mxu1 %v1310_v55  ;;  %v1038_v60 = vld [vmem:[%s7054_s3 + $0xcf0] sm:$0xff]  ;;  %v663_v55 = vld [vmem:[%s7054_s3 + $0x138] sm:$0xff] }
 0x27b   :  { %2680 = vmatpush.msra.mxu2 %v894_v56  ;;  %2697 = vmatpush.msra.mxu3 %v1046_v57  ;;  %v1142_v62 = vld [vmem:[%s7054_s3 + $0x1030] sm:$0xff]  ;;  %v815_v56 = vld [vmem:[%s7054_s3 + $0x5f8] sm:$0xff] }
 0x27c   :  { %v1294_v0 = vld [vmem:[%s7054_s3 + $0x14f0] sm:$0xff]  ;;  %2720 = vmatpush.msrb.mxu0 %v1150_v10  ;;  %2737 = vmatpush.msrb.mxu1 %v1302_v58  ;;  %v655_v58 = vld [vmem:[%s7054_s3 + $0xf8] sm:$0xff] }
 0x27d   :  { %2681 = vmatpush.msra.mxu2 %v886_v59  ;;  %2698 = vmatpush.msra.mxu3 %v1038_v60  ;;  %v1518_v1 = vld [vmem:[%s7054_s3 + $0x1bf0] sm:$0xff]  ;;  %v807_v59 = vld [vmem:[%s7054_s3 + $0x5b8] sm:$0xff] }
 0x27e   :  { %2721 = vmatpush.msrb.mxu0 %v1142_v62  ;;  %2738 = vmatpush.msrb.mxu1 %v1294_v0  ;;  %v1030_v3 = vld [vmem:[%s7054_s3 + $0xcb0] sm:$0xff]  ;;  %v647_v0 = vld [vmem:[%s7054_s3 + $0xb8] sm:$0xff] }
 0x27f   :  { %v1286_v4 = vld [vmem:[%s7054_s3 + $0x14b0] sm:$0xff]  ;;  %2682 = vmatmul.f32.vlgmr.msra.gmra.mxu2 %v4207_v13  ;;  %2722 = vmatmul.f32.vlgmr.msrb.gmra.mxu0 %v4401_v27 }
 0x280   :  { %v1510_v5 = vld [vmem:[%s7054_s3 + $0x1bb0] sm:$0xff]  ;;  %2746 = vmatpush.msrb.mxu2 %v1518_v1  ;;  %2786 = vmatpush.msra.mxu0 %v751_v2  ;;  %v799_v1 = vld [vmem:[%s7054_s3 + $0x578] sm:$0xff] }
 0x281   :  { %v1022_v7 = vld [vmem:[%s7054_s3 + $0xc70] sm:$0xff]  ;;  %2699 = vmatpush.msra.mxu3 %v1030_v3  ;;  %2739 = vmatpush.msrb.mxu1 %v1286_v4  ;;  %v639_v4 = vld [vmem:[%s7054_s3 + $0x78] sm:$0xff] }
 0x282   :  { %v1278_v8 = vld [vmem:[%s7054_s3 + $0x1470] sm:$0xff]  ;;  %2747 = vmatpush.msrb.mxu2 %v1510_v5  ;;  %2787 = vmatpush.msra.mxu0 %v743_v6  ;;  %v791_v5 = vld [vmem:[%s7054_s3 + $0x538] sm:$0xff] }
 0x283   :  { %v1502_v30 = vld [vmem:[%s7054_s3 + $0x1b70] sm:$0xff]  ;;  %2700 = vmatpush.msra.mxu3 %v1022_v7  ;;  %2740 = vmatpush.msrb.mxu1 %v1278_v8  ;;  %v631_v8 = vld [vmem:[%s7054_s3 + $0x38] sm:$0xff] }
 0x284   :  { %v1014_v46 = vld [vmem:[%s7054_s3 + $0xc30] sm:$0xff]  ;;  %2748 = vmatpush.msrb.mxu2 %v1502_v30  ;;  %2788 = vmatpush.msra.mxu0 %v735_v44  ;;  %v783_v30 = vld [vmem:[%s7054_s3 + $0x4f8] sm:$0xff] }
 0x285   :  { %v1270_v9 = vld [vmem:[%s7054_s3 + $0x1430] sm:$0xff]  ;;  %2701 = vmatpush.msra.mxu3 %v1014_v46  ;;  %v1007_v44 = vld [vmem:[%s7054_s3 + $0xbf8] sm:$0xff] }
 0x286   :  { %v1494_v11 = vld [vmem:[%s7054_s3 + $0x1b30] sm:$0xff]  ;;  %2741 = vmatpush.msrb.mxu1 %v1270_v9  ;;  %2702 = vmatmul.f32.vlgmr.msra.gmra.mxu3 %v4231_v24  ;;  %v1263_v46 = vld [vmem:[%s7054_s3 + $0x13f8] sm:$0xff] }
 0x287   :  { %v1646_v51 = vld [vmem:[%s7054_s3 + $0x1ff0] sm:$0xff]  ;;  %2742 = vmatmul.f32.vlgmr.msrb.gmra.mxu1 %v4431_v40  ;;  %2749 = vmatpush.msrb.mxu2 %v1494_v11  ;;  %v775_v11 = vld [vmem:[%s7054_s3 + $0x4b8] sm:$0xff] }
 0x288   :  { %v1486_v16 = vld [vmem:[%s7054_s3 + $0x1af0] sm:$0xff]  ;;  %2766 = vmatpush.msrb.mxu3 %v1646_v51  ;;  %2789 = vmatpush.msra.mxu0 %v727_v12  ;;  %v999_v51 = vld [vmem:[%s7054_s3 + $0xbb8] sm:$0xff] }
 0x289   :  { %v1638_v18 = vld [vmem:[%s7054_s3 + $0x1fb0] sm:$0xff]  ;;  %2806 = vmatpush.msra.mxu1 %v879_v15  ;;  %2750 = vmatpush.msrb.mxu2 %v1486_v16  ;;  %v1255_v12 = vld [vmem:[%s7054_s3 + $0x13b8] sm:$0xff] }
 0x28a   :  { %v1478_v26 = vld [vmem:[%s7054_s3 + $0x1ab0] sm:$0xff]  ;;  %2767 = vmatpush.msrb.mxu3 %v1638_v18  ;;  %2790 = vmatpush.msra.mxu0 %v719_v19  ;;  %v767_v16 = vld [vmem:[%s7054_s3 + $0x478] sm:$0xff] }
 0x28b   :  { %v1630_v20 = vld [vmem:[%s7054_s3 + $0x1f70] sm:$0xff]  ;;  %2807 = vmatpush.msra.mxu1 %v871_v61  ;;  %2751 = vmatpush.msrb.mxu2 %v1478_v26  ;;  %v1247_v18 = vld [vmem:[%s7054_s3 + $0x1378] sm:$0xff] }
 0x28c   :  { %v1470_v23 = vld [vmem:[%s7054_s3 + $0x1a70] sm:$0xff]  ;;  %2768 = vmatpush.msrb.mxu3 %v1630_v20  ;;  %2791 = vmatpush.msra.mxu0 %v711_v21  ;;  %v759_v61 = vld [vmem:[%s7054_s3 + $0x438] sm:$0xff] }
 0x28d   :  { %v1622_v25 = vld [vmem:[%s7054_s3 + $0x1f30] sm:$0xff]  ;;  %2808 = vmatpush.msra.mxu1 %v863_v22  ;;  %2752 = vmatpush.msrb.mxu2 %v1470_v23  ;;  %v983_v26 = vld [vmem:[%s7054_s3 + $0xb38] sm:$0xff] }
 0x28e   :  { %v1462_v32 = vld [vmem:[%s7054_s3 + $0x1a30] sm:$0xff]  ;;  %2769 = vmatpush.msrb.mxu3 %v1622_v25  ;;  %2792 = vmatpush.msra.mxu0 %v703_v28  ;;  %v1135_v20 = vld [vmem:[%s7054_s3 + $0xff8] sm:$0xff] }
 0x28f   :  { %v1614_v33 = vld [vmem:[%s7054_s3 + $0x1ef0] sm:$0xff]  ;;  %2809 = vmatpush.msra.mxu1 %v855_v31  ;;  %2753 = vmatpush.msrb.mxu2 %v1462_v32  ;;  %v1239_v21 = vld [vmem:[%s7054_s3 + $0x1338] sm:$0xff] }
 0x290   :  { %v1454_v35 = vld [vmem:[%s7054_s3 + $0x19f0] sm:$0xff]  ;;  %2770 = vmatpush.msrb.mxu3 %v1614_v33  ;;  %2793 = vmatpush.msra.mxu0 %v695_v54  ;;  %v1391_v22 = vld [vmem:[%s7054_s3 + $0x17f8] sm:$0xff] }
 0x291   :  { %v1606_v36 = vld [vmem:[%s7054_s3 + $0x1eb0] sm:$0xff]  ;;  %2810 = vmatpush.msra.mxu1 %v847_v34  ;;  %2754 = vmatpush.msrb.mxu2 %v1454_v35  ;;  %v975_v23 = vld [vmem:[%s7054_s3 + $0xaf8] sm:$0xff] }
 0x292   :  { %v1446_v39 = vld [vmem:[%s7054_s3 + $0x19b0] sm:$0xff]  ;;  %2771 = vmatpush.msrb.mxu3 %v1606_v36  ;;  %2794 = vmatpush.msra.mxu0 %v687_v37  ;;  %v1127_v25 = vld [vmem:[%s7054_s3 + $0xfb8] sm:$0xff] }
 0x293   :  { %v1598_v45 = vld [vmem:[%s7054_s3 + $0x1e70] sm:$0xff]  ;;  %2811 = vmatpush.msra.mxu1 %v839_v38  ;;  %2755 = vmatpush.msrb.mxu2 %v1446_v39  ;;  %v1231_v28 = vld [vmem:[%s7054_s3 + $0x12f8] sm:$0xff] }
 0x294   :  { %v1438_v42 = vld [vmem:[%s7054_s3 + $0x1970] sm:$0xff]  ;;  %2772 = vmatpush.msrb.mxu3 %v1598_v45  ;;  %2795 = vmatpush.msra.mxu0 %v679_v17  ;;  %v1383_v31 = vld [vmem:[%s7054_s3 + $0x17b8] sm:$0xff] }
 0x295   :  { %v1590_v43 = vld [vmem:[%s7054_s3 + $0x1e30] sm:$0xff]  ;;  %2812 = vmatpush.msra.mxu1 %v831_v41  ;;  %2756 = vmatpush.msrb.mxu2 %v1438_v42  ;;  %v1119_v32 = vld [vmem:[%s7054_s3 + $0xf78] sm:$0xff] }
 0x296   :  { %v1430_v49 = vld [vmem:[%s7054_s3 + $0x1930] sm:$0xff]  ;;  %2773 = vmatpush.msrb.mxu3 %v1590_v43  ;;  %2796 = vmatpush.msra.mxu0 %v671_v47  ;;  %v1223_v33 = vld [vmem:[%s7054_s3 + $0x12b8] sm:$0xff] }
 0x297   :  { %v1582_v52 = vld [vmem:[%s7054_s3 + $0x1df0] sm:$0xff]  ;;  %2813 = vmatpush.msra.mxu1 %v823_v48  ;;  %2757 = vmatpush.msrb.mxu2 %v1430_v49  ;;  %v1375_v54 = vld [vmem:[%s7054_s3 + $0x1778] sm:$0xff] }
 0x298   :  { %v1422_v57 = vld [vmem:[%s7054_s3 + $0x18f0] sm:$0xff]  ;;  %2774 = vmatpush.msrb.mxu3 %v1582_v52  ;;  %2797 = vmatpush.msra.mxu0 %v663_v55  ;;  %v959_v34 = vld [vmem:[%s7054_s3 + $0xa78] sm:$0xff] }
 0x299   :  { %v1574_v10 = vld [vmem:[%s7054_s3 + $0x1db0] sm:$0xff]  ;;  %2814 = vmatpush.msra.mxu1 %v815_v56  ;;  %2758 = vmatpush.msrb.mxu2 %v1422_v57  ;;  %v1111_v35 = vld [vmem:[%s7054_s3 + $0xf38] sm:$0xff] }
 0x29a   :  { %v1414_v60 = vld [vmem:[%s7054_s3 + $0x18b0] sm:$0xff]  ;;  %2775 = vmatpush.msrb.mxu3 %v1574_v10  ;;  %2798 = vmatpush.msra.mxu0 %v655_v58  ;;  %v1215_v36 = vld [vmem:[%s7054_s3 + $0x1278] sm:$0xff] }
 0x29b   :  { %v1566_v62 = vld [vmem:[%s7054_s3 + $0x1d70] sm:$0xff]  ;;  %2815 = vmatpush.msra.mxu1 %v807_v59  ;;  %2759 = vmatpush.msrb.mxu2 %v1414_v60  ;;  %v1367_v37 = vld [vmem:[%s7054_s3 + $0x1738] sm:$0xff] }
 0x29c   :  { %v1406_v2 = vld [vmem:[%s7054_s3 + $0x1870] sm:$0xff]  ;;  %2776 = vmatpush.msrb.mxu3 %v1566_v62  ;;  %2799 = vmatpush.msra.mxu0 %v647_v0  ;;  %v951_v38 = vld [vmem:[%s7054_s3 + $0xa38] sm:$0xff] }
 0x29d   :  { %v1558_v3 = vld [vmem:[%s7054_s3 + $0x1d30] sm:$0xff]  ;;  %2816 = vmatpush.msra.mxu1 %v799_v1  ;;  %2760 = vmatpush.msrb.mxu2 %v1406_v2  ;;  %v1103_v39 = vld [vmem:[%s7054_s3 + $0xef8] sm:$0xff] }
 0x29e   :  { %v1398_v6 = vld [vmem:[%s7054_s3 + $0x1830] sm:$0xff]  ;;  %2777 = vmatpush.msrb.mxu3 %v1558_v3  ;;  %2800 = vmatpush.msra.mxu0 %v639_v4  ;;  %v1207_v45 = vld [vmem:[%s7054_s3 + $0x1238] sm:$0xff] }
 0x29f   :  { %v1550_v7 = vld [vmem:[%s7054_s3 + $0x1cf0] sm:$0xff]  ;;  %2817 = vmatpush.msra.mxu1 %v791_v5  ;;  %2761 = vmatpush.msrb.mxu2 %v1398_v6  ;;  %v1359_v17 = vld [vmem:[%s7054_s3 + $0x16f8] sm:$0xff] }
 0x2a0   :  { %2778 = vmatpush.msrb.mxu3 %v1550_v7  ;;  %2801 = vmatpush.msra.mxu0 %v631_v8  ;;  %v1542_v9 = vld [vmem:[%s7054_s3 + $0x1cb0] sm:$0xff]  ;;  %v943_v41 = vld [vmem:[%s7054_s3 + $0x9f8] sm:$0xff] }
 0x2a1   :  { %2818 = vmatpush.msra.mxu1 %v783_v30  ;;  %2762 = vmatmul.f32.vlgmr.msrb.gmra.mxu2 %v4527_v14  ;;  %v1534_v15 = vld [vmem:[%s7054_s3 + $0x1c70] sm:$0xff]  ;;  %v1095_v42 = vld [vmem:[%s7054_s3 + $0xeb8] sm:$0xff] }
 0x2a2   :  { %2802 = vmatmul.f32.vlgmr.msra.gmra.mxu0 %v4145_v50  ;;  %2826 = vmatpush.msra.mxu2 %v1007_v44  ;;  %v991_v50 = vld [vmem:[%s7054_s3 + $0xb78] sm:$0xff]  ;;  %v1526_v19 = vld [vmem:[%s7054_s3 + $0x1c30] sm:$0xff] }
 0x2a3   :  { %2866 = vmatpush.msrb.mxu0 %v1263_v46  ;;  %2779 = vmatpush.msrb.mxu3 %v1542_v9  ;;  %v1199_v43 = vld [vmem:[%s7054_s3 + $0x11f8] sm:$0xff] }
 0x2a4   :  { %2819 = vmatpush.msra.mxu1 %v775_v11  ;;  %2827 = vmatpush.msra.mxu2 %v999_v51  ;;  %v1351_v47 = vld [vmem:[%s7054_s3 + $0x16b8] sm:$0xff] }
 0x2a5   :  { %2867 = vmatpush.msrb.mxu0 %v1255_v12  ;;  %2780 = vmatpush.msrb.mxu3 %v1534_v15  ;;  %v935_v48 = vld [vmem:[%s7054_s3 + $0x9b8] sm:$0xff] }
 0x2a6   :  { %2820 = vmatpush.msra.mxu1 %v767_v16  ;;  %2828 = vmatpush.msra.mxu2 %v991_v50  ;;  %v1087_v49 = vld [vmem:[%s7054_s3 + $0xe78] sm:$0xff] }
 0x2a7   :  { %2868 = vmatpush.msrb.mxu0 %v1247_v18  ;;  %2781 = vmatpush.msrb.mxu3 %v1526_v19  ;;  %v1191_v52 = vld [vmem:[%s7054_s3 + $0x11b8] sm:$0xff] }
 0x2a8   :  { %2821 = vmatpush.msra.mxu1 %v759_v61  ;;  %2782 = vmatmul.f32.vlgmr.msrb.gmra.mxu3 %v4556_v29  ;;  %v1343_v55 = vld [vmem:[%s7054_s3 + $0x1678] sm:$0xff] }
 0x2a9   :  { %2822 = vmatmul.f32.vlgmr.msra.gmra.mxu1 %v4170_v63  ;;  %2829 = vmatpush.msra.mxu2 %v983_v26  ;;  %v967_v63 = vld [vmem:[%s7054_s3 + $0xab8] sm:$0xff] }
 0x2aa   :  { %2846 = vmatpush.msra.mxu3 %v1135_v20  ;;  %2869 = vmatpush.msrb.mxu0 %v1239_v21  ;;  %v927_v56 = vld [vmem:[%s7054_s3 + $0x978] sm:$0xff] }
 0x2ab   :  { %2886 = vmatpush.msrb.mxu1 %v1391_v22  ;;  %2830 = vmatpush.msra.mxu2 %v975_v23  ;;  %v1079_v57 = vld [vmem:[%s7054_s3 + $0xe38] sm:$0xff] }
 0x2ac   :  { %2847 = vmatpush.msra.mxu3 %v1127_v25  ;;  %2870 = vmatpush.msrb.mxu0 %v1231_v28  ;;  %v1183_v10 = vld [vmem:[%s7054_s3 + $0x1178] sm:$0xff] }
 0x2ad   :  { %2887 = vmatpush.msrb.mxu1 %v1383_v31  ;;  %2831 = vmatpush.msra.mxu2 %v967_v63  ;;  %v1335_v58 = vld [vmem:[%s7054_s3 + $0x1638] sm:$0xff] }
 0x2ae   :  { %2848 = vmatpush.msra.mxu3 %v1119_v32  ;;  %2871 = vmatpush.msrb.mxu0 %v1223_v33  ;;  %v919_v59 = vld [vmem:[%s7054_s3 + $0x938] sm:$0xff] }
 0x2af   :  { %2888 = vmatpush.msrb.mxu1 %v1375_v54  ;;  %2832 = vmatpush.msra.mxu2 %v959_v34  ;;  %v1071_v60 = vld [vmem:[%s7054_s3 + $0xdf8] sm:$0xff] }
 0x2b0   :  { %2849 = vmatpush.msra.mxu3 %v1111_v35  ;;  %2872 = vmatpush.msrb.mxu0 %v1215_v36  ;;  %v1175_v62 = vld [vmem:[%s7054_s3 + $0x1138] sm:$0xff] }
 0x2b1   :  { %2889 = vmatpush.msrb.mxu1 %v1367_v37  ;;  %2833 = vmatpush.msra.mxu2 %v951_v38  ;;  %v1327_v0 = vld [vmem:[%s7054_s3 + $0x15f8] sm:$0xff] }
 0x2b2   :  { %2850 = vmatpush.msra.mxu3 %v1103_v39  ;;  %2873 = vmatpush.msrb.mxu0 %v1207_v45  ;;  %v911_v1 = vld [vmem:[%s7054_s3 + $0x8f8] sm:$0xff] }
 0x2b3   :  { %2890 = vmatpush.msrb.mxu1 %v1359_v17  ;;  %2834 = vmatpush.msra.mxu2 %v943_v41  ;;  %v1063_v2 = vld [vmem:[%s7054_s3 + $0xdb8] sm:$0xff] }
 0x2b4   :  { %2851 = vmatpush.msra.mxu3 %v1095_v42  ;;  %2874 = vmatpush.msrb.mxu0 %v1199_v43  ;;  %v1167_v3 = vld [vmem:[%s7054_s3 + $0x10f8] sm:$0xff] }
 0x2b5   :  { %2891 = vmatpush.msrb.mxu1 %v1351_v47  ;;  %2835 = vmatpush.msra.mxu2 %v935_v48  ;;  %v1319_v4 = vld [vmem:[%s7054_s3 + $0x15b8] sm:$0xff] }
 0x2b6   :  { %2852 = vmatpush.msra.mxu3 %v1087_v49  ;;  %2875 = vmatpush.msrb.mxu0 %v1191_v52  ;;  %v903_v5 = vld [vmem:[%s7054_s3 + $0x8b8] sm:$0xff] }
 0x2b7   :  { %2892 = vmatpush.msrb.mxu1 %v1343_v55  ;;  %2836 = vmatpush.msra.mxu2 %v927_v56  ;;  %v1055_v6 = vld [vmem:[%s7054_s3 + $0xd78] sm:$0xff] }
 0x2b8   :  { %2853 = vmatpush.msra.mxu3 %v1079_v57  ;;  %2876 = vmatpush.msrb.mxu0 %v1183_v10  ;;  %v1159_v7 = vld [vmem:[%s7054_s3 + $0x10b8] sm:$0xff]  ;;  %v2163_v57 = vpop.f32.mrf.mxu0  ;;  %v2183_v10 = vpop.f32.mrf.mxu1 }
 0x2b9   :  { %2893 = vmatpush.msrb.mxu1 %v1335_v58  ;;  %2837 = vmatpush.msra.mxu2 %v919_v59  ;;  %v1311_v8 = vld [vmem:[%s7054_s3 + $0x1578] sm:$0xff]  ;;  %v2203_v58 = vpop.f32.mrf.mxu2  ;;  %v2223_v59 = vpop.f32.mrf.mxu3 }
 0x2ba   :  { %2854 = vmatpush.msra.mxu3 %v1071_v60  ;;  %2877 = vmatpush.msrb.mxu0 %v1175_v62  ;;  %v895_v30 = vld [vmem:[%s7054_s3 + $0x878] sm:$0xff] }
 0x2bb   :  { %2894 = vmatpush.msrb.mxu1 %v1327_v0  ;;  %2838 = vmatpush.msra.mxu2 %v911_v1  ;;  %v1047_v44 = vld [vmem:[%s7054_s3 + $0xd38] sm:$0xff] }
 0x2bc   :  { %2855 = vmatpush.msra.mxu3 %v1063_v2  ;;  %2878 = vmatpush.msrb.mxu0 %v1167_v3  ;;  %v1151_v46 = vld [vmem:[%s7054_s3 + $0x1078] sm:$0xff] }
 0x2bd   :  { %2895 = vmatpush.msrb.mxu1 %v1319_v4  ;;  %2839 = vmatpush.msra.mxu2 %v903_v5  ;;  %v1303_v9 = vld [vmem:[%s7054_s3 + $0x1538] sm:$0xff] }
 0x2be   :  { %2856 = vmatpush.msra.mxu3 %v1055_v6  ;;  %2879 = vmatpush.msrb.mxu0 %v1159_v7  ;;  %v887_v11 = vld [vmem:[%s7054_s3 + $0x838] sm:$0xff] }
 0x2bf   :  { %2896 = vmatpush.msrb.mxu1 %v1311_v8  ;;  %v1039_v51 = vld [vmem:[%s7054_s3 + $0xcf8] sm:$0xff]  ;;  %2840 = vmatpush.msra.mxu2 %v895_v30 }
 0x2c0   :  { %2857 = vmatpush.msra.mxu3 %v1047_v44  ;;  %v1143_v12 = vld [vmem:[%s7054_s3 + $0x1038] sm:$0xff]  ;;  %2880 = vmatpush.msrb.mxu0 %v1151_v46  ;;  %v2243_v60 = vpop.f32.mrf.mxu0  ;;  %v2263_v62 = vpop.f32.mrf.mxu1 }
 0x2c1   :  { %v1295_v15 = vld [vmem:[%s7054_s3 + $0x14f8] sm:$0xff]  ;;  %2897 = vmatpush.msrb.mxu1 %v1303_v9  ;;  %2841 = vmatpush.msra.mxu2 %v887_v11  ;;  %v7036_v0 = vpop.f32.mrf.mxu3 }
 0x2c2   :  { %2858 = vmatpush.msra.mxu3 %v1039_v51  ;;  %v1519_v16 = vld [vmem:[%s7054_s3 + $0x1bf8] sm:$0xff]  ;;  %2881 = vmatpush.msrb.mxu0 %v1143_v12 }
 0x2c3   :  { %v1031_v50 = vld [vmem:[%s7054_s3 + $0xcb8] sm:$0xff]  ;;  %2898 = vmatpush.msrb.mxu1 %v1295_v15  ;;  %2842 = vmatmul.f32.vlgmr.msra.gmra.mxu2 %v4207_v13 }
 0x2c4   :  { %v1287_v18 = vld [vmem:[%s7054_s3 + $0x14b8] sm:$0xff]  ;;  %2882 = vmatmul.f32.vlgmr.msrb.gmra.mxu0 %v4401_v27  ;;  %2906 = vmatpush.msrb.mxu2 %v1519_v16  ;;  %v2993_v16 = vld [vmem:[%s7056_s4] sm:$0xff] }
 0x2c5   :  { %v1511_v19 = vld [vmem:[%s7054_s3 + $0x1bb8] sm:$0xff]  ;;  %2859 = vmatpush.msra.mxu3 %v1031_v50  ;;  %2899 = vmatpush.msrb.mxu1 %v1287_v18  ;;  %v1653_v50 = vperm.slane %v2993_v16, 3 }
 0x2c6   :  { %v1023_v61 = vld [vmem:[%s7054_s3 + $0xc78] sm:$0xff]  ;;  %2907 = vmatpush.msrb.mxu2 %v1511_v19 }
 0x2c7   :  { %v1279_v26 = vld [vmem:[%s7054_s3 + $0x1478] sm:$0xff]  ;;  %2860 = vmatpush.msra.mxu3 %v1023_v61  ;;  %v1654_v61 = vperm.slane %v2993_v16, 4 }
 0x2c8   :  { %v1503_v13 = vld [vmem:[%s7054_s3 + $0x1b78] sm:$0xff]  ;;  %2900 = vmatpush.msrb.mxu1 %v1279_v26  ;;  %v2323_v1 = vpop.f32.mrf.mxu0  ;;  %v2343_v2 = vpop.f32.mrf.mxu1  ;;  %v2164_v26 = vadd.f32 %v2163_v57, %v1653_v50 }
 0x2c9   :  { %v1015_v27 = vld [vmem:[%s7054_s3 + $0xc38] sm:$0xff]  ;;  %2908 = vmatpush.msrb.mxu2 %v1503_v13  ;;  %v2383_v4 = vpop.f32.mrf.mxu3 }
 0x2ca   :  { %v1271_v20 = vld [vmem:[%s7054_s3 + $0x1438] sm:$0xff]  ;;  %2861 = vmatpush.msra.mxu3 %v1015_v27  ;;  %v1655_v27 = vperm.slane %v2993_v16, 5 }
 0x2cb   :  { %v1495_v21 = vld [vmem:[%s7054_s3 + $0x1b38] sm:$0xff]  ;;  %2901 = vmatpush.msrb.mxu1 %v1271_v20  ;;  %2862 = vmatmul.f32.vlgmr.msra.gmra.mxu3 %v4231_v24  ;;  %v2184_v20 = vadd.f32 %v2183_v10, %v2164_v26 }
 0x2cc   :  { %v1647_v22 = vld [vmem:[%s7054_s3 + $0x1ff8] sm:$0xff]  ;;  %2902 = vmatmul.f32.vlgmr.msrb.gmra.mxu1 %v4431_v40  ;;  %2909 = vmatpush.msrb.mxu2 %v1495_v21 }
 0x2cd   :  { %v1487_v23 = vld [vmem:[%s7054_s3 + $0x1af8] sm:$0xff]  ;;  %2926 = vmatpush.msrb.mxu3 %v1647_v22  ;;  %v2324_v22 = vadd.f32 %v2323_v1, %v1654_v61 }
 0x2ce   :  { %v1639_v25 = vld [vmem:[%s7054_s3 + $0x1fb8] sm:$0xff]  ;;  %2910 = vmatpush.msrb.mxu2 %v1487_v23  ;;  %v1656_v23 = vperm.slane %v2993_v16, 6 }
 0x2cf   :  { %v1479_v28 = vld [vmem:[%s7054_s3 + $0x1ab8] sm:$0xff]  ;;  %2927 = vmatpush.msrb.mxu3 %v1639_v25  ;;  %v2204_v25 = vadd.f32 %v2203_v58, %v2184_v20 }
 0x2d0   :  { %v1631_v24 = vld [vmem:[%s7054_s3 + $0x1f78] sm:$0xff]  ;;  %2911 = vmatpush.msrb.mxu2 %v1479_v28  ;;  %v2403_v5 = vpop.f32.mrf.mxu0  ;;  %v2423_v6 = vpop.f32.mrf.mxu1 }
 0x2d1   :  { %v1471_v40 = vld [vmem:[%s7054_s3 + $0x1a78] sm:$0xff]  ;;  %2928 = vmatpush.msrb.mxu3 %v1631_v24  ;;  %v2463_v8 = vpop.f32.mrf.mxu3  ;;  %v2344_v24 = vadd.f32 %v2343_v2, %v2324_v22 }
 0x2d2   :  { %v1623_v31 = vld [vmem:[%s7054_s3 + $0x1f38] sm:$0xff]  ;;  %2912 = vmatpush.msrb.mxu2 %v1471_v40 }
 0x2d3   :  { %v1463_v63 = vld [vmem:[%s7054_s3 + $0x1a38] sm:$0xff]  ;;  %2929 = vmatpush.msrb.mxu3 %v1623_v31  ;;  %v12_v31 = vstv %s7058_s6 }
 0x2d4   :  { %v1615_v32 = vld [vmem:[%s7054_s3 + $0x1ef8] sm:$0xff]  ;;  %2913 = vmatpush.msrb.mxu2 %v1463_v63  ;;  %v2224_v63 = vadd.f32 %v2223_v59, %v2204_v25  ;;  %13 = vst [vmem:[#allocation2] sm:$0x1] %v12_v31 }
 0x2d5   :  { %v1455_v33 = vld [vmem:[%s7054_s3 + $0x19f8] sm:$0xff]  ;;  %2930 = vmatpush.msrb.mxu3 %v1615_v32 }
 0x2d6   :  { %v1607_v54 = vld [vmem:[%s7054_s3 + $0x1eb8] sm:$0xff]  ;;  %2914 = vmatpush.msrb.mxu2 %v1455_v33 }
 0x2d7   :  { %v1447_v34 = vld [vmem:[%s7054_s3 + $0x19b8] sm:$0xff]  ;;  %2931 = vmatpush.msrb.mxu3 %v1607_v54 }
 0x2d8   :  { %v1599_v35 = vld [vmem:[%s7054_s3 + $0x1e78] sm:$0xff]  ;;  %2915 = vmatpush.msrb.mxu2 %v1447_v34  ;;  %v2483_v30 = vpop.f32.mrf.mxu0  ;;  %v2503_v44 = vpop.f32.mrf.mxu1 }
 0x2d9   :  { %v1439_v36 = vld [vmem:[%s7054_s3 + $0x1978] sm:$0xff]  ;;  %2932 = vmatpush.msrb.mxu3 %v1599_v35  ;;  %v2543_v46 = vpop.f32.mrf.mxu3  ;;  %v2484_v40 = vadd.f32 %v2483_v30, %v1655_v27 }
 0x2da   :  { %v1591_v37 = vld [vmem:[%s7054_s3 + $0x1e38] sm:$0xff]  ;;  %2916 = vmatpush.msrb.mxu2 %v1439_v36 }
 0x2db   :  { %v1431_v38 = vld [vmem:[%s7054_s3 + $0x1938] sm:$0xff]  ;;  %2933 = vmatpush.msrb.mxu3 %v1591_v37  ;;  %v2504_v54 = vadd.f32 %v2503_v44, %v2484_v40  ;;  %v2992_v40 = vld [vmem:[#allocation2] ss:$0 sm:$0xff] }
 0x2dc   :  { %v1583_v39 = vld [vmem:[%s7054_s3 + $0x1df8] sm:$0xff]  ;;  %2917 = vmatpush.msrb.mxu2 %v1431_v38 }
 0x2dd   :  { %v1423_v45 = vld [vmem:[%s7054_s3 + $0x18f8] sm:$0xff]  ;;  %2934 = vmatpush.msrb.mxu3 %v1583_v39  ;;  %v1657_v39 = vperm.slane %v2993_v16, 7 }
 0x2de   :  { %v1575_v17 = vld [vmem:[%s7054_s3 + $0x1db8] sm:$0xff]  ;;  %2918 = vmatpush.msrb.mxu2 %v1423_v45  ;;  %v2244_v45 = vadd.f32 %v2243_v60, %v2224_v63  ;;  %v2994_v60 = vld [vmem:[%s7057_s5] sm:$0xff] }
 0x2df   :  { %v1415_v41 = vld [vmem:[%s7054_s3 + $0x18b8] sm:$0xff]  ;;  %2935 = vmatpush.msrb.mxu3 %v1575_v17  ;;  %v2954_v61 = vperm.slane %v2994_v60, 6 }
 0x2e0   :  { %v1567_v42 = vld [vmem:[%s7054_s3 + $0x1d78] sm:$0xff]  ;;  %2919 = vmatpush.msrb.mxu2 %v1415_v41  ;;  %v2563_v9 = vpop.f32.mrf.mxu0  ;;  %v2583_v11 = vpop.f32.mrf.mxu1 }
 0x2e1   :  { %v1407_v43 = vld [vmem:[%s7054_s3 + $0x1878] sm:$0xff]  ;;  %2936 = vmatpush.msrb.mxu3 %v1567_v42 }
 0x2e2   :  { %v1559_v47 = vld [vmem:[%s7054_s3 + $0x1d38] sm:$0xff]  ;;  %2920 = vmatpush.msrb.mxu2 %v1407_v43 }
 0x2e3   :  { %v1399_v48 = vld [vmem:[%s7054_s3 + $0x1838] sm:$0xff]  ;;  %2937 = vmatpush.msrb.mxu3 %v1559_v47 }
 0x2e4   :  { %v1551_v49 = vld [vmem:[%s7054_s3 + $0x1cf8] sm:$0xff]  ;;  %2921 = vmatpush.msrb.mxu2 %v1399_v48 }
 0x2e5   :  { %v1543_v52 = vld [vmem:[%s7054_s3 + $0x1cb8] sm:$0xff]  ;;  %2938 = vmatpush.msrb.mxu3 %v1551_v49  ;;  %2922 = vmatmul.f32.vlgmr.msrb.gmra.mxu2 %v4527_v14  ;;  %v2283_v14 = vpop.f32.mrf.mxu2 }
 0x2e6   :  { %v1535_v55 = vld [vmem:[%s7054_s3 + $0x1c78] sm:$0xff] }
 0x2e7   :  { %2939 = vmatpush.msrb.mxu3 %v1543_v52  ;;  %v1527_v56 = vld [vmem:[%s7054_s3 + $0x1c38] sm:$0xff]  ;;  %v2623_v12 = vpop.f32.mrf.mxu3  ;;  %v2264_v52 = vadd.f32 %v2263_v62, %v2244_v45  ;;  %v2952_v62 = vperm.slane %v2994_v60, 4 }
 0x2e8   :  { %v2643_v15 = vpop.f32.mrf.mxu0  ;;  %v2663_v18 = vpop.f32.mrf.mxu1 }
 0x2e9   :  { %2940 = vmatpush.msrb.mxu3 %v1535_v55  ;;  %v2644_v34 = vadd.f32 %v2643_v15, %v1656_v23  ;;  %v2284_v10 = vadd.f32 %v2283_v14, %v2264_v52 }
 0x2eb   :  { %2941 = vmatpush.msrb.mxu3 %v1527_v56  ;;  %v2664_v38 = vadd.f32 %v2663_v18, %v2644_v34 }
 0x2ec   :  { %2942 = vmatmul.f32.vlgmr.msrb.gmra.mxu3 %v4556_v29 }
 0x2ed   :  { %v2363_v3 = vpop.f32.mrf.mxu2 }
 0x2ee   :  { %v2364_v33 = vadd.f32 %v2363_v3, %v2344_v24  ;;  %v2304_v3 = vadd.f32 %v7036_v0, %v2284_v10 }
 0x2f0   :  { %v2384_v36 = vadd.f32 %v2383_v4, %v2364_v33  ;;  %v2951_v4 = vperm.slane %v2994_v60, 3 }
 0x2f2   :  { %v2404_v47 = vadd.f32 %v2403_v5, %v2384_v36  ;;  %v2967_v15 = vmul.f32 %v2951_v4, %v2304_v3 }
 0x2f4   :  { %v2424_v59 = vadd.f32 %v2423_v6, %v2404_v47  ;;  %v2953_v6 = vperm.slane %v2994_v60, 5  ;;  %v2974_v27 = vadd.f32 %v5992_v53, %v2967_v15 }
 0x2f5   :  { %v2443_v7 = vpop.f32.mrf.mxu2 }
 0x2f6   :  { %v2444_v30 = vadd.f32 %v2443_v7, %v2424_v59 }
 0x2fc   :  { %v2723_v21 = vpop.f32.mrf.mxu0 }
 0x2fd   :  { %v2523_v29 = vpop.f32.mrf.mxu2 }
 0x2fe   :  { %v2524_v37 = vadd.f32 %v2523_v29, %v2504_v54  ;;  %v2464_v29 = vadd.f32 %v2463_v8, %v2444_v30 }
 0x300   :  { %v2544_v41 = vadd.f32 %v2543_v46, %v2524_v37 }
 0x302   :  { %v2564_v56 = vadd.f32 %v2563_v9, %v2544_v41 }
 0x304   :  { %v2743_v28 = vpop.f32.mrf.mxu1  ;;  %v2584_v5 = vadd.f32 %v2583_v11, %v2564_v56 }
 0x305   :  { %v2603_v51 = vpop.f32.mrf.mxu2 }
 0x306   :  { %v2604_v46 = vadd.f32 %v2603_v51, %v2584_v5  ;;  %v2955_v51 = vperm.slane %v2994_v60, 7 }
 0x308   :  { %v2624_v16 = vadd.f32 %v2623_v12, %v2604_v46 }
 0x309   :  { %v2703_v13 = vpop.f32.mrf.mxu3 }
 0x30a   :  { %v2969_v7 = vmul.f32 %v2953_v6, %v2624_v16 }
 0x30d   :  { %v2683_v19 = vpop.f32.mrf.mxu2 }
 0x30e   :  { %v2684_v42 = vadd.f32 %v2683_v19, %v2664_v38  ;;  %v2968_v19 = vmul.f32 %v2952_v62, %v2464_v29 }
 0x310   :  { %v2704_v48 = vadd.f32 %v2703_v13, %v2684_v42  ;;  %v2975_v20 = vadd.f32 %v2974_v27, %v2968_v19 }
 0x312   :  { %v2724_v1 = vadd.f32 %v2723_v21, %v2704_v48  ;;  %v2976_v25 = vadd.f32 %v2975_v20, %v2969_v7 }
 0x314   :  { %v2744_v9 = vadd.f32 %v2743_v28, %v2724_v1 }
 0x31f   :  { %v2803_v17 = vpop.f32.mrf.mxu0 }
 0x320   :  { %v2804_v49 = vadd.f32 %v2803_v17, %v1657_v39 }
 0x324   :  { %v2763_v32 = vpop.f32.mrf.mxu2 }
 0x325   :  { %v2764_v50 = vadd.f32 %v2763_v32, %v2744_v9 }
 0x326   :  { %v2823_v43 = vpop.f32.mrf.mxu1 }
 0x327   :  { %v2824_v57 = vadd.f32 %v2823_v43, %v2804_v49 }
 0x32b   :  { %v2783_v35 = vpop.f32.mrf.mxu3 }
 0x32c   :  { %v2784_v0 = vadd.f32 %v2783_v35, %v2764_v50 }
 0x32e   :  { %v2970_v8 = vmul.f32 %v2954_v61, %v2784_v0 }
 0x330   :  { %v2977_v28 = vadd.f32 %v2976_v25, %v2970_v8 }
 0x341   :  { %v2883_v14 = vpop.f32.mrf.mxu0 }
 0x346   :  { %v2843_v55 = vpop.f32.mrf.mxu2 }
 0x347   :  { %v2844_v2 = vadd.f32 %v2843_v55, %v2824_v57 }
 0x349   :  { %v2903_v26 = vpop.f32.mrf.mxu1 }
 0x34e   :  { %v2863_v58 = vpop.f32.mrf.mxu3 }
 0x34f   :  { %v2864_v44 = vadd.f32 %v2863_v58, %v2844_v2 }
 0x351   :  { %v2884_v18 = vadd.f32 %v2883_v14, %v2864_v44 }
 0x353   :  { %v2904_v11 = vadd.f32 %v2903_v26, %v2884_v18 }
 0x368   :  { %v2923_v13 = vpop.f32.mrf.mxu2 }
 0x369   :  { %v2924_v21 = vadd.f32 %v2923_v13, %v2904_v11 }
 0x36f   :  { %v2943_v22 = vpop.f32.mrf.mxu3 }
 0x370   :  { %v2944_v23 = vadd.f32 %v2943_v22, %v2924_v21 }
 0x372   :  { %v2971_v12 = vmul.f32 %v2955_v51, %v2944_v23 }
 0x374   :  { %v2978_v24 = vadd.f32 %v2977_v28, %v2971_v12 }
 0x376   :  { %2979 = vadd.xlane.f32.xlu0 %v2978_v24 }
 0x3e9   :  { %v2980_v31 = vpop.xlane.xlu0 %2979 }
 0x3ea   :  { %v2985_v63 = vadd.f32 %v2992_v40, %v2980_v31 }
 0x3ec   :  { %2987 = vst.msk [vmem:[%s7059_s7] sm:$0xff] %vm2986_vm0, %v2985_v63 }

</bundles_post_ra>
